<compile_context>
chip_gen: v7x
topology: tpu7x:2x2x1
jax: 0.10.0
libtpu: 0.0.40
codegen_flags: <defaults>
</compile_context>

<pallas_src>
import functools

import jax
import jax.numpy as jnp
from jax.experimental import pallas as pl
from jax.experimental.pallas import tpu as pltpu


_QUAD = ((0, 0), (0, 1), (1, 0), (1, 1))

# torch.cat order in the reference module.
_BRANCHES = ["head2", "head3", "head4", "head5",
             "head2_1", "head3_1", "head4_1", "head5_1"]


# ----------------------------------------------------------------------------
# Pallas kernel: one (branch, row-tile) step of
#   ConvTranspose2d(k=2s, stride=s, pad=s//2) + folded-BN + ReLU
# as 4 quadrant matmuls with the 2x2 window taps fused into K.
# ----------------------------------------------------------------------------
def _deconv_kernel(x_ref, w_ref, shift_ref, o_ref, *, th, W, cin, qw):
    """
    x_ref:     [N, H+2, W+2, cin]  bf16  whole zero-padded NHWC input (per branch)
    w_ref:     [4, 4*cin, qw]      bf16  per-quadrant weights, rows ordered
                                         (tap, cin), BN scale folded in
    shift_ref: [1, 4*qw]           f32   folded BN shift, columns (qy,qx,ry,rx,c)
    o_ref:     [N, th, W, 4*qw]          output row-tile, columns (qy,qx,ry,rx,c)
    """
    n = x_ref.shape[0]
    tm = n * th * W

    # Dynamic-start band load covering this row tile + 1-px halo.
    row0 = pl.multiple_of(pl.program_id(1) * th, th)
    band = x_ref[:, pl.ds(row0, th + 2), :, :]            # [n, th+2, W+2, cin]

    # 9 unique shifted-window tiles (deduplicated; previously 16 materializations).
    tiles = []
    for dy in range(3):
        rows = band[:, dy:dy + th, :, :]                   # [n, th, W+2, cin]
        for dx in range(3):
            tiles.append(rows[:, :, dx:dx + W, :].reshape(tm, cin))

    # 4 quadrants, ONE MXU call each with K = 4*cin (taps fused into K).
    outs = []
    for qi, (qy, qx) in enumerate(_QUAD):
        a = jnp.concatenate(
            [tiles[(qy + r) * 3 + (qx + c)] for (r, c) in _QUAD], axis=-1)
        outs.append(jnp.dot(a, w_ref[qi], preferred_element_type=jnp.float32))

    # Single lane-dense [tm, 4*qw] store; shift broadcast + ReLU applied once.
    y = jnp.concatenate(outs, axis=-1) + shift_ref[...]
    y = jnp.maximum(y, 0.0).astype(o_ref.dtype)
    o_ref[...] = y.reshape(n, th, W, 4 * qw)


def _pick_th(H, N, W, max_rows=1024):
    """Largest divisor th of H with N*th*W <= max_rows (fallback 1)."""
    best = 1
    for cand in range(1, H + 1):
        if H % cand == 0 and N * cand * W <= max_rows:
            best = cand
    return best


def _deconv_stage(x, w4, shift, *, th, out_dtype):
    """One deconv+BN+ReLU stage for all 8 branches in a single pallas_call.

    x:     [B, N, H, W, cin]   bf16  (B = 8 branches, NHWC, unpadded)
    w4:    [B, 4, 4*cin, qw]   bf16
    shift: [B, 1, 4*qw]        f32
    returns [B, N, H, W, 4*qw] in out_dtype, columns ordered (qy,qx,ry,rx,c).
    """
    B, N, H, W, cin = x.shape
    qw = w4.shape[-1]
    assert H % th == 0
    nj = H // th

    xp = jnp.pad(x, ((0, 0), (0, 0), (1, 1), (1, 1), (0, 0)))

    kernel = functools.partial(_deconv_kernel, th=th, W=W, cin=cin, qw=qw)
    return pl.pallas_call(
        kernel,
        out_shape=jax.ShapeDtypeStruct((B, N, H, W, 4 * qw), out_dtype),
        grid=(B, nj),                                      # branch outer, M inner
        in_specs=[
            # Whole padded input per branch, constant across M tiles -> one DMA.
            pl.BlockSpec((None, N, H + 2, W + 2, cin), lambda b, j: (b, 0, 0, 0, 0)),
            # Weights / shift: VMEM-resident across M tiles.
            pl.BlockSpec((None, 4, 4 * cin, qw), lambda b, j: (b, 0, 0, 0)),
            pl.BlockSpec((None, 1, 4 * qw), lambda b, j: (b, 0, 0)),
        ],
        out_specs=pl.BlockSpec((None, N, th, W, 4 * qw), lambda b, j: (b, 0, j, 0, 0)),
        compiler_params=pltpu.CompilerParams(
            dimension_semantics=("parallel", "parallel"),
            vmem_limit_bytes=64 * 1024 * 1024),
    )(xp, w4, shift)


def _pixel_shuffle(y, *, s, cout):
    """[B,N,H,W,4*qw] (columns (qy,qx,ry,rx,c)) -> [B,N,H*s,W*s,cout]."""
    B, N, H, W, _ = y.shape
    h = s // 2
    y = y.reshape(B, N, H, W, 2, 2, h, h, cout)
    y = y.transpose(0, 1, 2, 4, 6, 3, 5, 7, 8)
    return y.reshape(B, N, H * s, W * s, cout)


# ----------------------------------------------------------------------------
# Host-side parameter preparation (weight rearrangement + BN folding, once)
# ----------------------------------------------------------------------------
def _fold_quadrant_weights(w, gamma, beta, mean, var, *, k, s, eps=1e-5):
    """PyTorch ConvTranspose2d weight [cin, cout, k, k] (k=2s, pad=s//2) ->
    (w4 [4, 4*cin, (s//2)**2*cout] bf16 with BN scale folded,
     shift [1, 4*(s//2)**2*cout] f32)."""
    assert k == 2 * s
    p = s // 2
    h = s // 2
    cin, cout = w.shape[0], w.shape[1]

    scale = gamma / jnp.sqrt(var + eps)
    shift = beta - mean * scale

    wq = jnp.zeros((4, 4, cin, h, h, cout), jnp.float32)
    for qi, (qy, qx) in enumerate(_QUAD):          # quadrant = which 2x2 window
        for ti, (r, c) in enumerate(_QUAD):        # tap inside the window
            for ry in range(h):
                ky = (qy * h + ry) + p - s * (qy + r - 1)
                for rx in range(h):
                    kx = (qx * h + rx) + p - s * (qx + c - 1)
                    wq = wq.at[qi, ti, :, ry, rx, :].set(w[:, :, ky, kx])
    wq = wq * scale[None, None, None, None, None, :]          # fold BN scale
    w4 = wq.reshape(4, 4 * cin, h * h * cout).astype(jnp.bfloat16)
    shift4 = jnp.tile(shift, 4 * h * h).reshape(1, 4 * h * h * cout).astype(jnp.float32)
    return w4, shift4


def prepare_params(params):
    """Stack the 8 branches' folded weights/shifts for the branch-fused kernels."""
    w1, s1, w2, s2 = [], [], [], []
    for name in _BRANCHES:
        pr = params[name]
        wa, sa = _fold_quadrant_weights(pr["w1"], pr["g1"], pr["b1"],
                                        pr["m1"], pr["v1"], k=4, s=2)
        wb, sb = _fold_quadrant_weights(pr["w2"], pr["g2"], pr["b2"],
                                        pr["m2"], pr["v2"], k=8, s=4)
        w1.append(wa); s1.append(sa); w2.append(wb); s2.append(sb)
    return (jnp.stack(w1), jnp.stack(s1), jnp.stack(w2), jnp.stack(s2))


# ----------------------------------------------------------------------------
# Forward pass (NCHW in / NCHW out, matching the PyTorch module)
# ----------------------------------------------------------------------------
def bimla_head_forward(prepared, mla_b2, mla_b3, mla_b4, mla_b5,
                       mla_p2, mla_p3, mla_p4, mla_p5, max_rows=1024):
    w1, sh1, w2, sh2 = prepared
    # Stack branch inputs in torch.cat order: head2..head5 use p2..p5,
    # head2_1..head5_1 use b2..b5.
    x = jnp.stack([mla_p2, mla_p3, mla_p4, mla_p5,
                   mla_b2, mla_b3, mla_b4, mla_b5], axis=0)      # [8,N,Cin,H,W]
    x = jnp.transpose(x, (0, 1, 3, 4, 2)).astype(jnp.bfloat16)   # [8,N,H,W,Cin]
    B, N, H, W, _ = x.shape

    # Stage 1: k=4, s=2 (h=1, qw == cout1)
    cout1 = sh1.shape[-1] // 4
    y1 = _deconv_stage(x, w1, sh1, th=_pick_th(H, N, W, max_rows),
                       out_dtype=jnp.bfloat16)                   # [8,N,H,W,4*cout1]
    y1 = _pixel_shuffle(y1, s=2, cout=cout1)                     # [8,N,2H,2W,cout1]

    # Stage 2: k=8, s=4 (h=2, 4*qw == 16*cout2), bf16 writeback
    H2, W2 = 2 * H, 2 * W
    cout2 = sh2.shape[-1] // 16
    y2 = _deconv_stage(y1, w2, sh2, th=_pick_th(H2, N, W2, max_rows),
                       out_dtype=jnp.bfloat16)                   # [8,N,H2,W2,16*cout2]

    # Fused: stage-2 pixel shuffle + 8-branch channel concat + NCHW + f32 cast
    # (one XLA pass over the largest tensor).
    y2 = y2.reshape(B, N, H2, W2, 2, 2, 2, 2, cout2)
    out = jnp.transpose(y2, (1, 0, 8, 2, 4, 6, 3, 5, 7))
    return out.reshape(N, B * cout2, 4 * H2, 4 * W2).astype(jnp.float32)


# ----------------------------------------------------------------------------
# Pure-JAX reference (validated 3x3 zero-tap formulation) for self-checking,
# with the same bf16 quantization points as the Pallas path.
# ----------------------------------------------------------------------------
def _ref_build_deconv_mat(w, k, s, p):
    cin, cout = w.shape[0], w.shape[1]
    wmat = jnp.zeros((3, 3, cin, s, s, cout), jnp.float32)
    for ry in range(s):
        for dy in (-1, 0, 1):
            ky = ry + p - s * dy
            if not (0 <= ky < k):
                continue
            for rx in range(s):
                for dx in (-1, 0, 1):
                    kx = rx + p - s * dx
                    if not (0 <= kx < k):
                        continue
                    wmat = wmat.at[dy + 1, dx + 1, :, ry, rx, :].set(w[:, :, ky, kx])
    return wmat


def _ref_deconv_bn_relu(x, w, gamma, beta, mean, var, *, k, s, p,
                        out_dtype, eps=1e-5):
    n, hh, ww, cin = x.shape
    cout = w.shape[1]
    scale = gamma / jnp.sqrt(var + eps)
    shift = beta - mean * scale
    wmat = _ref_build_deconv_mat(w, k, s, p) * scale[None, None, None, None, None, :]
    wmat = wmat.reshape(9 * cin, s * s * cout).astype(jnp.bfloat16)
    xp = jnp.pad(x.astype(jnp.bfloat16), ((0, 0), (1, 1), (1, 1), (0, 0)))
    patches = jnp.stack([xp[:, dy:dy + hh, dx:dx + ww, :]
                         for dy in range(3) for dx in range(3)], axis=3)
    a = patches.reshape(n * hh * ww, 9 * cin)
    y = jnp.dot(a, wmat, preferred_element_type=jnp.float32)
    y = jnp.maximum(y + jnp.tile(shift, s * s)[None, :], 0.0).astype(out_dtype)
    y = y.reshape(n, hh, ww, s, s, cout).transpose(0, 1, 3, 2, 4, 5)
    return y.reshape(n, hh * s, ww * s, cout)


def _ref_forward(params, branch_inputs_nchw):
    outs = []
    for name, xin in zip(_BRANCHES, branch_inputs_nchw):
        pr = params[name]
        xx = jnp.transpose(xin, (0, 2, 3, 1))
        y = _ref_deconv_bn_relu(xx, pr["w1"], pr["g1"], pr["b1"], pr["m1"], pr["v1"],
                                k=4, s=2, p=1, out_dtype=jnp.bfloat16)
        y = _ref_deconv_bn_relu(y, pr["w2"], pr["g2"], pr["b2"], pr["m2"], pr["v2"],
                                k=8, s=4, p=2, out_dtype=jnp.bfloat16)
        outs.append(jnp.transpose(y, (0, 3, 1, 2)).astype(jnp.float32))
    return jnp.concatenate(outs, axis=1)


# ----------------------------------------------------------------------------
# Deterministic synthetic parameters (no checkpoint loading)
# ----------------------------------------------------------------------------
def init_params(key, mla_channels, mlahead_channels):
    params = {}
    for name in _BRANCHES:
        key, *ks = jax.random.split(key, 11)
        params[name] = {
            "w1": 0.05 * jax.random.normal(
                ks[0], (mla_channels, mlahead_channels, 4, 4), jnp.float32),
            "g1": 1.0 + 0.1 * jax.random.normal(ks[1], (mlahead_channels,), jnp.float32),
            "b1": 0.1 * jax.random.normal(ks[2], (mlahead_channels,), jnp.float32),
            "m1": 0.1 * jax.random.normal(ks[3], (mlahead_channels,), jnp.float32),
            "v1": 1.0 + 0.5 * jax.random.uniform(ks[4], (mlahead_channels,), jnp.float32),
            "w2": 0.05 * jax.random.normal(
                ks[5], (mlahead_channels, mlahead_channels, 8, 8), jnp.float32),
            "g2": 1.0 + 0.1 * jax.random.normal(ks[6], (mlahead_channels,), jnp.float32),
            "b2": 0.1 * jax.random.normal(ks[7], (mlahead_channels,), jnp.float32),
            "m2": 0.1 * jax.random.normal(ks[8], (mlahead_channels,), jnp.float32),
            "v2": 1.0 + 0.5 * jax.random.uniform(ks[9], (mlahead_channels,), jnp.float32),
        }
    return params


if __name__ == "__main__":
    # Small shapes consistent with the module: 8 NCHW inputs, 8x spatial
    # upsampling per branch, 8 branches concatenated on channels.
    mla_channels, mlahead_channels = 16, 8
    N, H, W = 2, 8, 8

    key = jax.random.PRNGKey(0)
    kparam, kin = jax.random.split(key)
    params = init_params(kparam, mla_channels, mlahead_channels)
    prepared = prepare_params(params)

    in_keys = jax.random.split(kin, 8)
    # Argument order: mla_b2, mla_b3, mla_b4, mla_b5, mla_p2, mla_p3, mla_p4, mla_p5
    inputs = [jax.random.normal(in_keys[i], (N, mla_channels, H, W), jnp.float32)
              for i in range(8)]

    fwd = jax.jit(functools.partial(bimla_head_forward, prepared))
    out = jax.block_until_ready(fwd(*inputs))

    expected_shape = (N, 8 * mlahead_channels, 8 * H, 8 * W)
    assert out.shape == expected_shape, (out.shape, expected_shape)
    assert out.dtype == jnp.float32
    assert bool(jnp.all(jnp.isfinite(out)))
    assert bool(jnp.all(out >= 0.0))        # final op of every branch is ReLU

    # Cross-check against the validated pure-JAX 3x3 formulation (same bf16
    # quantization points); tolerance covers accumulation-order differences.
    ref_inputs = [inputs[4], inputs[5], inputs[6], inputs[7],
                  inputs[0], inputs[1], inputs[2], inputs[3]]
    ref = jax.block_until_ready(_ref_forward(params, ref_inputs))
    assert bool(jnp.allclose(out, ref, rtol=3e-2, atol=3e-2)), (
        float(jnp.max(jnp.abs(out - ref))))

    print("KERNEL_OK")
</pallas_src>

<mosaic_0001>
module attributes {stable_mosaic.version = 11 : i64} {
  func.func @_deconv_kernel(%arg0: i32, %arg1: i32, %arg2: memref<1x2x10x10x16xbf16, #tpu.memory_space<vmem>>, %arg3: memref<1x4x64x8xbf16, #tpu.memory_space<vmem>>, %arg4: memref<1x1x32xf32, #tpu.memory_space<vmem>>, %arg5: memref<1x2x8x8x32xbf16, #tpu.memory_space<vmem>>) attributes {dimension_semantics = [#tpu.dimension_semantics<parallel>, #tpu.dimension_semantics<parallel>], iteration_bounds = array<i64: 8, 1>, scalar_prefetch = 0 : i64, scratch_operands = 0 : i64, tpu.core_type = #tpu.core_type<tc>, window_params = [{transform_indices = @transform_0, window_bounds = array<i64: 1, 2, 10, 10, 16>}, {transform_indices = @transform_1, window_bounds = array<i64: 1, 4, 64, 8>}, {transform_indices = @transform_2, window_bounds = array<i64: 1, 1, 32>}, {transform_indices = @transform_3, window_bounds = array<i64: 1, 2, 8, 8, 32>}]} {
    %c8_i32 = arith.constant 8 : i32
    %0 = arith.muli %arg1, %c8_i32 : i32
    %1 = tpu.assume_multiple %0, 8 : i32
    %c0 = arith.constant 0 : index
    %c0_0 = arith.constant 0 : index
    %2 = arith.index_cast %1 : i32 to index
    %c0_1 = arith.constant 0 : index
    %c0_2 = arith.constant 0 : index
    %3 = vector.load %arg2[%c0, %c0_0, %2, %c0_1, %c0_2] : memref<1x2x10x10x16xbf16, #tpu.memory_space<vmem>>, vector<1x2x10x10x16xbf16>
    %4 = vector.shape_cast %3 : vector<1x2x10x10x16xbf16> to vector<2x10x10x16xbf16>
    %5 = vector.extract_strided_slice %4 {offsets = [0, 0, 0, 0], sizes = [2, 8, 10, 16], strides = [1, 1, 1, 1]} : vector<2x10x10x16xbf16> to vector<2x8x10x16xbf16>
    %6 = vector.extract_strided_slice %5 {offsets = [0, 0, 0, 0], sizes = [2, 8, 8, 16], strides = [1, 1, 1, 1]} : vector<2x8x10x16xbf16> to vector<2x8x8x16xbf16>
    %7 = vector.shape_cast %6 : vector<2x8x8x16xbf16> to vector<128x16xbf16>
    %8 = vector.extract_strided_slice %5 {offsets = [0, 0, 1, 0], sizes = [2, 8, 8, 16], strides = [1, 1, 1, 1]} : vector<2x8x10x16xbf16> to vector<2x8x8x16xbf16>
    %9 = vector.shape_cast %8 : vector<2x8x8x16xbf16> to vector<128x16xbf16>
    %10 = vector.extract_strided_slice %5 {offsets = [0, 0, 2, 0], sizes = [2, 8, 8, 16], strides = [1, 1, 1, 1]} : vector<2x8x10x16xbf16> to vector<2x8x8x16xbf16>
    %11 = vector.shape_cast %10 : vector<2x8x8x16xbf16> to vector<128x16xbf16>
    %12 = vector.extract_strided_slice %4 {offsets = [0, 1, 0, 0], sizes = [2, 8, 10, 16], strides = [1, 1, 1, 1]} : vector<2x10x10x16xbf16> to vector<2x8x10x16xbf16>
    %13 = vector.extract_strided_slice %12 {offsets = [0, 0, 0, 0], sizes = [2, 8, 8, 16], strides = [1, 1, 1, 1]} : vector<2x8x10x16xbf16> to vector<2x8x8x16xbf16>
    %14 = vector.shape_cast %13 : vector<2x8x8x16xbf16> to vector<128x16xbf16>
    %15 = vector.extract_strided_slice %12 {offsets = [0, 0, 1, 0], sizes = [2, 8, 8, 16], strides = [1, 1, 1, 1]} : vector<2x8x10x16xbf16> to vector<2x8x8x16xbf16>
    %16 = vector.shape_cast %15 : vector<2x8x8x16xbf16> to vector<128x16xbf16>
    %17 = vector.extract_strided_slice %12 {offsets = [0, 0, 2, 0], sizes = [2, 8, 8, 16], strides = [1, 1, 1, 1]} : vector<2x8x10x16xbf16> to vector<2x8x8x16xbf16>
    %18 = vector.shape_cast %17 : vector<2x8x8x16xbf16> to vector<128x16xbf16>
    %19 = vector.extract_strided_slice %4 {offsets = [0, 2, 0, 0], sizes = [2, 8, 10, 16], strides = [1, 1, 1, 1]} : vector<2x10x10x16xbf16> to vector<2x8x10x16xbf16>
    %20 = vector.extract_strided_slice %19 {offsets = [0, 0, 0, 0], sizes = [2, 8, 8, 16], strides = [1, 1, 1, 1]} : vector<2x8x10x16xbf16> to vector<2x8x8x16xbf16>
    %21 = vector.shape_cast %20 : vector<2x8x8x16xbf16> to vector<128x16xbf16>
    %22 = vector.extract_strided_slice %19 {offsets = [0, 0, 1, 0], sizes = [2, 8, 8, 16], strides = [1, 1, 1, 1]} : vector<2x8x10x16xbf16> to vector<2x8x8x16xbf16>
    %23 = vector.shape_cast %22 : vector<2x8x8x16xbf16> to vector<128x16xbf16>
    %24 = vector.extract_strided_slice %19 {offsets = [0, 0, 2, 0], sizes = [2, 8, 8, 16], strides = [1, 1, 1, 1]} : vector<2x8x10x16xbf16> to vector<2x8x8x16xbf16>
    %25 = vector.shape_cast %24 : vector<2x8x8x16xbf16> to vector<128x16xbf16>
    %26 = tpu.concatenate %7, %9, %14, %16 in 1 : vector<128x16xbf16>, vector<128x16xbf16>, vector<128x16xbf16>, vector<128x16xbf16> -> vector<128x64xbf16>
    %c0_3 = arith.constant 0 : index
    %c0_4 = arith.constant 0 : index
    %c0_5 = arith.constant 0 : index
    %c0_6 = arith.constant 0 : index
    %27 = vector.load %arg3[%c0_3, %c0_4, %c0_5, %c0_6] : memref<1x4x64x8xbf16, #tpu.memory_space<vmem>>, vector<1x1x64x8xbf16>
    %28 = vector.shape_cast %27 : vector<1x1x64x8xbf16> to vector<64x8xbf16>
    %cst = arith.constant dense<0.000000e+00> : vector<128x8xf32>
    %29 = tpu.matmul %26, %28, %cst {dimension_numbers = #tpu.dot_dimension_numbers<[1], [0], [0], [1], [0, 0, 1, 1], [], []>} : vector<128x64xbf16>, vector<64x8xbf16>, vector<128x8xf32> -> vector<128x8xf32>
    %30 = tpu.concatenate %9, %11, %16, %18 in 1 : vector<128x16xbf16>, vector<128x16xbf16>, vector<128x16xbf16>, vector<128x16xbf16> -> vector<128x64xbf16>
    %c0_7 = arith.constant 0 : index
    %c1 = arith.constant 1 : index
    %c0_8 = arith.constant 0 : index
    %c0_9 = arith.constant 0 : index
    %31 = vector.load %arg3[%c0_7, %c1, %c0_8, %c0_9] : memref<1x4x64x8xbf16, #tpu.memory_space<vmem>>, vector<1x1x64x8xbf16>
    %32 = vector.shape_cast %31 : vector<1x1x64x8xbf16> to vector<64x8xbf16>
    %cst_10 = arith.constant dense<0.000000e+00> : vector<128x8xf32>
    %33 = tpu.matmul %30, %32, %cst_10 {dimension_numbers = #tpu.dot_dimension_numbers<[1], [0], [0], [1], [0, 0, 1, 1], [], []>} : vector<128x64xbf16>, vector<64x8xbf16>, vector<128x8xf32> -> vector<128x8xf32>
    %34 = tpu.concatenate %14, %16, %21, %23 in 1 : vector<128x16xbf16>, vector<128x16xbf16>, vector<128x16xbf16>, vector<128x16xbf16> -> vector<128x64xbf16>
    %c0_11 = arith.constant 0 : index
    %c2 = arith.constant 2 : index
    %c0_12 = arith.constant 0 : index
    %c0_13 = arith.constant 0 : index
    %35 = vector.load %arg3[%c0_11, %c2, %c0_12, %c0_13] : memref<1x4x64x8xbf16, #tpu.memory_space<vmem>>, vector<1x1x64x8xbf16>
    %36 = vector.shape_cast %35 : vector<1x1x64x8xbf16> to vector<64x8xbf16>
    %cst_14 = arith.constant dense<0.000000e+00> : vector<128x8xf32>
    %37 = tpu.matmul %34, %36, %cst_14 {dimension_numbers = #tpu.dot_dimension_numbers<[1], [0], [0], [1], [0, 0, 1, 1], [], []>} : vector<128x64xbf16>, vector<64x8xbf16>, vector<128x8xf32> -> vector<128x8xf32>
    %38 = tpu.concatenate %16, %18, %23, %25 in 1 : vector<128x16xbf16>, vector<128x16xbf16>, vector<128x16xbf16>, vector<128x16xbf16> -> vector<128x64xbf16>
    %c0_15 = arith.constant 0 : index
    %c3 = arith.constant 3 : index
    %c0_16 = arith.constant 0 : index
    %c0_17 = arith.constant 0 : index
    %39 = vector.load %arg3[%c0_15, %c3, %c0_16, %c0_17] : memref<1x4x64x8xbf16, #tpu.memory_space<vmem>>, vector<1x1x64x8xbf16>
    %40 = vector.shape_cast %39 : vector<1x1x64x8xbf16> to vector<64x8xbf16>
    %cst_18 = arith.constant dense<0.000000e+00> : vector<128x8xf32>
    %41 = tpu.matmul %38, %40, %cst_18 {dimension_numbers = #tpu.dot_dimension_numbers<[1], [0], [0], [1], [0, 0, 1, 1], [], []>} : vector<128x64xbf16>, vector<64x8xbf16>, vector<128x8xf32> -> vector<128x8xf32>
    %42 = tpu.concatenate %29, %33, %37, %41 in 1 : vector<128x8xf32>, vector<128x8xf32>, vector<128x8xf32>, vector<128x8xf32> -> vector<128x32xf32>
    %c0_19 = arith.constant 0 : index
    %c0_20 = arith.constant 0 : index
    %c0_21 = arith.constant 0 : index
    %43 = vector.load %arg4[%c0_19, %c0_20, %c0_21] : memref<1x1x32xf32, #tpu.memory_space<vmem>>, vector<1x1x32xf32>
    %44 = vector.shape_cast %43 : vector<1x1x32xf32> to vector<1x32xf32>
    %45 = vector.broadcast %44 : vector<1x32xf32> to vector<128x32xf32>
    %46 = arith.addf %42, %45 : vector<128x32xf32>
    %cst_22 = arith.constant 0.000000e+00 : f32
    %47 = vector.broadcast %cst_22 : f32 to vector<128x32xf32>
    %48 = arith.maximumf %46, %47 : vector<128x32xf32>
    %49 = arith.truncf %48 : vector<128x32xf32> to vector<128x32xbf16>
    %50 = vector.shape_cast %49 : vector<128x32xbf16> to vector<2x8x8x32xbf16>
    %c0_23 = arith.constant 0 : index
    %c0_24 = arith.constant 0 : index
    %c0_25 = arith.constant 0 : index
    %c0_26 = arith.constant 0 : index
    %c0_27 = arith.constant 0 : index
    %51 = vector.load %arg5[%c0_23, %c0_24, %c0_25, %c0_26, %c0_27] : memref<1x2x8x8x32xbf16, #tpu.memory_space<vmem>>, vector<1x2x8x8x32xbf16>
    %52 = vector.shape_cast %51 : vector<1x2x8x8x32xbf16> to vector<2x8x8x32xbf16>
    %53 = vector.shape_cast %50 : vector<2x8x8x32xbf16> to vector<1x2x8x8x32xbf16>
    tpu.vector_store %arg5[%c0_23, %c0_24, %c0_25, %c0_26, %c0_27], %53 {strides = array<i32>} : memref<1x2x8x8x32xbf16, #tpu.memory_space<vmem>>, vector<1x2x8x8x32xbf16>,
    return
  }
  func.func @transform_0(%arg0: i32, %arg1: i32) -> (i32, i32, i32, i32, i32) {
    %c0_i32 = arith.constant 0 : i32
    %c0_i32_0 = arith.constant 0 : i32
    %c0_i32_1 = arith.constant 0 : i32
    %c0_i32_2 = arith.constant 0 : i32
    %c0_i32_3 = arith.constant 0 : i32
    return %arg0, %c0_i32, %c0_i32_0, %c0_i32_1, %c0_i32_2 : i32, i32, i32, i32, i32
  }
  func.func @transform_1(%arg0: i32, %arg1: i32) -> (i32, i32, i32, i32) {
    %c0_i32 = arith.constant 0 : i32
    %c0_i32_0 = arith.constant 0 : i32
    %c0_i32_1 = arith.constant 0 : i32
    %c0_i32_2 = arith.constant 0 : i32
    return %arg0, %c0_i32, %c0_i32_0, %c0_i32_1 : i32, i32, i32, i32
  }
  func.func @transform_2(%arg0: i32, %arg1: i32) -> (i32, i32, i32) {
    %c0_i32 = arith.constant 0 : i32
    %c0_i32_0 = arith.constant 0 : i32
    %c0_i32_1 = arith.constant 0 : i32
    return %arg0, %c0_i32, %c0_i32_0 : i32, i32, i32
  }
  func.func @transform_3(%arg0: i32, %arg1: i32) -> (i32, i32, i32, i32, i32) {
    %c0_i32 = arith.constant 0 : i32
    %c0_i32_0 = arith.constant 0 : i32
    %c0_i32_1 = arith.constant 0 : i32
    %c0_i32_2 = arith.constant 0 : i32
    return %arg0, %c0_i32, %arg1, %c0_i32_0, %c0_i32_1 : i32, i32, i32, i32, i32
  }
}

module attributes {stable_mosaic.version = 11 : i64} {
  func.func @_deconv_kernel(%arg0: i32, %arg1: i32, %arg2: memref<1x2x18x18x8xbf16, #tpu.memory_space<vmem>>, %arg3: memref<1x4x32x32xbf16, #tpu.memory_space<vmem>>, %arg4: memref<1x1x128xf32, #tpu.memory_space<vmem>>, %arg5: memref<1x2x16x16x128xbf16, #tpu.memory_space<vmem>>) attributes {dimension_semantics = [#tpu.dimension_semantics<parallel>, #tpu.dimension_semantics<parallel>], iteration_bounds = array<i64: 8, 1>, scalar_prefetch = 0 : i64, scratch_operands = 0 : i64, tpu.core_type = #tpu.core_type<tc>, window_params = [{transform_indices = @transform_0, window_bounds = array<i64: 1, 2, 18, 18, 8>}, {transform_indices = @transform_1, window_bounds = array<i64: 1, 4, 32, 32>}, {transform_indices = @transform_2, window_bounds = array<i64: 1, 1, 128>}, {transform_indices = @transform_3, window_bounds = array<i64: 1, 2, 16, 16, 128>}]} {
    %c16_i32 = arith.constant 16 : i32
    %0 = arith.muli %arg1, %c16_i32 : i32
    %1 = tpu.assume_multiple %0, 16 : i32
    %c0 = arith.constant 0 : index
    %c0_0 = arith.constant 0 : index
    %2 = arith.index_cast %1 : i32 to index
    %c0_1 = arith.constant 0 : index
    %c0_2 = arith.constant 0 : index
    %3 = vector.load %arg2[%c0, %c0_0, %2, %c0_1, %c0_2] : memref<1x2x18x18x8xbf16, #tpu.memory_space<vmem>>, vector<1x2x18x18x8xbf16>
    %4 = vector.shape_cast %3 : vector<1x2x18x18x8xbf16> to vector<2x18x18x8xbf16>
    %5 = vector.extract_strided_slice %4 {offsets = [0, 0, 0, 0], sizes = [2, 16, 18, 8], strides = [1, 1, 1, 1]} : vector<2x18x18x8xbf16> to vector<2x16x18x8xbf16>
    %6 = vector.extract_strided_slice %5 {offsets = [0, 0, 0, 0], sizes = [2, 16, 16, 8], strides = [1, 1, 1, 1]} : vector<2x16x18x8xbf16> to vector<2x16x16x8xbf16>
    %7 = vector.shape_cast %6 : vector<2x16x16x8xbf16> to vector<512x8xbf16>
    %8 = vector.extract_strided_slice %5 {offsets = [0, 0, 1, 0], sizes = [2, 16, 16, 8], strides = [1, 1, 1, 1]} : vector<2x16x18x8xbf16> to vector<2x16x16x8xbf16>
    %9 = vector.shape_cast %8 : vector<2x16x16x8xbf16> to vector<512x8xbf16>
    %10 = vector.extract_strided_slice %5 {offsets = [0, 0, 2, 0], sizes = [2, 16, 16, 8], strides = [1, 1, 1, 1]} : vector<2x16x18x8xbf16> to vector<2x16x16x8xbf16>
    %11 = vector.shape_cast %10 : vector<2x16x16x8xbf16> to vector<512x8xbf16>
    %12 = vector.extract_strided_slice %4 {offsets = [0, 1, 0, 0], sizes = [2, 16, 18, 8], strides = [1, 1, 1, 1]} : vector<2x18x18x8xbf16> to vector<2x16x18x8xbf16>
    %13 = vector.extract_strided_slice %12 {offsets = [0, 0, 0, 0], sizes = [2, 16, 16, 8], strides = [1, 1, 1, 1]} : vector<2x16x18x8xbf16> to vector<2x16x16x8xbf16>
    %14 = vector.shape_cast %13 : vector<2x16x16x8xbf16> to vector<512x8xbf16>
    %15 = vector.extract_strided_slice %12 {offsets = [0, 0, 1, 0], sizes = [2, 16, 16, 8], strides = [1, 1, 1, 1]} : vector<2x16x18x8xbf16> to vector<2x16x16x8xbf16>
    %16 = vector.shape_cast %15 : vector<2x16x16x8xbf16> to vector<512x8xbf16>
    %17 = vector.extract_strided_slice %12 {offsets = [0, 0, 2, 0], sizes = [2, 16, 16, 8], strides = [1, 1, 1, 1]} : vector<2x16x18x8xbf16> to vector<2x16x16x8xbf16>
    %18 = vector.shape_cast %17 : vector<2x16x16x8xbf16> to vector<512x8xbf16>
    %19 = vector.extract_strided_slice %4 {offsets = [0, 2, 0, 0], sizes = [2, 16, 18, 8], strides = [1, 1, 1, 1]} : vector<2x18x18x8xbf16> to vector<2x16x18x8xbf16>
    %20 = vector.extract_strided_slice %19 {offsets = [0, 0, 0, 0], sizes = [2, 16, 16, 8], strides = [1, 1, 1, 1]} : vector<2x16x18x8xbf16> to vector<2x16x16x8xbf16>
    %21 = vector.shape_cast %20 : vector<2x16x16x8xbf16> to vector<512x8xbf16>
    %22 = vector.extract_strided_slice %19 {offsets = [0, 0, 1, 0], sizes = [2, 16, 16, 8], strides = [1, 1, 1, 1]} : vector<2x16x18x8xbf16> to vector<2x16x16x8xbf16>
    %23 = vector.shape_cast %22 : vector<2x16x16x8xbf16> to vector<512x8xbf16>
    %24 = vector.extract_strided_slice %19 {offsets = [0, 0, 2, 0], sizes = [2, 16, 16, 8], strides = [1, 1, 1, 1]} : vector<2x16x18x8xbf16> to vector<2x16x16x8xbf16>
    %25 = vector.shape_cast %24 : vector<2x16x16x8xbf16> to vector<512x8xbf16>
    %26 = tpu.concatenate %7, %9, %14, %16 in 1 : vector<512x8xbf16>, vector<512x8xbf16>, vector<512x8xbf16>, vector<512x8xbf16> -> vector<512x32xbf16>
    %c0_3 = arith.constant 0 : index
    %c0_4 = arith.constant 0 : index
    %c0_5 = arith.constant 0 : index
    %c0_6 = arith.constant 0 : index
    %27 = vector.load %arg3[%c0_3, %c0_4, %c0_5, %c0_6] : memref<1x4x32x32xbf16, #tpu.memory_space<vmem>>, vector<1x1x32x32xbf16>
    %28 = vector.shape_cast %27 : vector<1x1x32x32xbf16> to vector<32x32xbf16>
    %cst = arith.constant dense<0.000000e+00> : vector<512x32xf32>
    %29 = tpu.matmul %26, %28, %cst {dimension_numbers = #tpu.dot_dimension_numbers<[1], [0], [0], [1], [0, 0, 1, 1], [], []>} : vector<512x32xbf16>, vector<32x32xbf16>, vector<512x32xf32> -> vector<512x32xf32>
    %30 = tpu.concatenate %9, %11, %16, %18 in 1 : vector<512x8xbf16>, vector<512x8xbf16>, vector<512x8xbf16>, vector<512x8xbf16> -> vector<512x32xbf16>
    %c0_7 = arith.constant 0 : index
    %c1 = arith.constant 1 : index
    %c0_8 = arith.constant 0 : index
    %c0_9 = arith.constant 0 : index
    %31 = vector.load %arg3[%c0_7, %c1, %c0_8, %c0_9] : memref<1x4x32x32xbf16, #tpu.memory_space<vmem>>, vector<1x1x32x32xbf16>
    %32 = vector.shape_cast %31 : vector<1x1x32x32xbf16> to vector<32x32xbf16>
    %cst_10 = arith.constant dense<0.000000e+00> : vector<512x32xf32>
    %33 = tpu.matmul %30, %32, %cst_10 {dimension_numbers = #tpu.dot_dimension_numbers<[1], [0], [0], [1], [0, 0, 1, 1], [], []>} : vector<512x32xbf16>, vector<32x32xbf16>, vector<512x32xf32> -> vector<512x32xf32>
    %34 = tpu.concatenate %14, %16, %21, %23 in 1 : vector<512x8xbf16>, vector<512x8xbf16>, vector<512x8xbf16>, vector<512x8xbf16> -> vector<512x32xbf16>
    %c0_11 = arith.constant 0 : index
    %c2 = arith.constant 2 : index
    %c0_12 = arith.constant 0 : index
    %c0_13 = arith.constant 0 : index
    %35 = vector.load %arg3[%c0_11, %c2, %c0_12, %c0_13] : memref<1x4x32x32xbf16, #tpu.memory_space<vmem>>, vector<1x1x32x32xbf16>
    %36 = vector.shape_cast %35 : vector<1x1x32x32xbf16> to vector<32x32xbf16>
    %cst_14 = arith.constant dense<0.000000e+00> : vector<512x32xf32>
    %37 = tpu.matmul %34, %36, %cst_14 {dimension_numbers = #tpu.dot_dimension_numbers<[1], [0], [0], [1], [0, 0, 1, 1], [], []>} : vector<512x32xbf16>, vector<32x32xbf16>, vector<512x32xf32> -> vector<512x32xf32>
    %38 = tpu.concatenate %16, %18, %23, %25 in 1 : vector<512x8xbf16>, vector<512x8xbf16>, vector<512x8xbf16>, vector<512x8xbf16> -> vector<512x32xbf16>
    %c0_15 = arith.constant 0 : index
    %c3 = arith.constant 3 : index
    %c0_16 = arith.constant 0 : index
    %c0_17 = arith.constant 0 : index
    %39 = vector.load %arg3[%c0_15, %c3, %c0_16, %c0_17] : memref<1x4x32x32xbf16, #tpu.memory_space<vmem>>, vector<1x1x32x32xbf16>
    %40 = vector.shape_cast %39 : vector<1x1x32x32xbf16> to vector<32x32xbf16>
    %cst_18 = arith.constant dense<0.000000e+00> : vector<512x32xf32>
    %41 = tpu.matmul %38, %40, %cst_18 {dimension_numbers = #tpu.dot_dimension_numbers<[1], [0], [0], [1], [0, 0, 1, 1], [], []>} : vector<512x32xbf16>, vector<32x32xbf16>, vector<512x32xf32> -> vector<512x32xf32>
    %42 = tpu.concatenate %29, %33, %37, %41 in 1 : vector<512x32xf32>, vector<512x32xf32>, vector<512x32xf32>, vector<512x32xf32> -> vector<512x128xf32>
    %c0_19 = arith.constant 0 : index
    %c0_20 = arith.constant 0 : index
    %c0_21 = arith.constant 0 : index
    %43 = vector.load %arg4[%c0_19, %c0_20, %c0_21] : memref<1x1x128xf32, #tpu.memory_space<vmem>>, vector<1x1x128xf32>
    %44 = vector.shape_cast %43 : vector<1x1x128xf32> to vector<1x128xf32>
    %45 = vector.broadcast %44 : vector<1x128xf32> to vector<512x128xf32>
    %46 = arith.addf %42, %45 : vector<512x128xf32>
    %cst_22 = arith.constant 0.000000e+00 : f32
    %47 = vector.broadcast %cst_22 : f32 to vector<512x128xf32>
    %48 = arith.maximumf %46, %47 : vector<512x128xf32>
    %49 = arith.truncf %48 : vector<512x128xf32> to vector<512x128xbf16>
    %50 = vector.shape_cast %49 : vector<512x128xbf16> to vector<2x16x16x128xbf16>
    %c0_23 = arith.constant 0 : index
    %c0_24 = arith.constant 0 : index
    %c0_25 = arith.constant 0 : index
    %c0_26 = arith.constant 0 : index
    %c0_27 = arith.constant 0 : index
    %51 = vector.load %arg5[%c0_23, %c0_24, %c0_25, %c0_26, %c0_27] : memref<1x2x16x16x128xbf16, #tpu.memory_space<vmem>>, vector<1x2x16x16x128xbf16>
    %52 = vector.shape_cast %51 : vector<1x2x16x16x128xbf16> to vector<2x16x16x128xbf16>
    %53 = vector.shape_cast %50 : vector<2x16x16x128xbf16> to vector<1x2x16x16x128xbf16>
    tpu.vector_store %arg5[%c0_23, %c0_24, %c0_25, %c0_26, %c0_27], %53 {strides = array<i32>} : memref<1x2x16x16x128xbf16, #tpu.memory_space<vmem>>, vector<1x2x16x16x128xbf16>,
    return
  }
  func.func @transform_0(%arg0: i32, %arg1: i32) -> (i32, i32, i32, i32, i32) {
    %c0_i32 = arith.constant 0 : i32
    %c0_i32_0 = arith.constant 0 : i32
    %c0_i32_1 = arith.constant 0 : i32
    %c0_i32_2 = arith.constant 0 : i32
    %c0_i32_3 = arith.constant 0 : i32
    return %arg0, %c0_i32, %c0_i32_0, %c0_i32_1, %c0_i32_2 : i32, i32, i32, i32, i32
  }
  func.func @transform_1(%arg0: i32, %arg1: i32) -> (i32, i32, i32, i32) {
    %c0_i32 = arith.constant 0 : i32
    %c0_i32_0 = arith.constant 0 : i32
    %c0_i32_1 = arith.constant 0 : i32
    %c0_i32_2 = arith.constant 0 : i32
    return %arg0, %c0_i32, %c0_i32_0, %c0_i32_1 : i32, i32, i32, i32
  }
  func.func @transform_2(%arg0: i32, %arg1: i32) -> (i32, i32, i32) {
    %c0_i32 = arith.constant 0 : i32
    %c0_i32_0 = arith.constant 0 : i32
    %c0_i32_1 = arith.constant 0 : i32
    return %arg0, %c0_i32, %c0_i32_0 : i32, i32, i32
  }
  func.func @transform_3(%arg0: i32, %arg1: i32) -> (i32, i32, i32, i32, i32) {
    %c0_i32 = arith.constant 0 : i32
    %c0_i32_0 = arith.constant 0 : i32
    %c0_i32_1 = arith.constant 0 : i32
    %c0_i32_2 = arith.constant 0 : i32
    return %arg0, %c0_i32, %arg1, %c0_i32_0, %c0_i32_1 : i32, i32, i32, i32, i32
  }
}

</mosaic_0001>

<bundles_post_ra>
// kernel: bimla_head_forward.2
= control target key start
LH: loop header
LB: loop body
LE: loop exit
PB: predicated region body
PF: predicated region fallthrough
CT: control target
= control target key end

     0   :  { %s4309_s0 = inlined_call_operand.hbm [shape: bf16[8,2,10,10,16], index: 0, kind: input, shape index: {}]   ;;  %s4310_s1 = inlined_call_operand.hbm [shape: bf16[8,4,64,8], index: 1, kind: input, shape index: {}]   ;;  %s4311_s2 = inlined_call_operand.hbm [shape: f32[8,1,32], index: 2, kind: input, shape index: {}]   ;;  %s4312_s3 = inlined_call_operand.hbm [shape: bf16[8,2,8,8,32], index: 3, kind: output, shape index: {}]  }
   0x1   :  { %4327 = sst [smem:[#allocation22_spill]] %s4310_s1 }
   0x2   :  { %8 = vsyncpa [#allocation3], 0 }
   0x3   :  { %10 = vsyncpa [#allocation3 + $0x1], 0 }
   0x4   :  { %11 = vsyncpa [#allocation6], 0 }
   0x5   :  { %13 = vsyncpa [#allocation6 + $0x1], 0 }
   0x6   :  { %14 = vsyncpa [#allocation4], 0 }
   0x7   :  { %16 = vsyncpa [#allocation4 + $0x1], 0  ;;  %s3018_s12 = smov 0   ;;  %s3020_s13 = smov 0  }
   0x8   :  { %s3022_s14 = smov 0   ;;  %s3024_s15 = smov 0  }
   0x9   :  { %s3026_s16 = smov 0   ;;  %s3028_s17 = smov 0  }
   0xa LB: > { %4328 = sst [smem:[#allocation12_spill]] %s2979_s16  ;;  %s3049_s18 = sadd.s32 4294967295, %s2983_s17   ;;  %s2983_s17 = sphi %s3028_s17, %s22_s17   ;;  %s2979_s16 = sphi %s3026_s16, %s4367_s16   ;;  %s2975_s15 = sphi %s3024_s15, %s4366_s15   ;;  %s2971_s14 = sphi %s3022_s14, %s4370_s14   ;;  %s2967_s13 = sphi %s3020_s13, %s4369_s13   ;;  %s2963_s12 = sphi %s3018_s12, %s4368_s12  }
   0xb   : > { %s2348_s19 = sadd.s32 4294967294, %s2983_s17   ;;  %s34_s20 = sadd.s32 1, %s2979_s16 }
   0xc   : > { %s41_s21 = sadd.s32 1, %s2971_s14  ;;  %p36_p0 = scmp.ge.s32.totalorder %s34_s20, 8 }
   0xd   : > { %p48_p1 = scmp.ne.s32.totalorder %s2971_s14, %s2967_s13  ;;  %p49_p2 = scmp.eq.s32.totalorder %s2983_s17, 0 }
   0xe   : > { %p54_p3 = scmp.ne.s32.totalorder %s2967_s13, %s2963_s12  ;;  %s4372_s20 = smov (%p36_p0, %s34_s20), 0 }
   0xf   : > { %4329 = sst [smem:[#allocation13_spill]] %s4372_s20  ;;  %p50_p4 = por %p49_p2, %p48_p1 }
  0x10   : > { %p55_p5 = scmp.eq.s32.totalorder %s3049_s18, 0  ;;  %s38_s22 = ssub.s32 %s2979_s16, %s4372_s20 }
  0x11   : > { %p132_p6 = scmp.eq.s32.totalorder %s3049_s18, 7  ;;  %p39_p7 = scmp.eq.s32.totalorder %s38_s22, 0 }
  0x12   : > { %p3065_p8 = por %p55_p5, %p54_p3  ;;  %p138_p10 = scmp.eq.s32.totalorder %s2348_s19, 7 }
  0x13   : > { %p3069_p9 = por %p132_p6, %p48_p1  ;;  %p2714_p12 = scmp.lt.s32.totalorder %s2983_s17, 8 }
  0x14   : > { %s4330_s23 = scalar_select %p3065_p8, 1, 0 }
  0x15   : > { %s4331_s24 = scalar_select %p3069_p9, 1, 0 }
  0x16   : > { %s3074_s25 = scalar_select %p39_p7, %s2971_s14, %s41_s21  }
  0x17   : > { %p3076_p11 = por %p138_p10, %p54_p3  ;;  %s3082_s27 = sand.u32 1, %s2971_s14  }
  0x18   : > { %4332 = sst [smem:[#allocation14_spill]] %s3074_s25  ;;  %p3084_p13 = pnand %p2714_p12, %p50_p4 }
  0x19   : > { %s4333_s26 = scalar_select %p3076_p11, 1, 0 }
  0x1a   : > { %s4334_s28 = scalar_select %p3084_p13, 1, 0 }
  0x1b   : > { %s179_s29 = sand.u32 1, %s2983_s17   ;;  %s2352_s30 = sshll.u32 %s3082_s27, 7 }
  0x1c   : > { %s2527_s4 = sshll.u32 %s2979_s16, 11  ;;  %s183_s5 = scalar_lea.vmem [#allocation5], %s2352_s30 }
  0x1d   : > { %s190_s6 = sshll.u32 %s183_s5, 4  ;;  %s4335_s1 = sld [smem:[#allocation22_spill]]  ;;  %s3096_s6 = int_to_ptr.vmem [resolvable:$true] %s190_s6 }
  0x1e   : > { %s3098_s10 = scalar_lea.sflag [#allocation6], %s179_s29  ;;  %p3104_p1 = pneg %p3084_p13 }
  0x23   : > { %s3094_s9 = scalar_lea.hbm %s4335_s1, %s2527_s4  ;;  %s2812_s30 = scalar_lea.hbm %s4335_s1, 16384 }
  0x24   : > { %s2807_s11 = scalar_lea.hbm %s3094_s9, 2048  ;;  %p2813_p4 = scmp.lt.u32.totalorder %s3094_s9, %s4335_s1 }
  0x25   : > { %p2808_p0 = scmp.ne.s32.totalorder %s3094_s9, %s2807_s11  ;;  %p2814_p5 = scmp.lt.u32.totalorder %s2812_s30, %s2807_s11 }
  0x26   : > { %p2816_p7 = scmp.lt.u32.totalorder %s2807_s11, %s3094_s9 }
  0x27   : > { %p2810_p2 = pnand %p3104_p1, %p2808_p0  ;;  %p2815_p6 = por %p2814_p5, %p2813_p4 }
  0x29   : > { %p2811_p3 = pneg %p2810_p2  ;;  %p2817_p10 = por %p2816_p7, %p2815_p6 }
  0x2b   : > { %p2818_p12 = pnand %p2817_p10, %p2811_p3 }
  0x2d   : > { %2821 = shalt.err (!%p2818_p12)
}
  0x2e   : > { %s2822_s29 = scalar_lea.vmem %s3096_s6, 2048  ;;  %s2985_s7 = smov [#allocation5]  }
  0x2f   : > { %p2823_p0 = scmp.ne.s32.totalorder %s3096_s6, %s2822_s29  ;;  %s2827_s8 = sshll.u32 %s2985_s7, 4  ;;  %s2828_s8 = int_to_ptr.vmem [resolvable:$false] %s2827_s8 }
  0x30   : > { %s2829_s21 = scalar_lea.vmem %s2828_s8, 4096  ;;  %p2830_p9 = scmp.lt.s32.totalorder %s3096_s6, %s2828_s8 }
  0x31   : > { %p2825_p2 = pnand %p2823_p0, %p3104_p1  ;;  %p2831_p8 = scmp.lt.s32.totalorder %s2829_s21, %s2822_s29 }
  0x33   : > { %p2826_p11 = pneg %p2825_p2  ;;  %p2832_p4 = por %p2831_p8, %p2830_p9 }
  0x35   : > { %p2833_p5 = pnand %p2832_p4, %p2826_p11 }
  0x37   : > { %2836 = shalt.err (!%p2833_p5)
}
  0x38   : > { %s4316_s11 = smov 64   ;;  %s4317_s22 = smov 4  }
  0x39   : > { %2706 = dma.hbm_to_vmem [thread:$0]  (!%p3084_p13), %s3094_s9, 2048, %s3096_s6, %s3098_s10, %s4316_s11, %s4316_s11, %s4317_s22  }
  0x3a   : > { %p2356_p8 = scmp.ge.s32.totalorder %s2983_s17, 1  ;;  %p215_p9 = scmp.lt.s32.totalorder %s2983_s17, 9 }
  0x3b   : > { %s2689_s4 = smul.u32 160, %s3082_s27  ;;  %s2355_s29 = sshll.u32 %s2979_s16, 4 }
  0x3c   : > { %p3133_p11 = pnand %p2356_p8, %p215_p9  ;;  %s2690_s5 = smul.u32 2560, %s2979_s16 }
  0x3d   : > { %s3143_s21 = scalar_lea.hbm %s4311_s2, %s2355_s29  ;;  %s162_s6 = scalar_lea.vmem [#allocation2], %s2689_s4 }
  0x3e   : > { %s4337_s30 = scalar_select %p3133_p11, 1, 0 }
  0x3f   : > { %s3148_s25 = scalar_lea.hbm %s4309_s0, %s2690_s5  ;;  %s169_s9 = sshll.u32 %s162_s6, 4  ;;  %s3150_s9 = int_to_ptr.vmem [resolvable:$true] %s169_s9 }
  0x40   : > { %s203_s11 = scalar_lea.vmem [#allocation7], %s3082_s27  ;;  %s159_s16 = scalar_lea.sflag [#allocation3], %s3082_s27 }
  0x41   : > { %s3153_s22 = sshll.u32 %s203_s11, 4  ;;  %s2837_s7 = scalar_lea.hbm %s3148_s25, 2560  ;;  %s211_s22 = int_to_ptr.vmem [resolvable:$true] %s3153_s22 }
  0x42   : > { %p2838_p3 = scmp.ne.s32.totalorder %s3148_s25, %s2837_s7  ;;  %s2842_s5 = scalar_lea.hbm %s4309_s0, 20480 }
  0x43   : > { %p2843_p10 = scmp.lt.u32.totalorder %s3148_s25, %s4309_s0  ;;  %p2844_p12 = scmp.lt.u32.totalorder %s2842_s5, %s2837_s7 }
  0x44   : > { %p2840_p6 = pnand %p2838_p3, %p3104_p1  ;;  %p2846_p2 = scmp.lt.u32.totalorder %s2837_s7, %s3148_s25 }
  0x45   : > { %p2845_p0 = por %p2844_p12, %p2843_p10 }
  0x46   : > { %p2841_p7 = pneg %p2840_p6 }
  0x47   : > { %p2847_p4 = por %p2846_p2, %p2845_p0 }
  0x49   : > { %p2848_p5 = pnand %p2847_p4, %p2841_p7 }
  0x4b   : > { %2851 = shalt.err (!%p2848_p5)
}
  0x4c   : > { %s2852_s11 = scalar_lea.vmem %s3150_s9, 2560  ;;  %s2988_s4 = smov [#allocation2]  }
  0x4d   : > { %p2853_p8 = scmp.ne.s32.totalorder %s3150_s9, %s2852_s11  ;;  %s2857_s6 = sshll.u32 %s2988_s4, 4  ;;  %s2858_s6 = int_to_ptr.vmem [resolvable:$false] %s2857_s6 }
  0x4e   : > { %s2859_s1 = scalar_lea.vmem %s2858_s6, 5120  ;;  %p2860_p6 = scmp.lt.s32.totalorder %s3150_s9, %s2858_s6 }
  0x4f   : > { %p2855_p9 = pnand %p2853_p8, %p3104_p1  ;;  %p2861_p11 = scmp.lt.s32.totalorder %s2859_s1, %s2852_s11 }
  0x51   : > { %p2856_p3 = pneg %p2855_p9  ;;  %p2862_p10 = por %p2861_p11, %p2860_p6 }
  0x53   : > { %p2863_p12 = pnand %p2862_p10, %p2856_p3 }
  0x55   : > { %2866 = shalt.err (!%p2863_p12)
}
  0x56   : > { %s4338_s7 = smov 4   ;;  %s4339_s20 = smov 64  }
  0x57   : > { %2703 = dma.hbm_to_vmem [thread:$0]  (!%p3084_p13), %s3148_s25, 2560, %s3150_s9, %s159_s16, %s4339_s20, %s4339_s20, %s4338_s7  }
  0x58   : > { %s2867_s5 = scalar_lea.hbm %s3143_s21, 16  ;;  %s2872_s11 = scalar_lea.hbm %s4311_s2, 128 }
  0x59   : > { %p2868_p11 = scmp.ne.s32.totalorder %s3143_s21, %s2867_s5  ;;  %p2873_p2 = scmp.lt.u32.totalorder %s3143_s21, %s4311_s2 }
  0x5a   : > { %p2874_p4 = scmp.lt.u32.totalorder %s2872_s11, %s2867_s5  ;;  %p2876_p8 = scmp.lt.u32.totalorder %s2867_s5, %s3143_s21 }
  0x5b   : > { %p2870_p7 = pnand %p2868_p11, %p3104_p1 }
  0x5c   : > { %p2875_p5 = por %p2874_p4, %p2873_p2 }
  0x5d   : > { %p2871_p0 = pneg %p2870_p7 }
  0x5e   : > { %p2877_p9 = por %p2876_p8, %p2875_p5 }
  0x60   : > { %p2878_p3 = pnand %p2877_p9, %p2871_p0 }
  0x62   : > { %2881 = shalt.err (!%p2878_p3)
}
  0x63   : > { %s2882_s16 = scalar_lea.vmem %s211_s22, 16  ;;  %s2989_s25 = smov [#allocation7]  }
  0x64   : > { %p2883_p6 = scmp.ne.s32.totalorder %s211_s22, %s2882_s16  ;;  %s2887_s9 = sshll.u32 %s2989_s25, 4  ;;  %s2888_s9 = int_to_ptr.vmem [resolvable:$false] %s2887_s9 }
  0x65   : > { %s2889_s6 = scalar_lea.vmem %s2888_s9, 32  ;;  %p2890_p11 = scmp.lt.s32.totalorder %s211_s22, %s2888_s9 }
  0x66   : > { %p2885_p10 = pnand %p2883_p6, %p3104_p1  ;;  %p2891_p7 = scmp.lt.s32.totalorder %s2889_s6, %s2882_s16 }
  0x68   : > { %p2886_p12 = pneg %p2885_p10  ;;  %p2892_p13 = por %p2891_p7, %p2890_p11 }
  0x6a   : > { %p2893_p2 = pnand %p2892_p13, %p2886_p12 }
  0x6c   : > { %2896 = shalt.err (!%p2893_p2)
}
  0x6d   : > { %p4340_p4 = scmp.ne.s32.totalorder %s4334_s28, 0  ;;  %p4341_p0 = scmp.ne.s32.totalorder %s4337_s30, 0 }
  0x6f   : > { %2709 = dma.hbm_to_vmem [thread:$0]  (!%p4340_p4), %s3143_s21, 16, %s211_s22, %s3098_s10  }
  0x70   : > { %219 = sbr.rel (%p4341_p0) target bundleno = 807 (0x327), region = 32 }
  0x77   : > { %s3204_s19 = sand.u32 1, %s2967_s13   ;;  %p4342_p13 = scmp.ne.s32.totalorder %s4330_s23, 0 }
  0x78   : > { %s2691_s1 = smul.u32 160, %s3204_s19  ;;  %s222_s7 = scalar_lea.sflag [#allocation3], %s3204_s19 }
  0x7a   : > { %s3208_s20 = scalar_lea.vmem [#allocation2], %s2691_s1 }
  0x7b   : > { %2950 = dma.done.wait (%p4342_p13), %s222_s7, 2560  }
  0x7c   : > { %2952 = vsyncadd (%p4342_p13), %s222_s7, 4294964736  ;;  %s230_s28 = sand.u32 1, %s3049_s18   ;;  %s2357_s10 = sshll.u32 %s3204_s19, 7 }
  0x7d   : > { %s231_s22 = scalar_lea.sflag [#allocation6], %s230_s28  ;;  %s3216_s30 = scalar_lea.vmem [#allocation5], %s2357_s10 }
  0x7e   : > { %2954 = dma.done.wait (%p4342_p13), %s231_s22, 2064  }
  0x7f   : > { %2956 = vsyncadd (%p4342_p13), %s231_s22, 4294965232  ;;  %vm579_vm0 = vcmask 1042432   ;;  %vm580_vm1 = vcmask 1046532   ;;  %vm320_vm2 = vsmask.f32 3328  ;;  %v2783_v8 = vld [vmem:[%s3216_s30] sm:$0xff]  }
  0x80   : > { %vm321_vm3 = vsmask.f32 7440  ;;  %v3223_v0 = vld [vmem:[%s3208_s20 + $0x18] sm:$0xf]  ;;  %v3226_v1 = vld [vmem:[%s3208_s20 + $0x20] sm:$0xf]  ;;  %2593 = vmatprep.subr.bf16.mxu0 %v2783_v8  ;;  %vm3267_vm4 = vmor %vm579_vm0, %vm580_vm1 }
  0x81   : > { %v3229_v2 = vld [vmem:[%s3208_s20 + $0x8] sm:$0xf]  ;;  %v380_v3 = vshrl.u32 %v3226_v1, 16  ;;  %v383_v4 = vshll.u32 %v3226_v1, 16  ;;  %v3235_v5 = vcombine.low %v3223_v0, %v3226_v1  ;;  %v366_v6 = vshrl.u32 %v3223_v0, 16  ;;  %s2990_s18 = smov 32   ;;  %2594 = vmatpush3.bf16.msra.mxu0 %v2783_v8  ;;  %vm3293_vm5 = vmor %vm320_vm2, %vm321_vm3 }
  0x82   : > { %v3239_v7 = vld [vmem:[%s3208_s20 + $0x10] sm:$0xf]  ;;  %v369_v9 = vshll.u32 %v3223_v0, 16  ;;  %v285_v13 = vld [vmem:[%s3208_s20 + $0x14] sm:$0x1]  ;;  %v2784_v14 = vld [vmem:[%s3216_s30 + $0x8] sm:$0xff]  }
  0x83   : > { %4343 = vst [vmem:[#allocation15_spill] sm:$0xff] %v3235_v5  ;;  %v352_v10 = vshrl.u32 %v3239_v7, 16  ;;  %v355_v11 = vshll.u32 %v3239_v7, 16  ;;  %v3247_v12 = vcombine.low %v3229_v2, %v3239_v7  ;;  %v3251_v15 = vrot.slane %v380_v3, 4  ;;  %802 = vrot.lane.b32.xlu0 %v3235_v5, %s2990_s18  ;;  %v287_v18 = vld [vmem:[%s3208_s20 + $0x1c] sm:$0x1]  ;;  %2595 = vmatprep.subr.bf16.mxu0 %v2784_v14 }
  0x84   : > { %v3253_v16 = vrot.slane %v383_v4, 5  ;;  %v338_v17 = vshrl.u32 %v3229_v2, 16  ;;  %v368_v19 = vrot.slane %v366_v6, 4  ;;  %v371_v20 = vrot.slane %v369_v9, 5  ;;  %v3263_v23 = vld [vmem:[%s3208_s20] sm:$0xf] }
  0x85   : > { %4344 = vst [vmem:[#allocation16_spill] sm:$0xff] %v3247_v12  ;;  %v354_v21 = vrot.slane %v352_v10, 4  ;;  %800 = vrot.lane.b32.xlu1 %v3247_v12, %s2990_s18  ;;  %v341_v22 = vshll.u32 %v3229_v2, 16  ;;  %v357_v24 = vrot.slane %v355_v11, 5  ;;  %v361_v26 = vshll.u32 %v285_v13, 16  ;;  %2596 = vmatpush3.bf16.msra.mxu0 %v2784_v14  ;;  %s2991_s23 = smov 16  }
  0x86   : > { %v340_v25 = vrot.slane %v338_v17, 4  ;;  %v2361_v28 = vrot.slane %v3239_v7, 9  ;;  %v281_v29 = vld [vmem:[%s3208_s20 + $0x4] sm:$0x1]  ;;  %v592_v31 = vrot.slane %v285_v13, 5  ;;  %v2362_v32 = vrot.slane %v3223_v0, 9 }
  0x87   : > { %v343_v30 = vrot.slane %v341_v22, 5  ;;  %v596_v33 = vrot.slane %v287_v18, 5  ;;  %v283_v34 = vld [vmem:[%s3208_s20 + $0xc] sm:$0x1]  ;;  %v363_v35 = vrot.slane %v361_v26, 5  ;;  %v375_v36 = vshll.u32 %v287_v18, 16 }
  0x88   : > { %v347_v37 = vshll.u32 %v283_v34, 16  ;;  %v2359_v38 = vrot.slane %v3263_v23, 9  ;;  %v3278_v39 = vsel %vm3267_vm4, %v2361_v28, %v592_v31  ;;  %v584_v41 = vrot.slane %v281_v29, 5  ;;  %v289_v56 = vld [vmem:[%s3208_s20 + $0x24] sm:$0x1]  ;;  %v2787_v26 = vld [vmem:[%s3216_s30 + $0x10] sm:$0xff]  }
  0x89   : > { %v3282_v40 = vsel %vm3267_vm4, %v2362_v32, %v596_v33  ;;  %v2360_v42 = vrot.slane %v3229_v2, 9  ;;  %v588_v45 = vrot.slane %v283_v34, 5  ;;  %v344_v46 = vor.u32 %v343_v30, %v340_v25  ;;  %v2785_v61 = vld [vmem:[%s3216_s30 + $0x20] sm:$0xff]   ;;  %v3316_v11 = vld [vmem:[%s3208_s20 + $0x30] sm:$0xf]  ;;  %s2992_s21 = smov 48   ;;  %2597 = vmatprep.subr.bf16.mxu0 %v2787_v26 }
  0x8a   : > { %v3287_v43 = vcombine.low %v3278_v39, %v3282_v40  ;;  %v349_v44 = vrot.slane %v347_v37, 5  ;;  %v585_v47 = vsel %vm3267_vm4, %v2359_v38, %v584_v41  ;;  %v358_v49 = vor.u32 %v357_v24, %v354_v21  ;;  %2617 = vmatprep.subr.bf16.mxu1 %v2785_v61  ;;  %v3321_v17 = vld [vmem:[%s3208_s20 + $0x34] sm:$0x1]  ;;  %v3324_v18 = vld [vmem:[%s3208_s20 + $0x38] sm:$0xf]  ;;  %v2789_v32 = vld [vmem:[%s3216_s30 + $0x28] sm:$0xff]   ;;  %2598 = vmatpush3.bf16.msra.mxu0 %v2787_v26 }
  0x8b   : > { %v324_v50 = vshrl.u32 %v3263_v23, 16  ;;  %v327_v51 = vshll.u32 %v3263_v23, 16  ;;  %v3303_v52 = vsel %vm3267_vm4, %v2360_v42, %v588_v45  ;;  %v345_v53 = vrot.slane %v344_v46, 4  ;;  %2618 = vmatpush3.bf16.msra.mxu1 %v2785_v61  ;;  %v3330_v22 = vld [vmem:[%s3208_s20 + $0x3c] sm:$0x1]  ;;  %s2993_s5 = smov 8  }
  0x8c   : > { %1073 = vrot.lane.b32.xlu0 %v3287_v43, %s2991_s23  ;;  %v333_v54 = vshll.u32 %v281_v29, 16  ;;  %v372_v55 = vor.u32 %v371_v20, %v368_v19  ;;  %v2423_v57 = vcombine.low %v585_v47, %v3303_v52  ;;  %v359_v58 = vrot.slane %v358_v49, 4  ;;  %v3342_v31 = vld [vmem:[%s3208_s20 + $0x28] sm:$0xf]  ;;  %v291_v37 = vld [vmem:[%s3208_s20 + $0x2c] sm:$0x1]  ;;  %2619 = vmatprep.subr.bf16.mxu1 %v2789_v32 }
  0x8d   : > { %v326_v59 = vrot.slane %v324_v50, 4  ;;  %v329_v60 = vrot.slane %v327_v51, 5  ;;  %v377_v62 = vrot.slane %v375_v36, 5  ;;  %v350_v63 = vsel %vm3293_vm5, %v345_v53, %v349_v44  ;;  %v2790_v50 = vld [vmem:[%s3216_s30 + $0x18] sm:$0xff]   ;;  %s2994_s29 = smov 24   ;;  %s242_s8 = scalar_lea.vmem [#allocation7], %s3204_s19 }
  0x8e   : > { %v373_v3 = vrot.slane %v372_v55, 4  ;;  %v386_v4 = vor.u32 %v3253_v16, %v3251_v15  ;;  %1071 = vrot.lane.b32.xlu1 %v2423_v57, %s2991_s23  ;;  %v364_v6 = vsel %vm3293_vm5, %v359_v58, %v363_v35  ;;  %v335_v9 = vrot.slane %v333_v54, 5  ;;  %2599 = vmatprep.subr.bf16.mxu0 %v2790_v50  ;;  %s2358_s11 = sshll.u32 %s3204_s19, 6  ;;  %s2544_s4 = sshll.u32 %s2975_s15, 10 }
  0x8f   : > { %v330_v8 = vor.u32 %v329_v60, %v326_v59  ;;  %v389_v10 = vshll.u32 %v289_v56, 16  ;;  %v3318_v13 = vcombine.low %v350_v63, %v364_v6  ;;  %v2363_v19 = vrot.slane %v3226_v1, 9  ;;  %2620 = vmatpush3.bf16.msra.mxu1 %v2789_v32  ;;  %v3369_v60 = vld [vmem:[%s3208_s20 + $0x40] sm:$0xf]  ;;  %2600 = vmatpush3.bf16.msra.mxu0 %v2790_v50  ;;  %v3436_v50 = vld [vmem:[%s3208_s20 + $0x58] sm:$0xf]  ;;  %s4255_s6 = scalar_lea.hbm %s4312_s3, %s2544_s4 }
  0x90   : > { %v387_v14 = vrot.slane %v386_v4, 4  ;;  %v378_v20 = vsel %vm3293_vm5, %v373_v3, %v377_v62  ;;  %v600_v21 = vrot.slane %v289_v56, 5  ;;  %v408_v24 = vshrl.u32 %v3316_v11, 16  ;;  %v2792_v3 = vld [vmem:[%s3216_s30 + $0x30] sm:$0xff]   ;;  %s4155_s27 = scalar_lea.vmem [#allocation8], %s2358_s11  ;;  %s2206_s15 = scalar_lea.sflag [#allocation4], %s3204_s19 }
  0x91   : > { %v331_v15 = vrot.slane %v330_v8, 4  ;;  %v391_v16 = vrot.slane %v389_v10, 5  ;;  %v411_v25 = vshll.u32 %v3316_v11, 16  ;;  %v417_v29 = vshll.u32 %v3321_v17, 16  ;;  %2621 = vmatprep.subr.bf16.mxu1 %v2792_v3  ;;  %s2221_s16 = sshll.u32 %s4155_s27, 4  ;;  %p4363_p5 = scmp.ne.s32.totalorder %s4331_s24, 0  ;;  %s4257_s16 = int_to_ptr.vmem [resolvable:$true] %s2221_s16 }
  0x92   : > { %826 = vrot.lane.b32.xlu1 %v3318_v13, %s2992_s21  ;;  %v422_v30 = vshrl.u32 %v3324_v18, 16  ;;  %v410_v35 = vrot.slane %v408_v24, 4  ;;  %v3352_v38 = vcombine.low %v364_v6, %v378_v20  ;;  %v425_v42 = vshll.u32 %v3324_v18, 16  ;;  %s2897_s1 = scalar_lea.vmem %s4257_s16, 1024  ;;  %s2995_s7 = smov [#allocation8]  }
  0x93   : > { %v336_v28 = vsel %vm3293_vm5, %v331_v15, %v335_v9  ;;  %v3349_v34 = vsel %vm3293_vm5, %v387_v14, %v391_v16  ;;  %v413_v36 = vrot.slane %v411_v25, 5  ;;  %v431_v44 = vshll.u32 %v3330_v22, 16  ;;  %2622 = vmatpush3.bf16.msra.mxu1 %v2792_v3  ;;  %p2898_p1 = scmp.ne.s32.totalorder %s4257_s16, %s2897_s1 }
  0x94   : > { %v3345_v33 = vcombine.low %v336_v28, %v350_v63  ;;  %v424_v41 = vrot.slane %v422_v30, 4  ;;  %v601_v45 = vsel %vm3267_vm4, %v2363_v19, %v600_v21  ;;  %v394_v47 = vshrl.u32 %v3342_v31, 16  ;;  %v2793_v19 = vld [vmem:[%s3216_s30 + $0x38] sm:$0xff]   ;;  %v3396_v21 = vld [vmem:[%s3208_s20 + $0x60] sm:$0xf] }
  0x95   : > { %v414_v46 = vor.u32 %v413_v36, %v410_v35  ;;  %v397_v49 = vshll.u32 %v3342_v31, 16  ;;  %v3366_v51 = vcombine.low %v378_v20, %v3349_v34  ;;  %v419_v53 = vrot.slane %v417_v29, 5  ;;  %2623 = vmatprep.subr.bf16.mxu1 %v2793_v19  ;;  %v297_v28 = vld [vmem:[%s3208_s20 + $0x44] sm:$0x1]  ;;  %v3411_v29 = vld [vmem:[%s3208_s20 + $0x68] sm:$0xf]  ;;  %p2899_p8 = pnand %p2898_p1, %p4363_p5 }
  0x96   : > { %774 = vrot.lane.b32.xlu0 %v3345_v33, %s2991_s23  ;;  %1087 = vrot.lane.b32.xlu1 %v3318_v13, %s2990_s18  ;;  %v427_v54 = vrot.slane %v425_v42, 5  ;;  %v403_v55 = vshll.u32 %v291_v37, 16  ;;  %v433_v57 = vrot.slane %v431_v44, 5  ;;  %v396_v58 = vrot.slane %v394_v47, 4  ;;  %v3428_v42 = vld [vmem:[%s3208_s20 + $0x50] sm:$0xf] }
  0x97   : > { %v415_v56 = vrot.slane %v414_v46, 4  ;;  %v399_v59 = vrot.slane %v397_v49, 5  ;;  %v3374_v62 = vcombine.low %v3282_v40, %v601_v45  ;;  %v2364_v8 = vrot.slane %v3342_v31, 9  ;;  %2624 = vmatpush3.bf16.msra.mxu1 %v2793_v19  ;;  %v3431_v47 = vld [vmem:[%s3208_s20 + $0x64] sm:$0x1]  ;;  %p2900_p9 = pneg %p2899_p8 }
  0x98   : > { %v428_v61 = vor.u32 %v427_v54, %v424_v41  ;;  %v405_v6 = vrot.slane %v403_v55, 5  ;;  %v604_v9 = vrot.slane %v291_v37, 5  ;;  %v647_v15 = vshrl.u32 %v3369_v60, 16 }
  0x99   : > { %v400_v63 = vor.u32 %v399_v59, %v396_v58  ;;  %v420_v10 = vsel %vm3293_vm5, %v415_v56, %v419_v53  ;;  %v650_v40 = vshll.u32 %v3369_v60, 16  ;;  %v3393_v20 = vcombine.low %v3303_v52, %v3278_v39  ;;  %v3457_v59 = vld [vmem:[%s3208_s20 + $0x6c] sm:$0x1] }
  0x9a   : > { %776 = vrot.lane.b32.xlu0 %v3352_v38, %s2991_s23  ;;  %1089 = vrot.lane.b32.xlu1 %v3366_v51, %s2990_s18  ;;  %v429_v4 = vrot.slane %v428_v61, 4  ;;  %v3407_v26 = vsel %vm3267_vm4, %v2364_v8, %v604_v9  ;;  %v649_v39 = vrot.slane %v647_v15, 4  ;;  %v464_v30 = vshrl.u32 %v3396_v21, 16 }
  0x9b   : > { %v401_v14 = vrot.slane %v400_v63, 4  ;;  %v652_v52 = vrot.slane %v650_v40, 5  ;;  %v467_v32 = vshll.u32 %v3396_v21, 16  ;;  %v3423_v36 = vcombine.low %v601_v45, %v3407_v26  ;;  %v301_v40 = vld [vmem:[%s3208_s20 + $0x54] sm:$0x1] }
  0x9c   : > { %v3386_v16 = vsel %vm3293_vm5, %v429_v4, %v433_v57  ;;  %v2365_v37 = vrot.slane %v3316_v11, 9  ;;  %v608_v41 = vrot.slane %v3321_v17, 5  ;;  %v656_v46 = vshll.u32 %v297_v28, 16 }
  0x9d   : > { %v3401_v24 = vcombine.low %v420_v10, %v3386_v16  ;;  %v406_v25 = vsel %vm3293_vm5, %v401_v14, %v405_v6  ;;  %v653_v44 = vor.u32 %v652_v52, %v649_v39  ;;  %v481_v49 = vshll.u32 %v3411_v29, 16  ;;  %v303_v39 = vld [vmem:[%s3208_s20 + $0x5c] sm:$0x1] }
  0x9e   : > { %828 = vrot.lane.b32.xlu0 %v3366_v51, %s2992_s21  ;;  %1115 = vrot.lane.b32.xlu1 %v3374_v62, %s2992_s21  ;;  %v3418_v35 = vcombine.low %v3349_v34, %v406_v25  ;;  %v478_v34 = vshrl.u32 %v3411_v29, 16  ;;  %v2366_v45 = vrot.slane %v3324_v18, 9  ;;  %v612_v53 = vrot.slane %v3330_v22, 5 }
  0x9f   : > { %v466_v54 = vrot.slane %v464_v30, 4  ;;  %v469_v55 = vrot.slane %v467_v32, 5  ;;  %v3444_v17 = vcombine.low %v3342_v31, %v3316_v11  ;;  %v436_v56 = vshrl.u32 %v3428_v42, 16 }
  0xa0   : > { %v439_v57 = vshll.u32 %v3428_v42, 16  ;;  %v3450_v58 = vcombine.low %v406_v25, %v420_v10  ;;  %v3454_v22 = vcombine.low %v3324_v18, %v3369_v60  ;;  %v450_v61 = vshrl.u32 %v3436_v50, 16 }
  0xa1   : > { %4349 = vst [vmem:[#allocation17_spill] sm:$0xff] %v3444_v17  ;;  %v453_v63 = vshll.u32 %v3436_v50, 16  ;;  %v654_v3 = vrot.slane %v653_v44, 4  ;;  %v658_v4 = vrot.slane %v656_v46, 5  ;;  %v480_v6 = vrot.slane %v478_v34, 4 }
  0xa2   : > { %1113 = vrot.lane.b32.xlu0 %v3393_v20, %s2992_s21  ;;  %780 = vrot.lane.b32.xlu1 %v3401_v24, %s2991_s23  ;;  %4350 = vst [vmem:[#allocation18_spill] sm:$0xff] %v3454_v22  ;;  %v483_v8 = vrot.slane %v481_v49, 5  ;;  %v609_v9 = vsel %vm3267_vm4, %v2365_v37, %v608_v41  ;;  %v2375_v10 = vrot.slane %v3369_v60, 9  ;;  %v680_v14 = vrot.slane %v297_v28, 5 }
  0xa3   : > { %v473_v15 = vshll.u32 %v3431_v47, 16  ;;  %v613_v19 = vsel %vm3267_vm4, %v2366_v45, %v612_v53  ;;  %v470_v25 = vor.u32 %v469_v55, %v466_v54  ;;  %v438_v52 = vrot.slane %v436_v56, 4 }
  0xa4   : > { %v441_v30 = vrot.slane %v439_v57, 5  ;;  %v452_v32 = vrot.slane %v450_v61, 4  ;;  %v455_v37 = vrot.slane %v453_v63, 5  ;;  %v3475_v28 = vsel %vm3293_vm5, %v654_v3, %v658_v4  ;;  %v3496_v4 = vld [vmem:[%s3208_s20 + $0x70] sm:$0xf] }
  0xa5   : > { %v484_v41 = vor.u32 %v483_v8, %v480_v6  ;;  %v487_v44 = vshll.u32 %v3457_v59, 16  ;;  %v3478_v46 = vcombine.low %v609_v9, %v613_v19  ;;  %v3484_v34 = vsel %vm3267_vm4, %v2375_v10, %v680_v14 }
  0xa6   : > { %778 = vrot.lane.b32.xlu0 %v3418_v35, %s2991_s23  ;;  %1075 = vrot.lane.b32.xlu1 %v3423_v36, %s2991_s23  ;;  %v471_v49 = vrot.slane %v470_v25, 4  ;;  %v475_v45 = vrot.slane %v473_v15, 5  ;;  %v445_v53 = vshll.u32 %v301_v40, 16  ;;  %v3490_v54 = vcombine.low %v3386_v16, %v3475_v28 }
  0xa7   : > { %v442_v55 = vor.u32 %v441_v30, %v438_v52  ;;  %v456_v56 = vor.u32 %v455_v37, %v452_v32  ;;  %v459_v57 = vshll.u32 %v303_v39, 16  ;;  %v485_v61 = vrot.slane %v484_v41, 4 }
  0xa8   : > { %v489_v63 = vrot.slane %v487_v44, 5  ;;  %v3493_v3 = vcombine.low %v613_v19, %v3484_v34  ;;  %v476_v6 = vsel %vm3293_vm5, %v471_v49, %v475_v45  ;;  %v447_v8 = vrot.slane %v445_v53, 5  ;;  %v309_v49 = vld [vmem:[%s3208_s20 + $0x74] sm:$0x1] }
  0xa9   : > { %v2367_v16 = vrot.slane %v3428_v42, 9  ;;  %v616_v10 = vrot.slane %v301_v40, 5  ;;  %v443_v14 = vrot.slane %v442_v55, 4  ;;  %v457_v15 = vrot.slane %v456_v56, 4  ;;  %v3534_v55 = vld [vmem:[%s3208_s20 + $0x80] sm:$0xf] }
  0xaa   : > { %804 = vrot.lane.b32.xlu0 %v3444_v17, %s2990_s18  ;;  %830 = vrot.lane.b32.xlu1 %v3450_v58, %s2992_s21  ;;  %v461_v19 = vrot.slane %v459_v57, 5  ;;  %v2368_v25 = vrot.slane %v3436_v50, 9  ;;  %v3508_v52 = vsel %vm3293_vm5, %v485_v61, %v489_v63  ;;  %v620_v30 = vrot.slane %v303_v39, 5  ;;  %v3537_v56 = vld [vmem:[%s3208_s20 + $0x88] sm:$0xf] }
  0xab   : > { %v492_v32 = vshrl.u32 %v3496_v4, 16  ;;  %v495_v40 = vshll.u32 %v3496_v4, 16  ;;  %v3515_v37 = vcombine.low %v3407_v26, %v609_v9  ;;  %v3520_v41 = vcombine.low %v476_v6, %v3508_v52 }
  0xac   : > { %v448_v44 = vsel %vm3293_vm5, %v443_v14, %v447_v8  ;;  %v462_v39 = vsel %vm3293_vm5, %v457_v15, %v461_v19  ;;  %v617_v45 = vsel %vm3267_vm4, %v2367_v16, %v616_v10  ;;  %v3531_v26 = vsel %vm3267_vm4, %v2368_v25, %v620_v30  ;;  %v3551_v19 = vld [vmem:[%s3208_s20 + $0x78] sm:$0xf] }
  0xad   : > { %v494_v9 = vrot.slane %v492_v32, 4  ;;  %v497_v53 = vrot.slane %v495_v40, 5  ;;  %v3541_v57 = vcombine.low %v448_v44, %v462_v39  ;;  %v501_v61 = vshll.u32 %v309_v49, 16 }
  0xae   : > { %806 = vrot.lane.b32.xlu0 %v3454_v22, %s2990_s18  ;;  %1091 = vrot.lane.b32.xlu1 %v3450_v58, %s2990_s18  ;;  %v2427_v63 = vcombine.low %v617_v45, %v3531_v26  ;;  %v520_v8 = vshrl.u32 %v3534_v55, 16  ;;  %v523_v16 = vshll.u32 %v3534_v55, 16  ;;  %v534_v14 = vshrl.u32 %v3537_v56, 16 }
  0xaf   : > { %4351 = vst [vmem:[#allocation19_spill] sm:$0xff] %v3541_v57  ;;  %v498_v10 = vor.u32 %v497_v53, %v494_v9  ;;  %v537_v15 = vshll.u32 %v3537_v56, 16  ;;  %v3555_v25 = vcombine.low %v3436_v50, %v3396_v21  ;;  %v2369_v30 = vrot.slane %v3396_v21, 9 }
  0xb0   : > { %v624_v32 = vrot.slane %v3431_v47, 5  ;;  %v3559_v40 = vcombine.low %v462_v39, %v476_v6  ;;  %v2370_v44 = vrot.slane %v3411_v29, 9  ;;  %v628_v45 = vrot.slane %v3457_v59, 5  ;;  %v3569_v6 = vld [vmem:[%s3208_s20 + $0x84] sm:$0x1] }
  0xb1   : > { %4352 = vst [vmem:[#allocation20_spill] sm:$0xff] %v3555_v25  ;;  %v503_v9 = vrot.slane %v501_v61, 5  ;;  %v522_v53 = vrot.slane %v520_v8, 4  ;;  %v525_v22 = vrot.slane %v523_v16, 5  ;;  %v506_v17 = vshrl.u32 %v3551_v19, 16 }
  0xb2   : > { %1077 = vrot.lane.b32.xlu0 %v3478_v46, %s2991_s23  ;;  %1093 = vrot.lane.b32.xlu1 %v3490_v54, %s2990_s18  ;;  %v509_v5 = vshll.u32 %v3551_v19, 16  ;;  %v499_v47 = vrot.slane %v498_v10, 4  ;;  %v536_v39 = vrot.slane %v534_v14, 4  ;;  %v539_v12 = vrot.slane %v537_v15, 5  ;;  %v311_v14 = vld [vmem:[%s3208_s20 + $0x7c] sm:$0x1] }
  0xb3   : > { %v3577_v59 = vcombine.low %v3411_v29, %v3496_v4  ;;  %v625_v61 = vsel %vm3267_vm4, %v2369_v30, %v624_v32  ;;  %v3586_v8 = vcombine.low %v3226_v1, %v3342_v31  ;;  %v2371_v16 = vrot.slane %v3496_v4, 9 }
  0xb4   : > { %v3595_v10 = vcombine.low %v3316_v11, %v3324_v18  ;;  %v629_v1 = vsel %vm3267_vm4, %v2370_v44, %v628_v45  ;;  %v529_v31 = vshll.u32 %v3569_v6, 16  ;;  %v508_v15 = vrot.slane %v506_v17, 4 }
  0xb5   : > { %v511_v30 = vrot.slane %v509_v5, 5  ;;  %v526_v32 = vor.u32 %v525_v22, %v522_v53  ;;  %v3608_v11 = vcombine.low %v3396_v21, %v3411_v29  ;;  %v3612_v18 = vcombine.low %v625_v61, %v629_v1 }
  0xb6   : > { %832 = vrot.lane.b32.xlu0 %v3490_v54, %s2992_s21  ;;  %1119 = vrot.lane.b32.xlu1 %v3493_v3, %s2992_s21  ;;  %v515_v17 = vshll.u32 %v311_v14, 16  ;;  %v3618_v22 = vcombine.low %v3496_v4, %v3551_v19  ;;  %v3629_v44 = vcombine.low %v3534_v55, %v3537_v56  ;;  %v3632_v4 = vld [vmem:[%s3208_s20 + $0x90] sm:$0xf]  ;;  %vm867_vm6 = vcmask 261120  }
  0xb7   : > { %v512_v21 = vor.u32 %v511_v30, %v508_v15  ;;  %v527_v45 = vrot.slane %v526_v32, 4  ;;  %v636_v15 = vrot.slane %v311_v14, 5  ;;  %v3650_v30 = vcombine.low %v3531_v26, %v625_v61 }
  0xb8   : > { %vm842_vm7 = vcmask 130048   ;;  %vm884_vm8 = vcmask 392192   ;;  %vm933_vm9 = vcmask 523264   ;;  %vm2035_vm10 = vcmask 64512  }
  0xb9   : > { %vm2068_vm11 = vcmask 195584   ;;  %vm2188_vm12 = vcmask 257024  }
  0xba   : > { %1117 = vrot.lane.b32.xlu0 %v3515_v37, %s2992_s21  ;;  %784 = vrot.lane.b32.xlu1 %v3520_v41, %s2991_s23 }
  0xbe   : > { %782 = vrot.lane.b32.xlu0 %v3541_v57, %s2991_s23  ;;  %1079 = vrot.lane.b32.xlu1 %v2427_v63, %s2991_s23  ;;  %v3573_v57 = vcombine.low %v3239_v7, %v3223_v0  ;;  %v3582_v63 = vld [vmem:[%s3208_s20 + $0x8c] sm:$0x1]  ;;  %v632_v0 = vrot.slane %v309_v49, 5  ;;  %v504_v49 = vsel %vm3293_vm5, %v499_v47, %v503_v9  ;;  %v540_v7 = vor.u32 %v539_v12, %v536_v39 }
  0xbf   : > { %v3623_v12 = vcombine.low %v3508_v52, %v504_v49  ;;  %v531_v9 = vrot.slane %v529_v31, 5  ;;  %v513_v52 = vrot.slane %v512_v21, 4  ;;  %v661_v31 = vshrl.u32 %v3632_v4, 16 }
  0xc0   : > { %v633_v5 = vsel %vm3267_vm4, %v2371_v16, %v632_v0  ;;  %v541_v53 = vrot.slane %v540_v7, 4  ;;  %v517_v16 = vrot.slane %v515_v17, 5  ;;  %v2372_v0 = vrot.slane %v3551_v19, 9 }
  0xc1   : > { %v3636_v39 = vcombine.low %v629_v1, %v633_v5  ;;  %v532_v7 = vsel %vm3293_vm5, %v527_v45, %v531_v9  ;;  %v664_v1 = vshll.u32 %v3632_v4, 16  ;;  %v663_v21 = vrot.slane %v661_v31, 4  ;;  %v317_v9 = vld [vmem:[%s3208_s20 + $0x94] sm:$0x1] }
  0xc2   : > { %808 = vrot.lane.b32.xlu0 %v3555_v25, %s2990_s18  ;;  %834 = vrot.lane.b32.xlu1 %v3559_v40, %s2992_s21  ;;  %v543_v25 = vshll.u32 %v3582_v63, 16  ;;  %v518_v32 = vsel %vm3293_vm5, %v513_v52, %v517_v16  ;;  %v637_v17 = vsel %vm3267_vm4, %v2372_v0, %v636_v15  ;;  %v3673_v52 = vcombine.low %v3551_v19, %v3534_v55 }
  0xc3   : > { %v666_v45 = vrot.slane %v664_v1, 5  ;;  %v3667_v26 = vcombine.low %v633_v5, %v637_v17  ;;  %v2373_v16 = vrot.slane %v3534_v55, 9  ;;  %v640_v0 = vrot.slane %v3569_v6, 5 }
  0xc4   : > { %v545_v47 = vrot.slane %v543_v25, 5  ;;  %v2374_v5 = vrot.slane %v3537_v56, 9  ;;  %v644_v15 = vrot.slane %v3582_v63, 5  ;;  %v3687_v55 = vcombine.low %v3537_v56, %v3632_v4 }
  0xc5   : > { %v667_v61 = vor.u32 %v666_v45, %v663_v21  ;;  %v641_v19 = vsel %vm3267_vm4, %v2373_v16, %v640_v0 }
  0xc6   : > { %810 = vrot.lane.b32.xlu0 %v3577_v59, %s2990_s18  ;;  %1095 = vrot.lane.b32.xlu1 %v3559_v40, %s2990_s18  ;;  %v546_v25 = vsel %vm3293_vm5, %v541_v53, %v545_v47  ;;  %v3663_v53 = vcombine.low %v504_v49, %v518_v32  ;;  %v670_v47 = vshll.u32 %v317_v9, 16  ;;  %v3678_v49 = vcombine.low %v518_v32, %v532_v7 }
  0xc7   : > { %v3654_v14 = vcombine.low %v532_v7, %v546_v25  ;;  %v668_v31 = vrot.slane %v667_v61, 4  ;;  %4353 = vst [vmem:[#allocation21_spill] sm:$0xff] %v3687_v55  ;;  %v645_v6 = vsel %vm3267_vm4, %v2374_v5, %v644_v15  ;;  %v2376_v7 = vrot.slane %v3632_v4, 9  ;;  %v3714_v61 = vld [vmem:[%s3216_s30 + $0x40] sm:$0xff]  }
  0xc8   : > { %v672_v1 = vrot.slane %v670_v47, 5  ;;  %v684_v32 = vrot.slane %v317_v9, 5  ;;  %v3702_v56 = vcombine.low %v641_v19, %v645_v6  ;;  %2641 = vmatprep.subr.bf16.mxu0 %v3714_v61  ;;  %v3729_v47 = vcombine.low %v637_v17, %v641_v19  ;;  %v298_v17 = vld [vmem:[%s3208_s20 + $0x48] sm:$0xf]  ;;  %v299_v19 = vld [vmem:[%s3208_s20 + $0x4c] sm:$0x1] }
  0xc9   : > { %v687_v0 = vshrl.u32 %v298_v17, 16  ;;  %v690_v5 = vshll.u32 %v298_v17, 16 }
  0xca   : > { %1081 = vrot.lane.b32.xlu0 %v3612_v18, %s2991_s23  ;;  %1097 = vrot.lane.b32.xlu1 %v3623_v12, %s2990_s18  ;;  %v3697_v63 = vsel %vm3293_vm5, %v668_v31, %v672_v1  ;;  %v3711_v45 = vsel %vm3267_vm4, %v2376_v7, %v684_v32  ;;  %v696_v7 = vshll.u32 %v299_v19, 16 }
  0xcb   : > { %v3707_v21 = vcombine.low %v546_v25, %v3697_v63  ;;  %v3722_v9 = vcombine.low %v645_v6, %v3711_v45  ;;  %v3725_v25 = vld [vmem:[%s3216_s30 + $0x60] sm:$0xff]   ;;  %v689_v15 = vrot.slane %v687_v0, 4  ;;  %v692_v31 = vrot.slane %v690_v5, 5 }
  0xcc   : > { %2665 = vmatprep.subr.bf16.mxu1 %v3725_v25  ;;  %v698_v5 = vrot.slane %v696_v7, 5  ;;  %v720_v7 = vrot.slane %v299_v19, 5 }
  0xcd   : > { %v693_v6 = vor.u32 %v692_v31, %v689_v15 }
  0xce   : > { %836 = vrot.lane.b32.xlu0 %v3623_v12, %s2992_s21  ;;  %1123 = vrot.lane.b32.xlu1 %v3636_v39, %s2992_s21 }
  0xcf   : > { %v694_v0 = vrot.slane %v693_v6, 4  ;;  %v2377_v6 = vrot.slane %v298_v17, 9 }
  0xd2   : > { %1121 = vrot.lane.b32.xlu0 %v3650_v30, %s2992_s21  ;;  %788 = vrot.lane.b32.xlu1 %v3654_v14, %s2991_s23 }
  0xd6   : > { %786 = vrot.lane.b32.xlu0 %v3663_v53, %s2991_s23  ;;  %1083 = vrot.lane.b32.xlu1 %v3667_v26, %s2991_s23 }
  0xda   : > { %812 = vrot.lane.b32.xlu0 %v3673_v52, %s2990_s18  ;;  %838 = vrot.lane.b32.xlu1 %v3678_v49, %s2992_s21 }
  0xde   : > { %814 = vrot.lane.b32.xlu0 %v3687_v55, %s2990_s18  ;;  %1099 = vrot.lane.b32.xlu1 %v3678_v49, %s2990_s18 }
  0xe2   : > { %1085 = vrot.lane.b32.xlu0 %v3702_v56, %s2991_s23  ;;  %1101 = vrot.lane.b32.xlu1 %v3707_v21, %s2990_s18 }
  0xe6   : > { %840 = vrot.lane.b32.xlu0 %v3707_v21, %s2992_s21  ;;  %1127 = vrot.lane.b32.xlu1 %v3722_v9, %s2992_s21 }
  0xea   : > { %1125 = vrot.lane.b32.xlu0 %v3729_v47, %s2992_s21  ;;  %1333 = vrot.lane.b32.xlu1 %v3366_v51, %s2991_s23 }
  0xee   : > { %1331 = vrot.lane.b32.xlu0 %v3318_v13, %s2991_s23  ;;  %1589 = vrot.lane.b32.xlu1 %v3393_v20, %s2991_s23 }
  0xf2   : > { %1351 = vrot.lane.b32.xlu0 %v3573_v57, %s2990_s18  ;;  %1371 = vrot.lane.b32.xlu1 %v3352_v38, %s2992_s21 }
  0xf5   : > { %v803_v16 = vpop.permute.xlu0 %802 }
  0xf6   : > { %1353 = vrot.lane.b32.xlu0 %v3586_v8, %s2990_s18  ;;  %1605 = vrot.lane.b32.xlu1 %v3352_v38, %s2990_s18 }
  0xf7   : > { %v801_v20 = vpop.permute.xlu1 %800 }
  0xfa   : > { %1591 = vrot.lane.b32.xlu0 %v3374_v62, %s2991_s23  ;;  %1607 = vrot.lane.b32.xlu1 %v3418_v35, %s2990_s18 }
  0xfe   : > { %1373 = vrot.lane.b32.xlu0 %v3418_v35, %s2992_s21  ;;  %1627 = vrot.lane.b32.xlu1 %v3423_v36, %s2992_s21  ;;  %v1074_v62 = vpop.permute.xlu0 %1073 }
 0x100   : > { %v1072_v1 = vpop.permute.xlu1 %1071 }
 0x102   : > { %1625 = vrot.lane.b32.xlu0 %v3287_v43, %s2992_s21  ;;  %1337 = vrot.lane.b32.xlu1 %v3490_v54, %s2991_s23  ;;  %v4354_v43 = vcombine.low %v3263_v23, %v3229_v2  ;;  %v699_v23 = vsel %vm3293_vm5, %v694_v0, %v698_v5  ;;  %v2800_v0 = vld [vmem:[%s3216_s30 + $0x48] sm:$0xff]  }
 0x104   : > { %v827_v32 = vpop.permute.xlu1 %826 }
 0x106   : > { %1335 = vrot.lane.b32.xlu0 %v3450_v58, %s2991_s23  ;;  %1593 = vrot.lane.b32.xlu1 %v3515_v37, %s2991_s23  ;;  %v2459_v37 = vcombine.low %v3369_v60, %v298_v17  ;;  %v2461_v60 = vcombine.low %v3475_v28, %v699_v23  ;;  %v1131_v28 = vsel %vm842_vm7, %v3345_v33, %v1072_v1  ;;  %v2802_v33 = vld [vmem:[%s3216_s30 + $0x50] sm:$0xff]   ;;  %v2803_v1 = vld [vmem:[%s3216_s30 + $0x68] sm:$0xff]  }
 0x108   : > { %v775_v36 = vpop.permute.xlu0 %774  ;;  %v1088_v15 = vpop.permute.xlu1 %1087 }
 0x109   : > { %v845_v29 = vsel %vm842_vm7, %v4354_v43, %v775_v36  ;;  %v1154_v43 = vsel %vm867_vm6, %v1131_v28, %v1088_v15  ;;  %v2804_v15 = vld [vmem:[%s3216_s30 + $0x58] sm:$0xff]  }
 0x10a   : > { %1355 = vrot.lane.b32.xlu0 %v3595_v10, %s2990_s18  ;;  %v869_v31 = vsel %vm867_vm6, %v845_v29, %v801_v20  ;;  %1375 = vrot.lane.b32.xlu1 %v3401_v24, %s2992_s21 }
 0x10b   : > { %v886_v55 = vsel %vm884_vm8, %v869_v31, %v827_v32  ;;  %v721_v32 = vsel %vm3267_vm4, %v2377_v6, %v720_v7  ;;  %v2806_v7 = vld [vmem:[%s3216_s30 + $0x78] sm:$0xff]  }
 0x10c   : > { %2601 = vmatprep.mubr.msk.bf16.mxu0 %vm933_vm9, %v886_v55  ;;  %v777_v2 = vpop.permute.xlu0 %776  ;;  %v1090_v29 = vpop.permute.xlu1 %1089  ;;  %v2483_v5 = vcombine.low %v3484_v34, %v721_v32 }
 0x10d   : > { %v848_v36 = vsel %vm842_vm7, %v3573_v57, %v777_v2  ;;  %v1134_v57 = vsel %vm842_vm7, %v3352_v38, %v1074_v62 }
 0x10e   : > { %1357 = vrot.lane.b32.xlu0 %v2459_v37, %s2990_s18  ;;  %1609 = vrot.lane.b32.xlu1 %v3401_v24, %s2990_s18  ;;  %v871_v20 = vsel %vm867_vm6, %v848_v36, %v803_v16  ;;  %v1156_v16 = vsel %vm867_vm6, %v1134_v57, %v1090_v29  ;;  %v2805_v37 = vld [vmem:[%s3216_s30 + $0x70] sm:$0xff]  }
 0x110   : > { %v829_v55 = vpop.permute.xlu0 %828  ;;  %v1116_v19 = vpop.permute.xlu1 %1115 }
 0x111   : > { %v888_v17 = vsel %vm884_vm8, %v871_v20, %v829_v55  ;;  %v1172_v38 = vsel %vm884_vm8, %v1156_v16, %v1116_v19 }
 0x112   : > { %1595 = vrot.lane.b32.xlu0 %v3493_v3, %s2991_s23  ;;  %2602 = vmatmul.mubr.msk.bf16.vlgmr.msra.gmra.mrb[0].mxu0 %vm933_vm9, %v888_v17  ;;  %v318_v17 = vld [vmem:[%s3208_s20 + $0x98] sm:$0xf] }
 0x113   : > { %1611 = vrot.lane.b32.xlu1 %v2461_v60, %s2990_s18  ;;  %2642 = vmatpush3.bf16.msra.mxu0 %v3714_v61 }
 0x114   : > { %v1114_v62 = vpop.permute.xlu0 %1113  ;;  %2643 = vmatprep.subr.bf16.mxu0 %v2800_v0  ;;  %v781_v31 = vpop.permute.xlu1 %780 }
 0x115   : > { %v1170_v3 = vsel %vm884_vm8, %v1154_v43, %v1114_v62  ;;  %v704_v43 = vshll.u32 %v318_v17, 16 }
 0x116   : > { %1377 = vrot.lane.b32.xlu0 %v2461_v60, %s2992_s21  ;;  %2625 = vmatprep.mubr.msk.bf16.mxu1 %vm933_vm9, %v1170_v3 }
 0x117   : > { %2626 = vmatmul.mubr.msk.bf16.vlgmr.msra.gmra.mrb[0].mxu1 %vm933_vm9, %v1172_v38  ;;  %1631 = vrot.lane.b32.xlu1 %v2483_v5, %s2992_s21  ;;  %v706_v3 = vrot.slane %v704_v43, 5 }
 0x118   : > { %v779_v34 = vpop.permute.xlu0 %778  ;;  %2644 = vmatpush3.bf16.msra.mxu0 %v2800_v0  ;;  %2666 = vmatpush3.bf16.msra.mxu1 %v3725_v25  ;;  %v1076_v61 = vpop.permute.xlu1 %1075 }
 0x119   : > { %2645 = vmatprep.subr.bf16.mxu0 %v2802_v33  ;;  %2667 = vmatprep.subr.bf16.mxu1 %v2803_v1  ;;  %v851_v2 = vsel %vm842_vm7, %v3586_v8, %v779_v34 }
 0x11a   : > { %1629 = vrot.lane.b32.xlu0 %v3478_v46, %s2992_s21 }
 0x11b   : > { %1341 = vrot.lane.b32.xlu1 %v3623_v12, %s2991_s23 }
 0x11c   : > { %v805_v23 = vpop.permute.xlu0 %804  ;;  %2646 = vmatpush3.bf16.msra.mxu0 %v2802_v33  ;;  %2668 = vmatpush3.bf16.msra.mxu1 %v2803_v1  ;;  %v831_v6 = vpop.permute.xlu1 %830  ;;  %v319_v33 = vld [vmem:[%s3208_s20 + $0x9c] sm:$0x1]  ;;  %v4355_v1 = vcombine.low %v3428_v42, %v3436_v50  ;;  %s2901_s20 = sshll.u32 %s2995_s7, 4  ;;  %s2902_s20 = int_to_ptr.vmem [resolvable:$false] %s2901_s20 }
 0x11d   : > { %v873_v25 = vsel %vm867_vm6, %v851_v2, %v805_v23  ;;  %2647 = vmatprep.subr.bf16.mxu0 %v2804_v15  ;;  %2669 = vmatprep.subr.bf16.mxu1 %v2805_v37  ;;  %s2903_s28 = scalar_lea.vmem %s2902_s20, 2048  ;;  %p2904_p3 = scmp.lt.s32.totalorder %s4257_s16, %s2902_s20 }
 0x11e   : > { %1339 = vrot.lane.b32.xlu0 %v3559_v40, %s2991_s23  ;;  %v890_v46 = vsel %vm884_vm8, %v873_v25, %v831_v6  ;;  %v2460_v6 = vcombine.low %v3632_v4, %v318_v17  ;;  %p2905_p6 = scmp.lt.s32.totalorder %s2903_s28, %s2897_s1 }
 0x11f   : > { %1597 = vrot.lane.b32.xlu1 %v3650_v30, %s2991_s23  ;;  %2605 = vmatprep.mubr.msk.bf16.mxu0 %vm933_vm9, %v890_v46  ;;  %v854_v30 = vsel %vm842_vm7, %v3595_v10, %v781_v31  ;;  %v1137_v10 = vsel %vm842_vm7, %v3418_v35, %v1076_v61 }
 0x120   : > { %v807_v8 = vpop.permute.xlu0 %806  ;;  %2648 = vmatpush3.bf16.msra.mxu0 %v2804_v15  ;;  %2670 = vmatpush3.bf16.msra.mxu1 %v2805_v37  ;;  %v1092_v36 = vpop.permute.xlu1 %1091  ;;  %v710_v37 = vshll.u32 %v319_v33, 16  ;;  %p2906_p10 = por %p2905_p6, %p2904_p3 }
 0x121   : > { %2671 = vmatprep.subr.bf16.mxu1 %v2806_v7  ;;  %v875_v20 = vsel %vm867_vm6, %v854_v30, %v807_v8  ;;  %v1158_v28 = vsel %vm867_vm6, %v1137_v10, %v1092_v36  ;;  %v2378_v8 = vrot.slane %v318_v17, 9 }
 0x122   : > { %1359 = vrot.lane.b32.xlu0 %v3608_v11, %s2990_s18  ;;  %v712_v50 = vrot.slane %v710_v37, 5  ;;  %p2907_p12 = pnand %p2906_p10, %p2900_p9 }
 0x123   : > { %1379 = vrot.lane.b32.xlu1 %v3520_v41, %s2992_s21 }
 0x124   : > { %v1078_v29 = vpop.permute.xlu0 %1077  ;;  %2672 = vmatpush3.bf16.msra.mxu1 %v2806_v7  ;;  %v1094_v60 = vpop.permute.xlu1 %1093 }
 0x125   : > { %v1140_v19 = vsel %vm842_vm7, %v3401_v24, %v1078_v29  ;;  %v701_v24 = vshrl.u32 %v318_v17, 16 }
 0x126   : > { %1361 = vrot.lane.b32.xlu0 %v3618_v22, %s2990_s18  ;;  %v1160_v57 = vsel %vm867_vm6, %v1140_v19, %v1094_v60 }
 0x127   : > { %1613 = vrot.lane.b32.xlu1 %v3520_v41, %s2990_s18  ;;  %v703_v62 = vrot.slane %v701_v24, 4 }
 0x128   : > { %v833_v55 = vpop.permute.xlu0 %832  ;;  %v1120_v0 = vpop.permute.xlu1 %1119 }
 0x129   : > { %v892_v32 = vsel %vm884_vm8, %v875_v20, %v833_v55  ;;  %v1176_v16 = vsel %vm884_vm8, %v1160_v57, %v1120_v0  ;;  %v707_v15 = vor.u32 %v706_v3, %v703_v62 }
 0x12a   : > { %1599 = vrot.lane.b32.xlu0 %v3636_v39, %s2991_s23  ;;  %2606 = vmatmul.mubr.msk.bf16.gmra.mrb[4].mxu0 %vm933_vm9, %v892_v32 }
 0x12b   : > { %1615 = vrot.lane.b32.xlu1 %v3663_v53, %s2990_s18  ;;  %v708_v42 = vrot.slane %v707_v15, 4 }
 0x12c   : > { %v1118_v5 = vpop.permute.xlu0 %1117  ;;  %v785_v38 = vpop.permute.xlu1 %784 }
 0x12d   : > { %v1174_v39 = vsel %vm884_vm8, %v1158_v28, %v1118_v5  ;;  %v713_v46 = vsel %vm3293_vm5, %v708_v42, %v712_v50  ;;  %v860_v29 = vsel %vm842_vm7, %v3608_v11, %v785_v38  ;;  %v4356_v11 = vld [vmem:[#allocation19_spill] sm:$0xff] }
 0x12e   : > { %1381 = vrot.lane.b32.xlu0 %v3663_v53, %s2992_s21  ;;  %2629 = vmatprep.mubr.msk.bf16.mxu1 %vm933_vm9, %v1174_v39  ;;  %v2462_v4 = vcombine.low %v3697_v63, %v713_v46 }
 0x12f   : > { %2630 = vmatmul.mubr.msk.bf16.gmra.mrb[4].mxu1 %vm933_vm9, %v1176_v16  ;;  %1635 = vrot.lane.b32.xlu1 %v3667_v26, %s2992_s21 }
 0x130   : > { %v783_v35 = vpop.permute.xlu0 %782  ;;  %v1080_v31 = vpop.permute.xlu1 %1079 }
 0x131   : > { %v857_v34 = vsel %vm842_vm7, %v4355_v1, %v783_v35  ;;  %v1143_v63 = vsel %vm842_vm7, %v4356_v11, %v1080_v31 }
 0x132   : > { %1633 = vrot.lane.b32.xlu0 %v3612_v18, %s2992_s21 }
 0x133   : > { %1345 = vrot.lane.b32.xlu1 %v3707_v21, %s2991_s23 }
 0x134   : > { %v809_v61 = vpop.permute.xlu0 %808  ;;  %v835_v2 = vpop.permute.xlu1 %834 }
 0x135   : > { %v877_v26 = vsel %vm867_vm6, %v857_v34, %v809_v61 }
 0x136   : > { %1343 = vrot.lane.b32.xlu0 %v3678_v49, %s2991_s23  ;;  %v894_v23 = vsel %vm884_vm8, %v877_v26, %v835_v2 }
 0x137   : > { %1601 = vrot.lane.b32.xlu1 %v3729_v47, %s2991_s23  ;;  %2609 = vmatprep.mubr.msk.bf16.mxu0 %vm933_vm9, %v894_v23  ;;  %v724_v47 = vrot.slane %v319_v33, 5 }
 0x138   : > { %v811_v18 = vpop.permute.xlu0 %810  ;;  %v1096_v25 = vpop.permute.xlu1 %1095 }
 0x139   : > { %v879_v60 = vsel %vm867_vm6, %v860_v29, %v811_v18  ;;  %v725_v48 = vsel %vm3267_vm4, %v2378_v8, %v724_v47  ;;  %v1162_v17 = vsel %vm867_vm6, %v1143_v63, %v1096_v25  ;;  %v4357_v18 = vld [vmem:[#allocation16_spill] sm:$0xff] }
 0x13a   : > { %1363 = vrot.lane.b32.xlu0 %v3629_v44, %s2990_s18  ;;  %v2484_v27 = vcombine.low %v3711_v45, %v725_v48 }
 0x13b   : > { %1383 = vrot.lane.b32.xlu1 %v3654_v14, %s2992_s21 }
 0x13c   : > { %v1082_v7 = vpop.permute.xlu0 %1081  ;;  %v1098_v36 = vpop.permute.xlu1 %1097 }
 0x13d   : > { %v1146_v32 = vsel %vm842_vm7, %v3520_v41, %v1082_v7 }
 0x13e   : > { %1365 = vrot.lane.b32.xlu0 %v2460_v6, %s2990_s18  ;;  %v1164_v0 = vsel %vm867_vm6, %v1146_v32, %v1098_v36  ;;  %v4358_v36 = vld [vmem:[#allocation15_spill] sm:$0xff] }
 0x13f   : > { %1617 = vrot.lane.b32.xlu1 %v3654_v14, %s2990_s18 }
 0x140   : > { %v837_v30 = vpop.permute.xlu0 %836  ;;  %v1124_v55 = vpop.permute.xlu1 %1123 }
 0x141   : > { %v896_v20 = vsel %vm884_vm8, %v879_v60, %v837_v30  ;;  %v1180_v19 = vsel %vm884_vm8, %v1164_v0, %v1124_v55 }
 0x142   : > { %1603 = vrot.lane.b32.xlu0 %v3722_v9, %s2991_s23  ;;  %2610 = vmatmul.mubr.msk.bf16.gmra.mrb[8].mxu0 %vm933_vm9, %v896_v20 }
 0x143   : > { %1619 = vrot.lane.b32.xlu1 %v2462_v4, %s2990_s18 }
 0x144   : > { %v1122_v10 = vpop.permute.xlu0 %1121  ;;  %v789_v57 = vpop.permute.xlu1 %788 }
 0x145   : > { %v1178_v41 = vsel %vm884_vm8, %v1162_v17, %v1122_v10  ;;  %v866_v3 = vsel %vm842_vm7, %v3629_v44, %v789_v57  ;;  %v4359_v10 = vld [vmem:[#allocation17_spill] sm:$0xff] }
 0x146   : > { %1385 = vrot.lane.b32.xlu0 %v2462_v4, %s2992_s21  ;;  %2633 = vmatprep.mubr.msk.bf16.mxu1 %vm933_vm9, %v1178_v41 }
 0x147   : > { %2634 = vmatmul.mubr.msk.bf16.gmra.mrb[8].mxu1 %vm933_vm9, %v1180_v19  ;;  %1639 = vrot.lane.b32.xlu1 %v2484_v27, %s2992_s21 }
 0x148   : > { %v787_v9 = vpop.permute.xlu0 %786  ;;  %v1084_v28 = vpop.permute.xlu1 %1083 }
 0x149   : > { %v863_v45 = vsel %vm842_vm7, %v3618_v22, %v787_v9  ;;  %v1149_v34 = vsel %vm842_vm7, %v3663_v53, %v1084_v28 }
 0x14a   : > { %1637 = vrot.lane.b32.xlu0 %v3702_v56, %s2992_s21 }
 0x14c   : > { %v813_v16 = vpop.permute.xlu0 %812  ;;  %v839_v24 = vpop.permute.xlu1 %838 }
 0x14d   : > { %v881_v5 = vsel %vm867_vm6, %v863_v45, %v813_v16 }
 0x14e   : > { %v898_v43 = vsel %vm884_vm8, %v881_v5, %v839_v24 }
 0x14f   : > { %2613 = vmatprep.mubr.msk.bf16.mxu0 %vm933_vm9, %v898_v43  ;;  %v4360_v43 = vld [vmem:[#allocation18_spill] sm:$0xff] }
 0x150   : > { %v815_v39 = vpop.permute.xlu0 %814  ;;  %v1100_v38 = vpop.permute.xlu1 %1099 }
 0x151   : > { %v883_v56 = vsel %vm867_vm6, %v866_v3, %v815_v39  ;;  %v1166_v15 = vsel %vm867_vm6, %v1149_v34, %v1100_v38 }
 0x154   : > { %v1086_v35 = vpop.permute.xlu0 %1085  ;;  %v1102_v62 = vpop.permute.xlu1 %1101 }
 0x155   : > { %v1152_v1 = vsel %vm842_vm7, %v3654_v14, %v1086_v35 }
 0x156   : > { %v1168_v61 = vsel %vm867_vm6, %v1152_v1, %v1102_v62 }
 0x158   : > { %v841_v31 = vpop.permute.xlu0 %840  ;;  %v1128_v33 = vpop.permute.xlu1 %1127 }
 0x159   : > { %v900_v22 = vsel %vm884_vm8, %v883_v56, %v841_v31  ;;  %v1184_v44 = vsel %vm884_vm8, %v1168_v61, %v1128_v33 }
 0x15a   : > { %2614 = vmatmul.mubr.msk.bf16.gmra.mrb[12].mxu0 %vm933_vm9, %v900_v22 }
 0x15c   : > { %v1126_v37 = vpop.permute.xlu0 %1125  ;;  %v1334_v2 = vpop.permute.xlu1 %1333 }
 0x15d   : > { %v1182_v26 = vsel %vm884_vm8, %v1166_v15, %v1126_v37  ;;  %v1392_v29 = vsel %vm842_vm7, %v4358_v36, %v1334_v2  ;;  %v4361_v37 = vld [vmem:[#allocation20_spill] sm:$0xff] }
 0x15e   : > { %2637 = vmatprep.mubr.msk.bf16.mxu1 %vm933_vm9, %v1182_v26 }
 0x15f   : > { %2638 = vmatmul.mubr.msk.bf16.gmra.mrb[12].mxu1 %vm933_vm9, %v1184_v44 }
 0x160   : > { %v1332_v14 = vpop.permute.xlu0 %1331  ;;  %v1590_v23 = vpop.permute.xlu1 %1589 }
 0x161   : > { %v1389_v42 = vsel %vm842_vm7, %v4357_v18, %v1332_v14  ;;  %v1643_v55 = vsel %vm842_vm7, %v3318_v13, %v1590_v23 }
 0x164   : > { %v1352_v53 = vpop.permute.xlu0 %1351  ;;  %v1372_v25 = vpop.permute.xlu1 %1371 }
 0x165   : > { %v1412_v50 = vsel %vm867_vm6, %v1389_v42, %v1352_v53 }
 0x166   : > { %v1428_v6 = vsel %vm884_vm8, %v1412_v50, %v1372_v25 }
 0x167   : > { %2649 = vmatprep.mubr.msk.bf16.mxu0 %vm933_vm9, %v1428_v6 }
 0x168   : > { %v1354_v7 = vpop.permute.xlu0 %1353  ;;  %v1606_v46 = vpop.permute.xlu1 %1605 }
 0x169   : > { %v1414_v4 = vsel %vm867_vm6, %v1392_v29, %v1354_v7  ;;  %v1666_v11 = vsel %vm867_vm6, %v1643_v55, %v1606_v46 }
 0x16c   : > { %v1592_v8 = vpop.permute.xlu0 %1591  ;;  %v1608_v47 = vpop.permute.xlu1 %1607 }
 0x16d   : > { %v1646_v20 = vsel %vm842_vm7, %v3366_v51, %v1592_v8 }
 0x16e   : > { %v1668_v32 = vsel %vm867_vm6, %v1646_v20, %v1608_v47 }
 0x170   : > { %v1374_v60 = vpop.permute.xlu0 %1373  ;;  %v1628_v48 = vpop.permute.xlu1 %1627 }
 0x171   : > { %v1430_v30 = vsel %vm884_vm8, %v1414_v4, %v1374_v60  ;;  %v1684_v63 = vsel %vm884_vm8, %v1668_v32, %v1628_v48 }
 0x172   : > { %2650 = vmatmul.mubr.msk.bf16.vlgmr.msra.gmra.mrb[16].mxu0 %vm933_vm9, %v1430_v30 }
 0x174   : > { %v1626_v0 = vpop.permute.xlu0 %1625  ;;  %v1338_v17 = vpop.permute.xlu1 %1337 }
 0x175   : > { %v1682_v27 = vsel %vm884_vm8, %v1666_v11, %v1626_v0  ;;  %v1398_v39 = vsel %vm842_vm7, %v4360_v43, %v1338_v17 }
 0x176   : > { %2673 = vmatprep.mubr.msk.bf16.mxu1 %vm933_vm9, %v1682_v27 }
 0x177   : > { %2674 = vmatmul.mubr.msk.bf16.vlgmr.msra.gmra.mrb[16].mxu1 %vm933_vm9, %v1684_v63 }
 0x178   : > { %v1336_v51 = vpop.permute.xlu0 %1335  ;;  %v1594_v19 = vpop.permute.xlu1 %1593 }
 0x179   : > { %v1395_v41 = vsel %vm842_vm7, %v4359_v10, %v1336_v51  ;;  %v1649_v31 = vsel %vm842_vm7, %v3450_v58, %v1594_v19  ;;  %v4362_v19 = vld [vmem:[#allocation21_spill] sm:$0xff] }
 0x17c   : > { %v1356_v13 = vpop.permute.xlu0 %1355  ;;  %v1376_v9 = vpop.permute.xlu1 %1375 }
 0x17d   : > { %v1416_v57 = vsel %vm867_vm6, %v1395_v41, %v1356_v13 }
 0x17e   : > { %v1432_v28 = vsel %vm884_vm8, %v1416_v57, %v1376_v9 }
 0x17f   : > { %2653 = vmatprep.mubr.msk.bf16.mxu0 %vm933_vm9, %v1432_v28 }
 0x180   : > { %v1358_v45 = vpop.permute.xlu0 %1357  ;;  %v1610_v16 = vpop.permute.xlu1 %1609 }
 0x181   : > { %v1418_v38 = vsel %vm867_vm6, %v1398_v39, %v1358_v45  ;;  %v1670_v33 = vsel %vm867_vm6, %v1649_v31, %v1610_v16 }
 0x184   : > { %v1596_v5 = vpop.permute.xlu0 %1595 }
 0x185   : > { %v1612_v24 = vpop.permute.xlu1 %1611  ;;  %v1652_v56 = vsel %vm842_vm7, %v3490_v54, %v1596_v5 }
 0x186   : > { %v1672_v22 = vsel %vm867_vm6, %v1652_v56, %v1612_v24 }
 0x188   : > { %v1378_v35 = vpop.permute.xlu0 %1377 }
 0x189   : > { %v1434_v62 = vsel %vm884_vm8, %v1418_v38, %v1378_v35  ;;  %v1632_v3 = vpop.permute.xlu1 %1631 }
 0x18a   : > { %2654 = vmatmul.mubr.msk.bf16.gmra.mrb[20].mxu0 %vm933_vm9, %v1434_v62  ;;  %v1688_v1 = vsel %vm884_vm8, %v1672_v22, %v1632_v3 }
 0x18c   : > { %v1630_v34 = vpop.permute.xlu0 %1629 }
 0x18d   : > { %v1686_v61 = vsel %vm884_vm8, %v1670_v33, %v1630_v34  ;;  %v1342_v15 = vpop.permute.xlu1 %1341 }
 0x18e   : > { %2677 = vmatprep.mubr.msk.bf16.mxu1 %vm933_vm9, %v1686_v61  ;;  %v1404_v25 = vsel %vm842_vm7, %v3577_v59, %v1342_v15 }
 0x18f   : > { %2678 = vmatmul.mubr.msk.bf16.gmra.mrb[20].mxu1 %vm933_vm9, %v1688_v1 }
 0x190   : > { %v1340_v54 = vpop.permute.xlu0 %1339 }
 0x191   : > { %v1598_v44 = vpop.permute.xlu1 %1597  ;;  %v1401_v26 = vsel %vm842_vm7, %v4361_v37, %v1340_v54 }
 0x192   : > { %v1655_v36 = vsel %vm842_vm7, %v3559_v40, %v1598_v44 }
 0x194   : > { %v1360_v58 = vpop.permute.xlu0 %1359 }
 0x195   : > { %v1420_v2 = vsel %vm867_vm6, %v1401_v26, %v1360_v58  ;;  %v1380_v14 = vpop.permute.xlu1 %1379 }
 0x196   : > { %v1436_v23 = vsel %vm884_vm8, %v1420_v2, %v1380_v14 }
 0x197   : > { %2657 = vmatprep.mubr.msk.bf16.mxu0 %vm933_vm9, %v1436_v23 }
 0x198   : > { %v1362_v18 = vpop.permute.xlu0 %1361 }
 0x199   : > { %v1614_v42 = vpop.permute.xlu1 %1613  ;;  %v1422_v6 = vsel %vm867_vm6, %v1404_v25, %v1362_v18 }
 0x19a   : > { %v1674_v4 = vsel %vm867_vm6, %v1655_v36, %v1614_v42 }
 0x19c   : > { %v1600_v53 = vpop.permute.xlu0 %1599 }
 0x19d   : > { %v1616_v50 = vpop.permute.xlu1 %1615  ;;  %v1658_v47 = vsel %vm842_vm7, %v3623_v12, %v1600_v53 }
 0x19e   : > { %v1676_v29 = vsel %vm867_vm6, %v1658_v47, %v1616_v50 }
 0x1a0   : > { %v1382_v7 = vpop.permute.xlu0 %1381 }
 0x1a1   : > { %v1438_v46 = vsel %vm884_vm8, %v1422_v6, %v1382_v7  ;;  %v1636_v8 = vpop.permute.xlu1 %1635 }
 0x1a2   : > { %2658 = vmatmul.mubr.msk.bf16.gmra.mrb[24].mxu0 %vm933_vm9, %v1438_v46  ;;  %v1692_v59 = vsel %vm884_vm8, %v1676_v29, %v1636_v8 }
 0x1a4   : > { %v1634_v60 = vpop.permute.xlu0 %1633 }
 0x1a5   : > { %v1690_v30 = vsel %vm884_vm8, %v1674_v4, %v1634_v60  ;;  %v1346_v48 = vpop.permute.xlu1 %1345 }
 0x1a6   : > { %2681 = vmatprep.mubr.msk.bf16.mxu1 %vm933_vm9, %v1690_v30  ;;  %v1410_v10 = vsel %vm842_vm7, %v4362_v19, %v1346_v48 }
 0x1a7   : > { %2682 = vmatmul.mubr.msk.bf16.gmra.mrb[24].mxu1 %vm933_vm9, %v1692_v59 }
 0x1a8   : > { %v1344_v12 = vpop.permute.xlu0 %1343 }
 0x1a9   : > { %v1602_v20 = vpop.permute.xlu1 %1601  ;;  %v1407_v55 = vsel %vm842_vm7, %v3673_v52, %v1344_v12 }
 0x1aa   : > { %v1661_v28 = vsel %vm842_vm7, %v3678_v49, %v1602_v20 }
 0x1ac   : > { %v1364_v40 = vpop.permute.xlu0 %1363 }
 0x1ad   : > { %v1424_v32 = vsel %vm867_vm6, %v1407_v55, %v1364_v40  ;;  %v1384_v11 = vpop.permute.xlu1 %1383 }
 0x1ae   : > { %v1440_v63 = vsel %vm884_vm8, %v1424_v32, %v1384_v11 }
 0x1af   : > { %2661 = vmatprep.mubr.msk.bf16.mxu0 %vm933_vm9, %v1440_v63 }
 0x1b0   : > { %v1366_v0 = vpop.permute.xlu0 %1365 }
 0x1b1   : > { %v1618_v27 = vpop.permute.xlu1 %1617  ;;  %v1426_v41 = vsel %vm867_vm6, %v1410_v10, %v1366_v0 }
 0x1b2   : > { %v1678_v16 = vsel %vm867_vm6, %v1661_v28, %v1618_v27 }
 0x1b4   : > { %v1604_v17 = vpop.permute.xlu0 %1603 }
 0x1b5   : > { %v1620_v51 = vpop.permute.xlu1 %1619  ;;  %v1664_v9 = vsel %vm842_vm7, %v3707_v21, %v1604_v17 }
 0x1b6   : > { %v1680_v45 = vsel %vm867_vm6, %v1664_v9, %v1620_v51 }
 0x1b8   : > { %v1386_v13 = vpop.permute.xlu0 %1385 }
 0x1b9   : > { %v1442_v52 = vsel %vm884_vm8, %v1426_v41, %v1386_v13  ;;  %v1640_v57 = vpop.permute.xlu1 %1639 }
 0x1ba   : > { %2662 = vmatmul.mubr.msk.bf16.gmra.mrb[28].mxu0 %vm933_vm9, %v1442_v52  ;;  %v1696_v5 = vsel %vm884_vm8, %v1680_v45, %v1640_v57 }
 0x1bc   : > { %v1638_v24 = vpop.permute.xlu0 %1637 }
 0x1bd   : > { %v1694_v43 = vsel %vm884_vm8, %v1678_v16, %v1638_v24 }
 0x1be   : > { %2685 = vmatprep.mubr.msk.bf16.mxu1 %vm933_vm9, %v1694_v43 }
 0x1bf   : > { %2686 = vmatmul.mubr.msk.bf16.gmra.mrb[28].mxu1 %vm933_vm9, %v1696_v5 }
 0x1e5   : > { %v4014_v39 = vpop.f32.mrb[0].mxu0 }
 0x1e6   : > { %v4016_v21 = vpop.f32.mrb[1].mxu0 }
 0x1e7   : > { %v4018_v38 = vpop.f32.mrb[2].mxu0 }
 0x1e8   : > { %v4020_v49 = vpop.f32.mrb[3].mxu0 }
 0x1ea   : > { %v2627_v35 = vpop.f32.mrb[0].mxu1 }
 0x1eb   : > { %1863 = vrot.lane.b32.xlu0 %v2627_v35, %s2993_s5  ;;  %v1268_v62 = vpop.f32.mrb[1].mxu1 }
 0x1ec   : > { %v2628_v3 = vpop.f32.mrb[2].mxu1 }
 0x1ed   : > { %1865 = vrot.lane.b32.xlu1 %v2628_v3, %s2993_s5  ;;  %v1271_v56 = vpop.f32.mrb[3].mxu1 }
 0x1ef   : > { %1859 = vrot.lane.b32.xlu0 %v1268_v62, %s2993_s5 }
 0x1f1   : > { %1861 = vrot.lane.b32.xlu1 %v1271_v56, %s2993_s5 }
 0x1fd   : > { %v4026_v31 = vpop.f32.mrb[4].mxu0 }
 0x1fe   : > { %v4028_v22 = vpop.f32.mrb[5].mxu0 }
 0x1ff   : > { %v4030_v33 = vpop.f32.mrb[6].mxu0 }
 0x200   : > { %v4032_v1 = vpop.f32.mrb[7].mxu0 }
 0x202   : > { %v2631_v34 = vpop.f32.mrb[4].mxu1 }
 0x203   : > { %1871 = vrot.lane.b32.xlu0 %v2631_v34, %s2993_s5  ;;  %v1284_v61 = vpop.f32.mrb[5].mxu1 }
 0x204   : > { %v2632_v15 = vpop.f32.mrb[6].mxu1 }
 0x205   : > { %1873 = vrot.lane.b32.xlu1 %v2632_v15, %s2993_s5  ;;  %v1287_v54 = vpop.f32.mrb[7].mxu1 }
 0x207   : > { %1867 = vrot.lane.b32.xlu0 %v1284_v61, %s2993_s5 }
 0x209   : > { %1869 = vrot.lane.b32.xlu1 %v1287_v54, %s2993_s5 }
 0x215   : > { %v4038_v44 = vpop.f32.mrb[8].mxu0 }
 0x216   : > { %v4040_v37 = vpop.f32.mrb[9].mxu0 }
 0x217   : > { %v4042_v26 = vpop.f32.mrb[10].mxu0 }
 0x218   : > { %v4044_v58 = vpop.f32.mrb[11].mxu0 }
 0x21a   : > { %v2635_v2 = vpop.f32.mrb[8].mxu1 }
 0x21b   : > { %1879 = vrot.lane.b32.xlu0 %v2635_v2, %s2993_s5  ;;  %v1300_v14 = vpop.f32.mrb[9].mxu1 }
 0x21c   : > { %v2636_v23 = vpop.f32.mrb[10].mxu1 }
 0x21d   : > { %1881 = vrot.lane.b32.xlu1 %v2636_v23, %s2993_s5  ;;  %v1303_v18 = vpop.f32.mrb[11].mxu1 }
 0x21f   : > { %1875 = vrot.lane.b32.xlu0 %v1300_v14, %s2993_s5 }
 0x221   : > { %1877 = vrot.lane.b32.xlu1 %v1303_v18, %s2993_s5 }
 0x22d   : > { %v4050_v42 = vpop.f32.mrb[12].mxu0 }
 0x22e   : > { %v4052_v53 = vpop.f32.mrb[13].mxu0 }
 0x22f   : > { %v4054_v50 = vpop.f32.mrb[14].mxu0 }
 0x230   : > { %v4056_v25 = vpop.f32.mrb[15].mxu0 }
 0x232   : > { %v2639_v6 = vpop.f32.mrb[12].mxu1 }
 0x233   : > { %1887 = vrot.lane.b32.xlu0 %v2639_v6, %s2993_s5  ;;  %v1316_v7 = vpop.f32.mrb[13].mxu1 }
 0x234   : > { %v2640_v46 = vpop.f32.mrb[14].mxu1 }
 0x235   : > { %1889 = vrot.lane.b32.xlu1 %v2640_v46, %s2993_s5  ;;  %v1319_v8 = vpop.f32.mrb[15].mxu1 }
 0x237   : > { %1883 = vrot.lane.b32.xlu0 %v1316_v7, %s2993_s5 }
 0x239   : > { %1885 = vrot.lane.b32.xlu1 %v1319_v8, %s2993_s5 }
 0x245   : > { %v2651_v47 = vpop.f32.mrb[16].mxu0 }
 0x246   : > { %v1526_v36 = vpop.f32.mrb[17].mxu0 }
 0x247   : > { %v2652_v29 = vpop.f32.mrb[18].mxu0 }
 0x248   : > { %v1529_v4 = vpop.f32.mrb[19].mxu0 }
 0x24a   : > { %v2675_v59 = vpop.f32.mrb[16].mxu1 }
 0x24b   : > { %1991 = vrot.lane.b32.xlu0 %v2675_v59, %s2994_s29  ;;  %v1780_v60 = vpop.f32.mrb[17].mxu1 }
 0x24c   : > { %v2676_v30 = vpop.f32.mrb[18].mxu1 }
 0x24d   : > { %1993 = vrot.lane.b32.xlu1 %v2676_v30, %s2994_s29  ;;  %v1783_v48 = vpop.f32.mrb[19].mxu1 }
 0x24f   : > { %1927 = vrot.lane.b32.xlu0 %v2651_v47, %s2991_s23 }
 0x251   : > { %1929 = vrot.lane.b32.xlu1 %v2652_v29, %s2991_s23 }
 0x253   : > { %1987 = vrot.lane.b32.xlu0 %v1780_v60, %s2994_s29 }
 0x255   : > { %1989 = vrot.lane.b32.xlu1 %v1783_v48, %s2994_s29 }
 0x257   : > { %1923 = vrot.lane.b32.xlu0 %v1526_v36, %s2991_s23 }
 0x259   : > { %1925 = vrot.lane.b32.xlu1 %v1529_v4, %s2991_s23 }
 0x25d   : > { %v2655_v12 = vpop.f32.mrb[20].mxu0  ;;  %v1864_v10 = vpop.permute.xlu0 %1863 }
 0x25e   : > { %v1542_v20 = vpop.f32.mrb[21].mxu0 }
 0x25f   : > { %v2656_v55 = vpop.f32.mrb[22].mxu0  ;;  %v1866_v13 = vpop.permute.xlu1 %1865 }
 0x260   : > { %v1545_v40 = vpop.f32.mrb[23].mxu0 }
 0x261   : > { %v4080_v28 = vpop.permute.xlu0 %1859 }
 0x262   : > { %v2679_v32 = vpop.f32.mrb[20].mxu1 }
 0x263   : > { %1999 = vrot.lane.b32.xlu0 %v2679_v32, %s2994_s29  ;;  %v1796_v11 = vpop.f32.mrb[21].mxu1  ;;  %v4083_v45 = vpop.permute.xlu1 %1861 }
 0x264   : > { %v2680_v63 = vpop.f32.mrb[22].mxu1 }
 0x265   : > { %2001 = vrot.lane.b32.xlu1 %v2680_v63, %s2994_s29  ;;  %v1799_v0 = vpop.f32.mrb[23].mxu1 }
 0x267   : > { %1935 = vrot.lane.b32.xlu0 %v2655_v12, %s2991_s23 }
 0x269   : > { %1937 = vrot.lane.b32.xlu1 %v2656_v55, %s2991_s23 }
 0x26b   : > { %1995 = vrot.lane.b32.xlu0 %v1796_v11, %s2994_s29 }
 0x26d   : > { %1997 = vrot.lane.b32.xlu1 %v1799_v0, %s2994_s29 }
 0x26f   : > { %1931 = vrot.lane.b32.xlu0 %v1542_v20, %s2991_s23 }
 0x271   : > { %1933 = vrot.lane.b32.xlu1 %v1545_v40, %s2991_s23 }
 0x275   : > { %v2659_v27 = vpop.f32.mrb[24].mxu0  ;;  %v4086_v16 = vpop.permute.xlu0 %1871 }
 0x276   : > { %v1558_v17 = vpop.f32.mrb[25].mxu0 }
 0x277   : > { %v2660_v51 = vpop.f32.mrb[26].mxu0  ;;  %v4089_v5 = vpop.permute.xlu1 %1873 }
 0x278   : > { %v1561_v19 = vpop.f32.mrb[27].mxu0 }
 0x279   : > { %v4093_v24 = vpop.permute.xlu0 %1867 }
 0x27a   : > { %v2683_v41 = vpop.f32.mrb[24].mxu1 }
 0x27b   : > { %2007 = vrot.lane.b32.xlu0 %v2683_v41, %s2994_s29  ;;  %v1812_v52 = vpop.f32.mrb[25].mxu1  ;;  %v4096_v43 = vpop.permute.xlu1 %1869 }
 0x27c   : > { %v2684_v57 = vpop.f32.mrb[26].mxu1 }
 0x27d   : > { %2009 = vrot.lane.b32.xlu1 %v2684_v57, %s2994_s29  ;;  %v1815_v9 = vpop.f32.mrb[27].mxu1 }
 0x27f   : > { %1943 = vrot.lane.b32.xlu0 %v2659_v27, %s2991_s23 }
 0x281   : > { %1945 = vrot.lane.b32.xlu1 %v2660_v51, %s2991_s23 }
 0x283   : > { %2003 = vrot.lane.b32.xlu0 %v1812_v52, %s2994_s29 }
 0x285   : > { %2005 = vrot.lane.b32.xlu1 %v1815_v9, %s2994_s29 }
 0x287   : > { %1939 = vrot.lane.b32.xlu0 %v1558_v17, %s2991_s23 }
 0x289   : > { %1941 = vrot.lane.b32.xlu1 %v1561_v19, %s2991_s23 }
 0x28d   : > { %v2663_v35 = vpop.f32.mrb[28].mxu0  ;;  %v1880_v62 = vpop.permute.xlu0 %1879 }
 0x28e   : > { %v4100_v3 = vsel %vm2035_vm10, %v4038_v44, %v1880_v62  ;;  %v1574_v56 = vpop.f32.mrb[29].mxu0  ;;  %1951 = vrot.lane.b32.xlu0 %v2663_v35, %s2991_s23 }
 0x28f   : > { %v2664_v34 = vpop.f32.mrb[30].mxu0  ;;  %v1882_v61 = vpop.permute.xlu1 %1881 }
 0x290   : > { %v4105_v15 = vsel %vm2035_vm10, %v4042_v26, %v1882_v61  ;;  %v1577_v54 = vpop.f32.mrb[31].mxu0  ;;  %1953 = vrot.lane.b32.xlu1 %v2664_v34, %s2991_s23  ;;  %v2042_v34 = vsel %vm2035_vm10, %v4026_v31, %v4086_v16 }
 0x291   : > { %v1876_v2 = vpop.permute.xlu0 %1875 }
 0x292   : > { %v4110_v14 = vsel %vm2035_vm10, %v4040_v37, %v1876_v2  ;;  %v2687_v23 = vpop.f32.mrb[28].mxu1  ;;  %v2043_v2 = vsel %vm2035_vm10, %v4030_v33, %v4089_v5  ;;  %v2040_v33 = vsel %vm2035_vm10, %v4028_v22, %v4093_v24 }
 0x293   : > { %v1878_v44 = vpop.permute.xlu1 %1877  ;;  %v1828_v18 = vpop.f32.mrb[29].mxu1 }
 0x294   : > { %v4114_v6 = vsel %vm2035_vm10, %v4044_v58, %v1878_v44  ;;  %2011 = vrot.lane.b32.xlu0 %v1828_v18, %s2994_s29  ;;  %v2688_v7 = vpop.f32.mrb[30].mxu1 }
 0x295   : > { %v1831_v26 = vpop.f32.mrb[31].mxu1 }
 0x296   : > { %2013 = vrot.lane.b32.xlu1 %v1831_v26, %s2994_s29 }
 0x298   : > { %1947 = vrot.lane.b32.xlu0 %v1574_v56, %s2991_s23 }
 0x29a   : > { %1949 = vrot.lane.b32.xlu1 %v1577_v54, %s2991_s23 }
 0x29c   : > { %2015 = vrot.lane.b32.xlu0 %v2687_v23, %s2994_s29 }
 0x29e   : > { %2017 = vrot.lane.b32.xlu1 %v2688_v7, %s2994_s29 }
 0x2a5   : > { %v1888_v37 = vpop.permute.xlu0 %1887 }
 0x2a6   : > { %v4124_v58 = vsel %vm2035_vm10, %v4050_v42, %v1888_v37  ;;  %v2038_v42 = vsel %vm2035_vm10, %v4014_v39, %v1864_v10  ;;  %v2037_v10 = vsel %vm2035_vm10, %v4020_v49, %v4083_v45 }
 0x2a7   : > { %v1890_v46 = vpop.permute.xlu1 %1889 }
 0x2a8   : > { %v4128_v8 = vsel %vm2035_vm10, %v4054_v50, %v1890_v46  ;;  %v4141_v50 = vld [vmem:[%s242_s8] ss:$0 sm:$0xff] }
 0x2a9   : > { %v1884_v47 = vpop.permute.xlu0 %1883 }
 0x2aa   : > { %v4132_v36 = vsel %vm2035_vm10, %v4052_v53, %v1884_v47  ;;  %v2039_v53 = vsel %vm2035_vm10, %v4018_v38, %v1866_v13  ;;  %v2036_v38 = vsel %vm2035_vm10, %v4016_v21, %v4080_v28 }
 0x2ab   : > { %v1886_v29 = vpop.permute.xlu1 %1885 }
 0x2ac   : > { %v4136_v4 = vsel %vm2035_vm10, %v4056_v25, %v1886_v29 }
 0x2bd   : > { %v1992_v59 = vpop.permute.xlu0 %1991 }
 0x2bf   : > { %v1994_v60 = vpop.permute.xlu1 %1993 }
 0x2c1   : > { %v1928_v30 = vpop.permute.xlu0 %1927 }
 0x2c2   : > { %v2054_v48 = vsel %vm842_vm7, %v2038_v42, %v1928_v30  ;;  %v2041_v42 = vsel %vm2035_vm10, %v4032_v1, %v4096_v43 }
 0x2c3   : > { %v2071_v12 = vsel %vm2068_vm11, %v2054_v48, %v1992_v59  ;;  %v1930_v20 = vpop.permute.xlu1 %1929 }
 0x2c4   : > { %v2094_v25 = vadd.f32 %v4141_v50, %v2071_v12  ;;  %v2055_v55 = vsel %vm842_vm7, %v2039_v53, %v1930_v20 }
 0x2c5   : > { %v2072_v40 = vsel %vm2068_vm11, %v2055_v55, %v1994_v60  ;;  %v1988_v39 = vpop.permute.xlu0 %1987 }
 0x2c6   : > { %v2110_v32 = vmax.f32 %v2094_v25, 0.0  ;;  %v2095_v11 = vadd.f32 %v4141_v50, %v2072_v40 }
 0x2c7   : > { %v1990_v63 = vpop.permute.xlu1 %1989 }
 0x2c8   : > { %v2530_v0 = vpack.c.bf16 %v2110_v32, %v2110_v32  ;;  %v2111_v27 = vmax.f32 %v2095_v11, 0.0 }
 0x2c9   : > { %v1924_v17 = vpop.permute.xlu0 %1923 }
 0x2ca   : > { %2191 = vst.msk [vmem:[%s4155_s27 + $0x8] sm:$0xf] %vm2188_vm12, %v2530_v0  ;;  %v2531_v51 = vpack.c.bf16 %v2111_v27, %v2111_v27  ;;  %v2052_v19 = vsel %vm842_vm7, %v2036_v38, %v1924_v17 }
 0x2cb   : > { %v2069_v41 = vsel %vm2068_vm11, %v2052_v19, %v1988_v39  ;;  %v1926_v13 = vpop.permute.xlu1 %1925 }
 0x2cc   : > { %2192 = vst.msk [vmem:[%s4155_s27 + $0xc] sm:$0xf] %vm2188_vm12, %v2531_v51  ;;  %v2092_v21 = vadd.f32 %v4141_v50, %v2069_v41  ;;  %v2053_v52 = vsel %vm842_vm7, %v2037_v10, %v1926_v13 }
 0x2cd   : > { %v2070_v57 = vsel %vm2068_vm11, %v2053_v52, %v1990_v63 }
 0x2ce   : > { %v2108_v9 = vmax.f32 %v2092_v21, 0.0  ;;  %v2093_v28 = vadd.f32 %v4141_v50, %v2070_v57 }
 0x2d0   : > { %v2528_v35 = vpack.c.bf16 %v2108_v9, %v2108_v9  ;;  %v2109_v62 = vmax.f32 %v2093_v28, 0.0 }
 0x2d2   : > { %2189 = vst.msk [vmem:[%s4155_s27] sm:$0xf] %vm2188_vm12, %v2528_v35  ;;  %v2529_v56 = vpack.c.bf16 %v2109_v62, %v2109_v62 }
 0x2d4   : > { %2190 = vst.msk [vmem:[%s4155_s27 + $0x4] sm:$0xf] %vm2188_vm12, %v2529_v56 }
 0x2d5   : > { %v2000_v49 = vpop.permute.xlu0 %1999 }
 0x2d7   : > { %v2002_v45 = vpop.permute.xlu1 %2001 }
 0x2d9   : > { %v1936_v61 = vpop.permute.xlu0 %1935 }
 0x2da   : > { %v2058_v54 = vsel %vm842_vm7, %v2042_v34, %v1936_v61 }
 0x2db   : > { %v2075_v23 = vsel %vm2068_vm11, %v2058_v54, %v2000_v49  ;;  %v1938_v44 = vpop.permute.xlu1 %1937 }
 0x2dc   : > { %v2098_v18 = vadd.f32 %v4141_v50, %v2075_v23  ;;  %v2059_v7 = vsel %vm842_vm7, %v2043_v2, %v1938_v44 }
 0x2dd   : > { %v2076_v26 = vsel %vm2068_vm11, %v2059_v7, %v2002_v45  ;;  %v1996_v37 = vpop.permute.xlu0 %1995 }
 0x2de   : > { %v2114_v31 = vmax.f32 %v2098_v18, 0.0  ;;  %v2099_v16 = vadd.f32 %v4141_v50, %v2076_v26 }
 0x2df   : > { %v1998_v46 = vpop.permute.xlu1 %1997 }
 0x2e0   : > { %v2534_v47 = vpack.c.bf16 %v2114_v31, %v2114_v31  ;;  %v2115_v29 = vmax.f32 %v2099_v16, 0.0 }
 0x2e1   : > { %v1932_v5 = vpop.permute.xlu0 %1931 }
 0x2e2   : > { %2195 = vst.msk [vmem:[%s4155_s27 + $0x18] sm:$0xf] %vm2188_vm12, %v2534_v47  ;;  %v2535_v59 = vpack.c.bf16 %v2115_v29, %v2115_v29  ;;  %v2056_v60 = vsel %vm842_vm7, %v2040_v33, %v1932_v5 }
 0x2e3   : > { %v2073_v30 = vsel %vm2068_vm11, %v2056_v60, %v1996_v37  ;;  %v1934_v48 = vpop.permute.xlu1 %1933 }
 0x2e4   : > { %2196 = vst.msk [vmem:[%s4155_s27 + $0x1c] sm:$0xf] %vm2188_vm12, %v2535_v59  ;;  %v2096_v53 = vadd.f32 %v4141_v50, %v2073_v30  ;;  %v2057_v22 = vsel %vm842_vm7, %v2041_v42, %v1934_v48 }
 0x2e5   : > { %v2074_v24 = vsel %vm2068_vm11, %v2057_v22, %v1998_v46 }
 0x2e6   : > { %v2112_v12 = vmax.f32 %v2096_v53, 0.0  ;;  %v2097_v20 = vadd.f32 %v4141_v50, %v2074_v24 }
 0x2e8   : > { %v2532_v25 = vpack.c.bf16 %v2112_v12, %v2112_v12  ;;  %v2113_v55 = vmax.f32 %v2097_v20, 0.0 }
 0x2ea   : > { %2193 = vst.msk [vmem:[%s4155_s27 + $0x10] sm:$0xf] %vm2188_vm12, %v2532_v25  ;;  %v2533_v40 = vpack.c.bf16 %v2113_v55, %v2113_v55 }
 0x2ec   : > { %2194 = vst.msk [vmem:[%s4155_s27 + $0x14] sm:$0xf] %vm2188_vm12, %v2533_v40 }
 0x2ed   : > { %v2008_v1 = vpop.permute.xlu0 %2007 }
 0x2ef   : > { %v2010_v43 = vpop.permute.xlu1 %2009 }
 0x2f1   : > { %v1944_v39 = vpop.permute.xlu0 %1943 }
 0x2f2   : > { %v2062_v32 = vsel %vm842_vm7, %v4100_v3, %v1944_v39 }
 0x2f3   : > { %v2079_v11 = vsel %vm2068_vm11, %v2062_v32, %v2008_v1  ;;  %v1946_v63 = vpop.permute.xlu1 %1945 }
 0x2f4   : > { %v2102_v0 = vadd.f32 %v4141_v50, %v2079_v11  ;;  %v2063_v27 = vsel %vm842_vm7, %v4105_v15, %v1946_v63 }
 0x2f5   : > { %v2080_v38 = vsel %vm2068_vm11, %v2063_v27, %v2010_v43  ;;  %v2004_v17 = vpop.permute.xlu0 %2003 }
 0x2f6   : > { %v2118_v51 = vmax.f32 %v2102_v0, 0.0  ;;  %v2103_v19 = vadd.f32 %v4141_v50, %v2080_v38 }
 0x2f7   : > { %v2006_v10 = vpop.permute.xlu1 %2005 }
 0x2f8   : > { %v2538_v41 = vpack.c.bf16 %v2118_v51, %v2118_v51  ;;  %v2119_v13 = vmax.f32 %v2103_v19, 0.0 }
 0x2f9   : > { %v1940_v3 = vpop.permute.xlu0 %1939 }
 0x2fa   : > { %2199 = vst.msk [vmem:[%s4155_s27 + $0x28] sm:$0xf] %vm2188_vm12, %v2538_v41  ;;  %v2539_v21 = vpack.c.bf16 %v2119_v13, %v2119_v13  ;;  %v2060_v52 = vsel %vm842_vm7, %v4110_v14, %v1940_v3 }
 0x2fb   : > { %v2077_v15 = vsel %vm2068_vm11, %v2060_v52, %v2004_v17  ;;  %v1942_v57 = vpop.permute.xlu1 %1941 }
 0x2fc   : > { %2200 = vst.msk [vmem:[%s4155_s27 + $0x2c] sm:$0xf] %vm2188_vm12, %v2539_v21  ;;  %v2100_v9 = vadd.f32 %v4141_v50, %v2077_v15  ;;  %v2061_v28 = vsel %vm842_vm7, %v4114_v6, %v1942_v57 }
 0x2fd   : > { %v2078_v35 = vsel %vm2068_vm11, %v2061_v28, %v2006_v10 }
 0x2fe   : > { %v2116_v62 = vmax.f32 %v2100_v9, 0.0  ;;  %v2101_v56 = vadd.f32 %v4141_v50, %v2078_v35 }
 0x300   : > { %v2536_v49 = vpack.c.bf16 %v2116_v62, %v2116_v62  ;;  %v2117_v45 = vmax.f32 %v2101_v56, 0.0  ;;  %v1952_v34 = vpop.permute.xlu0 %1951 }
 0x301   : > { %v2066_v37 = vsel %vm842_vm7, %v4124_v58, %v1952_v34 }
 0x302   : > { %2197 = vst.msk [vmem:[%s4155_s27 + $0x20] sm:$0xf] %vm2188_vm12, %v2536_v49  ;;  %v2537_v14 = vpack.c.bf16 %v2117_v45, %v2117_v45  ;;  %v1954_v61 = vpop.permute.xlu1 %1953 }
 0x303   : > { %v2067_v29 = vsel %vm842_vm7, %v4128_v8, %v1954_v61 }
 0x304   : > { %2198 = vst.msk [vmem:[%s4155_s27 + $0x24] sm:$0xf] %vm2188_vm12, %v2537_v14 }
 0x306   : > { %v2012_v54 = vpop.permute.xlu0 %2011 }
 0x308   : > { %v2014_v2 = vpop.permute.xlu1 %2013 }
 0x30a   : > { %v1948_v23 = vpop.permute.xlu0 %1947 }
 0x30b   : > { %v2064_v6 = vsel %vm842_vm7, %v4132_v36, %v1948_v23 }
 0x30c   : > { %v2081_v44 = vsel %vm2068_vm11, %v2064_v6, %v2012_v54  ;;  %v1950_v18 = vpop.permute.xlu1 %1949 }
 0x30d   : > { %v2104_v7 = vadd.f32 %v4141_v50, %v2081_v44  ;;  %v2065_v26 = vsel %vm842_vm7, %v4136_v4, %v1950_v18 }
 0x30e   : > { %v2082_v31 = vsel %vm2068_vm11, %v2065_v26, %v2014_v2  ;;  %v2016_v16 = vpop.permute.xlu0 %2015 }
 0x30f   : > { %v2120_v46 = vmax.f32 %v2104_v7, 0.0  ;;  %v2105_v36 = vadd.f32 %v4141_v50, %v2082_v31  ;;  %v2083_v47 = vsel %vm2068_vm11, %v2066_v37, %v2016_v16 }
 0x310   : > { %v2106_v33 = vadd.f32 %v4141_v50, %v2083_v47  ;;  %v2018_v4 = vpop.permute.xlu1 %2017 }
 0x311   : > { %v2540_v5 = vpack.c.bf16 %v2120_v46, %v2120_v46  ;;  %v2121_v58 = vmax.f32 %v2105_v36, 0.0  ;;  %v2084_v59 = vsel %vm2068_vm11, %v2067_v29, %v2018_v4 }
 0x312   : > { %v2122_v60 = vmax.f32 %v2106_v33, 0.0  ;;  %v2107_v42 = vadd.f32 %v4141_v50, %v2084_v59 }
 0x313   : > { %2201 = vst.msk [vmem:[%s4155_s27 + $0x30] sm:$0xf] %vm2188_vm12, %v2540_v5  ;;  %v2541_v30 = vpack.c.bf16 %v2121_v58, %v2121_v58 }
 0x314   : > { %v2542_v8 = vpack.c.bf16 %v2122_v60, %v2122_v60  ;;  %v2123_v48 = vmax.f32 %v2107_v42, 0.0 }
 0x315   : > { %2202 = vst.msk [vmem:[%s4155_s27 + $0x34] sm:$0xf] %vm2188_vm12, %v2541_v30 }
 0x316   : > { %2203 = vst.msk [vmem:[%s4155_s27 + $0x38] sm:$0xf] %vm2188_vm12, %v2542_v8  ;;  %v2543_v50 = vpack.c.bf16 %v2123_v48, %v2123_v48 }
 0x318   : > { %2204 = vst.msk [vmem:[%s4155_s27 + $0x3c] sm:$0xf] %vm2188_vm12, %v2543_v50 }
 0x319   : > { %2910 = shalt.err (!%p2907_p12)
}
 0x31a   : > { %s2911_s10 = scalar_lea.hbm %s4255_s6, 1024  ;;  %s2915_s18 = scalar_lea.hbm %s4312_s3, 8192 }
 0x31b   : > { %p2912_p11 = scmp.ne.s32.totalorder %s4255_s6, %s2911_s10  ;;  %p2916_p4 = scmp.lt.u32.totalorder %s4255_s6, %s4312_s3 }
 0x31c   : > { %p2917_p0 = scmp.lt.u32.totalorder %s2915_s18, %s2911_s10  ;;  %p2919_p1 = scmp.lt.u32.totalorder %s2911_s10, %s4255_s6 }
 0x31d   : > { %p2913_p7 = pnand %p2912_p11, %p4363_p5 }
 0x31e   : > { %p2918_p13 = por %p2917_p0, %p2916_p4 }
 0x31f   : > { %p2914_p2 = pneg %p2913_p7 }
 0x320   : > { %p2920_p8 = por %p2919_p1, %p2918_p13 }
 0x322   : > { %p2921_p9 = pnand %p2920_p8, %p2914_p2 }
 0x324   : > { %2924 = shalt.err (!%p2921_p9)
}
 0x325   : > { %s2996_s5 = smov 64   ;;  %s2997_s29 = smov 4  }
 0x326   : > { %2698 = dma.vmem_to_hbm [thread:$0]  (%p4363_p5), %s4257_s16, 1024, %s4255_s6, %s2206_s15, %s2996_s5, %s2996_s5, %s2997_s29  }
 0x327 PF: > { %p2715_p3 = scmp.ge.s32.totalorder %s2983_s17, 2  ;;  %s2236_s8 = sand.u32 1, %s2963_s12  }
 0x328   : > { %p4364_p6 = scmp.ne.s32.totalorder %s4333_s26, 0  ;;  %s2237_s11 = scalar_lea.sflag [#allocation4], %s2236_s8 }
 0x32a   : > { %p2711_p10 = pnand %p2715_p3, %p4364_p6 }
 0x32c   : > { %2958 = dma.done.wait (!%p2711_p10), %s2237_s11, 1024  }
 0x32d   : > { %2960 = vsyncadd (!%p2711_p10), %s2237_s11, 4294966272  ;;  %s22_s17 = sadd.s32 1, %s2983_s17   ;;  %s4365_s27 = sld [smem:[#allocation14_spill]] }
 0x32e   : > { %p19_p12 = scmp.ge.s32.totalorder %s22_s17, 10   ;;  %s4366_s15 = sld [smem:[#allocation12_spill]] }
 0x32f   : > { %s4367_s16 = sld [smem:[#allocation13_spill]]  ;;  %s4368_s12 = smov %s2967_s13 }
 0x330   : > { %s4369_s13 = smov %s2971_s14  ;;  %21 = sbr.rel (!%p19_p12) target bundleno = 10 (0xa), region = 105 }
 0x333   : > { %s4370_s14 = smov %s4365_s27 }
 0x337   :  { %2242 = vsyncpa [#allocation3], 1 }
 0x338   :  { %2244 = vsyncpa [#allocation3 + $0x1], 1 }
 0x339   :  { %2245 = vsyncpa [#allocation6], 1 }
 0x33a   :  { %2247 = vsyncpa [#allocation6 + $0x1], 1 }
 0x33b   :  { %2248 = vsyncpa [#allocation4], 1 }
 0x33c   :  { %2250 = vsyncpa [#allocation4 + $0x1], 1 }

// kernel: bimla_head_forward.3
= control target key start
LH: loop header
LB: loop body
LE: loop exit
PB: predicated region body
PF: predicated region fallthrough
CT: control target
= control target key end

     0   :  { %s11191_s0 = inlined_call_operand.hbm [shape: bf16[8,2,18,18,8], index: 0, kind: input, shape index: {}]   ;;  %s11192_s1 = inlined_call_operand.hbm [shape: bf16[8,4,32,32], index: 1, kind: input, shape index: {}]   ;;  %s11193_s2 = inlined_call_operand.hbm [shape: f32[8,1,128], index: 2, kind: input, shape index: {}]   ;;  %s11194_s3 = inlined_call_operand.hbm [shape: bf16[8,2,16,16,128], index: 3, kind: output, shape index: {}]  }
   0x1   :  { %11331 = sst [smem:[#allocation163_spill]] %s11192_s1 }
   0x2   :  { %8 = vsyncpa [#allocation3], 0 }
   0x3   :  { %10 = vsyncpa [#allocation3 + $0x1], 0 }
   0x4   :  { %11 = vsyncpa [#allocation6], 0 }
   0x5   :  { %13 = vsyncpa [#allocation6 + $0x1], 0 }
   0x6   :  { %14 = vsyncpa [#allocation4], 0 }
   0x7   :  { %16 = vsyncpa [#allocation4 + $0x1], 0  ;;  %s7223_s12 = smov 0   ;;  %s7225_s13 = smov 0  }
   0x8   :  { %s7227_s14 = smov 0   ;;  %s7229_s15 = smov 0  }
   0x9   :  { %s7231_s16 = smov 0   ;;  %s7233_s17 = smov 0  }
   0xa LB: > { %11332 = sst [smem:[#allocation12_spill]] %s7184_s16  ;;  %s7254_s18 = sadd.s32 4294967295, %s7188_s17   ;;  %s7188_s17 = sphi %s7233_s17, %s22_s17   ;;  %s7184_s16 = sphi %s7231_s16, %s11939_s16   ;;  %s7180_s15 = sphi %s7229_s15, %s11938_s15   ;;  %s7176_s14 = sphi %s7227_s14, %s11942_s14   ;;  %s7172_s13 = sphi %s7225_s13, %s11941_s13   ;;  %s7168_s12 = sphi %s7223_s12, %s11940_s12  }
   0xb   : > { %s5750_s19 = sadd.s32 4294967294, %s7188_s17   ;;  %s34_s20 = sadd.s32 1, %s7184_s16 }
   0xc   : > { %s41_s21 = sadd.s32 1, %s7176_s14  ;;  %p36_p0 = scmp.ge.s32.totalorder %s34_s20, 8 }
   0xd   : > { %p48_p1 = scmp.ne.s32.totalorder %s7176_s14, %s7172_s13  ;;  %p49_p2 = scmp.eq.s32.totalorder %s7188_s17, 0 }
   0xe   : > { %p54_p3 = scmp.ne.s32.totalorder %s7172_s13, %s7168_s12  ;;  %s11944_s20 = smov (%p36_p0, %s34_s20), 0 }
   0xf   : > { %11333 = sst [smem:[#allocation13_spill]] %s11944_s20  ;;  %p50_p4 = por %p49_p2, %p48_p1 }
  0x10   : > { %p55_p5 = scmp.eq.s32.totalorder %s7254_s18, 0  ;;  %s38_s22 = ssub.s32 %s7184_s16, %s11944_s20 }
  0x11   : > { %p132_p6 = scmp.eq.s32.totalorder %s7254_s18, 7  ;;  %p39_p7 = scmp.eq.s32.totalorder %s38_s22, 0 }
  0x12   : > { %p7270_p8 = por %p55_p5, %p54_p3  ;;  %p138_p10 = scmp.eq.s32.totalorder %s5750_s19, 7 }
  0x13   : > { %p7274_p9 = por %p132_p6, %p48_p1  ;;  %p6813_p12 = scmp.lt.s32.totalorder %s7188_s17, 8 }
  0x14   : > { %s11334_s23 = scalar_select %p7270_p8, 1, 0 }
  0x15   : > { %s11335_s24 = scalar_select %p7274_p9, 1, 0 }
  0x16   : > { %s7279_s25 = scalar_select %p39_p7, %s7176_s14, %s41_s21  }
  0x17   : > { %p7281_p11 = por %p138_p10, %p54_p3  ;;  %s7287_s27 = sand.u32 1, %s7176_s14  }
  0x18   : > { %11336 = sst [smem:[#allocation14_spill]] %s7279_s25  ;;  %p7289_p13 = pnand %p6813_p12, %p50_p4 }
  0x19   : > { %s11337_s26 = scalar_select %p7281_p11, 1, 0 }
  0x1a   : > { %s11338_s28 = scalar_select %p7289_p13, 1, 0 }
  0x1b   : > { %s179_s29 = sand.u32 1, %s7188_s17   ;;  %s5754_s30 = sshll.u32 %s7287_s27, 6 }
  0x1c   : > { %s6123_s4 = sshll.u32 %s7184_s16, 10  ;;  %s183_s5 = scalar_lea.vmem [#allocation5], %s5754_s30 }
  0x1d   : > { %s190_s6 = sshll.u32 %s183_s5, 4  ;;  %s11339_s1 = sld [smem:[#allocation163_spill]]  ;;  %s7301_s6 = int_to_ptr.vmem [resolvable:$true] %s190_s6 }
  0x1e   : > { %s7303_s10 = scalar_lea.sflag [#allocation6], %s179_s29  ;;  %p7309_p1 = pneg %p7289_p13 }
  0x23   : > { %s7299_s9 = scalar_lea.hbm %s11339_s1, %s6123_s4  ;;  %s7017_s30 = scalar_lea.hbm %s11339_s1, 8192 }
  0x24   : > { %s7012_s11 = scalar_lea.hbm %s7299_s9, 1024  ;;  %p7018_p4 = scmp.lt.u32.totalorder %s7299_s9, %s11339_s1 }
  0x25   : > { %p7013_p0 = scmp.ne.s32.totalorder %s7299_s9, %s7012_s11  ;;  %p7019_p5 = scmp.lt.u32.totalorder %s7017_s30, %s7012_s11 }
  0x26   : > { %p7021_p7 = scmp.lt.u32.totalorder %s7012_s11, %s7299_s9 }
  0x27   : > { %p7015_p2 = pnand %p7309_p1, %p7013_p0  ;;  %p7020_p6 = por %p7019_p5, %p7018_p4 }
  0x29   : > { %p7016_p3 = pneg %p7015_p2  ;;  %p7022_p10 = por %p7021_p7, %p7020_p6 }
  0x2b   : > { %p7023_p12 = pnand %p7022_p10, %p7016_p3 }
  0x2d   : > { %7026 = shalt.err (!%p7023_p12)
}
  0x2e   : > { %s7027_s29 = scalar_lea.vmem %s7301_s6, 1024  ;;  %s7190_s7 = smov [#allocation5]  }
  0x2f   : > { %p7028_p0 = scmp.ne.s32.totalorder %s7301_s6, %s7027_s29  ;;  %s7032_s8 = sshll.u32 %s7190_s7, 4  ;;  %s7033_s8 = int_to_ptr.vmem [resolvable:$false] %s7032_s8 }
  0x30   : > { %s7034_s21 = scalar_lea.vmem %s7033_s8, 2048  ;;  %p7035_p9 = scmp.lt.s32.totalorder %s7301_s6, %s7033_s8 }
  0x31   : > { %p7030_p2 = pnand %p7028_p0, %p7309_p1  ;;  %p7036_p8 = scmp.lt.s32.totalorder %s7034_s21, %s7027_s29 }
  0x33   : > { %p7031_p11 = pneg %p7030_p2  ;;  %p7037_p4 = por %p7036_p8, %p7035_p9 }
  0x35   : > { %p7038_p5 = pnand %p7037_p4, %p7031_p11 }
  0x37   : > { %7041 = shalt.err (!%p7038_p5)
}
  0x38   : > { %s11198_s11 = smov 64   ;;  %s11199_s22 = smov 4  }
  0x39   : > { %6805 = dma.hbm_to_vmem [thread:$0]  (!%p7289_p13), %s7299_s9, 1024, %s7301_s6, %s7303_s10, %s11198_s11, %s11198_s11, %s11199_s22  }
  0x3a   : > { %p5758_p8 = scmp.ge.s32.totalorder %s7188_s17, 1  ;;  %p215_p9 = scmp.lt.s32.totalorder %s7188_s17, 9 }
  0x3b   : > { %s6788_s4 = smul.u32 432, %s7287_s27  ;;  %s5757_s29 = sshll.u32 %s7184_s16, 4 }
  0x3c   : > { %p7338_p11 = pnand %p5758_p8, %p215_p9  ;;  %s6789_s5 = smul.u32 6912, %s7184_s16 }
  0x3d   : > { %s7348_s21 = scalar_lea.hbm %s11193_s2, %s5757_s29  ;;  %s162_s6 = scalar_lea.vmem [#allocation2], %s6788_s4 }
  0x3e   : > { %s11341_s30 = scalar_select %p7338_p11, 1, 0 }
  0x3f   : > { %s7353_s25 = scalar_lea.hbm %s11191_s0, %s6789_s5  ;;  %s169_s9 = sshll.u32 %s162_s6, 4  ;;  %s7355_s9 = int_to_ptr.vmem [resolvable:$true] %s169_s9 }
  0x40   : > { %s203_s11 = scalar_lea.vmem [#allocation7], %s7287_s27  ;;  %s159_s16 = scalar_lea.sflag [#allocation3], %s7287_s27 }
  0x41   : > { %s7358_s22 = sshll.u32 %s203_s11, 4  ;;  %s7042_s7 = scalar_lea.hbm %s7353_s25, 6912  ;;  %s211_s22 = int_to_ptr.vmem [resolvable:$true] %s7358_s22 }
  0x42   : > { %p7043_p3 = scmp.ne.s32.totalorder %s7353_s25, %s7042_s7  ;;  %s7047_s5 = scalar_lea.hbm %s11191_s0, 55296 }
  0x43   : > { %p7048_p10 = scmp.lt.u32.totalorder %s7353_s25, %s11191_s0  ;;  %p7049_p12 = scmp.lt.u32.totalorder %s7047_s5, %s7042_s7 }
  0x44   : > { %p7045_p6 = pnand %p7043_p3, %p7309_p1  ;;  %p7051_p2 = scmp.lt.u32.totalorder %s7042_s7, %s7353_s25 }
  0x45   : > { %p7050_p0 = por %p7049_p12, %p7048_p10 }
  0x46   : > { %p7046_p7 = pneg %p7045_p6 }
  0x47   : > { %p7052_p4 = por %p7051_p2, %p7050_p0 }
  0x49   : > { %p7053_p5 = pnand %p7052_p4, %p7046_p7 }
  0x4b   : > { %7056 = shalt.err (!%p7053_p5)
}
  0x4c   : > { %s7057_s11 = scalar_lea.vmem %s7355_s9, 6912  ;;  %s7193_s4 = smov [#allocation2]  }
  0x4d   : > { %p7058_p8 = scmp.ne.s32.totalorder %s7355_s9, %s7057_s11  ;;  %s7062_s6 = sshll.u32 %s7193_s4, 4  ;;  %s7063_s6 = int_to_ptr.vmem [resolvable:$false] %s7062_s6 }
  0x4e   : > { %s7064_s1 = scalar_lea.vmem %s7063_s6, 13824  ;;  %p7065_p6 = scmp.lt.s32.totalorder %s7355_s9, %s7063_s6 }
  0x4f   : > { %p7060_p9 = pnand %p7058_p8, %p7309_p1  ;;  %p7066_p11 = scmp.lt.s32.totalorder %s7064_s1, %s7057_s11 }
  0x51   : > { %p7061_p3 = pneg %p7060_p9  ;;  %p7067_p10 = por %p7066_p11, %p7065_p6 }
  0x53   : > { %p7068_p12 = pnand %p7067_p10, %p7061_p3 }
  0x55   : > { %7071 = shalt.err (!%p7068_p12)
}
  0x56   : > { %s11342_s7 = smov 4   ;;  %s11343_s20 = smov 64  }
  0x57   : > { %6802 = dma.hbm_to_vmem [thread:$0]  (!%p7289_p13), %s7353_s25, 6912, %s7355_s9, %s159_s16, %s11343_s20, %s11343_s20, %s11342_s7  }
  0x58   : > { %s7072_s5 = scalar_lea.hbm %s7348_s21, 16  ;;  %s7077_s11 = scalar_lea.hbm %s11193_s2, 128 }
  0x59   : > { %p7073_p11 = scmp.ne.s32.totalorder %s7348_s21, %s7072_s5  ;;  %p7078_p2 = scmp.lt.u32.totalorder %s7348_s21, %s11193_s2 }
  0x5a   : > { %p7079_p4 = scmp.lt.u32.totalorder %s7077_s11, %s7072_s5  ;;  %p7081_p8 = scmp.lt.u32.totalorder %s7072_s5, %s7348_s21 }
  0x5b   : > { %p7075_p7 = pnand %p7073_p11, %p7309_p1 }
  0x5c   : > { %p7080_p5 = por %p7079_p4, %p7078_p2 }
  0x5d   : > { %p7076_p0 = pneg %p7075_p7 }
  0x5e   : > { %p7082_p9 = por %p7081_p8, %p7080_p5 }
  0x60   : > { %p7083_p3 = pnand %p7082_p9, %p7076_p0 }
  0x62   : > { %7086 = shalt.err (!%p7083_p3)
}
  0x63   : > { %s7087_s16 = scalar_lea.vmem %s211_s22, 16  ;;  %s7194_s25 = smov [#allocation7]  }
  0x64   : > { %p7088_p6 = scmp.ne.s32.totalorder %s211_s22, %s7087_s16  ;;  %s7092_s9 = sshll.u32 %s7194_s25, 4  ;;  %s7093_s9 = int_to_ptr.vmem [resolvable:$false] %s7092_s9 }
  0x65   : > { %s7094_s6 = scalar_lea.vmem %s7093_s9, 32  ;;  %p7095_p11 = scmp.lt.s32.totalorder %s211_s22, %s7093_s9 }
  0x66   : > { %p7090_p10 = pnand %p7088_p6, %p7309_p1  ;;  %p7096_p7 = scmp.lt.s32.totalorder %s7094_s6, %s7087_s16 }
  0x68   : > { %p7091_p12 = pneg %p7090_p10  ;;  %p7097_p13 = por %p7096_p7, %p7095_p11 }
  0x6a   : > { %p7098_p2 = pnand %p7097_p13, %p7091_p12 }
  0x6c   : > { %7101 = shalt.err (!%p7098_p2)
}
  0x6d   : > { %p11344_p4 = scmp.ne.s32.totalorder %s11338_s28, 0  ;;  %p11345_p0 = scmp.ne.s32.totalorder %s11341_s30, 0 }
  0x6f   : > { %6808 = dma.hbm_to_vmem [thread:$0]  (!%p11344_p4), %s7348_s21, 16, %s211_s22, %s7303_s10  }
  0x70   : > { %219 = sbr.rel (%p11345_p0) target bundleno = 1320 (0x528), region = 32 }
  0x77   : > { %s7409_s19 = sand.u32 1, %s7172_s13   ;;  %p11346_p13 = scmp.ne.s32.totalorder %s11334_s23, 0 }
  0x78   : > { %s6790_s1 = smul.u32 432, %s7409_s19  ;;  %s222_s7 = scalar_lea.sflag [#allocation3], %s7409_s19 }
  0x7a   : > { %s7413_s20 = scalar_lea.vmem [#allocation2], %s6790_s1 }
  0x7b   : > { %7155 = dma.done.wait (%p11346_p13), %s222_s7, 6912  }
  0x7c   : > { %7157 = vsyncadd (%p11346_p13), %s222_s7, 4294960384  ;;  %s230_s28 = sand.u32 1, %s7254_s18   ;;  %s5759_s10 = sshll.u32 %s7409_s19, 6 }
  0x7d   : > { %s231_s22 = scalar_lea.sflag [#allocation6], %s230_s28  ;;  %s7421_s30 = scalar_lea.vmem [#allocation5], %s5759_s10 }
  0x7e   : > { %7159 = dma.done.wait (%p11346_p13), %s231_s22, 1040  }
  0x7f   : > { %7161 = vsyncadd (%p11346_p13), %s231_s22, 4294966256  ;;  %vm388_vm0 = vsmask.f32 3328  ;;  %vm389_vm1 = vsmask.f32 7440  ;;  %v11347_v26 = vmov 0 }
  0x80   : > { %v286_v0 = vld [vmem:[%s7413_s20 + $0x18] sm:$0xf]  ;;  %v287_v1 = vld [vmem:[%s7413_s20 + $0x1c] sm:$0xf]  ;;  %v288_v2 = vld [vmem:[%s7413_s20 + $0x20] sm:$0x1] }
  0x81   : > { %v440_v3 = vshrl.u32 %v286_v0, 16  ;;  %v443_v4 = vshll.u32 %v286_v0, 16  ;;  %v449_v5 = vshll.u32 %v287_v1, 16  ;;  %v453_v6 = vshrl.u32 %v287_v1, 16  ;;  %v280_v7 = vld [vmem:[%s7413_s20] sm:$0xf]  ;;  %vm7437_vm2 = vmor %vm388_vm0, %vm389_vm1 }
  0x82   : > { %v459_v8 = vshll.u32 %v288_v2, 16  ;;  %v281_v9 = vld [vmem:[%s7413_s20 + $0x4] sm:$0xf]  ;;  %v282_v10 = vld [vmem:[%s7413_s20 + $0x8] sm:$0x1]  ;;  %v392_v11 = vshrl.u32 %v280_v7, 16 }
  0x83   : > { %v442_v12 = vrot.slane %v440_v3, 4  ;;  %v445_v13 = vrot.slane %v443_v4, 5  ;;  %v451_v14 = vrot.slane %v449_v5, 5  ;;  %v455_v15 = vrot.slane %v453_v6, 4  ;;  %v289_v16 = vld [vmem:[%s7413_s20 + $0x24] sm:$0xf] }
  0x84   : > { %v461_v17 = vrot.slane %v459_v8, 5  ;;  %v394_v18 = vrot.slane %v392_v11, 4  ;;  %v395_v19 = vshll.u32 %v280_v7, 16  ;;  %v401_v20 = vshll.u32 %v281_v9, 16  ;;  %v290_v25 = vld [vmem:[%s7413_s20 + $0x28] sm:$0xf] }
  0x85   : > { %v446_v21 = vor.u32 %v445_v13, %v442_v12  ;;  %v456_v22 = vor.u32 %v455_v15, %v451_v14  ;;  %v405_v23 = vshrl.u32 %v281_v9, 16  ;;  %v411_v24 = vshll.u32 %v282_v10, 16  ;;  %v291_v35 = vld [vmem:[%s7413_s20 + $0x2c] sm:$0x1]  ;;  %v284_v45 = vld [vmem:[%s7413_s20 + $0x10] sm:$0xf] }
  0x86   : > { %v11348_v26 = vsel %vm7437_vm2, 4294967295, %v11347_v26  ;;  %v397_v27 = vrot.slane %v395_v19, 5  ;;  %v403_v28 = vrot.slane %v401_v20, 5  ;;  %v464_v29 = vshrl.u32 %v289_v16, 16  ;;  %v283_v40 = vld [vmem:[%s7413_s20 + $0xc] sm:$0xf] }
  0x87   : > { %11349 = vst [vmem:[#allocation15_spill] sm:$0xff] %v11348_v26  ;;  %v467_v30 = vshll.u32 %v289_v16, 16  ;;  %v447_v31 = vrot.slane %v446_v21, 4  ;;  %v457_v32 = vrot.slane %v456_v22, 4  ;;  %v407_v33 = vrot.slane %v405_v23, 4  ;;  %s7195_s18 = smov 8  }
  0x88   : > { %v413_v34 = vrot.slane %v411_v24, 5  ;;  %v398_v36 = vor.u32 %v397_v27, %v394_v18  ;;  %v466_v37 = vrot.slane %v464_v29, 4  ;;  %v473_v39 = vshll.u32 %v290_v25, 16  ;;  %v285_v53 = vld [vmem:[%s7413_s20 + $0x14] sm:$0x1]  ;;  %s7196_s23 = smov 16  }
  0x89   : > { %v469_v38 = vrot.slane %v467_v30, 5  ;;  %v452_v41 = vsel %vm7437_vm2, %v447_v31, %v451_v14  ;;  %v462_v42 = vsel %vm7437_vm2, %v457_v32, %v461_v17  ;;  %v408_v43 = vor.u32 %v407_v33, %v403_v28  ;;  %v295_v59 = vld [vmem:[%s7413_s20 + $0x3c] sm:$0xf]  ;;  %v296_v0 = vld [vmem:[%s7413_s20 + $0x40] sm:$0xf]  ;;  %s7197_s21 = smov 24  }
  0x8a   : > { %v477_v44 = vshrl.u32 %v290_v25, 16  ;;  %v7448_v46 = vcombine.low %v452_v41, %v462_v42  ;;  %v399_v47 = vrot.slane %v398_v36, 4  ;;  %v475_v49 = vrot.slane %v473_v39, 5  ;;  %v297_v8 = vld [vmem:[%s7413_s20 + $0x44] sm:$0x1]  ;;  %s7198_s5 = smov 32  }
  0x8b   : > { %v470_v48 = vor.u32 %v469_v38, %v466_v37  ;;  %v409_v50 = vrot.slane %v408_v43, 4  ;;  %v483_v52 = vshll.u32 %v291_v35, 16  ;;  %v416_v54 = vshrl.u32 %v283_v40, 16  ;;  %v292_v14 = vld [vmem:[%s7413_s20 + $0x30] sm:$0xf]  ;;  %s7199_s29 = smov 64  }
  0x8c   : > { %11350 = vst [vmem:[#allocation16_spill] sm:$0xff] %v7448_v46  ;;  %v479_v51 = vrot.slane %v477_v44, 4  ;;  %1814 = vrot.lane.b32.xlu1 %v7448_v46, %s7195_s18  ;;  %v404_v55 = vsel %vm7437_vm2, %v399_v47, %v403_v28  ;;  %v419_v57 = vshll.u32 %v283_v40, 16  ;;  %v425_v58 = vshll.u32 %v284_v45, 16  ;;  %v293_v19 = vld [vmem:[%s7413_s20 + $0x34] sm:$0xf] }
  0x8d   : > { %v471_v56 = vrot.slane %v470_v48, 4  ;;  %v414_v60 = vsel %vm7437_vm2, %v409_v50, %v413_v34  ;;  %v485_v62 = vrot.slane %v483_v52, 5  ;;  %v418_v63 = vrot.slane %v416_v54, 4  ;;  %v294_v31 = vld [vmem:[%s7413_s20 + $0x38] sm:$0x1]  ;;  %s7200_s8 = smov 96  }
  0x8e   : > { %v480_v61 = vor.u32 %v479_v51, %v475_v49  ;;  %v7459_v1 = vcombine.low %v404_v55, %v414_v60  ;;  %v421_v3 = vrot.slane %v419_v57, 5  ;;  %v427_v4 = vrot.slane %v425_v58, 5  ;;  %v301_v34 = vld [vmem:[%s7413_s20 + $0x54] sm:$0xf]  ;;  %v302_v47 = vld [vmem:[%s7413_s20 + $0x58] sm:$0xf] }
  0x8f   : > { %v476_v2 = vsel %vm7437_vm2, %v471_v56, %v475_v49  ;;  %v429_v6 = vshrl.u32 %v284_v45, 16  ;;  %v435_v7 = vshll.u32 %v285_v53, 16  ;;  %v512_v9 = vshrl.u32 %v295_v59, 16  ;;  %v303_v53 = vld [vmem:[%s7413_s20 + $0x5c] sm:$0x1]  ;;  %s242_s11 = scalar_lea.vmem [#allocation7], %s7409_s19 }
  0x90   : > { %11351 = vst [vmem:[#allocation17_spill] sm:$0xff] %v7459_v1  ;;  %v481_v5 = vrot.slane %v480_v61, 4  ;;  %1810 = vrot.lane.b32.xlu0 %v7459_v1, %s7195_s18  ;;  %v422_v10 = vor.u32 %v421_v3, %v418_v63  ;;  %v515_v11 = vshll.u32 %v295_v59, 16  ;;  %v521_v12 = vshll.u32 %v296_v0, 16  ;;  %v298_v54 = vld [vmem:[%s7413_s20 + $0x48] sm:$0xf] }
  0x91   : > { %v525_v13 = vshrl.u32 %v296_v0, 16  ;;  %v431_v16 = vrot.slane %v429_v6, 4  ;;  %v437_v17 = vrot.slane %v435_v7, 5  ;;  %v514_v18 = vrot.slane %v512_v9, 4  ;;  %v299_v3 = vld [vmem:[%s7413_s20 + $0x4c] sm:$0xf] }
  0x92   : > { %v486_v15 = vsel %vm7437_vm2, %v481_v5, %v485_v62  ;;  %v423_v21 = vrot.slane %v422_v10, 4  ;;  %v517_v22 = vrot.slane %v515_v11, 5  ;;  %v523_v23 = vrot.slane %v521_v12, 5  ;;  %s5760_s27 = sshll.u32 %s7409_s19, 8  ;;  %s6188_s16 = sshll.u32 %s7180_s15, 12 }
  0x93   : > { %v7470_v20 = vcombine.low %v476_v2, %v486_v15  ;;  %v432_v24 = vor.u32 %v431_v16, %v427_v4  ;;  %v527_v25 = vrot.slane %v525_v13, 4  ;;  %v531_v27 = vshll.u32 %v297_v8, 16  ;;  %v300_v8 = vld [vmem:[%s7413_s20 + $0x50] sm:$0x1]  ;;  %s10823_s4 = scalar_lea.vmem [#allocation8], %s5760_s27  ;;  %s11138_s1 = scalar_lea.hbm %s11194_s3, %s6188_s16 }
  0x94   : > { %v488_v28 = vshrl.u32 %v292_v14, 16  ;;  %v428_v29 = vsel %vm7437_vm2, %v423_v21, %v427_v4  ;;  %v518_v30 = vor.u32 %v517_v22, %v514_v18  ;;  %v491_v32 = vshll.u32 %v292_v14, 16  ;;  %v307_v14 = vld [vmem:[%s7413_s20 + $0x6c] sm:$0xf]  ;;  %s5623_s25 = sshll.u32 %s10823_s4, 4  ;;  %s5607_s7 = scalar_lea.sflag [#allocation4], %s7409_s19  ;;  %s11140_s25 = int_to_ptr.vmem [resolvable:$true] %s5623_s25 }
  0x95   : > { %11352 = vst [vmem:[#allocation18_spill] sm:$0xff] %v7470_v20  ;;  %1816 = vrot.lane.b32.xlu1 %v7470_v20, %s7195_s18  ;;  %v497_v33 = vshll.u32 %v293_v19, 16  ;;  %v433_v35 = vrot.slane %v432_v24, 4  ;;  %v528_v36 = vor.u32 %v527_v25, %v523_v23  ;;  %v533_v37 = vrot.slane %v531_v27, 5  ;;  %v308_v24 = vld [vmem:[%s7413_s20 + $0x70] sm:$0xf] }
  0x96   : > { %v490_v38 = vrot.slane %v488_v28, 4  ;;  %v519_v39 = vrot.slane %v518_v30, 4  ;;  %v493_v40 = vrot.slane %v491_v32, 5  ;;  %v501_v42 = vshrl.u32 %v293_v19, 16  ;;  %p11935_p5 = scmp.ne.s32.totalorder %s11335_s24, 0  ;;  %s7201_s15 = smov [#allocation8]  }
  0x97   : > { %v499_v41 = vrot.slane %v497_v33, 5  ;;  %v438_v43 = vsel %vm7437_vm2, %v433_v35, %v437_v17  ;;  %v529_v44 = vrot.slane %v528_v36, 4  ;;  %v507_v45 = vshll.u32 %v294_v31, 16  ;;  %s7106_s28 = sshll.u32 %s7201_s15, 4  ;;  %s7107_s28 = int_to_ptr.vmem [resolvable:$false] %s7106_s28 }
  0x98   : > { %v560_v48 = vshrl.u32 %v301_v34, 16  ;;  %v7481_v49 = vcombine.low %v428_v29, %v438_v43  ;;  %v524_v50 = vsel %vm7437_vm2, %v519_v39, %v523_v23  ;;  %v494_v51 = vor.u32 %v493_v40, %v490_v38  ;;  %v309_v29 = vld [vmem:[%s7413_s20 + $0x74] sm:$0x1]  ;;  %v304_v39 = vld [vmem:[%s7413_s20 + $0x60] sm:$0xf]  ;;  %s7108_s10 = scalar_lea.vmem %s7107_s28, 8192  ;;  %p7109_p3 = scmp.lt.s32.totalorder %s11140_s25, %s7107_s28 }
  0x99   : > { %v503_v52 = vrot.slane %v501_v42, 4  ;;  %v534_v55 = vsel %vm7437_vm2, %v529_v44, %v533_v37  ;;  %v509_v56 = vrot.slane %v507_v45, 5  ;;  %v563_v58 = vshll.u32 %v301_v34, 16  ;;  %v305_v44 = vld [vmem:[%s7413_s20 + $0x64] sm:$0xf] }
  0x9a   : > { %11353 = vst [vmem:[#allocation19_spill] sm:$0xff] %v7481_v49  ;;  %v562_v57 = vrot.slane %v560_v48, 4  ;;  %1812 = vrot.lane.b32.xlu0 %v7481_v49, %s7195_s18  ;;  %v7491_v59 = vcombine.low %v524_v50, %v534_v55  ;;  %v495_v60 = vrot.slane %v494_v51, 4  ;;  %v569_v62 = vshll.u32 %v302_v47, 16 }
  0x9b   : > { %v504_v61 = vor.u32 %v503_v52, %v499_v41  ;;  %v565_v63 = vrot.slane %v563_v58, 5  ;;  %v573_v0 = vshrl.u32 %v302_v47, 16  ;;  %v579_v2 = vshll.u32 %v303_v53, 16 }
  0x9c   : > { %11354 = vst [vmem:[#allocation20_spill] sm:$0xff] %v7491_v59  ;;  %v536_v4 = vshrl.u32 %v298_v54, 16  ;;  %1820 = vrot.lane.b32.xlu1 %v7491_v59, %s7195_s18  ;;  %v500_v5 = vsel %vm7437_vm2, %v495_v60, %v499_v41  ;;  %v571_v7 = vrot.slane %v569_v62, 5  ;;  %v539_v9 = vshll.u32 %v298_v54, 16  ;;  %v306_v54 = vld [vmem:[%s7413_s20 + $0x68] sm:$0x1] }
  0x9d   : > { %v505_v6 = vrot.slane %v504_v61, 4  ;;  %v566_v10 = vor.u32 %v565_v63, %v562_v57  ;;  %v575_v11 = vrot.slane %v573_v0, 4  ;;  %v581_v12 = vrot.slane %v579_v2, 5  ;;  %v313_v61 = vld [vmem:[%s7413_s20 + $0x84] sm:$0xf] }
  0x9e   : > { %v538_v13 = vrot.slane %v536_v4, 4  ;;  %v541_v16 = vrot.slane %v539_v9, 5  ;;  %v545_v17 = vshll.u32 %v299_v3, 16  ;;  %v549_v18 = vshrl.u32 %v299_v3, 16  ;;  %v314_v3 = vld [vmem:[%s7413_s20 + $0x88] sm:$0xf] }
  0x9f   : > { %v510_v15 = vsel %vm7437_vm2, %v505_v6, %v509_v56  ;;  %v567_v21 = vrot.slane %v566_v10, 4  ;;  %v576_v22 = vor.u32 %v575_v11, %v571_v7  ;;  %v555_v23 = vshll.u32 %v300_v8, 16  ;;  %v375_v59 = vld [vmem:[%s7413_s20 + $0x17c] sm:$0x1] }
  0xa0   : > { %v7502_v19 = vcombine.low %v500_v5, %v510_v15  ;;  %v542_v25 = vor.u32 %v541_v16, %v538_v13  ;;  %v547_v27 = vrot.slane %v545_v17, 5  ;;  %v551_v28 = vrot.slane %v549_v18, 4  ;;  %v315_v15 = vld [vmem:[%s7413_s20 + $0x8c] sm:$0x1]  ;;  %v7533_v17 = vld [vmem:[%s7413_s20 + $0x78] sm:$0xf] }
  0xa1   : > { %v608_v30 = vshrl.u32 %v307_v14, 16  ;;  %v572_v31 = vsel %vm7437_vm2, %v567_v21, %v571_v7  ;;  %v577_v32 = vrot.slane %v576_v22, 4  ;;  %v557_v33 = vrot.slane %v555_v23, 5 }
  0xa2   : > { %11355 = vst [vmem:[#allocation21_spill] sm:$0xff] %v7502_v19  ;;  %1818 = vrot.lane.b32.xlu0 %v7502_v19, %s7195_s18  ;;  %v611_v34 = vshll.u32 %v307_v14, 16  ;;  %v543_v35 = vrot.slane %v542_v25, 4  ;;  %v552_v36 = vor.u32 %v551_v28, %v547_v27  ;;  %v617_v38 = vshll.u32 %v308_v24, 16 }
  0xa3   : > { %v610_v37 = vrot.slane %v608_v30, 4  ;;  %v582_v40 = vsel %vm7437_vm2, %v577_v32, %v581_v12  ;;  %v621_v42 = vshrl.u32 %v308_v24, 16  ;;  %v627_v43 = vshll.u32 %v309_v29, 16  ;;  %v7538_v24 = vld [vmem:[%s7413_s20 + $0x7c] sm:$0xf] }
  0xa4   : > { %v613_v41 = vrot.slane %v611_v34, 5  ;;  %v7514_v45 = vcombine.low %v572_v31, %v582_v40  ;;  %v548_v47 = vsel %vm7437_vm2, %v543_v35, %v547_v27  ;;  %v553_v48 = vrot.slane %v552_v36, 4  ;;  %v312_v36 = vld [vmem:[%s7413_s20 + $0x80] sm:$0x1] }
  0xa5   : > { %v619_v50 = vrot.slane %v617_v38, 5  ;;  %v623_v52 = vrot.slane %v621_v42, 4  ;;  %v629_v53 = vrot.slane %v627_v43, 5  ;;  %v584_v55 = vshrl.u32 %v304_v39, 16 }
  0xa6   : > { %11356 = vst [vmem:[#allocation22_spill] sm:$0xff] %v7514_v45  ;;  %v614_v51 = vor.u32 %v613_v41, %v610_v37  ;;  %1824 = vrot.lane.b32.xlu1 %v7514_v45, %s7195_s18  ;;  %v558_v56 = vsel %vm7437_vm2, %v553_v48, %v557_v33  ;;  %v587_v57 = vshll.u32 %v304_v39, 16  ;;  %v593_v58 = vshll.u32 %v305_v44, 16  ;;  %v7553_v39 = vld [vmem:[%s7413_s20 + $0x9c] sm:$0xf] }
  0xa7   : > { %v597_v60 = vshrl.u32 %v305_v44, 16  ;;  %v7524_v62 = vcombine.low %v548_v47, %v558_v56  ;;  %v624_v0 = vor.u32 %v623_v52, %v619_v50  ;;  %v586_v2 = vrot.slane %v584_v55, 4  ;;  %v7558_v44 = vld [vmem:[%s7413_s20 + $0xa0] sm:$0xf]  ;;  %v321_v55 = vld [vmem:[%s7413_s20 + $0xa4] sm:$0x1] }
  0xa8   : > { %v615_v63 = vrot.slane %v614_v51, 4  ;;  %v589_v4 = vrot.slane %v587_v57, 5  ;;  %v595_v5 = vrot.slane %v593_v58, 5  ;;  %v603_v7 = vshll.u32 %v306_v54, 16 }
  0xa9   : > { %11357 = vst [vmem:[#allocation23_spill] sm:$0xff] %v7524_v62  ;;  %v599_v6 = vrot.slane %v597_v60, 4  ;;  %1822 = vrot.lane.b32.xlu0 %v7524_v62, %s7195_s18  ;;  %v625_v9 = vrot.slane %v624_v0, 4  ;;  %v656_v10 = vshrl.u32 %v313_v61, 16  ;;  %v659_v11 = vshll.u32 %v313_v61, 16 }
  0xaa   : > { %v620_v8 = vsel %vm7437_vm2, %v615_v63, %v619_v50  ;;  %v590_v12 = vor.u32 %v589_v4, %v586_v2  ;;  %v605_v14 = vrot.slane %v603_v7, 5  ;;  %v665_v16 = vshll.u32 %v314_v3, 16  ;;  %v7570_v63 = vld [vmem:[%s7413_s20 + $0x90] sm:$0xf] }
  0xab   : > { %v600_v13 = vor.u32 %v599_v6, %v595_v5  ;;  %v630_v18 = vsel %vm7437_vm2, %v625_v9, %v629_v53  ;;  %v658_v21 = vrot.slane %v656_v10, 4  ;;  %v661_v22 = vrot.slane %v659_v11, 5  ;;  %v7578_v9 = vld [vmem:[%s7413_s20 + $0x94] sm:$0xf] }
  0xac   : > { %v669_v23 = vshrl.u32 %v314_v3, 16  ;;  %v7540_v25 = vcombine.low %v620_v8, %v630_v18  ;;  %v591_v27 = vrot.slane %v590_v12, 4  ;;  %v667_v29 = vrot.slane %v665_v16, 5  ;;  %v318_v18 = vld [vmem:[%s7413_s20 + $0x98] sm:$0x1] }
  0xad   : > { %v601_v28 = vrot.slane %v600_v13, 4  ;;  %v662_v30 = vor.u32 %v661_v22, %v658_v21  ;;  %v675_v32 = vshll.u32 %v315_v15, 16  ;;  %v632_v33 = vshrl.u32 %v7533_v17, 16 }
  0xae   : > { %11358 = vst [vmem:[#allocation24_spill] sm:$0xff] %v7540_v25  ;;  %v671_v31 = vrot.slane %v669_v23, 4  ;;  %1828 = vrot.lane.b32.xlu1 %v7540_v25, %s7195_s18  ;;  %v596_v34 = vsel %vm7437_vm2, %v591_v27, %v595_v5  ;;  %v635_v37 = vshll.u32 %v7533_v17, 16  ;;  %v641_v38 = vshll.u32 %v7538_v24, 16 }
  0xaf   : > { %v606_v35 = vsel %vm7437_vm2, %v601_v28, %v605_v14  ;;  %v663_v41 = vrot.slane %v662_v30, 4  ;;  %v677_v43 = vrot.slane %v675_v32, 5  ;;  %v634_v47 = vrot.slane %v632_v33, 4 }
  0xb0   : > { %v7555_v40 = vcombine.low %v596_v34, %v606_v35  ;;  %v672_v42 = vor.u32 %v671_v31, %v667_v29  ;;  %v637_v48 = vrot.slane %v635_v37, 5  ;;  %v643_v50 = vrot.slane %v641_v38, 5  ;;  %v7595_v34 = vld [vmem:[%s7413_s20 + $0xb8] sm:$0xf] }
  0xb1   : > { %v645_v51 = vshrl.u32 %v7538_v24, 16  ;;  %v668_v52 = vsel %vm7437_vm2, %v663_v41, %v667_v29  ;;  %v651_v54 = vshll.u32 %v312_v36, 16  ;;  %v704_v56 = vshrl.u32 %v7553_v39, 16  ;;  %v7589_v29 = vld [vmem:[%s7413_s20 + $0xb4] sm:$0xf] }
  0xb2   : > { %11359 = vst [vmem:[#allocation25_spill] sm:$0xff] %v7555_v40  ;;  %1826 = vrot.lane.b32.xlu0 %v7555_v40, %s7195_s18  ;;  %v673_v53 = vrot.slane %v672_v42, 4  ;;  %v638_v57 = vor.u32 %v637_v48, %v634_v47  ;;  %v707_v60 = vshll.u32 %v7553_v39, 16  ;;  %v713_v61 = vshll.u32 %v7558_v44, 16  ;;  %v327_v47 = vld [vmem:[%s7413_s20 + $0xbc] sm:$0x1] }
  0xb3   : > { %v647_v58 = vrot.slane %v645_v51, 4  ;;  %v653_v2 = vrot.slane %v651_v54, 5  ;;  %v706_v3 = vrot.slane %v704_v56, 4  ;;  %v717_v4 = vshrl.u32 %v7558_v44, 16  ;;  %v7610_v54 = vld [vmem:[%s7413_s20 + $0xa8] sm:$0xf] }
  0xb4   : > { %v678_v0 = vsel %vm7437_vm2, %v673_v53, %v677_v43  ;;  %v639_v6 = vrot.slane %v638_v57, 4  ;;  %v709_v8 = vrot.slane %v707_v60, 5  ;;  %v715_v10 = vrot.slane %v713_v61, 5  ;;  %v7615_v60 = vld [vmem:[%s7413_s20 + $0xac] sm:$0xf] }
  0xb5   : > { %v7575_v5 = vcombine.low %v668_v52, %v678_v0  ;;  %v648_v7 = vor.u32 %v647_v58, %v643_v50  ;;  %v719_v11 = vrot.slane %v717_v4, 4  ;;  %v723_v12 = vshll.u32 %v321_v55, 16 }
  0xb6   : > { %v680_v13 = vshrl.u32 %v7570_v63, 16  ;;  %v644_v14 = vsel %vm7437_vm2, %v639_v6, %v643_v50  ;;  %v710_v16 = vor.u32 %v709_v8, %v706_v3  ;;  %v683_v21 = vshll.u32 %v7570_v63, 16 }
  0xb7   : > { %11360 = vst [vmem:[#allocation26_spill] sm:$0xff] %v7575_v5  ;;  %1832 = vrot.lane.b32.xlu1 %v7575_v5, %s7195_s18  ;;  %v649_v15 = vrot.slane %v648_v7, 4  ;;  %v720_v22 = vor.u32 %v719_v11, %v715_v10  ;;  %v725_v23 = vrot.slane %v723_v12, 5  ;;  %v689_v28 = vshll.u32 %v7578_v9, 16  ;;  %v324_v7 = vld [vmem:[%s7413_s20 + $0xb0] sm:$0x1] }
  0xb8   : > { %v682_v27 = vrot.slane %v680_v13, 4  ;;  %v711_v31 = vrot.slane %v710_v16, 4  ;;  %v685_v32 = vrot.slane %v683_v21, 5  ;;  %v693_v33 = vshrl.u32 %v7578_v9, 16 }
  0xb9   : > { %v654_v30 = vsel %vm7437_vm2, %v649_v15, %v653_v2  ;;  %v721_v36 = vrot.slane %v720_v22, 4  ;;  %v691_v37 = vrot.slane %v689_v28, 5  ;;  %v699_v38 = vshll.u32 %v318_v18, 16  ;;  %v7627_v15 = vld [vmem:[%s7413_s20 + $0xe4] sm:$0xf] }
  0xba   : > { %v7597_v35 = vcombine.low %v644_v14, %v654_v30  ;;  %v716_v41 = vsel %vm7437_vm2, %v711_v31, %v715_v10  ;;  %v686_v42 = vor.u32 %v685_v32, %v682_v27  ;;  %v695_v43 = vrot.slane %v693_v33, 4 }
  0xbb   : > { %v752_v48 = vshrl.u32 %v7589_v29, 16  ;;  %v726_v50 = vsel %vm7437_vm2, %v721_v36, %v725_v23  ;;  %v701_v51 = vrot.slane %v699_v38, 5  ;;  %v755_v52 = vshll.u32 %v7589_v29, 16  ;;  %v7633_v23 = vld [vmem:[%s7413_s20 + $0xe8] sm:$0xf] }
  0xbc   : > { %11361 = vst [vmem:[#allocation27_spill] sm:$0xff] %v7597_v35  ;;  %1830 = vrot.lane.b32.xlu0 %v7597_v35, %s7195_s18  ;;  %v761_v53 = vshll.u32 %v7595_v34, 16  ;;  %v7612_v55 = vcombine.low %v716_v41, %v726_v50  ;;  %v687_v56 = vrot.slane %v686_v42, 4  ;;  %v696_v57 = vor.u32 %v695_v43, %v691_v37  ;;  %v339_v42 = vld [vmem:[%s7413_s20 + $0xec] sm:$0x1] }
  0xbd   : > { %v754_v58 = vrot.slane %v752_v48, 4  ;;  %v757_v61 = vrot.slane %v755_v52, 5  ;;  %v765_v2 = vshrl.u32 %v7595_v34, 16  ;;  %v771_v3 = vshll.u32 %v327_v47, 16 }
  0xbe   : > { %11362 = vst [vmem:[#allocation28_spill] sm:$0xff] %v7612_v55  ;;  %v763_v0 = vrot.slane %v761_v53, 5  ;;  %1836 = vrot.lane.b32.xlu1 %v7612_v55, %s7195_s18  ;;  %v692_v4 = vsel %vm7437_vm2, %v687_v56, %v691_v37  ;;  %v697_v6 = vrot.slane %v696_v57, 4  ;;  %v728_v8 = vshrl.u32 %v7610_v54, 16  ;;  %v334_v53 = vld [vmem:[%s7413_s20 + $0xd8] sm:$0xf] }
  0xbf   : > { %v731_v10 = vshll.u32 %v7610_v54, 16  ;;  %v758_v11 = vor.u32 %v757_v61, %v754_v58  ;;  %v767_v12 = vrot.slane %v765_v2, 4  ;;  %v773_v13 = vrot.slane %v771_v3, 5 }
  0xc0   : > { %v737_v14 = vshll.u32 %v7615_v60, 16  ;;  %v702_v16 = vsel %vm7437_vm2, %v697_v6, %v701_v51  ;;  %v730_v18 = vrot.slane %v728_v8, 4  ;;  %v741_v22 = vshrl.u32 %v7615_v60, 16 }
  0xc1   : > { %v733_v21 = vrot.slane %v731_v10, 5  ;;  %v7635_v27 = vcombine.low %v692_v4, %v702_v16  ;;  %v759_v28 = vrot.slane %v758_v11, 4  ;;  %v768_v30 = vor.u32 %v767_v12, %v763_v0  ;;  %v336_v10 = vld [vmem:[%s7413_s20 + $0xe0] sm:$0x1] }
  0xc2   : > { %v739_v31 = vrot.slane %v737_v14, 5  ;;  %v743_v33 = vrot.slane %v741_v22, 4  ;;  %v747_v36 = vshll.u32 %v324_v7, 16  ;;  %v800_v37 = vshrl.u32 %v7627_v15, 16 }
  0xc3   : > { %11363 = vst [vmem:[#allocation29_spill] sm:$0xff] %v7635_v27  ;;  %v734_v32 = vor.u32 %v733_v21, %v730_v18  ;;  %1834 = vrot.lane.b32.xlu0 %v7635_v27, %s7195_s18  ;;  %v764_v38 = vsel %vm7437_vm2, %v759_v28, %v763_v0  ;;  %v769_v41 = vrot.slane %v768_v30, 4  ;;  %v803_v43 = vshll.u32 %v7627_v15, 16  ;;  %v335_v0 = vld [vmem:[%s7413_s20 + $0xdc] sm:$0xf] }
  0xc4   : > { %v809_v47 = vshll.u32 %v7633_v23, 16  ;;  %v744_v50 = vor.u32 %v743_v33, %v739_v31  ;;  %v749_v51 = vrot.slane %v747_v36, 5  ;;  %v802_v52 = vrot.slane %v800_v37, 4  ;;  %v7660_v21 = vld [vmem:[%s7413_s20 + $0xfc] sm:$0xf] }
  0xc5   : > { %v735_v48 = vrot.slane %v734_v32, 4  ;;  %v774_v56 = vsel %vm7437_vm2, %v769_v41, %v773_v13  ;;  %v805_v57 = vrot.slane %v803_v43, 5  ;;  %v813_v61 = vshrl.u32 %v7633_v23, 16  ;;  %v7665_v32 = vld [vmem:[%s7413_s20 + $0x100] sm:$0xf] }
  0xc6   : > { %v811_v58 = vrot.slane %v809_v47, 5  ;;  %v7650_v2 = vcombine.low %v764_v38, %v774_v56  ;;  %v745_v4 = vrot.slane %v744_v50, 4  ;;  %v819_v6 = vshll.u32 %v339_v42, 16  ;;  %v345_v43 = vld [vmem:[%s7413_s20 + $0x104] sm:$0x1] }
  0xc7   : > { %v740_v3 = vsel %vm7437_vm2, %v735_v48, %v739_v31  ;;  %v806_v7 = vor.u32 %v805_v57, %v802_v52  ;;  %v815_v8 = vrot.slane %v813_v61, 4  ;;  %v776_v11 = vshrl.u32 %v334_v53, 16  ;;  %v7829_v27 = vld [vmem:[%s7413_s20 + $0x150] sm:$0xf] }
  0xc8   : > { %11364 = vst [vmem:[#allocation30_spill] sm:$0xff] %v7650_v2  ;;  %v779_v12 = vshll.u32 %v334_v53, 16  ;;  %1840 = vrot.lane.b32.xlu1 %v7650_v2, %s7195_s18  ;;  %v750_v13 = vsel %vm7437_vm2, %v745_v4, %v749_v51  ;;  %v821_v14 = vrot.slane %v819_v6, 5  ;;  %v785_v16 = vshll.u32 %v335_v0, 16  ;;  %v7675_v53 = vld [vmem:[%s7413_s20 + $0xf0] sm:$0xf] }
  0xc9   : > { %v789_v18 = vshrl.u32 %v335_v0, 16  ;;  %v7662_v22 = vcombine.low %v740_v3, %v750_v13  ;;  %v807_v28 = vrot.slane %v806_v7, 4  ;;  %v816_v30 = vor.u32 %v815_v8, %v811_v58  ;;  %v7682_v0 = vld [vmem:[%s7413_s20 + $0xf4] sm:$0xf]  ;;  %v342_v8 = vld [vmem:[%s7413_s20 + $0xf8] sm:$0x1] }
  0xca   : > { %v778_v31 = vrot.slane %v776_v11, 4  ;;  %v781_v33 = vrot.slane %v779_v12, 5  ;;  %v787_v36 = vrot.slane %v785_v16, 5  ;;  %v795_v38 = vshll.u32 %v336_v10, 16 }
  0xcb   : > { %11365 = vst [vmem:[#allocation31_spill] sm:$0xff] %v7662_v22  ;;  %v791_v37 = vrot.slane %v789_v18, 4  ;;  %1838 = vrot.lane.b32.xlu0 %v7662_v22, %s7195_s18  ;;  %v812_v41 = vsel %vm7437_vm2, %v807_v28, %v811_v58  ;;  %v817_v42 = vrot.slane %v816_v30, 4  ;;  %v848_v47 = vshrl.u32 %v7660_v21, 16 }
  0xcc   : > { %v782_v48 = vor.u32 %v781_v33, %v778_v31  ;;  %v797_v51 = vrot.slane %v795_v38, 5  ;;  %v851_v52 = vshll.u32 %v7660_v21, 16  ;;  %v857_v61 = vshll.u32 %v7665_v32, 16 }
  0xcd   : > { %v792_v50 = vor.u32 %v791_v37, %v787_v36  ;;  %v822_v56 = vsel %vm7437_vm2, %v817_v42, %v821_v14  ;;  %v850_v57 = vrot.slane %v848_v47, 4  ;;  %v861_v58 = vshrl.u32 %v7665_v32, 16  ;;  %v7689_v14 = vld [vmem:[%s7413_s20 + $0x114] sm:$0xf] }
  0xce   : > { %v7684_v3 = vcombine.low %v812_v41, %v822_v56  ;;  %v783_v4 = vrot.slane %v782_v48, 4  ;;  %v853_v7 = vrot.slane %v851_v52, 5  ;;  %v859_v10 = vrot.slane %v857_v61, 5  ;;  %v7701_v41 = vld [vmem:[%s7413_s20 + $0x118] sm:$0xf] }
  0xcf   : > { %v793_v6 = vrot.slane %v792_v50, 4  ;;  %v863_v11 = vrot.slane %v861_v58, 4  ;;  %v867_v12 = vshll.u32 %v345_v43, 16  ;;  %v824_v13 = vshrl.u32 %v7675_v53, 16  ;;  %v7707_v50 = vld [vmem:[%s7413_s20 + $0x108] sm:$0xf] }
  0xd0   : > { %11366 = vst [vmem:[#allocation32_spill] sm:$0xff] %v7684_v3  ;;  %1844 = vrot.lane.b32.xlu1 %v7684_v3, %s7195_s18  ;;  %v788_v16 = vsel %vm7437_vm2, %v783_v4, %v787_v36  ;;  %v854_v28 = vor.u32 %v853_v7, %v850_v57  ;;  %v827_v30 = vshll.u32 %v7675_v53, 16  ;;  %v833_v47 = vshll.u32 %v7682_v0, 16  ;;  %v351_v36 = vld [vmem:[%s7413_s20 + $0x11c] sm:$0x1] }
  0xd1   : > { %v798_v18 = vsel %vm7437_vm2, %v793_v6, %v797_v51  ;;  %v864_v33 = vor.u32 %v863_v11, %v859_v10  ;;  %v869_v37 = vrot.slane %v867_v12, 5  ;;  %v826_v38 = vrot.slane %v824_v13, 4  ;;  %v354_v3 = vld [vmem:[%s7413_s20 + $0x128] sm:$0x1] }
  0xd2   : > { %v7698_v31 = vcombine.low %v788_v16, %v798_v18  ;;  %v855_v42 = vrot.slane %v854_v28, 4  ;;  %v829_v43 = vrot.slane %v827_v30, 5  ;;  %v837_v48 = vshrl.u32 %v7682_v0, 16  ;;  %v7718_v16 = vld [vmem:[%s7413_s20 + $0x10c] sm:$0xf] }
  0xd3   : > { %v865_v51 = vrot.slane %v864_v33, 4  ;;  %v843_v52 = vshll.u32 %v342_v8, 16  ;;  %v896_v56 = vshrl.u32 %v7689_v14, 16  ;;  %v899_v57 = vshll.u32 %v7689_v14, 16 }
  0xd4   : > { %11367 = vst [vmem:[#allocation33_spill] sm:$0xff] %v7698_v31  ;;  %1842 = vrot.lane.b32.xlu0 %v7698_v31, %s7195_s18  ;;  %v860_v61 = vsel %vm7437_vm2, %v855_v42, %v859_v10  ;;  %v830_v58 = vor.u32 %v829_v43, %v826_v38  ;;  %v835_v4 = vrot.slane %v833_v47, 5  ;;  %v839_v6 = vrot.slane %v837_v48, 4  ;;  %v348_v48 = vld [vmem:[%s7413_s20 + $0x110] sm:$0x1] }
  0xd5   : > { %v870_v7 = vsel %vm7437_vm2, %v865_v51, %v869_v37  ;;  %v845_v11 = vrot.slane %v843_v52, 5  ;;  %v898_v12 = vrot.slane %v896_v56, 4  ;;  %v901_v13 = vrot.slane %v899_v57, 5 }
  0xd6   : > { %v7720_v8 = vcombine.low %v860_v61, %v870_v7  ;;  %v831_v18 = vrot.slane %v830_v58, 4  ;;  %v840_v28 = vor.u32 %v839_v6, %v835_v4  ;;  %v905_v30 = vshll.u32 %v7701_v41, 16 }
  0xd7   : > { %v902_v10 = vor.u32 %v901_v13, %v898_v12  ;;  %v909_v33 = vshrl.u32 %v7701_v41, 16  ;;  %v915_v38 = vshll.u32 %v351_v36, 16  ;;  %v872_v42 = vshrl.u32 %v7707_v50, 16  ;;  %v7732_v36 = vld [vmem:[%s7413_s20 + $0x12c] sm:$0xf] }
  0xd8   : > { %11368 = vst [vmem:[#allocation34_spill] sm:$0xff] %v7720_v8  ;;  %1848 = vrot.lane.b32.xlu1 %v7720_v8, %s7195_s18  ;;  %v836_v37 = vsel %vm7437_vm2, %v831_v18, %v835_v4  ;;  %v841_v43 = vrot.slane %v840_v28, 4  ;;  %v907_v47 = vrot.slane %v905_v30, 5  ;;  %v875_v51 = vshll.u32 %v7707_v50, 16  ;;  %v7739_v12 = vld [vmem:[%s7413_s20 + $0x130] sm:$0xf] }
  0xd9   : > { %v903_v52 = vrot.slane %v902_v10, 4  ;;  %v911_v56 = vrot.slane %v909_v33, 4  ;;  %v917_v57 = vrot.slane %v915_v38, 5  ;;  %v874_v61 = vrot.slane %v872_v42, 4  ;;  %v357_v42 = vld [vmem:[%s7413_s20 + $0x134] sm:$0x1] }
  0xda   : > { %v846_v58 = vsel %vm7437_vm2, %v841_v43, %v845_v11  ;;  %v877_v6 = vrot.slane %v875_v51, 5  ;;  %v881_v7 = vshll.u32 %v7718_v16, 16  ;;  %v885_v4 = vshrl.u32 %v7718_v16, 16 }
  0xdb   : > { %v7741_v13 = vcombine.low %v836_v37, %v846_v58  ;;  %v908_v18 = vsel %vm7437_vm2, %v903_v52, %v907_v47  ;;  %v912_v28 = vor.u32 %v911_v56, %v907_v47  ;;  %v891_v30 = vshll.u32 %v348_v48, 16 }
  0xdc   : > { %v878_v10 = vor.u32 %v877_v6, %v874_v61  ;;  %v883_v33 = vrot.slane %v881_v7, 5  ;;  %v887_v38 = vrot.slane %v885_v4, 4  ;;  %v944_v11 = vshrl.u32 %v7732_v36, 16  ;;  %v7753_v61 = vld [vmem:[%s7413_s20 + $0x120] sm:$0xf] }
  0xdd   : > { %11369 = vst [vmem:[#allocation35_spill] sm:$0xff] %v7741_v13  ;;  %1846 = vrot.lane.b32.xlu0 %v7741_v13, %s7195_s18  ;;  %v913_v43 = vrot.slane %v912_v28, 4  ;;  %v893_v51 = vrot.slane %v891_v30, 5  ;;  %v947_v37 = vshll.u32 %v7732_v36, 16  ;;  %v953_v58 = vshll.u32 %v7739_v12, 16 }
  0xde   : > { %v879_v52 = vrot.slane %v878_v10, 4  ;;  %v888_v47 = vor.u32 %v887_v38, %v883_v33  ;;  %v946_v48 = vrot.slane %v944_v11, 4  ;;  %v957_v56 = vshrl.u32 %v7739_v12, 16  ;;  %v7758_v28 = vld [vmem:[%s7413_s20 + $0x124] sm:$0xf] }
  0xdf   : > { %v918_v6 = vsel %vm7437_vm2, %v913_v43, %v917_v57  ;;  %v949_v7 = vrot.slane %v947_v37, 5  ;;  %v955_v4 = vrot.slane %v953_v58, 5  ;;  %v963_v31 = vshll.u32 %v357_v42, 16  ;;  %v7774_v37 = vld [vmem:[%s7413_s20 + $0x144] sm:$0xf] }
  0xe0   : > { %v7760_v30 = vcombine.low %v908_v18, %v918_v6  ;;  %v884_v10 = vsel %vm7437_vm2, %v879_v52, %v883_v33  ;;  %v889_v38 = vrot.slane %v888_v47, 4  ;;  %v959_v11 = vrot.slane %v957_v56, 4 }
  0xe1   : > { %v950_v1 = vor.u32 %v949_v7, %v946_v48  ;;  %v965_v8 = vrot.slane %v963_v31, 5  ;;  %v920_v13 = vshrl.u32 %v7753_v61, 16  ;;  %v923_v57 = vshll.u32 %v7753_v61, 16  ;;  %v7779_v48 = vld [vmem:[%s7413_s20 + $0x148] sm:$0xf] }
  0xe2   : > { %11370 = vst [vmem:[#allocation36_spill] sm:$0xff] %v7760_v30  ;;  %1852 = vrot.lane.b32.xlu1 %v7760_v30, %s7195_s18  ;;  %v894_v18 = vsel %vm7437_vm2, %v889_v38, %v893_v51  ;;  %v960_v42 = vor.u32 %v959_v11, %v955_v4  ;;  %v929_v33 = vshll.u32 %v7758_v28, 16  ;;  %v933_v43 = vshrl.u32 %v7758_v28, 16 }
  0xe3   : > { %v7776_v31 = vcombine.low %v884_v10, %v894_v18  ;;  %v951_v58 = vrot.slane %v950_v1, 4  ;;  %v922_v52 = vrot.slane %v920_v13, 4  ;;  %v925_v47 = vrot.slane %v923_v57, 5  ;;  %v363_v10 = vld [vmem:[%s7413_s20 + $0x14c] sm:$0x1] }
  0xe4   : > { %v961_v56 = vrot.slane %v960_v42, 4  ;;  %v931_v6 = vrot.slane %v929_v33, 5  ;;  %v935_v7 = vrot.slane %v933_v43, 4  ;;  %v939_v51 = vshll.u32 %v354_v3, 16  ;;  %v7792_v33 = vld [vmem:[%s7413_s20 + $0x138] sm:$0xf] }
  0xe5   : > { %11371 = vst [vmem:[#allocation37_spill] sm:$0xff] %v7776_v31  ;;  %1850 = vrot.lane.b32.xlu0 %v7776_v31, %s7195_s18  ;;  %v956_v38 = vsel %vm7437_vm2, %v951_v58, %v955_v4  ;;  %v926_v11 = vor.u32 %v925_v47, %v922_v52  ;;  %v992_v1 = vshrl.u32 %v7774_v37, 16  ;;  %v995_v13 = vshll.u32 %v7774_v37, 16  ;;  %v7797_v52 = vld [vmem:[%s7413_s20 + $0x13c] sm:$0xf] }
  0xe6   : > { %v966_v57 = vsel %vm7437_vm2, %v961_v56, %v965_v8  ;;  %v936_v18 = vor.u32 %v935_v7, %v931_v6  ;;  %v941_v42 = vrot.slane %v939_v51, 5  ;;  %v1001_v3 = vshll.u32 %v7779_v48, 16  ;;  %v360_v51 = vld [vmem:[%s7413_s20 + $0x140] sm:$0x1] }
  0xe7   : > { %v7794_v43 = vcombine.low %v956_v38, %v966_v57  ;;  %v927_v30 = vrot.slane %v926_v11, 4  ;;  %v994_v4 = vrot.slane %v992_v1, 4  ;;  %v997_v58 = vrot.slane %v995_v13, 5 }
  0xe8   : > { %v937_v47 = vrot.slane %v936_v18, 4  ;;  %v1003_v31 = vrot.slane %v1001_v3, 5  ;;  %v1005_v2 = vshrl.u32 %v7779_v48, 16  ;;  %v1011_v8 = vshll.u32 %v363_v10, 16  ;;  %v7811_v18 = vld [vmem:[%s7413_s20 + $0x15c] sm:$0xf] }
  0xe9   : > { %11372 = vst [vmem:[#allocation38_spill] sm:$0xff] %v7794_v43  ;;  %1856 = vrot.lane.b32.xlu1 %v7794_v43, %s7195_s18  ;;  %v932_v56 = vsel %vm7437_vm2, %v927_v30, %v931_v6  ;;  %v998_v7 = vor.u32 %v997_v58, %v994_v4  ;;  %v968_v38 = vshrl.u32 %v7792_v33, 16  ;;  %v971_v11 = vshll.u32 %v7792_v33, 16  ;;  %v7816_v4 = vld [vmem:[%s7413_s20 + $0x160] sm:$0xf] }
  0xea   : > { %v942_v1 = vsel %vm7437_vm2, %v937_v47, %v941_v42  ;;  %v1007_v13 = vrot.slane %v1005_v2, 4  ;;  %v1013_v57 = vrot.slane %v1011_v8, 5  ;;  %v977_v10 = vshll.u32 %v7797_v52, 16  ;;  %v369_v8 = vld [vmem:[%s7413_s20 + $0x164] sm:$0x1] }
  0xeb   : > { %v7813_v3 = vcombine.low %v932_v56, %v942_v1  ;;  %v999_v43 = vrot.slane %v998_v7, 4  ;;  %v970_v30 = vrot.slane %v968_v38, 4  ;;  %v973_v6 = vrot.slane %v971_v11, 5 }
  0xec   : > { %v1008_v58 = vor.u32 %v1007_v13, %v1003_v31  ;;  %v979_v55 = vrot.slane %v977_v10, 5  ;;  %v981_v22 = vshrl.u32 %v7797_v52, 16  ;;  %v987_v42 = vshll.u32 %v360_v51, 16 }
  0xed   : > { %11373 = vst [vmem:[#allocation39_spill] sm:$0xff] %v7813_v3  ;;  %1854 = vrot.lane.b32.xlu0 %v7813_v3, %s7195_s18  ;;  %v1004_v2 = vsel %vm7437_vm2, %v999_v43, %v1003_v31  ;;  %v974_v47 = vor.u32 %v973_v6, %v970_v30  ;;  %v1040_v56 = vshrl.u32 %v7811_v18, 16  ;;  %v1043_v7 = vshll.u32 %v7811_v18, 16 }
  0xee   : > { %v1009_v38 = vrot.slane %v1008_v58, 4  ;;  %v983_v11 = vrot.slane %v981_v22, 4  ;;  %v989_v1 = vrot.slane %v987_v42, 5  ;;  %v1049_v13 = vshll.u32 %v7816_v4, 16  ;;  %v7834_v58 = vld [vmem:[%s7413_s20 + $0x154] sm:$0xf] }
  0xef   : > { %v975_v51 = vrot.slane %v974_v47, 4  ;;  %v1042_v10 = vrot.slane %v1040_v56, 4  ;;  %v1045_v5 = vrot.slane %v1043_v7, 5  ;;  %v1053_v3 = vshrl.u32 %v7816_v4, 16  ;;  %v366_v7 = vld [vmem:[%s7413_s20 + $0x158] sm:$0x1] }
  0xf0   : > { %v1014_v31 = vsel %vm7437_vm2, %v1009_v38, %v1013_v57  ;;  %v984_v43 = vor.u32 %v983_v11, %v979_v55  ;;  %v1051_v30 = vrot.slane %v1049_v13, 5  ;;  %v1059_v6 = vshll.u32 %v369_v8, 16 }
  0xf1   : > { %v7836_v22 = vcombine.low %v1004_v2, %v1014_v31  ;;  %v980_v42 = vsel %vm7437_vm2, %v975_v51, %v979_v55  ;;  %v1046_v47 = vor.u32 %v1045_v5, %v1042_v10  ;;  %v1055_v56 = vrot.slane %v1053_v3, 4  ;;  %v7848_v5 = vld [vmem:[%s7413_s20 + $0x174] sm:$0xf]  ;;  %v7853_v10 = vld [vmem:[%s7413_s20 + $0x178] sm:$0xf] }
  0xf2   : > { %v985_v25 = vrot.slane %v984_v43, 4  ;;  %v1061_v35 = vrot.slane %v1059_v6, 5  ;;  %v1016_v45 = vshrl.u32 %v7829_v27, 16  ;;  %v1019_v57 = vshll.u32 %v7829_v27, 16 }
  0xf3   : > { %11374 = vst [vmem:[#allocation40_spill] sm:$0xff] %v7836_v22  ;;  %1860 = vrot.lane.b32.xlu1 %v7836_v22, %s7195_s18  ;;  %v1047_v8 = vrot.slane %v1046_v47, 4  ;;  %v1056_v38 = vor.u32 %v1055_v56, %v1051_v30  ;;  %v1025_v2 = vshll.u32 %v7834_v58, 16  ;;  %v1029_v55 = vshrl.u32 %v7834_v58, 16 }
  0xf4   : > { %v990_v3 = vsel %vm7437_vm2, %v985_v25, %v989_v1  ;;  %v1018_v11 = vrot.slane %v1016_v45, 4  ;;  %v1021_v13 = vrot.slane %v1019_v57, 5  ;;  %v1035_v51 = vshll.u32 %v366_v7, 16  ;;  %v7869_v7 = vld [vmem:[%s7413_s20 + $0x168] sm:$0xf] }
  0xf5   : > { %v7855_v31 = vcombine.low %v980_v42, %v990_v3  ;;  %v1052_v43 = vsel %vm7437_vm2, %v1047_v8, %v1051_v30  ;;  %v1057_v6 = vrot.slane %v1056_v38, 4  ;;  %v1027_v47 = vrot.slane %v1025_v2, 5 }
  0xf6   : > { %v1022_v56 = vor.u32 %v1021_v13, %v1018_v11  ;;  %v1031_v22 = vrot.slane %v1029_v55, 4  ;;  %v1037_v40 = vrot.slane %v1035_v51, 5  ;;  %v1088_v25 = vshrl.u32 %v7848_v5, 16  ;;  %v7874_v55 = vld [vmem:[%s7413_s20 + $0x16c] sm:$0xf] }
  0xf7   : > { %11375 = vst [vmem:[#allocation41_spill] sm:$0xff] %v7855_v31  ;;  %1858 = vrot.lane.b32.xlu0 %v7855_v31, %s7195_s18  ;;  %v1062_v45 = vsel %vm7437_vm2, %v1057_v6, %v1061_v35  ;;  %v1091_v1 = vshll.u32 %v7848_v5, 16  ;;  %v1097_v42 = vshll.u32 %v7853_v10, 16  ;;  %v1101_v30 = vshrl.u32 %v7853_v10, 16  ;;  %v372_v31 = vld [vmem:[%s7413_s20 + $0x170] sm:$0x1] }
  0xf8   : > { %v7871_v57 = vcombine.low %v1052_v43, %v1062_v45  ;;  %v1023_v8 = vrot.slane %v1022_v56, 4  ;;  %v1032_v38 = vor.u32 %v1031_v22, %v1027_v47  ;;  %v1090_v2 = vrot.slane %v1088_v25, 4 }
  0xf9   : > { %v1093_v3 = vrot.slane %v1091_v1, 5  ;;  %v1099_v11 = vrot.slane %v1097_v42, 5  ;;  %v1103_v35 = vrot.slane %v1101_v30, 4  ;;  %v1107_v13 = vshll.u32 %v375_v59, 16  ;;  %v7885_v42 = vld [vmem:[%s7413_s20 + $0x18c] sm:$0xf] }
  0xfa   : > { %11376 = vst [vmem:[#allocation42_spill] sm:$0xff] %v7871_v57  ;;  %1864 = vrot.lane.b32.xlu1 %v7871_v57, %s7195_s18  ;;  %v1028_v51 = vsel %vm7437_vm2, %v1023_v8, %v1027_v47  ;;  %v1033_v43 = vrot.slane %v1032_v38, 4  ;;  %v1064_v6 = vshrl.u32 %v7869_v7, 16  ;;  %v1067_v22 = vshll.u32 %v7869_v7, 16  ;;  %v7891_v8 = vld [vmem:[%s7413_s20 + $0x190] sm:$0xf] }
  0xfb   : > { %v1094_v56 = vor.u32 %v1093_v3, %v1090_v2  ;;  %v1104_v25 = vor.u32 %v1103_v35, %v1099_v11  ;;  %v1109_v45 = vrot.slane %v1107_v13, 5  ;;  %v1073_v1 = vshll.u32 %v7874_v55, 16 }
  0xfc   : > { %v1038_v59 = vsel %vm7437_vm2, %v1033_v43, %v1037_v40  ;;  %v1066_v30 = vrot.slane %v1064_v6, 4  ;;  %v1069_v57 = vrot.slane %v1067_v22, 5  ;;  %v1077_v47 = vshrl.u32 %v7874_v55, 16 }
  0xfd   : > { %v7893_v38 = vcombine.low %v1028_v51, %v1038_v59  ;;  %v1095_v2 = vrot.slane %v1094_v56, 4  ;;  %v1105_v3 = vrot.slane %v1104_v25, 4  ;;  %v1075_v35 = vrot.slane %v1073_v1, 5  ;;  %v381_v51 = vld [vmem:[%s7413_s20 + $0x194] sm:$0x1] }
  0xfe   : > { %v1070_v13 = vor.u32 %v1069_v57, %v1066_v30  ;;  %v1079_v62 = vrot.slane %v1077_v47, 4  ;;  %v1083_v20 = vshll.u32 %v372_v31, 16  ;;  %v1136_v19 = vshrl.u32 %v7885_v42, 16  ;;  %v7906_v56 = vld [vmem:[%s7413_s20 + $0x180] sm:$0xf] }
  0xff   : > { %11377 = vst [vmem:[#allocation43_spill] sm:$0xff] %v7893_v38  ;;  %1862 = vrot.lane.b32.xlu0 %v7893_v38, %s7195_s18  ;;  %v1100_v40 = vsel %vm7437_vm2, %v1095_v2, %v1099_v11  ;;  %v1110_v43 = vsel %vm7437_vm2, %v1105_v3, %v1109_v45  ;;  %v1139_v6 = vshll.u32 %v7885_v42, 16  ;;  %v1145_v22 = vshll.u32 %v7891_v8, 16  ;;  %v7911_v59 = vld [vmem:[%s7413_s20 + $0x184] sm:$0xf] }
 0x100   : > { %v7908_v57 = vcombine.low %v1100_v40, %v1110_v43  ;;  %v1071_v31 = vrot.slane %v1070_v13, 4  ;;  %v1080_v25 = vor.u32 %v1079_v62, %v1075_v35  ;;  %v1085_v1 = vrot.slane %v1083_v20, 5  ;;  %v378_v20 = vld [vmem:[%s7413_s20 + $0x188] sm:$0x1] }
 0x101   : > { %v1138_v30 = vrot.slane %v1136_v19, 4  ;;  %v1141_v11 = vrot.slane %v1139_v6, 5  ;;  %v1147_v47 = vrot.slane %v1145_v22, 5  ;;  %v1149_v45 = vshrl.u32 %v7891_v8, 16 }
 0x102   : > { %11378 = vst [vmem:[#allocation44_spill] sm:$0xff] %v7908_v57  ;;  %1868 = vrot.lane.b32.xlu1 %v7908_v57, %s7195_s18  ;;  %v1076_v2 = vsel %vm7437_vm2, %v1071_v31, %v1075_v35  ;;  %v1081_v3 = vrot.slane %v1080_v25, 4  ;;  %v1155_v40 = vshll.u32 %v381_v51, 16  ;;  %v1112_v43 = vshrl.u32 %v7906_v56, 16 }
 0x103   : > { %v1142_v13 = vor.u32 %v1141_v11, %v1138_v30  ;;  %v1151_v62 = vrot.slane %v1149_v45, 4  ;;  %v1115_v38 = vshll.u32 %v7906_v56, 16  ;;  %v1121_v19 = vshll.u32 %v7911_v59, 16 }
 0x104   : > { %v1086_v6 = vsel %vm7437_vm2, %v1081_v3, %v1085_v1  ;;  %v1157_v22 = vrot.slane %v1155_v40, 5  ;;  %v1114_v49 = vrot.slane %v1112_v43, 4  ;;  %v1125_v57 = vshrl.u32 %v7911_v59, 16 }
 0x105   : > { %v7925_v46 = vcombine.low %v1076_v2, %v1086_v6  ;;  %v1143_v35 = vrot.slane %v1142_v13, 4  ;;  %v1152_v51 = vor.u32 %v1151_v62, %v1147_v47  ;;  %v1117_v31 = vrot.slane %v1115_v38, 5 }
 0x106   : > { %v1123_v25 = vrot.slane %v1121_v19, 5  ;;  %v1127_v30 = vrot.slane %v1125_v57, 4  ;;  %v1131_v11 = vshll.u32 %v378_v20, 16  ;;  %v7945_v20 = vld [vmem:[%s7413_s20 + $0x1c] sm:$0xf]  ;;  %vm1255_vm3 = vcmask 1042432  }
 0x107   : > { %11379 = vst [vmem:[#allocation45_spill] sm:$0xff] %v7925_v46  ;;  %1866 = vrot.lane.b32.xlu0 %v7925_v46, %s7195_s18  ;;  %v1148_v1 = vsel %vm7437_vm2, %v1143_v35, %v1147_v47  ;;  %v1153_v45 = vrot.slane %v1152_v51, 4  ;;  %v1118_v3 = vor.u32 %v1117_v31, %v1114_v49  ;;  %v7942_v47 = vld [vmem:[%s7413_s20 + $0x18] sm:$0xf]  ;;  %v7959_v35 = vld [vmem:[%s7413_s20 + $0x10] sm:$0xf] }
 0x108   : > { %v1128_v2 = vor.u32 %v1127_v30, %v1123_v25  ;;  %v1133_v40 = vrot.slane %v1131_v11, 5  ;;  %v7949_v19 = vcombine.low %v7942_v47, %v7945_v20  ;;  %v7968_v31 = vld [vmem:[%s7413_s20 + $0x30] sm:$0xf]  ;;  %v7980_v11 = vld [vmem:[%s7413_s20 + $0x24] sm:$0xf]  ;;  %vm1256_vm4 = vcmask 1046532  }
 0x109   : > { %v1158_v38 = vsel %vm7437_vm2, %v1153_v45, %v1157_v22  ;;  %v1119_v43 = vrot.slane %v1118_v3, 4  ;;  %v7956_v22 = vld [vmem:[%s7413_s20 + $0xc] sm:$0xf]  ;;  %v7992_v3 = vld [vmem:[%s7413_s20 + $0x48] sm:$0xf]  ;;  %vm8300_vm5 = vmor %vm1255_vm3, %vm1256_vm4  ;;  %vm2014_vm6 = vcmask 64512  }
 0x10a   : > { %v7933_v57 = vcombine.low %v1148_v1, %v1158_v38  ;;  %v1129_v13 = vrot.slane %v1128_v2, 4  ;;  %11381 = vst [vmem:[#allocation47_spill] sm:$0xff] %v7949_v19  ;;  %v7963_v51 = vcombine.low %v7956_v22, %v7959_v35  ;;  %v7983_v1 = vld [vmem:[%s7413_s20 + $0x28] sm:$0xf]  ;;  %v7995_v2 = vld [vmem:[%s7413_s20 + $0x4c] sm:$0xf] }
 0x10b   : > { %v1124_v62 = vsel %vm7437_vm2, %v1119_v43, %v1123_v25  ;;  %v7971_v25 = vld [vmem:[%s7413_s20 + $0x34] sm:$0xf]  ;;  %v7987_v45 = vcombine.low %v7980_v11, %v7983_v1  ;;  %v8004_v38 = vld [vmem:[%s7413_s20 + $0x3c] sm:$0xf]  ;;  %v8007_v43 = vld [vmem:[%s7413_s20 + $0x40] sm:$0xf] }
 0x10c   : > { %11380 = vst [vmem:[#allocation46_spill] sm:$0xff] %v7933_v57  ;;  %1872 = vrot.lane.b32.xlu1 %v7933_v57, %s7195_s18  ;;  %v1134_v49 = vsel %vm7437_vm2, %v1129_v13, %v1133_v40  ;;  %11383 = vst [vmem:[#allocation49_spill] sm:$0xff] %v7963_v51  ;;  %v7975_v30 = vcombine.low %v7968_v31, %v7971_v25  ;;  %v7999_v40 = vcombine.low %v7992_v3, %v7995_v2  ;;  %vm2111_vm7 = vcmask 130048  }
 0x10d   : > { %v7951_v6 = vcombine.low %v1124_v62, %v1134_v49  ;;  %11385 = vst [vmem:[#allocation51_spill] sm:$0xff] %v7987_v45  ;;  %v8011_v13 = vcombine.low %v8004_v38, %v8007_v43  ;;  %v8016_v62 = vld [vmem:[%s7413_s20 + $0x60] sm:$0xf]  ;;  %v8019_v49 = vld [vmem:[%s7413_s20 + $0x64] sm:$0xf]  ;;  %vm2176_vm8 = vcmask 195584  }
 0x10e   : > { %11384 = vst [vmem:[#allocation50_spill] sm:$0xff] %v7975_v30  ;;  %11386 = vst [vmem:[#allocation52_spill] sm:$0xff] %v7999_v40  ;;  %vm2257_vm9 = vcmask 261120   ;;  %vm5021_vm10 = vcmask 523264   ;;  %vm5086_vm11 = vcmask 785408  }
 0x10f   : > { %11382 = vst [vmem:[#allocation48_spill] sm:$0xff] %v7951_v6  ;;  %1870 = vrot.lane.b32.xlu0 %v7951_v6, %s7195_s18  ;;  %11387 = vst [vmem:[#allocation53_spill] sm:$0xff] %v8011_v13 }
 0x110   : > { %1882 = vrot.lane.b32.xlu1 %v7949_v19, %s7196_s23  ;;  %11388 = vst [vmem:[#allocation54_spill] sm:$0xff] %v8016_v62  ;;  %11389 = vst [vmem:[#allocation55_spill] sm:$0xff] %v8019_v49  ;;  %v8031_v19 = vld [vmem:[%s7413_s20 + $0x58] sm:$0xf] }
 0x113   : > { %1880 = vrot.lane.b32.xlu0 %v7963_v51, %s7196_s23  ;;  %v8041_v51 = vcombine.low %v7533_v17, %v7538_v24  ;;  %v8064_v17 = vld [vmem:[%s7413_s20 + $0x84] sm:$0xf]  ;;  %v8067_v24 = vld [vmem:[%s7413_s20 + $0x88] sm:$0xf] }
 0x114   : > { %1886 = vrot.lane.b32.xlu1 %v7975_v30, %s7196_s23  ;;  %v8023_v30 = vcombine.low %v8016_v62, %v8019_v49  ;;  %v8049_v62 = vld [vmem:[%s7413_s20 + $0x70] sm:$0xf]  ;;  %11395 = vst [vmem:[#allocation61_spill] sm:$0xff] %v8064_v17  ;;  %11396 = vst [vmem:[#allocation62_spill] sm:$0xff] %v8067_v24 }
 0x115   : > { %11392 = vst [vmem:[#allocation58_spill] sm:$0xff] %v8041_v51 }
 0x116   : > { %11390 = vst [vmem:[#allocation56_spill] sm:$0xff] %v8023_v30 }
 0x117   : > { %1884 = vrot.lane.b32.xlu0 %v7987_v45, %s7196_s23  ;;  %v8028_v45 = vld [vmem:[%s7413_s20 + $0x54] sm:$0xf] }
 0x118   : > { %1890 = vrot.lane.b32.xlu1 %v7999_v40, %s7196_s23  ;;  %v8035_v40 = vcombine.low %v8028_v45, %v8031_v19 }
 0x11a   : > { %11391 = vst [vmem:[#allocation57_spill] sm:$0xff] %v8035_v40 }
 0x11b   : > { %1888 = vrot.lane.b32.xlu0 %v8011_v13, %s7196_s23  ;;  %v8046_v13 = vld [vmem:[%s7413_s20 + $0x6c] sm:$0xf] }
 0x11c   : > { %1894 = vrot.lane.b32.xlu1 %v8023_v30, %s7196_s23  ;;  %v8053_v49 = vcombine.low %v8046_v13, %v8049_v62  ;;  %v8059_v30 = vcombine.low %v7570_v63, %v7578_v9  ;;  %v8079_v63 = vpop.permute.xlu1 %1814  ;;  %v8082_v9 = vld [vmem:[%s7413_s20 + $0xc0] sm:$0xf] }
 0x11e   : > { %11393 = vst [vmem:[#allocation59_spill] sm:$0xff] %v8053_v49  ;;  %11394 = vst [vmem:[#allocation60_spill] sm:$0xff] %v8059_v30 }
 0x11f   : > { %1892 = vrot.lane.b32.xlu0 %v8035_v40, %s7196_s23  ;;  %v8071_v40 = vcombine.low %v8064_v17, %v8067_v24  ;;  %v8091_v17 = vcombine.low %v7553_v39, %v7558_v44  ;;  %v8093_v24 = vpop.permute.xlu0 %1810  ;;  %v8113_v39 = vcombine.low %v7675_v53, %v7682_v0  ;;  %v8135_v53 = vcombine.low %v7660_v21, %v7665_v32 }
 0x120   : > { %1898 = vrot.lane.b32.xlu1 %v8041_v51, %s7196_s23  ;;  %v8077_v51 = vcombine.low %v7610_v54, %v7615_v60  ;;  %v8101_v60 = vpop.permute.xlu1 %1816  ;;  %v8157_v21 = vcombine.low %v7792_v33, %v7797_v52  ;;  %v6907_v33 = vld [vmem:[%s7421_s30 + $0x8] sm:$0xff]  }
 0x121   : > { %11397 = vst [vmem:[#allocation63_spill] sm:$0xff] %v8071_v40  ;;  %11399 = vst [vmem:[#allocation65_spill] sm:$0xff] %v8091_v17  ;;  %v8206_v52 = vld [vmem:[%s7413_s20 + $0x198] sm:$0xf] }
 0x122   : > { %11398 = vst [vmem:[#allocation64_spill] sm:$0xff] %v8077_v51  ;;  %11402 = vst [vmem:[#allocation68_spill] sm:$0xff] %v8113_v39 }
 0x123   : > { %1896 = vrot.lane.b32.xlu0 %v8053_v49, %s7196_s23  ;;  %v8085_v49 = vld [vmem:[%s7413_s20 + $0xc4] sm:$0xf]  ;;  %v8115_v44 = vpop.permute.xlu0 %1812  ;;  %11405 = vst [vmem:[#allocation71_spill] sm:$0xff] %v8135_v53  ;;  %11409 = vst [vmem:[#allocation75_spill] sm:$0xff] %v8157_v21 }
 0x124   : > { %1902 = vrot.lane.b32.xlu1 %v8059_v30, %s7196_s23  ;;  %v8099_v54 = vcombine.low %v8082_v9, %v8085_v49  ;;  %v8107_v30 = vcombine.low %v7589_v29, %v7595_v34  ;;  %v8127_v29 = vcombine.low %v7707_v50, %v7718_v16  ;;  %v8129_v34 = vpop.permute.xlu1 %1820  ;;  %v8151_v50 = vcombine.low %v7689_v14, %v7701_v41 }
 0x125   : > { %v8165_v16 = vcombine.low %v7732_v36, %v7739_v12  ;;  %v8171_v14 = vcombine.low %v7829_v27, %v7834_v58  ;;  %v8188_v27 = vcombine.low %v7869_v7, %v7874_v55  ;;  %v8209_v58 = vld [vmem:[%s7413_s20 + $0x19c] sm:$0xf] }
 0x126   : > { %11400 = vst [vmem:[#allocation66_spill] sm:$0xff] %v8099_v54  ;;  %11401 = vst [vmem:[#allocation67_spill] sm:$0xff] %v8107_v30 }
 0x127   : > { %1900 = vrot.lane.b32.xlu0 %v8071_v40, %s7196_s23  ;;  %11404 = vst [vmem:[#allocation70_spill] sm:$0xff] %v8127_v29  ;;  %v8137_v0 = vpop.permute.xlu0 %1818  ;;  %11408 = vst [vmem:[#allocation74_spill] sm:$0xff] %v8151_v50 }
 0x128   : > { %1906 = vrot.lane.b32.xlu1 %v8077_v51, %s7196_s23  ;;  %v8121_v51 = vcombine.low %v7627_v15, %v7633_v23  ;;  %v8143_v15 = vcombine.low %v7753_v61, %v7758_v28  ;;  %v8145_v23 = vpop.permute.xlu1 %1824  ;;  %11410 = vst [vmem:[#allocation76_spill] sm:$0xff] %v8165_v16  ;;  %11411 = vst [vmem:[#allocation77_spill] sm:$0xff] %v8171_v14  ;;  %v6906_v61 = vld [vmem:[%s7421_s30] sm:$0xff]   ;;  %v8180_v28 = vcombine.low %v7774_v37, %v7779_v48 }
 0x129   : > { %11407 = vst [vmem:[#allocation73_spill] sm:$0xff] %v8145_v23  ;;  %11415 = vst [vmem:[#allocation81_spill] sm:$0xff] %v8188_v27  ;;  %6516 = vmatprep.subr.bf16.mxu0 %v6906_v61  ;;  %v8197_v37 = vcombine.low %v7811_v18, %v7816_v4  ;;  %v8203_v48 = vcombine.low %v7906_v56, %v7911_v59  ;;  %v8217_v18 = vcombine.low %v7848_v5, %v7853_v10  ;;  %v11426_v10 = vld [vmem:[#allocation16_spill] sm:$0xff] }
 0x12a   : > { %11403 = vst [vmem:[#allocation69_spill] sm:$0xff] %v8121_v51  ;;  %11406 = vst [vmem:[#allocation72_spill] sm:$0xff] %v8143_v15  ;;  %6517 = vmatpush3.bf16.msra.mxu0 %v6906_v61  ;;  %v8223_v4 = vcombine.low %v8206_v52, %v8209_v58  ;;  %v8231_v56 = vcombine.low %v7885_v42, %v7891_v8  ;;  %v11429_v42 = vld [vmem:[#allocation21_spill] sm:$0xff]  ;;  %v1288_v23 = vrot.slane %v7971_v25, 5  ;;  %v5765_v25 = vrot.slane %v7968_v31, 9 }
 0x12b   : > { %1904 = vrot.lane.b32.xlu0 %v8091_v17, %s7196_s23  ;;  %v8159_v32 = vpop.permute.xlu0 %1822  ;;  %11413 = vst [vmem:[#allocation79_spill] sm:$0xff] %v8180_v28  ;;  %11417 = vst [vmem:[#allocation83_spill] sm:$0xff] %v8197_v37  ;;  %6518 = vmatprep.subr.bf16.mxu0 %v6907_v33  ;;  %v11456_v17 = vld [vmem:[#allocation35_spill] sm:$0xff] }
 0x12c   : > { %1910 = vrot.lane.b32.xlu1 %v8099_v54, %s7196_s23  ;;  %v8173_v41 = vpop.permute.xlu1 %1828  ;;  %11418 = vst [vmem:[#allocation84_spill] sm:$0xff] %v8203_v48  ;;  %11420 = vst [vmem:[#allocation86_spill] sm:$0xff] %v8217_v18  ;;  %v1486_v54 = vshll.u32 %v8082_v9, 16  ;;  %v1289_v31 = vsel %vm8300_vm5, %v5765_v25, %v1288_v23 }
 0x12d   : > { %11412 = vst [vmem:[#allocation78_spill] sm:$0xff] %v8173_v41  ;;  %11421 = vst [vmem:[#allocation87_spill] sm:$0xff] %v8223_v4 }
 0x12e   : > { %6519 = vmatpush3.bf16.msra.mxu0 %v6907_v33  ;;  %11423 = vst [vmem:[#allocation89_spill] sm:$0xff] %v8231_v56  ;;  %v11428_v33 = vld [vmem:[#allocation19_spill] sm:$0xff] }
 0x12f   : > { %1908 = vrot.lane.b32.xlu0 %v8107_v30, %s7196_s23  ;;  %v8182_v36 = vpop.permute.xlu0 %1826  ;;  %v11438_v30 = vld [vmem:[#allocation22_spill] sm:$0xff] }
 0x130   : > { %1914 = vrot.lane.b32.xlu1 %v8113_v39, %s7196_s23  ;;  %11414 = vst [vmem:[#allocation80_spill] sm:$0xff] %v8182_v36  ;;  %v8190_v12 = vpop.permute.xlu1 %1832  ;;  %v6941_v36 = vld [vmem:[%s7413_s20 + $0x20] sm:$0x1] }
 0x131   : > { %11416 = vst [vmem:[#allocation82_spill] sm:$0xff] %v8190_v12  ;;  %v11462_v12 = vld [vmem:[#allocation39_spill] sm:$0xff] }
 0x133   : > { %1912 = vrot.lane.b32.xlu0 %v8121_v51, %s7196_s23  ;;  %v8211_v7 = vpop.permute.xlu0 %1830 }
 0x134   : > { %1918 = vrot.lane.b32.xlu1 %v8127_v29, %s7196_s23  ;;  %11419 = vst [vmem:[#allocation85_spill] sm:$0xff] %v8211_v7  ;;  %v8225_v55 = vpop.permute.xlu1 %1836  ;;  %v11435_v29 = vld [vmem:[#allocation20_spill] sm:$0xff] }
 0x135   : > { %11422 = vst [vmem:[#allocation88_spill] sm:$0xff] %v8225_v55 }
 0x137   : > { %1916 = vrot.lane.b32.xlu0 %v8135_v53, %s7196_s23  ;;  %v8233_v59 = vpop.permute.xlu0 %1834  ;;  %v11436_v53 = vld [vmem:[#allocation25_spill] sm:$0xff] }
 0x138   : > { %1922 = vrot.lane.b32.xlu1 %v8143_v15, %s7196_s23  ;;  %11424 = vst [vmem:[#allocation90_spill] sm:$0xff] %v8233_v59 }
 0x13a   : > { %v8237_v5 = vpop.permute.xlu1 %1840 }
 0x13b   : > { %1920 = vrot.lane.b32.xlu0 %v8151_v50, %s7196_s23  ;;  %11425 = vst [vmem:[#allocation91_spill] sm:$0xff] %v8237_v5  ;;  %v330_v50 = vld [vmem:[%s7413_s20 + $0xc8] sm:$0x1]  ;;  %v11441_v5 = vld [vmem:[#allocation24_spill] sm:$0xff] }
 0x13c   : > { %1926 = vrot.lane.b32.xlu1 %v8157_v21, %s7196_s23 }
 0x13d   : > { %v8243_v61 = vpop.permute.xlu0 %1838 }
 0x13e   : > { %11427 = vst [vmem:[#allocation16_spill] sm:$0xff] %v8243_v61 }
 0x13f   : > { %1924 = vrot.lane.b32.xlu0 %v8165_v16, %s7196_s23 }
 0x140   : > { %1930 = vrot.lane.b32.xlu1 %v8171_v14, %s7196_s23 }
 0x142   : > { %v8249_v8 = vpop.permute.xlu1 %1844 }
 0x143   : > { %1928 = vrot.lane.b32.xlu0 %v8180_v28, %s7196_s23  ;;  %11430 = vst [vmem:[#allocation19_spill] sm:$0xff] %v8249_v8  ;;  %v1488_v28 = vrot.slane %v1486_v54, 5  ;;  %v11439_v54 = vld [vmem:[#allocation27_spill] sm:$0xff] }
 0x144   : > { %1934 = vrot.lane.b32.xlu1 %v8188_v27, %s7196_s23 }
 0x146   : > { %v8257_v27 = vpop.permute.xlu0 %1842 }
 0x147   : > { %1932 = vrot.lane.b32.xlu0 %v8197_v37, %s7196_s23  ;;  %v11433_v37 = vld [vmem:[#allocation23_spill] sm:$0xff] }
 0x148   : > { %1938 = vrot.lane.b32.xlu1 %v8203_v48, %s7196_s23  ;;  %v1496_v48 = vshrl.u32 %v8085_v49, 16 }
 0x14a   : > { %v1498_v16 = vrot.slane %v1496_v48, 4  ;;  %v8261_v15 = vpop.permute.xlu1 %1848 }
 0x14b   : > { %1936 = vrot.lane.b32.xlu0 %v8217_v18, %s7196_s23  ;;  %v11431_v18 = vld [vmem:[#allocation18_spill] sm:$0xff]  ;;  %11434 = vst [vmem:[#allocation92_spill] sm:$0xff] %v8261_v15 }
 0x14c   : > { %1942 = vrot.lane.b32.xlu1 %v8223_v4, %s7196_s23  ;;  %v1483_v4 = vshrl.u32 %v8082_v9, 16  ;;  %11432 = vst [vmem:[#allocation18_spill] sm:$0xff] %v8257_v27  ;;  %v1502_v27 = vshll.u32 %v330_v50, 16 }
 0x14e   : > { %v1485_v14 = vrot.slane %v1483_v4, 4  ;;  %v1504_v15 = vrot.slane %v1502_v27, 5  ;;  %v5793_v27 = vrot.slane %v8082_v9, 9 }
 0x14f   : > { %1940 = vrot.lane.b32.xlu0 %v8231_v56, %s7196_s23  ;;  %v1492_v56 = vshll.u32 %v8085_v49, 16  ;;  %v8268_v39 = vpop.permute.xlu0 %1846 }
 0x150   : > { %1952 = vrot.lane.b32.xlu1 %v11426_v10, %s7197_s21  ;;  %11437 = vst [vmem:[#allocation20_spill] sm:$0xff] %v8268_v39  ;;  %v1489_v51 = vor.u32 %v1488_v28, %v1485_v14  ;;  %v11443_v14 = vld [vmem:[#allocation29_spill] sm:$0xff]  ;;  %v1538_v39 = vrot.slane %v8085_v49, 5  ;;  %v11449_v49 = vld [vmem:[#allocation28_spill] sm:$0xff] }
 0x151   : > { %v1494_v21 = vrot.slane %v1492_v56, 5 }
 0x152   : > { %v1490_v4 = vrot.slane %v1489_v51, 4  ;;  %v11445_v51 = vld [vmem:[#allocation26_spill] sm:$0xff] }
 0x153   : > { %1950 = vrot.lane.b32.xlu0 %v11428_v33, %s7197_s21  ;;  %v1499_v8 = vor.u32 %v1498_v16, %v1494_v21 }
 0x154   : > { %1956 = vrot.lane.b32.xlu1 %v11429_v42, %s7197_s21  ;;  %v8274_v48 = vpop.permute.xlu1 %1852  ;;  %v1495_v16 = vsel %vm7437_vm2, %v1490_v4, %v1494_v21  ;;  %v1540_v4 = vrot.slane %v1538_v39, 4 }
 0x155   : > { %11440 = vst [vmem:[#allocation27_spill] sm:$0xff] %v8274_v48  ;;  %v1500_v56 = vrot.slane %v1499_v8, 4  ;;  %v11446_v8 = vld [vmem:[#allocation31_spill] sm:$0xff] }
 0x157   : > { %1954 = vrot.lane.b32.xlu0 %v11431_v18, %s7197_s21  ;;  %v8278_v61 = vpop.permute.xlu0 %1850  ;;  %v1505_v28 = vsel %vm7437_vm2, %v1500_v56, %v1504_v15  ;;  %v1541_v15 = vrot.slane %v330_v50, 5  ;;  %v11454_v50 = vld [vmem:[#allocation30_spill] sm:$0xff] }
 0x158   : > { %1960 = vrot.lane.b32.xlu1 %v11433_v37, %s7197_s21  ;;  %11442 = vst [vmem:[#allocation24_spill] sm:$0xff] %v8278_v61  ;;  %v8294_v61 = vcombine.low %v1495_v16, %v1505_v28  ;;  %v1539_v16 = vsel %vm8300_vm5, %v5793_v27, %v1538_v39  ;;  %v1510_v39 = vshll.u32 %v8206_v52, 16  ;;  %v11458_v27 = vld [vmem:[#allocation32_spill] sm:$0xff] }
 0x159   : > { %v1542_v28 = vsel %vm8300_vm5, %v1540_v4, %v1541_v15  ;;  %v1516_v4 = vshll.u32 %v8209_v58, 16  ;;  %v1520_v15 = vshrl.u32 %v8209_v58, 16 }
 0x15a   : > { %11447 = vst [vmem:[#allocation26_spill] sm:$0xff] %v8294_v61 }
 0x15b   : > { %1958 = vrot.lane.b32.xlu0 %v11435_v29, %s7197_s21  ;;  %v8287_v48 = vpop.permute.xlu1 %1856  ;;  %v1518_v59 = vrot.slane %v1516_v4, 5  ;;  %v1522_v40 = vrot.slane %v1520_v15, 4 }
 0x15c   : > { %1964 = vrot.lane.b32.xlu1 %v11436_v53, %s7197_s21  ;;  %11444 = vst [vmem:[#allocation93_spill] sm:$0xff] %v8287_v48  ;;  %v8312_v48 = vcombine.low %v1539_v16, %v1542_v28  ;;  %v11459_v16 = vld [vmem:[#allocation37_spill] sm:$0xff] }
 0x15e   : > { %11453 = vst [vmem:[#allocation96_spill] sm:$0xff] %v8312_v48  ;;  %v8339_v48 = vld [vmem:[%s7413_s20 + $0x1a0] sm:$0x1] }
 0x15f   : > { %1962 = vrot.lane.b32.xlu0 %v11438_v30, %s7197_s21  ;;  %v8296_v21 = vpop.permute.xlu0 %1854  ;;  %v1526_v4 = vshll.u32 %v8339_v48, 16 }
 0x160   : > { %1968 = vrot.lane.b32.xlu1 %v11439_v54, %s7197_s21  ;;  %11448 = vst [vmem:[#allocation94_spill] sm:$0xff] %v8296_v21 }
 0x163   : > { %1966 = vrot.lane.b32.xlu0 %v11441_v5, %s7197_s21 }
 0x164   : > { %1972 = vrot.lane.b32.xlu1 %v11443_v14, %s7197_s21 }
 0x165   : > { %v8306_v9 = vpop.permute.xlu1 %1860 }
 0x166   : > { %11452 = vst [vmem:[#allocation95_spill] sm:$0xff] %v8306_v9  ;;  %v1507_v9 = vshrl.u32 %v8206_v52, 16 }
 0x167   : > { %1970 = vrot.lane.b32.xlu0 %v11445_v51, %s7197_s21 }
 0x168   : > { %1976 = vrot.lane.b32.xlu1 %v11446_v8, %s7197_s21 }
 0x169   : > { %v8316_v21 = vpop.permute.xlu0 %1858 }
 0x16a   : > { %11455 = vst [vmem:[#allocation97_spill] sm:$0xff] %v8316_v21  ;;  %v1509_v21 = vrot.slane %v1507_v9, 4  ;;  %v11466_v9 = vld [vmem:[#allocation41_spill] sm:$0xff] }
 0x16b   : > { %1974 = vrot.lane.b32.xlu0 %v11449_v49, %s7197_s21 }
 0x16c   : > { %1980 = vrot.lane.b32.xlu1 %v8294_v61, %s7197_s21  ;;  %v8320_v55 = vpop.permute.xlu1 %1864  ;;  %v6939_v61 = vld [vmem:[%s7413_s20 + $0x8] sm:$0x1] }
 0x16d   : > { %11457 = vst [vmem:[#allocation98_spill] sm:$0xff] %v8320_v55  ;;  %v11461_v55 = vld [vmem:[#allocation34_spill] sm:$0xff]  ;;  %v1263_v7 = vrot.slane %v6939_v61, 5  ;;  %v5763_v61 = vrot.slane %v7942_v47, 9 }
 0x16f   : > { %1978 = vrot.lane.b32.xlu0 %v11454_v50, %s7197_s21  ;;  %v11464_v50 = vld [vmem:[#allocation36_spill] sm:$0xff] }
 0x170   : > { %1984 = vrot.lane.b32.xlu1 %v11456_v17, %s7197_s21  ;;  %v1512_v17 = vrot.slane %v1510_v39, 5  ;;  %v1523_v39 = vor.u32 %v1522_v40, %v1518_v59 }
 0x171   : > { %v8330_v28 = vpop.permute.xlu0 %1862 }
 0x172   : > { %11460 = vst [vmem:[#allocation99_spill] sm:$0xff] %v8330_v28  ;;  %v1513_v28 = vor.u32 %v1512_v17, %v1509_v21  ;;  %v1267_v17 = vrot.slane %v7959_v35, 5 }
 0x173   : > { %1982 = vrot.lane.b32.xlu0 %v11458_v27, %s7197_s21 }
 0x174   : > { %1988 = vrot.lane.b32.xlu1 %v11459_v16, %s7197_s21  ;;  %v8336_v27 = vpop.permute.xlu1 %1868  ;;  %v1269_v35 = vrot.slane %v1267_v17, 4 }
 0x175   : > { %11463 = vst [vmem:[#allocation100_spill] sm:$0xff] %v8336_v27  ;;  %v1514_v27 = vrot.slane %v1513_v28, 4  ;;  %v5762_v28 = vrot.slane %v7956_v22, 9 }
 0x177   : > { %1986 = vrot.lane.b32.xlu0 %v11461_v55, %s7197_s21  ;;  %v11469_v55 = vld [vmem:[#allocation43_spill] sm:$0xff] }
 0x178   : > { %1992 = vrot.lane.b32.xlu1 %v11462_v12, %s7197_s21  ;;  %v11468_v12 = vld [vmem:[#allocation38_spill] sm:$0xff] }
 0x179   : > { %v8343_v16 = vpop.permute.xlu0 %1866 }
 0x17a   : > { %11465 = vst [vmem:[#allocation101_spill] sm:$0xff] %v8343_v16  ;;  %v1528_v16 = vrot.slane %v1526_v4, 5  ;;  %v6936_v4 = vld [vmem:[%s7413_s20 + $0x14] sm:$0x1] }
 0x17b   : > { %1990 = vrot.lane.b32.xlu0 %v11464_v50, %s7197_s21  ;;  %v1524_v50 = vrot.slane %v1523_v39, 4 }
 0x17c   : > { %1996 = vrot.lane.b32.xlu1 %v11466_v9, %s7197_s21  ;;  %v11471_v9 = vld [vmem:[#allocation40_spill] sm:$0xff] }
 0x17d   : > { %v1529_v39 = vsel %vm7437_vm2, %v1524_v50, %v1528_v16  ;;  %v1268_v50 = vsel %vm8300_vm5, %v5762_v28, %v1267_v17  ;;  %v8385_v16 = vld [vmem:[%s7413_s20] sm:$0xf]  ;;  %v5764_v17 = vrot.slane %v7980_v11, 9 }
 0x17e   : > { %v8348_v15 = vpop.permute.xlu1 %1872 }
 0x17f   : > { %11467 = vst [vmem:[#allocation102_spill] sm:$0xff] %v8348_v15  ;;  %1994 = vrot.lane.b32.xlu0 %v11468_v12, %s7197_s21  ;;  %v1519_v15 = vsel %vm7437_vm2, %v1514_v27, %v1518_v59  ;;  %v1281_v59 = vrot.slane %v7983_v1, 5  ;;  %v11472_v27 = vld [vmem:[#allocation42_spill] sm:$0xff] }
 0x180   : > { %2000 = vrot.lane.b32.xlu1 %v11469_v55, %s7197_s21  ;;  %v8370_v55 = vld [vmem:[%s7413_s20 + $0x4] sm:$0xf]  ;;  %v8380_v26 = vcombine.low %v1519_v15, %v1529_v39  ;;  %v1274_v15 = vrot.slane %v7945_v20, 5 }
 0x181   : > { %v8355_v21 = vpop.permute.xlu0 %1870  ;;  %v1283_v28 = vrot.slane %v1281_v59, 4 }
 0x182   : > { %11470 = vst [vmem:[#allocation103_spill] sm:$0xff] %v8355_v21  ;;  %v8357_v40 = vpop.permute.xlu1 %1882  ;;  %v1270_v21 = vrot.slane %v6936_v4, 5  ;;  %11473 = vst [vmem:[#allocation104_spill] sm:$0xff] %v8380_v26  ;;  %v5761_v4 = vrot.slane %v8385_v16, 9  ;;  %v1276_v11 = vrot.slane %v1274_v15, 4 }
 0x183   : > { %1998 = vrot.lane.b32.xlu0 %v11471_v9, %s7197_s21  ;;  %v1260_v9 = vrot.slane %v8370_v55, 5 }
 0x184   : > { %2004 = vrot.lane.b32.xlu1 %v7925_v46, %s7197_s21  ;;  %v1271_v1 = vsel %vm8300_vm5, %v1269_v35, %v1270_v21 }
 0x185   : > { %v8373_v12 = vpop.permute.xlu0 %1880  ;;  %v1262_v46 = vrot.slane %v1260_v9, 4  ;;  %v5900_v21 = vcombine.low %v1268_v50, %v1271_v1  ;;  %v1261_v35 = vsel %vm8300_vm5, %v5761_v4, %v1260_v9  ;;  %v1282_v50 = vsel %vm8300_vm5, %v5764_v17, %v1281_v59  ;;  %v6908_v9 = vld [vmem:[%s7421_s30 + $0x10] sm:$0xff]   ;;  %v6942_v1 = vld [vmem:[%s7413_s20 + $0x38] sm:$0x1] }
 0x186   : > { %v8376_v22 = vpop.permute.xlu1 %1886  ;;  %6584 = vmatprep.subr.bf16.mxu1 %v6908_v9  ;;  %v1290_v59 = vrot.slane %v1288_v23, 4  ;;  %v1291_v17 = vrot.slane %v6942_v1, 5 }
 0x187   : > { %2002 = vrot.lane.b32.xlu0 %v11472_v27, %s7197_s21  ;;  %v6940_v27 = vld [vmem:[%s7413_s20 + $0x2c] sm:$0x1]  ;;  %v1264_v20 = vsel %vm8300_vm5, %v1262_v46, %v1263_v7  ;;  %6585 = vmatpush3.bf16.msra.mxu1 %v6908_v9  ;;  %v5766_v9 = vrot.slane %v8004_v38, 9 }
 0x188   : > { %2008 = vrot.lane.b32.xlu1 %v7951_v6, %s7197_s21  ;;  %v1284_v41 = vrot.slane %v6940_v27, 5  ;;  %v11474_v6 = vld [vmem:[#allocation44_spill] sm:$0xff]  ;;  %v1277_v27 = vrot.slane %v6941_v36, 5  ;;  %v5899_v46 = vcombine.low %v1261_v35, %v1264_v20  ;;  %v1275_v36 = vsel %vm8300_vm5, %v5763_v61, %v1274_v15 }
 0x189   : > { %v8394_v39 = vpop.permute.xlu0 %1884  ;;  %v1292_v61 = vsel %vm8300_vm5, %v1290_v59, %v1291_v17  ;;  %v1302_v59 = vrot.slane %v7995_v2, 5 }
 0x18a   : > { %v8398_v49 = vpop.permute.xlu1 %1890  ;;  %v1285_v47 = vsel %vm8300_vm5, %v1283_v28, %v1284_v41  ;;  %v1278_v41 = vsel %vm8300_vm5, %v1276_v11, %v1277_v27  ;;  %v5903_v27 = vcombine.low %v1289_v31, %v1292_v61  ;;  %v5767_v31 = vrot.slane %v7992_v3, 9 }
 0x18b   : > { %2006 = vrot.lane.b32.xlu0 %v11474_v6, %s7197_s21  ;;  %v5902_v7 = vcombine.low %v1282_v50, %v1285_v47  ;;  %v5901_v15 = vcombine.low %v1275_v36, %v1278_v41  ;;  %v1295_v47 = vrot.slane %v8007_v43, 5  ;;  %v6943_v36 = vld [vmem:[%s7413_s20 + $0x44] sm:$0x1] }
 0x18c   : > { %2012 = vrot.lane.b32.xlu1 %v8380_v26, %s7197_s21  ;;  %v1298_v25 = vrot.slane %v6943_v36, 5  ;;  %v1304_v36 = vrot.slane %v1302_v59, 4  ;;  %v6944_v26 = vld [vmem:[%s7413_s20 + $0x50] sm:$0x1]  ;;  %v1303_v2 = vsel %vm8300_vm5, %v5767_v31, %v1302_v59 }
 0x18d   : > { %v8411_v8 = vpop.permute.xlu0 %1888 }
 0x18e   : > { %v8418_v4 = vpop.permute.xlu1 %1894 }
 0x18f   : > { %2010 = vrot.lane.b32.xlu0 %v7933_v57, %s7197_s21  ;;  %v6909_v57 = vld [vmem:[%s7421_s30 + $0x18] sm:$0xff]  }
 0x190   : > { %2709 = vrot.lane.b32.xlu1 %v5900_v21, %s7195_s18  ;;  %6586 = vmatprep.subr.bf16.mxu1 %v6909_v57 }
 0x191   : > { %v8429_v28 = vpop.permute.xlu0 %1892  ;;  %6587 = vmatpush3.bf16.msra.mxu1 %v6909_v57 }
 0x192   : > { %v8432_v35 = vpop.permute.xlu1 %1898 }
 0x193   : > { %2707 = vrot.lane.b32.xlu0 %v5899_v46, %s7195_s18  ;;  %v1297_v46 = vrot.slane %v1295_v47, 4 }
 0x194   : > { %2713 = vrot.lane.b32.xlu1 %v5902_v7, %s7195_s18 }
 0x195   : > { %v8440_v20 = vpop.permute.xlu0 %1896  ;;  %v1299_v38 = vsel %vm8300_vm5, %v1297_v46, %v1298_v25  ;;  %v6945_v25 = vld [vmem:[%s7413_s20 + $0x5c] sm:$0x1] }
 0x196   : > { %v8442_v11 = vpop.permute.xlu1 %1902 }
 0x197   : > { %2711 = vrot.lane.b32.xlu0 %v5901_v15, %s7195_s18 }
 0x198   : > { %2771 = vrot.lane.b32.xlu1 %v11428_v33, %s7196_s23 }
 0x199   : > { %v8447_v50 = vpop.permute.xlu0 %1900 }
 0x19a   : > { %v8450_v23 = vpop.permute.xlu1 %1906 }
 0x19b   : > { %2715 = vrot.lane.b32.xlu0 %v5903_v27, %s7195_s18 }
 0x19c   : > { %2841 = vrot.lane.b32.xlu1 %v5900_v21, %s7197_s21  ;;  %v1296_v21 = vsel %vm8300_vm5, %v5766_v9, %v1295_v47  ;;  %v1305_v47 = vrot.slane %v6944_v26, 5  ;;  %v1309_v9 = vrot.slane %v8031_v19, 5  ;;  %v1312_v19 = vrot.slane %v6945_v25, 5 }
 0x19d   : > { %v8454_v57 = vpop.permute.xlu0 %1904  ;;  %v5904_v17 = vcombine.low %v1296_v21, %v1299_v38 }
 0x19e   : > { %v8458_v41 = vpop.permute.xlu1 %1910  ;;  %v1306_v3 = vsel %vm8300_vm5, %v1304_v36, %v1305_v47  ;;  %v1311_v26 = vrot.slane %v1309_v9, 4  ;;  %v11475_v36 = vld [vmem:[#allocation55_spill] sm:$0xff] }
 0x19f   : > { %2773 = vrot.lane.b32.xlu0 %v11426_v10, %s7196_s23  ;;  %v5905_v38 = vcombine.low %v1303_v2, %v1306_v3  ;;  %v1316_v47 = vrot.slane %v11475_v36, 5  ;;  %v11476_v2 = vld [vmem:[#allocation54_spill] sm:$0xff] }
 0x1a0   : > { %2775 = vrot.lane.b32.xlu1 %v11431_v18, %s7196_s23  ;;  %v5769_v3 = vrot.slane %v11476_v2, 9  ;;  %v5770_v2 = vrot.slane %v8046_v13, 9 }
 0x1a1   : > { %v8464_v43 = vpop.permute.xlu0 %1908 }
 0x1a2   : > { %v8471_v1 = vpop.permute.xlu1 %1914  ;;  %v1317_v36 = vsel %vm8300_vm5, %v5769_v3, %v1316_v47  ;;  %v6948_v3 = vld [vmem:[%s7413_s20 + $0x7c] sm:$0xf] }
 0x1a3   : > { %2843 = vrot.lane.b32.xlu0 %v5901_v15, %s7197_s21  ;;  %v5768_v15 = vrot.slane %v8028_v45, 9  ;;  %v1313_v45 = vsel %vm8300_vm5, %v1311_v26, %v1312_v19  ;;  %v1323_v26 = vrot.slane %v8049_v62, 5  ;;  %v6947_v62 = vld [vmem:[%s7413_s20 + $0x74] sm:$0x1] }
 0x1a4   : > { %2845 = vrot.lane.b32.xlu1 %v5902_v7, %s7197_s21 }
 0x1a5   : > { %v8476_v61 = vpop.permute.xlu0 %1912  ;;  %v1310_v31 = vsel %vm8300_vm5, %v5768_v15, %v1309_v9  ;;  %v6946_v9 = vld [vmem:[%s7413_s20 + $0x68] sm:$0x1] }
 0x1a6   : > { %v8480_v46 = vpop.permute.xlu1 %1918  ;;  %v1319_v15 = vrot.slane %v6946_v9, 5  ;;  %v1325_v9 = vrot.slane %v1323_v26, 4 }
 0x1a7   : > { %2777 = vrot.lane.b32.xlu0 %v11429_v42, %s7196_s23  ;;  %v1326_v42 = vrot.slane %v6947_v62, 5 }
 0x1a8   : > { %2717 = vrot.lane.b32.xlu1 %v5904_v17, %s7195_s18 }
 0x1a9   : > { %v8487_v7 = vpop.permute.xlu0 %1916  ;;  %v1327_v13 = vsel %vm8300_vm5, %v1325_v9, %v1326_v42  ;;  %v11482_v42 = vld [vmem:[#allocation62_spill] sm:$0xff] }
 0x1aa   : > { %v8493_v21 = vpop.permute.xlu1 %1922  ;;  %v1337_v9 = vrot.slane %v11482_v42, 5 }
 0x1ab   : > { %2847 = vrot.lane.b32.xlu0 %v5903_v27, %s7197_s21  ;;  %v5906_v27 = vcombine.low %v1310_v31, %v1313_v45 }
 0x1ac   : > { %2781 = vrot.lane.b32.xlu1 %v11433_v37, %s7196_s23  ;;  %v1318_v37 = vrot.slane %v1316_v47, 4 }
 0x1ad   : > { %v8498_v59 = vpop.permute.xlu0 %1920 }
 0x1ae   : > { %v8505_v25 = vpop.permute.xlu1 %1926  ;;  %v1320_v45 = vsel %vm8300_vm5, %v1318_v37, %v1319_v15  ;;  %v1324_v37 = vsel %vm8300_vm5, %v5770_v2, %v1323_v26  ;;  %v1330_v15 = vrot.slane %v6948_v3, 5  ;;  %v6950_v2 = vld [vmem:[%s7413_s20 + $0x80] sm:$0x1] }
 0x1af   : > { %2779 = vrot.lane.b32.xlu0 %v11435_v29, %s7196_s23 }
 0x1b0   : > { %2851 = vrot.lane.b32.xlu1 %v5905_v38, %s7197_s21  ;;  %v1332_v26 = vrot.slane %v1330_v15, 4 }
 0x1b1   : > { %v8511_v6 = vpop.permute.xlu0 %1924 }
 0x1b2   : > { %v8515_v19 = vpop.permute.xlu1 %1930 }
 0x1b3   : > { %11477 = vst [vmem:[#allocation55_spill] sm:$0xff] %v8515_v19  ;;  %2849 = vrot.lane.b32.xlu0 %v5904_v17, %s7197_s21  ;;  %v5907_v17 = vcombine.low %v1317_v36, %v1320_v45  ;;  %v6949_v36 = vld [vmem:[%s7413_s20 + $0x78] sm:$0xf] }
 0x1b4   : > { %2721 = vrot.lane.b32.xlu1 %v5906_v27, %s7195_s18  ;;  %v5771_v45 = vrot.slane %v6949_v36, 9 }
 0x1b5   : > { %v8521_v31 = vpop.permute.xlu0 %1928 }
 0x1b6   : > { %v8527_v19 = vpop.permute.xlu1 %1934 }
 0x1b7   : > { %11478 = vst [vmem:[#allocation54_spill] sm:$0xff] %v8527_v19  ;;  %2719 = vrot.lane.b32.xlu0 %v5905_v38, %s7195_s18  ;;  %v8544_v38 = vcombine.low %v1324_v37, %v1327_v13  ;;  %v1333_v19 = vrot.slane %v6950_v2, 5  ;;  %v1331_v37 = vsel %vm8300_vm5, %v5771_v45, %v1330_v15  ;;  %v11484_v2 = vld [vmem:[#allocation61_spill] sm:$0xff] }
 0x1b8   : > { %2785 = vrot.lane.b32.xlu1 %v11436_v53, %s7196_s23  ;;  %v5772_v42 = vrot.slane %v11484_v2, 9 }
 0x1b9   : > { %v8532_v47 = vpop.permute.xlu0 %1932  ;;  %v1334_v36 = vsel %vm8300_vm5, %v1332_v26, %v1333_v19  ;;  %v6952_v26 = vld [vmem:[%s7413_s20 + $0x94] sm:$0xf] }
 0x1ba   : > { %11479 = vst [vmem:[#allocation105_spill] sm:$0xff] %v8532_v47  ;;  %v8539_v62 = vpop.permute.xlu1 %1938  ;;  %v11485_v47 = vld [vmem:[#allocation49_spill] sm:$0xff]  ;;  %v5909_v45 = vcombine.low %v1331_v37, %v1334_v36  ;;  %v1344_v2 = vrot.slane %v6952_v26, 5 }
 0x1bb   : > { %11480 = vst [vmem:[#allocation106_spill] sm:$0xff] %v8539_v62  ;;  %2783 = vrot.lane.b32.xlu0 %v11438_v30, %s7196_s23  ;;  %v6910_v62 = vld [vmem:[%s7421_s30 + $0x20] sm:$0xff]   ;;  %v5797_v30 = vcombine.low %v8385_v16, %v8370_v55  ;;  %v1339_v55 = vrot.slane %v1337_v9, 4  ;;  %v6951_v16 = vld [vmem:[%s7413_s20 + $0x8c] sm:$0x1]  ;;  %v2020_v15 = vsel %vm2014_vm6, %v11485_v47, %v8115_v44  ;;  %v1545_v47 = vrot.slane %v8209_v58, 5 }
 0x1bc   : > { %2855 = vrot.lane.b32.xlu1 %v5907_v17, %s7197_s21  ;;  %6652 = vmatprep.subr.bf16.mxu0 %v6910_v62  ;;  %v2115_v19 = vsel %vm2111_vm7, %v2020_v15, %v8357_v40 }
 0x1bd   : > { %v8547_v53 = vpop.permute.xlu0 %1936 }
 0x1be   : > { %11481 = vst [vmem:[#allocation107_spill] sm:$0xff] %v8547_v53  ;;  %v8551_v3 = vpop.permute.xlu1 %1942  ;;  %v2017_v53 = vsel %vm2014_vm6, %v5797_v30, %v8093_v24 }
 0x1bf   : > { %11483 = vst [vmem:[#allocation62_spill] sm:$0xff] %v8551_v3  ;;  %2853 = vrot.lane.b32.xlu0 %v5906_v27, %s7197_s21  ;;  %v1340_v27 = vrot.slane %v6951_v16, 5  ;;  %v2113_v30 = vsel %vm2111_vm7, %v2017_v53, %v8373_v12  ;;  %v6911_v16 = vld [vmem:[%s7421_s30 + $0x28] sm:$0xff]  }
 0x1c0   : > { %2725 = vrot.lane.b32.xlu1 %v8544_v38, %s7195_s18  ;;  %v11486_v53 = vld [vmem:[#allocation47_spill] sm:$0xff] }
 0x1c1   : > { %v8561_v13 = vpop.permute.xlu0 %1940  ;;  %v1341_v40 = vsel %vm8300_vm5, %v1339_v55, %v1340_v27  ;;  %v2023_v12 = vsel %vm2014_vm6, %v11486_v53, %v8079_v63  ;;  %v1346_v55 = vrot.slane %v1344_v2, 4  ;;  %v6954_v27 = vld [vmem:[%s7413_s20 + $0x98] sm:$0x1] }
 0x1c2   : > { %v1953_v3 = vpop.permute.xlu1 %1952  ;;  %v1347_v15 = vrot.slane %v6954_v27, 5  ;;  %v2117_v63 = vsel %vm2111_vm7, %v2023_v12, %v8394_v39 }
 0x1c3   : > { %2723 = vrot.lane.b32.xlu0 %v5907_v17, %s7195_s18  ;;  %v8581_v24 = vsel %vm2176_vm8, %v2115_v19, %v1953_v3  ;;  %v1338_v17 = vsel %vm8300_vm5, %v5772_v42, %v1337_v9  ;;  %v5794_v3 = vrot.slane %v8206_v52, 9  ;;  %v6953_v9 = vld [vmem:[%s7413_s20 + $0x90] sm:$0xf]  ;;  %v6955_v19 = vld [vmem:[%s7413_s20 + $0xa0] sm:$0xf] }
 0x1c4   : > { %2789 = vrot.lane.b32.xlu1 %v11439_v54, %s7196_s23  ;;  %v8600_v58 = vcombine.low %v1338_v17, %v1341_v40  ;;  %v5773_v42 = vrot.slane %v6953_v9, 9  ;;  %v1351_v26 = vrot.slane %v6955_v19, 5  ;;  %v1547_v17 = vrot.slane %v1545_v47, 4 }
 0x1c5   : > { %v1951_v44 = vpop.permute.xlu0 %1950  ;;  %v1548_v40 = vrot.slane %v8339_v48, 5  ;;  %v1546_v48 = vsel %vm8300_vm5, %v5794_v3, %v1545_v47 }
 0x1c6   : > { %v2178_v37 = vsel %vm2176_vm8, %v2113_v30, %v1951_v44  ;;  %v1957_v36 = vpop.permute.xlu1 %1956  ;;  %v1345_v39 = vsel %vm8300_vm5, %v5773_v42, %v1344_v2  ;;  %v1353_v27 = vrot.slane %v1351_v26, 4  ;;  %v11488_v2 = vld [vmem:[#allocation50_spill] sm:$0xff] }
 0x1c7   : > { %2787 = vrot.lane.b32.xlu0 %v11441_v5, %s7196_s23  ;;  %6520 = vmatprep.mubr.msk.bf16.mxu0 %vm2257_vm9, %v2178_v37  ;;  %v11487_v37 = vld [vmem:[#allocation51_spill] sm:$0xff]  ;;  %v2029_v42 = vsel %vm2014_vm6, %v11488_v2, %v8137_v0 }
 0x1c8   : > { %6521 = vmatmul.mubr.msk.bf16.vlgmr.msra.gmra.mrb[0].mxu0 %vm2257_vm9, %v8581_v24  ;;  %2859 = vrot.lane.b32.xlu1 %v5909_v45, %s7197_s21  ;;  %v2026_v53 = vsel %vm2014_vm6, %v11487_v37, %v8101_v60  ;;  %v1549_v60 = vsel %vm8300_vm5, %v1547_v17, %v1548_v40 }
 0x1c9   : > { %v1955_v52 = vpop.permute.xlu0 %1954  ;;  %6653 = vmatpush3.bf16.msra.mxu0 %v6910_v62  ;;  %v1348_v62 = vsel %vm8300_vm5, %v1346_v55, %v1347_v15  ;;  %v8630_v19 = vcombine.low %v1546_v48, %v1549_v60  ;;  %v2119_v47 = vsel %vm2111_vm7, %v2026_v53, %v8376_v22  ;;  %v2121_v55 = vsel %vm2111_vm7, %v2029_v42, %v8411_v8  ;;  %v6959_v53 = vld [vmem:[%s7413_s20 + $0xa8] sm:$0xf] }
 0x1ca   : > { %v8608_v30 = vsel %vm2176_vm8, %v2117_v63, %v1955_v52  ;;  %v1961_v44 = vpop.permute.xlu1 %1960  ;;  %6654 = vmatprep.subr.bf16.mxu0 %v6911_v16  ;;  %v6957_v63 = vld [vmem:[%s7413_s20 + $0xa4] sm:$0x1]  ;;  %v8640_v15 = vsel %vm2176_vm8, %v2119_v47, %v1957_v36  ;;  %v5911_v0 = vcombine.low %v1345_v39, %v1348_v62  ;;  %v6958_v36 = vld [vmem:[%s7413_s20 + $0xac] sm:$0xf]  ;;  %v5775_v39 = vrot.slane %v6959_v53, 9 }
 0x1cb   : > { %2857 = vrot.lane.b32.xlu0 %v8544_v38, %s7197_s21  ;;  %6524 = vmatprep.mubr.msk.bf16.mxu0 %vm2257_vm9, %v8608_v30  ;;  %v6956_v38 = vld [vmem:[%s7413_s20 + $0x9c] sm:$0xf]  ;;  %v1354_v52 = vrot.slane %v6957_v63, 5  ;;  %v1358_v17 = vrot.slane %v6958_v36, 5  ;;  %v11489_v62 = vld [vmem:[#allocation53_spill] sm:$0xff]  ;;  %v11492_v53 = vld [vmem:[#allocation31_spill] sm:$0xff] }
 0x1cc   : > { %2729 = vrot.lane.b32.xlu1 %v8600_v58, %s7195_s18  ;;  %v5774_v9 = vrot.slane %v6956_v38, 9  ;;  %v2032_v48 = vsel %vm2014_vm6, %v11489_v62, %v8129_v34  ;;  %v11490_v63 = vld [vmem:[#allocation52_spill] sm:$0xff]  ;;  %v11494_v62 = vld [vmem:[#allocation57_spill] sm:$0xff] }
 0x1cd   : > { %v1959_v12 = vpop.permute.xlu0 %1958  ;;  %6655 = vmatpush3.bf16.msra.mxu0 %v6911_v16  ;;  %v1360_v60 = vrot.slane %v1358_v17, 4  ;;  %v2123_v2 = vsel %vm2111_vm7, %v2032_v48, %v8398_v49 }
 0x1ce   : > { %v1965_v3 = vpop.permute.xlu1 %1964  ;;  %v8644_v16 = vsel %vm2176_vm8, %v2121_v55, %v1959_v12  ;;  %v1352_v22 = vsel %vm8300_vm5, %v5774_v9, %v1351_v26  ;;  %v6960_v12 = vld [vmem:[%s7413_s20 + $0xb0] sm:$0x1]  ;;  %v6961_v9 = vld [vmem:[%s7413_s20 + $0xb8] sm:$0xf]  ;;  %v8678_v47 = vsel %vm2176_vm8, %v2123_v2, %v1961_v44  ;;  %v6962_v44 = vld [vmem:[%s7413_s20 + $0xb4] sm:$0xf] }
 0x1cf   : > { %2727 = vrot.lane.b32.xlu0 %v5909_v45, %s7195_s18  ;;  %v1355_v45 = vsel %vm8300_vm5, %v1353_v27, %v1354_v52  ;;  %v1361_v38 = vrot.slane %v6960_v12, 5  ;;  %v1365_v27 = vrot.slane %v6961_v9, 5  ;;  %v2035_v52 = vsel %vm2014_vm6, %v11490_v63, %v8159_v32  ;;  %v11495_v9 = vld [vmem:[#allocation80_spill] sm:$0xff] }
 0x1d0   : > { %6525 = vmatmul.mubr.msk.bf16.gmra.mrb[4].mxu0 %vm2257_vm9, %v8640_v15  ;;  %2793 = vrot.lane.b32.xlu1 %v11443_v14, %s7196_s23  ;;  %v5912_v37 = vcombine.low %v1352_v22, %v1355_v45  ;;  %v2125_v34 = vsel %vm2111_vm7, %v2035_v52, %v8429_v28  ;;  %v1359_v32 = vsel %vm8300_vm5, %v5775_v39, %v1358_v17  ;;  %v11493_v39 = vld [vmem:[#allocation73_spill] sm:$0xff]  ;;  %v11496_v63 = vld [vmem:[#allocation56_spill] sm:$0xff] }
 0x1d1   : > { %6528 = vmatprep.mubr.msk.bf16.mxu0 %vm2257_vm9, %v8644_v16  ;;  %v1963_v8 = vpop.permute.xlu0 %1962  ;;  %v1362_v28 = vsel %vm8300_vm5, %v1360_v60, %v1361_v38  ;;  %v1367_v22 = vrot.slane %v1365_v27, 4  ;;  %v2038_v48 = vsel %vm2014_vm6, %v11494_v62, %v11493_v39 }
 0x1d2   : > { %v8657_v40 = vpop.permute.xlu1 %1968  ;;  %v8683_v55 = vsel %vm2176_vm8, %v2125_v34, %v1963_v8  ;;  %v6963_v8 = vld [vmem:[%s7413_s20 + $0xbc] sm:$0x1]  ;;  %v5913_v17 = vcombine.low %v1359_v32, %v1362_v28  ;;  %v2127_v52 = vsel %vm2111_vm7, %v2038_v48, %v8418_v4  ;;  %v6966_v48 = vld [vmem:[%s7413_s20 + $0xe4] sm:$0xf] }
 0x1d3   : > { %2791 = vrot.lane.b32.xlu0 %v11445_v51, %s7196_s23  ;;  %11491 = vst [vmem:[#allocation61_spill] sm:$0xff] %v8683_v55  ;;  %v1368_v45 = vrot.slane %v6963_v8, 5  ;;  %v8720_v32 = vsel %vm2176_vm8, %v2127_v52, %v1965_v3  ;;  %v6964_v3 = vld [vmem:[%s7413_s20 + $0xe8] sm:$0xf] }
 0x1d4   : > { %2863 = vrot.lane.b32.xlu1 %v5911_v0, %s7197_s21  ;;  %11497 = vst [vmem:[#allocation49_spill] sm:$0xff] %v8720_v32  ;;  %v11500_v8 = vld [vmem:[#allocation78_spill] sm:$0xff] }
 0x1d5   : > { %v1967_v26 = vpop.permute.xlu0 %1966  ;;  %v1369_v38 = vsel %vm8300_vm5, %v1367_v22, %v1368_v45  ;;  %v11501_v45 = vld [vmem:[#allocation59_spill] sm:$0xff] }
 0x1d6   : > { %v8673_v42 = vpop.permute.xlu1 %1972  ;;  %v2044_v39 = vsel %vm2014_vm6, %v11501_v45, %v11500_v8 }
 0x1d7   : > { %2861 = vrot.lane.b32.xlu0 %v8600_v58, %s7197_s21  ;;  %v5776_v58 = vrot.slane %v6962_v44, 9  ;;  %v1379_v44 = vrot.slane %v6964_v3, 5 }
 0x1d8   : > { %6529 = vmatmul.mubr.msk.bf16.gmra.mrb[8].mxu0 %vm2257_vm9, %v8678_v47  ;;  %2733 = vrot.lane.b32.xlu1 %v5912_v37, %s7195_s18 }
 0x1d9   : > { %6532 = vmatprep.mubr.msk.bf16.mxu0 %vm2257_vm9, %v8683_v55  ;;  %v1971_v49 = vpop.permute.xlu0 %1970  ;;  %v1366_v60 = vsel %vm8300_vm5, %v5776_v58, %v1365_v27  ;;  %v11498_v27 = vld [vmem:[#allocation28_spill] sm:$0xff] }
 0x1da   : > { %v8696_v36 = vpop.permute.xlu1 %1976  ;;  %v5914_v4 = vcombine.low %v1366_v60, %v1369_v38  ;;  %v5778_v60 = vrot.slane %v6966_v48, 9  ;;  %v1381_v38 = vrot.slane %v1379_v44, 4  ;;  %v6968_v48 = vld [vmem:[%s7413_s20 + $0xe0] sm:$0x1] }
 0x1db   : > { %2731 = vrot.lane.b32.xlu0 %v5911_v0, %s7195_s18  ;;  %v2041_v0 = vsel %vm2014_vm6, %v11496_v63, %v11495_v9  ;;  %v6967_v9 = vld [vmem:[%s7413_s20 + $0xec] sm:$0x1] }
 0x1dc   : > { %2797 = vrot.lane.b32.xlu1 %v11492_v53, %s7196_s23  ;;  %v2129_v34 = vsel %vm2111_vm7, %v2041_v0, %v8440_v20  ;;  %v1382_v63 = vrot.slane %v6967_v9, 5  ;;  %v11503_v0 = vld [vmem:[#allocation58_spill] sm:$0xff]  ;;  %v1375_v9 = vrot.slane %v6968_v48, 5  ;;  %v11508_v48 = vld [vmem:[#allocation96_spill] sm:$0xff]  ;;  %v11510_v53 = vld [vmem:[#allocation63_spill] sm:$0xff] }
 0x1dd   : > { %v8704_v12 = vpop.permute.xlu0 %1974  ;;  %v8725_v28 = vsel %vm2176_vm8, %v2129_v34, %v1967_v26  ;;  %v8740_v26 = vld [vmem:[%s7413_s20 + $0xdc] sm:$0xf]  ;;  %v2131_v34 = vsel %vm2111_vm7, %v2044_v39, %v8432_v35  ;;  %v8773_v39 = vld [vmem:[%s7413_s20 + $0xd8] sm:$0xf] }
 0x1de   : > { %v8715_v2 = vpop.permute.xlu1 %1980  ;;  %11499 = vst [vmem:[#allocation47_spill] sm:$0xff] %v8725_v28  ;;  %v1372_v22 = vrot.slane %v8740_v26, 5  ;;  %v8761_v45 = vsel %vm2176_vm8, %v2131_v34, %v8657_v40  ;;  %v11506_v35 = vld [vmem:[#allocation26_spill] sm:$0xff] }
 0x1df   : > { %2795 = vrot.lane.b32.xlu0 %v11498_v27, %s7196_s23  ;;  %11504 = vst [vmem:[#allocation51_spill] sm:$0xff] %v8761_v45 }
 0x1e0   : > { %6533 = vmatmul.mubr.msk.bf16.gmra.mrb[12].mxu0 %vm2257_vm9, %v8720_v32  ;;  %2867 = vrot.lane.b32.xlu1 %v5913_v17, %s7197_s21  ;;  %v1374_v40 = vrot.slane %v1372_v22, 4 }
 0x1e1   : > { %6536 = vmatprep.mubr.msk.bf16.mxu0 %vm2257_vm9, %v8725_v28  ;;  %v8732_v20 = vpop.permute.xlu0 %1978 }
 0x1e2   : > { %v8735_v58 = vpop.permute.xlu1 %1984 }
 0x1e3   : > { %2865 = vrot.lane.b32.xlu0 %v5912_v37, %s7197_s21  ;;  %v11502_v37 = vld [vmem:[#allocation85_spill] sm:$0xff] }
 0x1e4   : > { %2737 = vrot.lane.b32.xlu1 %v5914_v4, %s7195_s18  ;;  %v2047_v52 = vsel %vm2014_vm6, %v11503_v0, %v11502_v37  ;;  %v1383_v37 = vsel %vm8300_vm5, %v1381_v38, %v1382_v63  ;;  %v6970_v0 = vld [vmem:[%s7413_s20 + $0xf4] sm:$0xf]  ;;  %v11509_v63 = vld [vmem:[#allocation82_spill] sm:$0xff] }
 0x1e5   : > { %v8746_v62 = vpop.permute.xlu0 %1982  ;;  %v2133_v8 = vsel %vm2111_vm7, %v2047_v52, %v8447_v50  ;;  %v5777_v50 = vrot.slane %v8773_v39, 9  ;;  %v1386_v52 = vrot.slane %v6970_v0, 5  ;;  %v2050_v0 = vsel %vm2014_vm6, %v11510_v53, %v11509_v63  ;;  %v11514_v63 = vld [vmem:[#allocation88_spill] sm:$0xff] }
 0x1e6   : > { %v8755_v3 = vpop.permute.xlu1 %1988  ;;  %v8766_v28 = vsel %vm2176_vm8, %v2133_v8, %v1971_v49  ;;  %v1380_v49 = vsel %vm8300_vm5, %v5778_v60, %v1379_v44  ;;  %v11507_v8 = vld [vmem:[#allocation30_spill] sm:$0xff]  ;;  %v1376_v44 = vsel %vm8300_vm5, %v1374_v40, %v1375_v9  ;;  %v2135_v9 = vsel %vm2111_vm7, %v2050_v0, %v8442_v11  ;;  %v11515_v0 = vld [vmem:[#allocation65_spill] sm:$0xff] }
 0x1e7   : > { %2735 = vrot.lane.b32.xlu0 %v5913_v17, %s7195_s18  ;;  %11505 = vst [vmem:[#allocation50_spill] sm:$0xff] %v8766_v28  ;;  %v6971_v60 = vld [vmem:[%s7413_s20 + $0xf0] sm:$0xf]  ;;  %v1388_v55 = vrot.slane %v1386_v52, 4  ;;  %v8814_v40 = vsel %vm2176_vm8, %v2135_v9, %v8673_v42  ;;  %v6976_v9 = vld [vmem:[%s7413_s20 + $0x10c] sm:$0xf] }
 0x1e8   : > { %6537 = vmatmul.mubr.msk.bf16.gmra.mrb[16].mxu0 %vm2257_vm9, %v8761_v45  ;;  %2801 = vrot.lane.b32.xlu1 %v11506_v35, %s7196_s23  ;;  %v1373_v45 = vsel %vm8300_vm5, %v5777_v50, %v1372_v22  ;;  %v5779_v38 = vrot.slane %v6971_v60, 9  ;;  %v6973_v35 = vld [vmem:[%s7413_s20 + $0x100] sm:$0xf] }
 0x1e9   : > { %6540 = vmatprep.mubr.msk.bf16.mxu0 %vm2257_vm9, %v8766_v28  ;;  %v8778_v17 = vpop.permute.xlu0 %1986  ;;  %v5916_v28 = vcombine.low %v1380_v49, %v1383_v37  ;;  %v1393_v49 = vrot.slane %v6973_v35, 5  ;;  %v11511_v37 = vld [vmem:[#allocation90_spill] sm:$0xff]  ;;  %v5915_v35 = vcombine.low %v1373_v45, %v1376_v44 }
 0x1ea   : > { %v8785_v34 = vpop.permute.xlu1 %1992  ;;  %v1387_v11 = vsel %vm8300_vm5, %v5779_v38, %v1386_v52  ;;  %v11513_v52 = vld [vmem:[#allocation35_spill] sm:$0xff] }
 0x1eb   : > { %2799 = vrot.lane.b32.xlu0 %v11507_v8, %s7196_s23  ;;  %v6972_v8 = vld [vmem:[%s7413_s20 + $0xf8] sm:$0x1]  ;;  %v1395_v45 = vrot.slane %v1393_v49, 4 }
 0x1ec   : > { %2871 = vrot.lane.b32.xlu1 %v11508_v48, %s7197_s21  ;;  %v1389_v14 = vrot.slane %v6972_v8, 5  ;;  %v11512_v48 = vld [vmem:[#allocation60_spill] sm:$0xff] }
 0x1ed   : > { %v8799_v32 = vpop.permute.xlu0 %1990  ;;  %v2053_v22 = vsel %vm2014_vm6, %v11512_v48, %v11511_v37  ;;  %v6975_v48 = vld [vmem:[%s7413_s20 + $0x104] sm:$0x1]  ;;  %v2056_v37 = vsel %vm2014_vm6, %v11515_v0, %v11514_v63 }
 0x1ee   : > { %v8808_v50 = vpop.permute.xlu1 %1996  ;;  %v2137_v53 = vsel %vm2111_vm7, %v2053_v22, %v8454_v57  ;;  %v1390_v42 = vsel %vm8300_vm5, %v1388_v55, %v1389_v14  ;;  %v1396_v44 = vrot.slane %v6975_v48, 5 }
 0x1ef   : > { %2869 = vrot.lane.b32.xlu0 %v5914_v4, %s7197_s21  ;;  %v8819_v8 = vsel %vm2176_vm8, %v2137_v53, %v8704_v12  ;;  %v6974_v4 = vld [vmem:[%s7413_s20 + $0xfc] sm:$0xf]  ;;  %v5917_v38 = vcombine.low %v1387_v11, %v1390_v42  ;;  %v1400_v53 = vrot.slane %v6976_v9, 5  ;;  %v2139_v42 = vsel %vm2111_vm7, %v2056_v37, %v8450_v23  ;;  %v6978_v37 = vld [vmem:[%s7413_s20 + $0x110] sm:$0x1] }
 0x1f0   : > { %6541 = vmatmul.mubr.msk.bf16.gmra.mrb[20].mxu0 %vm2257_vm9, %v8814_v40  ;;  %2741 = vrot.lane.b32.xlu1 %v5916_v28, %s7195_s18  ;;  %v5780_v12 = vrot.slane %v6974_v4, 9  ;;  %v1397_v55 = vsel %vm8300_vm5, %v1395_v45, %v1396_v44  ;;  %v11517_v4 = vld [vmem:[#allocation64_spill] sm:$0xff]  ;;  %v1403_v9 = vrot.slane %v6978_v37, 5 }
 0x1f1   : > { %6544 = vmatprep.mubr.msk.bf16.mxu0 %vm2257_vm9, %v8819_v8  ;;  %v8828_v57 = vpop.permute.xlu0 %1994  ;;  %v6977_v44 = vld [vmem:[%s7413_s20 + $0x108] sm:$0xf] }
 0x1f2   : > { %v8834_v60 = vpop.permute.xlu1 %2000  ;;  %v1394_v14 = vsel %vm8300_vm5, %v5780_v12, %v1393_v49  ;;  %v8860_v49 = vsel %vm2176_vm8, %v2139_v42, %v8696_v36  ;;  %v11519_v12 = vld [vmem:[#allocation32_spill] sm:$0xff]  ;;  %v5781_v0 = vrot.slane %v6977_v44, 9  ;;  %v1402_v36 = vrot.slane %v1400_v53, 4 }
 0x1f3   : > { %2739 = vrot.lane.b32.xlu0 %v5915_v35, %s7195_s18  ;;  %v11516_v35 = vld [vmem:[#allocation16_spill] sm:$0xff]  ;;  %11518 = vst [vmem:[#allocation53_spill] sm:$0xff] %v8860_v49  ;;  %v5918_v23 = vcombine.low %v1394_v14, %v1397_v55  ;;  %v11521_v14 = vld [vmem:[#allocation91_spill] sm:$0xff] }
 0x1f4   : > { %2805 = vrot.lane.b32.xlu1 %v11513_v52, %s7196_s23  ;;  %v2059_v11 = vsel %vm2014_vm6, %v11517_v4, %v11516_v35  ;;  %v5813_v4 = vcombine.low %v8773_v39, %v8740_v26  ;;  %v11522_v55 = vld [vmem:[#allocation67_spill] sm:$0xff]  ;;  %v1404_v37 = vsel %vm8300_vm5, %v1402_v36, %v1403_v9  ;;  %v11523_v52 = vld [vmem:[#allocation18_spill] sm:$0xff] }
 0x1f5   : > { %v8842_v22 = vpop.permute.xlu0 %1998  ;;  %v2141_v63 = vsel %vm2111_vm7, %v2059_v11, %v8464_v43  ;;  %v2062_v42 = vsel %vm2014_vm6, %v11522_v55, %v11521_v14  ;;  %v11526_v9 = vld [vmem:[#allocation34_spill] sm:$0xff] }
 0x1f6   : > { %v8854_v48 = vpop.permute.xlu1 %2004  ;;  %v8866_v45 = vsel %vm2176_vm8, %v2141_v63, %v8732_v20  ;;  %v6979_v20 = vld [vmem:[%s7413_s20 + $0x118] sm:$0xf]  ;;  %v1401_v63 = vsel %vm8300_vm5, %v5781_v0, %v1400_v53  ;;  %v2143_v14 = vsel %vm2111_vm7, %v2062_v42, %v8458_v41  ;;  %v6983_v42 = vld [vmem:[%s7413_s20 + $0x130] sm:$0xf] }
 0x1f7   : > { %2803 = vrot.lane.b32.xlu0 %v11519_v12, %s7196_s23  ;;  %11520 = vst [vmem:[#allocation52_spill] sm:$0xff] %v8866_v45  ;;  %v1407_v35 = vrot.slane %v6979_v20, 5  ;;  %v6980_v20 = vld [vmem:[%s7413_s20 + $0x114] sm:$0xf]  ;;  %v8905_v0 = vsel %vm2176_vm8, %v2143_v14, %v8715_v2 }
 0x1f8   : > { %6545 = vmatmul.mubr.msk.bf16.gmra.mrb[24].mxu0 %vm2257_vm9, %v8860_v49  ;;  %2875 = vrot.lane.b32.xlu1 %v5917_v38, %s7197_s21  ;;  %v5782_v26 = vrot.slane %v6980_v20, 9  ;;  %v2065_v49 = vsel %vm2014_vm6, %v5813_v4, %v11523_v52  ;;  %11524 = vst [vmem:[#allocation73_spill] sm:$0xff] %v8905_v0  ;;  %v11525_v41 = vld [vmem:[#allocation37_spill] sm:$0xff]  ;;  %v5919_v52 = vcombine.low %v1401_v63, %v1404_v37  ;;  %v1421_v63 = vrot.slane %v6983_v42, 5  ;;  %v11527_v37 = vld [vmem:[#allocation19_spill] sm:$0xff] }
 0x1f9   : > { %6548 = vmatprep.mubr.msk.bf16.mxu0 %vm2257_vm9, %v8866_v45  ;;  %v8874_v43 = vpop.permute.xlu0 %2002  ;;  %v1409_v39 = vrot.slane %v1407_v35, 4  ;;  %v6981_v45 = vld [vmem:[%s7413_s20 + $0x11c] sm:$0x1]  ;;  %v2145_v53 = vsel %vm2111_vm7, %v2065_v49, %v8476_v61  ;;  %v11528_v20 = vld [vmem:[#allocation69_spill] sm:$0xff] }
 0x1fa   : > { %v8880_v11 = vpop.permute.xlu1 %2008  ;;  %v1408_v2 = vsel %vm8300_vm5, %v5782_v26, %v1407_v35  ;;  %v2068_v35 = vsel %vm2014_vm6, %v11528_v20, %v11527_v37 }
 0x1fb   : > { %2873 = vrot.lane.b32.xlu0 %v5916_v28, %s7197_s21  ;;  %v1410_v28 = vrot.slane %v6981_v45, 5  ;;  %v2210_v45 = vsel %vm2176_vm8, %v2145_v53, %v8746_v62  ;;  %v6982_v62 = vld [vmem:[%s7413_s20 + $0x124] sm:$0xf]  ;;  %v6985_v53 = vld [vmem:[%s7413_s20 + $0x128] sm:$0x1] }
 0x1fc   : > { %2745 = vrot.lane.b32.xlu1 %v5918_v23, %s7195_s18  ;;  %v1414_v49 = vrot.slane %v6982_v62, 5  ;;  %v11529_v62 = vld [vmem:[#allocation20_spill] sm:$0xff] }
 0x1fd   : > { %v8889_v44 = vpop.permute.xlu0 %2006 }
 0x1fe   : > { %v8899_v55 = vpop.permute.xlu1 %2012  ;;  %v1416_v14 = vrot.slane %v1414_v49, 4 }
 0x1ff   : > { %2743 = vrot.lane.b32.xlu0 %v5917_v38, %s7195_s18  ;;  %v1411_v38 = vsel %vm8300_vm5, %v1409_v39, %v1410_v28  ;;  %v6984_v39 = vld [vmem:[%s7413_s20 + $0x120] sm:$0xf] }
 0x200   : > { %6549 = vmatmul.mubr.msk.bf16.gmra.mrb[28].mxu0 %vm2257_vm9, %v8905_v0  ;;  %2809 = vrot.lane.b32.xlu1 %v11525_v41, %s7196_s23  ;;  %v8927_v4 = vcombine.low %v1408_v2, %v1411_v38  ;;  %v5783_v28 = vrot.slane %v6984_v39, 9  ;;  %v11530_v41 = vld [vmem:[#allocation68_spill] sm:$0xff]  ;;  %v2147_v2 = vsel %vm2111_vm7, %v2068_v35, %v8471_v1 }
 0x201   : > { %6552 = vmatprep.mubr.msk.bf16.mxu0 %vm2257_vm9, %v2210_v45  ;;  %v8915_v61 = vpop.permute.xlu0 %2010  ;;  %v1417_v45 = vrot.slane %v6985_v53, 5  ;;  %v2071_v0 = vsel %vm2014_vm6, %v11530_v41, %v11529_v62  ;;  %v8946_v37 = vsel %vm2176_vm8, %v2147_v2, %v8735_v58  ;;  %v6986_v1 = vld [vmem:[%s7413_s20 + $0x12c] sm:$0xf]  ;;  %v11533_v53 = vld [vmem:[#allocation39_spill] sm:$0xff] }
 0x202   : > { %v8922_v36 = vpop.permute.xlu1 %2709  ;;  %v2149_v42 = vsel %vm2111_vm7, %v2071_v0, %v8487_v7  ;;  %11531 = vst [vmem:[#allocation57_spill] sm:$0xff] %v8946_v37  ;;  %v5784_v41 = vrot.slane %v6986_v1, 9  ;;  %v1423_v7 = vrot.slane %v1421_v63, 4  ;;  %v6987_v0 = vld [vmem:[%s7413_s20 + $0x134] sm:$0x1] }
 0x203   : > { %2807 = vrot.lane.b32.xlu0 %v11526_v9, %s7196_s23  ;;  %v8951_v20 = vsel %vm2176_vm8, %v2149_v42, %v8778_v17  ;;  %v1424_v35 = vrot.slane %v6987_v0, 5  ;;  %v1415_v17 = vsel %vm8300_vm5, %v5783_v28, %v1414_v49  ;;  %v6988_v1 = vld [vmem:[%s7413_s20 + $0x13c] sm:$0xf]  ;;  %v11535_v49 = vld [vmem:[#allocation71_spill] sm:$0xff] }
 0x204   : > { %2879 = vrot.lane.b32.xlu1 %v5919_v52, %s7197_s21  ;;  %11532 = vst [vmem:[#allocation80_spill] sm:$0xff] %v8951_v20  ;;  %v1422_v2 = vsel %vm8300_vm5, %v5784_v41, %v1421_v63  ;;  %v1428_v0 = vrot.slane %v6988_v1, 5 }
 0x205   : > { %v2708_v26 = vpop.permute.xlu0 %2707  ;;  %v1425_v42 = vsel %vm8300_vm5, %v1423_v7, %v1424_v35 }
 0x206   : > { %v8940_v38 = vpop.permute.xlu1 %2713 }
 0x207   : > { %2877 = vrot.lane.b32.xlu0 %v5918_v23, %s7197_s21  ;;  %v1418_v23 = vsel %vm8300_vm5, %v1416_v14, %v1417_v45  ;;  %v11536_v14 = vld [vmem:[#allocation17_spill] sm:$0xff] }
 0x208   : > { %6553 = vmatmul.mubr.msk.bf16.gmra.mrb[32].mxu0 %vm2257_vm9, %v8946_v37  ;;  %2749 = vrot.lane.b32.xlu1 %v8927_v4, %s7195_s18  ;;  %v5921_v62 = vcombine.low %v1415_v17, %v1418_v23  ;;  %v11537_v37 = vld [vmem:[#allocation24_spill] sm:$0xff]  ;;  %v11538_v17 = vld [vmem:[#allocation70_spill] sm:$0xff] }
 0x209   : > { %6556 = vmatprep.mubr.msk.bf16.mxu0 %vm2257_vm9, %v8951_v20  ;;  %v2712_v58 = vpop.permute.xlu0 %2711  ;;  %v11534_v20 = vld [vmem:[#allocation92_spill] sm:$0xff]  ;;  %v2077_v63 = vsel %vm2014_vm6, %v11538_v17, %v11537_v37  ;;  %v8995_v37 = vcombine.low %v1422_v2, %v1425_v42  ;;  %v11542_v17 = vld [vmem:[#allocation74_spill] sm:$0xff] }
 0x20a   : > { %v2772_v39 = vpop.permute.xlu1 %2771  ;;  %v2074_v28 = vsel %vm2014_vm6, %v11535_v49, %v11534_v20  ;;  %v2153_v23 = vsel %vm2111_vm7, %v2077_v63, %v8498_v59  ;;  %v11539_v20 = vld [vmem:[#allocation36_spill] sm:$0xff] }
 0x20b   : > { %2747 = vrot.lane.b32.xlu0 %v5919_v52, %s7195_s18  ;;  %v2907_v52 = vsel %vm2014_vm6, %v11536_v14, %v2708_v26  ;;  %v2151_v41 = vsel %vm2111_vm7, %v2074_v28, %v8480_v46  ;;  %v8999_v46 = vsel %vm2176_vm8, %v2153_v23, %v8799_v32  ;;  %v6989_v59 = vld [vmem:[%s7413_s20 + $0x138] sm:$0xf]  ;;  %v6990_v49 = vld [vmem:[%s7413_s20 + $0x140] sm:$0x1]  ;;  %v6991_v32 = vld [vmem:[%s7413_s20 + $0x148] sm:$0xf] }
 0x20c   : > { %2813 = vrot.lane.b32.xlu1 %v11533_v53, %s7196_s23  ;;  %v3002_v7 = vsel %vm2111_vm7, %v2907_v52, %v2772_v39  ;;  %v8990_v26 = vsel %vm2176_vm8, %v2151_v41, %v8755_v3  ;;  %11540 = vst [vmem:[#allocation56_spill] sm:$0xff] %v8999_v46  ;;  %v5785_v39 = vrot.slane %v6989_v59, 9  ;;  %v1430_v3 = vrot.slane %v1428_v0, 4  ;;  %v11541_v52 = vld [vmem:[#allocation27_spill] sm:$0xff] }
 0x20d   : > { %v8978_v45 = vpop.permute.xlu0 %2715  ;;  %v1431_v28 = vrot.slane %v6990_v49, 5  ;;  %v1435_v42 = vrot.slane %v6991_v32, 5  ;;  %v2080_v63 = vsel %vm2014_vm6, %v11542_v17, %v11541_v52  ;;  %v2910_v41 = vsel %vm2014_vm6, %v11428_v33, %v8922_v36  ;;  %v6992_v23 = vld [vmem:[%s7413_s20 + $0x144] sm:$0xf]  ;;  %v6993_v52 = vld [vmem:[%s7413_s20 + $0x14c] sm:$0x1] }
 0x20e   : > { %v2842_v35 = vpop.permute.xlu1 %2841  ;;  %v2913_v59 = vsel %vm2014_vm6, %v11426_v10, %v2712_v58  ;;  %v1438_v33 = vrot.slane %v6993_v52, 5  ;;  %v11543_v36 = vld [vmem:[#allocation94_spill] sm:$0xff]  ;;  %v11544_v17 = vld [vmem:[#allocation72_spill] sm:$0xff] }
 0x20f   : > { %2811 = vrot.lane.b32.xlu0 %v11539_v20, %s7196_s23  ;;  %v3066_v1 = vsel %vm2176_vm8, %v3002_v7, %v2842_v35  ;;  %v1429_v7 = vsel %vm8300_vm5, %v5785_v39, %v1428_v0  ;;  %v1432_v35 = vsel %vm8300_vm5, %v1430_v3, %v1431_v28  ;;  %v1437_v32 = vrot.slane %v1435_v42, 4 }
 0x210   : > { %6557 = vmatmul.mubr.msk.bf16.gmra.mrb[36].mxu0 %vm2257_vm9, %v8990_v26  ;;  %2883 = vrot.lane.b32.xlu1 %v5921_v62, %s7197_s21  ;;  %v2155_v0 = vsel %vm2111_vm7, %v2080_v63, %v8493_v21 }
 0x211   : > { %6560 = vmatprep.mubr.msk.bf16.mxu0 %vm2257_vm9, %v8999_v46  ;;  %v2774_v2 = vpop.permute.xlu0 %2773  ;;  %6588 = vmatprep.mubr.msk.bf16.mxu1 %vm2257_vm9, %v3066_v1  ;;  %v5786_v1 = vrot.slane %v6992_v23, 9  ;;  %v2083_v46 = vsel %vm2014_vm6, %v11544_v17, %v11543_v36  ;;  %v9042_v28 = vsel %vm2176_vm8, %v2155_v0, %v8785_v34  ;;  %v5923_v34 = vcombine.low %v1429_v7, %v1432_v35  ;;  %v11546_v7 = vld [vmem:[#allocation38_spill] sm:$0xff]  ;;  %v11547_v35 = vld [vmem:[#allocation93_spill] sm:$0xff]  ;;  %v11548_v23 = vld [vmem:[#allocation76_spill] sm:$0xff] }
 0x212   : > { %v2776_v14 = vpop.permute.xlu1 %2775  ;;  %v2157_v58 = vsel %vm2111_vm7, %v2083_v46, %v8511_v6  ;;  %v11545_v6 = vld [vmem:[#allocation41_spill] sm:$0xff] }
 0x213   : > { %2881 = vrot.lane.b32.xlu0 %v8927_v4, %s7197_s21  ;;  %v3004_v4 = vsel %vm2111_vm7, %v2910_v41, %v2774_v2  ;;  %v3006_v39 = vsel %vm2111_vm7, %v2913_v59, %v2776_v14  ;;  %v9052_v2 = vsel %vm2176_vm8, %v2157_v58, %v8828_v57  ;;  %v1436_v46 = vsel %vm8300_vm5, %v5786_v1, %v1435_v42  ;;  %v6994_v14 = vld [vmem:[%s7413_s20 + $0x154] sm:$0xf]  ;;  %v6995_v36 = vld [vmem:[%s7413_s20 + $0x150] sm:$0xf] }
 0x214   : > { %2753 = vrot.lane.b32.xlu1 %v8995_v37, %s7195_s18  ;;  %v1439_v57 = vsel %vm8300_vm5, %v1437_v32, %v1438_v33  ;;  %v1442_v63 = vrot.slane %v6994_v14, 5  ;;  %v2086_v59 = vsel %vm2014_vm6, %v11548_v23, %v11547_v35  ;;  %v11549_v1 = vld [vmem:[#allocation97_spill] sm:$0xff]  ;;  %v5787_v17 = vrot.slane %v6995_v36, 9  ;;  %v6998_v23 = vld [vmem:[%s7413_s20 + $0x15c] sm:$0xf] }
 0x215   : > { %v2844_v49 = vpop.permute.xlu0 %2843  ;;  %v9076_v42 = vcombine.low %v1436_v46, %v1439_v57  ;;  %v6997_v46 = vld [vmem:[%s7413_s20 + $0x160] sm:$0xf] }
 0x216   : > { %v9036_v3 = vsel %vm2176_vm8, %v3004_v4, %v2844_v49  ;;  %v2846_v10 = vpop.permute.xlu1 %2845  ;;  %v2916_v4 = vsel %vm2014_vm6, %v11431_v18, %v8940_v38  ;;  %v11550_v49 = vld [vmem:[#allocation75_spill] sm:$0xff]  ;;  %v1444_v0 = vrot.slane %v1442_v63, 4  ;;  %v1449_v57 = vrot.slane %v6997_v46, 5  ;;  %v11554_v36 = vld [vmem:[#allocation77_spill] sm:$0xff] }
 0x217   : > { %2751 = vrot.lane.b32.xlu0 %v5921_v62, %s7195_s18  ;;  %6589 = vmatmul.mubr.msk.bf16.vlgmr.msra.gmra.mrb[0].mxu1 %vm2257_vm9, %v9036_v3  ;;  %v9048_v21 = vsel %vm2176_vm8, %v3006_v39, %v2846_v10  ;;  %v2089_v32 = vsel %vm2014_vm6, %v11550_v49, %v11549_v1  ;;  %v2159_v39 = vsel %vm2111_vm7, %v2086_v59, %v8505_v25  ;;  %v6996_v38 = vld [vmem:[%s7413_s20 + $0x158] sm:$0x1] }
 0x218   : > { %6561 = vmatmul.mubr.msk.bf16.gmra.mrb[40].mxu0 %vm2257_vm9, %v9042_v28  ;;  %2817 = vrot.lane.b32.xlu1 %v11545_v6, %s7196_s23  ;;  %v1445_v58 = vrot.slane %v6996_v38, 5  ;;  %v9094_v14 = vsel %vm2176_vm8, %v2159_v39, %v8808_v50  ;;  %v1443_v50 = vsel %vm8300_vm5, %v5787_v17, %v1442_v63  ;;  %v1451_v59 = vrot.slane %v1449_v57, 4  ;;  %v11553_v63 = vld [vmem:[#allocation99_spill] sm:$0xff] }
 0x219   : > { %6564 = vmatprep.mubr.msk.bf16.mxu0 %vm2257_vm9, %v9052_v2  ;;  %v2778_v62 = vpop.permute.xlu0 %2777  ;;  %6592 = vmatprep.mubr.msk.bf16.mxu1 %vm2257_vm9, %v9048_v21  ;;  %v2095_v17 = vsel %vm2014_vm6, %v11554_v36, %v11553_v63 }
 0x21a   : > { %v2718_v41 = vpop.permute.xlu1 %2717  ;;  %v3008_v52 = vsel %vm2111_vm7, %v2916_v4, %v2778_v62  ;;  %v2161_v62 = vsel %vm2111_vm7, %v2089_v32, %v8521_v31  ;;  %v1446_v35 = vsel %vm8300_vm5, %v1444_v0, %v1445_v58  ;;  %v6999_v4 = vld [vmem:[%s7413_s20 + $0x164] sm:$0x1] }
 0x21b   : > { %2815 = vrot.lane.b32.xlu0 %v11546_v7, %s7196_s23  ;;  %v9102_v25 = vsel %vm2176_vm8, %v2161_v62, %v8842_v22  ;;  %v5788_v22 = vrot.slane %v6998_v23, 9  ;;  %v1452_v1 = vrot.slane %v6999_v4, 5  ;;  %v2922_v49 = vsel %vm2014_vm6, %v11435_v29, %v2718_v41  ;;  %v11551_v32 = vld [vmem:[#allocation95_spill] sm:$0xff]  ;;  %v11555_v0 = vld [vmem:[#allocation21_spill] sm:$0xff]  ;;  %v7000_v62 = vld [vmem:[%s7413_s20 + $0x16c] sm:$0xf] }
 0x21c   : > { %2887 = vrot.lane.b32.xlu1 %v5923_v34, %s7197_s21  ;;  %v2919_v39 = vsel %vm2014_vm6, %v11555_v0, %v8978_v45  ;;  %v11556_v58 = vld [vmem:[#allocation43_spill] sm:$0xff]  ;;  %v5925_v46 = vcombine.low %v1443_v50, %v1446_v35  ;;  %v1456_v23 = vrot.slane %v7000_v62, 5  ;;  %v11564_v62 = vld [vmem:[#allocation81_spill] sm:$0xff] }
 0x21d   : > { %v2848_v33 = vpop.permute.xlu0 %2847  ;;  %v11557_v4 = vld [vmem:[#allocation55_spill] sm:$0xff] }
 0x21e   : > { %v9086_v10 = vsel %vm2176_vm8, %v3008_v52, %v2848_v33  ;;  %v2782_v18 = vpop.permute.xlu1 %2781  ;;  %v11552_v52 = vld [vmem:[#allocation79_spill] sm:$0xff] }
 0x21f   : > { %2885 = vrot.lane.b32.xlu0 %v8995_v37, %s7197_s21  ;;  %6593 = vmatmul.mubr.msk.bf16.gmra.mrb[4].mxu1 %vm2257_vm9, %v9086_v10  ;;  %v2092_v33 = vsel %vm2014_vm6, %v11552_v52, %v11551_v32  ;;  %v3012_v38 = vsel %vm2111_vm7, %v2922_v49, %v2782_v18  ;;  %v1450_v49 = vsel %vm8300_vm5, %v5788_v22, %v1449_v57  ;;  %v11559_v52 = vld [vmem:[#allocation40_spill] sm:$0xff] }
 0x220   : > { %6565 = vmatmul.mubr.msk.bf16.gmra.mrb[44].mxu0 %vm2257_vm9, %v9094_v14  ;;  %2757 = vrot.lane.b32.xlu1 %v9076_v42, %s7195_s18  ;;  %v2163_v32 = vsel %vm2111_vm7, %v2092_v33, %v11557_v4  ;;  %v1458_v33 = vrot.slane %v1456_v23, 4 }
 0x221   : > { %6568 = vmatprep.mubr.msk.bf16.mxu0 %vm2257_vm9, %v9102_v25  ;;  %v2780_v31 = vpop.permute.xlu0 %2779  ;;  %v9149_v35 = vsel %vm2176_vm8, %v2163_v32, %v8834_v60 }
 0x222   : > { %v2852_v37 = vpop.permute.xlu1 %2851  ;;  %v3010_v29 = vsel %vm2111_vm7, %v2919_v39, %v2780_v31  ;;  %v1453_v31 = vsel %vm8300_vm5, %v1451_v59, %v1452_v1  ;;  %v7001_v59 = vld [vmem:[%s7413_s20 + $0x168] sm:$0xf] }
 0x223   : > { %2755 = vrot.lane.b32.xlu0 %v5923_v34, %s7195_s18  ;;  %v9133_v34 = vsel %vm2176_vm8, %v3012_v38, %v2852_v37  ;;  %v11558_v37 = vld [vmem:[#allocation105_spill] sm:$0xff]  ;;  %v9166_v22 = vcombine.low %v1450_v49, %v1453_v31  ;;  %v5789_v1 = vrot.slane %v7001_v59, 9  ;;  %v11561_v39 = vld [vmem:[#allocation98_spill] sm:$0xff]  ;;  %v11562_v38 = vld [vmem:[#allocation83_spill] sm:$0xff] }
 0x224   : > { %2821 = vrot.lane.b32.xlu1 %v11556_v58, %s7196_s23  ;;  %v2165_v50 = vsel %vm2111_vm7, %v2095_v17, %v11558_v37  ;;  %v7003_v17 = vld [vmem:[%s7413_s20 + $0x178] sm:$0xf]  ;;  %v7004_v59 = vld [vmem:[%s7413_s20 + $0x174] sm:$0xf] }
 0x225   : > { %v2850_v41 = vpop.permute.xlu0 %2849  ;;  %v9157_v57 = vsel %vm2176_vm8, %v2165_v50, %v8874_v43  ;;  %v7002_v43 = vld [vmem:[%s7413_s20 + $0x170] sm:$0x1]  ;;  %v1463_v0 = vrot.slane %v7003_v17, 5  ;;  %v1457_v49 = vsel %vm8300_vm5, %v5789_v1, %v1456_v23 }
 0x226   : > { %v9139_v45 = vsel %vm2176_vm8, %v3010_v29, %v2850_v41  ;;  %v2722_v18 = vpop.permute.xlu1 %2721  ;;  %11560 = vst [vmem:[#allocation28_spill] sm:$0xff] %v9157_v57  ;;  %v1459_v63 = vrot.slane %v7002_v43, 5  ;;  %v2098_v29 = vsel %vm2014_vm6, %v11562_v38, %v11561_v39  ;;  %v11563_v41 = vld [vmem:[#allocation101_spill] sm:$0xff]  ;;  %v11565_v37 = vld [vmem:[#allocation54_spill] sm:$0xff]  ;;  %v5790_v43 = vrot.slane %v7004_v59, 9 }
 0x227   : > { %2819 = vrot.lane.b32.xlu0 %v11559_v52, %s7196_s23  ;;  %6596 = vmatprep.mubr.msk.bf16.mxu1 %vm2257_vm9, %v9139_v45  ;;  %v2101_v4 = vsel %vm2014_vm6, %v11564_v62, %v11563_v41  ;;  %v1465_v17 = vrot.slane %v1463_v0, 4  ;;  %v7005_v39 = vld [vmem:[%s7413_s20 + $0x17c] sm:$0x1]  ;;  %v11566_v41 = vld [vmem:[#allocation107_spill] sm:$0xff] }
 0x228   : > { %6569 = vmatmul.mubr.msk.bf16.gmra.mrb[48].mxu0 %vm2257_vm9, %v9149_v35  ;;  %6597 = vmatmul.mubr.msk.bf16.gmra.mrb[8].mxu1 %vm2257_vm9, %v9133_v34  ;;  %v1460_v31 = vsel %vm8300_vm5, %v1458_v33, %v1459_v63  ;;  %v1466_v38 = vrot.slane %v7005_v39, 5  ;;  %v2169_v62 = vsel %vm2111_vm7, %v2101_v4, %v11566_v41  ;;  %v11568_v23 = vld [vmem:[#allocation22_spill] sm:$0xff]  ;;  %v11570_v63 = vld [vmem:[#allocation23_spill] sm:$0xff] }
 0x229   : > { %6572 = vmatprep.mubr.msk.bf16.mxu0 %vm2257_vm9, %v9157_v57  ;;  %v2720_v60 = vpop.permute.xlu0 %2719  ;;  %2891 = vrot.lane.b32.xlu1 %v5925_v46, %s7197_s21  ;;  %v2928_v1 = vsel %vm2014_vm6, %v11568_v23, %v2722_v18  ;;  %v9200_v33 = vsel %vm2176_vm8, %v2169_v62, %v8889_v44  ;;  %v11571_v44 = vld [vmem:[#allocation45_spill] sm:$0xff]  ;;  %v5927_v18 = vcombine.low %v1457_v49, %v1460_v31  ;;  %v11572_v39 = vld [vmem:[#allocation42_spill] sm:$0xff]  ;;  %v11573_v49 = vld [vmem:[#allocation100_spill] sm:$0xff] }
 0x22a   : > { %v2786_v36 = vpop.permute.xlu1 %2785  ;;  %11569 = vst [vmem:[#allocation59_spill] sm:$0xff] %v9200_v33  ;;  %v11574_v31 = vld [vmem:[#allocation86_spill] sm:$0xff]  ;;  %v7008_v23 = vld [vmem:[%s7413_s20 + $0x188] sm:$0x1] }
 0x22b   : > { %2889 = vrot.lane.b32.xlu0 %v9076_v42, %s7197_s21  ;;  %v2167_v42 = vsel %vm2111_vm7, %v2098_v29, %v11565_v37  ;;  %v2925_v29 = vsel %vm2014_vm6, %v11570_v63, %v2720_v60  ;;  %v3016_v37 = vsel %vm2111_vm7, %v2928_v1, %v2786_v36  ;;  %v7006_v60 = vld [vmem:[%s7413_s20 + $0x184] sm:$0xf]  ;;  %v2104_v41 = vsel %vm2014_vm6, %v11574_v31, %v11573_v49  ;;  %v7009_v49 = vld [vmem:[%s7413_s20 + $0x190] sm:$0xf] }
 0x22c   : > { %v9193_v57 = vsel %vm2176_vm8, %v2167_v42, %v8854_v48  ;;  %v1470_v36 = vrot.slane %v7006_v60, 5  ;;  %v1473_v1 = vrot.slane %v7008_v23, 5  ;;  %v11575_v63 = vld [vmem:[#allocation103_spill] sm:$0xff]  ;;  %v1477_v31 = vrot.slane %v7009_v49, 5 }
 0x22d   : > { %v2784_v32 = vpop.permute.xlu0 %2783  ;;  %2761 = vrot.lane.b32.xlu1 %v9166_v22, %s7195_s18  ;;  %11567 = vst [vmem:[#allocation78_spill] sm:$0xff] %v9193_v57 }
 0x22e   : > { %v2856_v50 = vpop.permute.xlu1 %2855  ;;  %v3014_v48 = vsel %vm2111_vm7, %v2925_v29, %v2784_v32  ;;  %v1464_v32 = vsel %vm8300_vm5, %v5790_v43, %v1463_v0  ;;  %v7007_v43 = vld [vmem:[%s7413_s20 + $0x180] sm:$0xf] }
 0x22f   : > { %2759 = vrot.lane.b32.xlu0 %v5925_v46, %s7195_s18  ;;  %v9209_v4 = vsel %vm2176_vm8, %v3016_v37, %v2856_v50  ;;  %v1467_v50 = vsel %vm8300_vm5, %v1465_v17, %v1466_v38  ;;  %v5791_v17 = vrot.slane %v7007_v43, 9  ;;  %v1472_v38 = vrot.slane %v1470_v36, 4  ;;  %v11576_v29 = vld [vmem:[#allocation84_spill] sm:$0xff] }
 0x230   : > { %6573 = vmatmul.mubr.msk.bf16.gmra.mrb[52].mxu0 %vm2257_vm9, %v9193_v57  ;;  %v5928_v0 = vcombine.low %v1464_v32, %v1467_v50  ;;  %v2107_v37 = vsel %vm2014_vm6, %v11576_v29, %v11575_v63  ;;  %v11581_v63 = vld [vmem:[#allocation89_spill] sm:$0xff] }
 0x231   : > { %6576 = vmatprep.mubr.msk.bf16.mxu0 %vm2257_vm9, %v9200_v33  ;;  %v2854_v46 = vpop.permute.xlu0 %2853  ;;  %2825 = vrot.lane.b32.xlu1 %v11571_v44, %s7196_s23  ;;  %v2173_v32 = vsel %vm2111_vm7, %v2107_v37, %v8561_v13 }
 0x232   : > { %v9217_v42 = vsel %vm2176_vm8, %v3014_v48, %v2854_v46  ;;  %v2726_v59 = vpop.permute.xlu1 %2725  ;;  %v11577_v48 = vld [vmem:[#allocation106_spill] sm:$0xff]  ;;  %v9251_v43 = vsel %vm2176_vm8, %v2173_v32, %v8915_v61 }
 0x233   : > { %2823 = vrot.lane.b32.xlu0 %v11572_v39, %s7196_s23  ;;  %6600 = vmatprep.mubr.msk.bf16.mxu1 %vm2257_vm9, %v9217_v42  ;;  %v2171_v46 = vsel %vm2111_vm7, %v2104_v41, %v11577_v48  ;;  %11579 = vst [vmem:[#allocation58_spill] sm:$0xff] %v9251_v43  ;;  %v7010_v41 = vld [vmem:[%s7413_s20 + $0x18c] sm:$0xf]  ;;  %v1479_v48 = vrot.slane %v1477_v31, 4 }
 0x234   : > { %6601 = vmatmul.mubr.msk.bf16.gmra.mrb[12].mxu1 %vm2257_vm9, %v9209_v4  ;;  %v9245_v50 = vsel %vm2176_vm8, %v2171_v46, %v8880_v11  ;;  %v5792_v23 = vrot.slane %v7010_v41, 9  ;;  %v1471_v11 = vsel %vm8300_vm5, %v5791_v17, %v1470_v36  ;;  %v11580_v61 = vld [vmem:[#allocation102_spill] sm:$0xff]  ;;  %v7011_v46 = vld [vmem:[%s7413_s20 + $0x194] sm:$0x1] }
 0x235   : > { %v2724_v62 = vpop.permute.xlu0 %2723  ;;  %2895 = vrot.lane.b32.xlu1 %v5927_v18, %s7197_s21  ;;  %11578 = vst [vmem:[#allocation85_spill] sm:$0xff] %v9245_v50  ;;  %v2110_v29 = vsel %vm2014_vm6, %v11581_v63, %v11580_v61  ;;  %v1480_v49 = vrot.slane %v7011_v46, 5  ;;  %v9268_v32 = vld [vmem:[%s7413_s20 + $0xcc] sm:$0xf]  ;;  %v9276_v36 = vld [vmem:[%s7413_s20 + $0xd0] sm:$0xf] }
 0x236   : > { %v2790_v60 = vpop.permute.xlu1 %2789  ;;  %v11582_v41 = vld [vmem:[#allocation62_spill] sm:$0xff]  ;;  %v11583_v17 = vld [vmem:[#allocation25_spill] sm:$0xff]  ;;  %v1478_v63 = vsel %vm8300_vm5, %v5792_v23, %v1477_v31  ;;  %v1560_v23 = vshll.u32 %v9276_v36, 16 }
 0x237   : > { %2893 = vrot.lane.b32.xlu0 %v9166_v22, %s7197_s21  ;;  %v1474_v22 = vsel %vm8300_vm5, %v1472_v38, %v1473_v1  ;;  %v2931_v38 = vsel %vm2014_vm6, %v11583_v17, %v2724_v62  ;;  %v1481_v31 = vsel %vm8300_vm5, %v1479_v48, %v1480_v49 }
 0x238   : > { %6577 = vmatmul.mubr.msk.bf16.gmra.mrb[56].mxu0 %vm2257_vm9, %v9245_v50  ;;  %v2934_v50 = vsel %vm2014_vm6, %v11441_v5, %v2726_v59  ;;  %v5929_v61 = vcombine.low %v1471_v11, %v1474_v22  ;;  %v11584_v5 = vld [vmem:[#allocation48_spill] sm:$0xff]  ;;  %v1554_v59 = vshll.u32 %v9268_v32, 16  ;;  %v1562_v49 = vrot.slane %v1560_v23, 5 }
 0x239   : > { %6580 = vmatprep.mubr.msk.bf16.mxu0 %vm2257_vm9, %v9251_v43  ;;  %v2788_v13 = vpop.permute.xlu0 %2787  ;;  %2765 = vrot.lane.b32.xlu1 %v5928_v0, %s7195_s18  ;;  %v2175_v43 = vsel %vm2111_vm7, %v2110_v29, %v11582_v41  ;;  %v3020_v1 = vsel %vm2111_vm7, %v2934_v50, %v2790_v60  ;;  %v1564_v50 = vshrl.u32 %v9276_v36, 16  ;;  %v11586_v11 = vld [vmem:[#allocation44_spill] sm:$0xff] }
 0x23a   : > { %v2860_v37 = vpop.permute.xlu1 %2859  ;;  %v3018_v46 = vsel %vm2111_vm7, %v2931_v38, %v2788_v13  ;;  %v9300_v13 = vsel %vm2176_vm8, %v2175_v43, %v8899_v55  ;;  %v5930_v55 = vcombine.low %v1478_v63, %v1481_v31  ;;  %v6913_v38 = vld [vmem:[%s7421_s30 + $0x30] sm:$0xff]  }
 0x23b   : > { %2763 = vrot.lane.b32.xlu0 %v5927_v18, %s7195_s18  ;;  %v9285_v29 = vsel %vm2176_vm8, %v3020_v1, %v2860_v37  ;;  %v1551_v18 = vshrl.u32 %v9268_v32, 16  ;;  %11585 = vst [vmem:[#allocation82_spill] sm:$0xff] %v9300_v13  ;;  %v1556_v37 = vrot.slane %v1554_v59, 5  ;;  %v1566_v17 = vrot.slane %v1564_v50, 4  ;;  %v333_v1 = vld [vmem:[%s7413_s20 + $0xd4] sm:$0x1]  ;;  %6720 = vmatprep.subr.bf16.mxu1 %v6913_v38 }
 0x23c   : > { %6721 = vmatpush3.bf16.msra.mxu1 %v6913_v38  ;;  %v1570_v63 = vshll.u32 %v333_v1, 16  ;;  %v9327_v50 = vld [vmem:[%s7413_s20 + $0x1a4] sm:$0xf]  ;;  %v11590_v38 = vld [vmem:[#allocation46_spill] sm:$0xff]  ;;  %v1609_v33 = vrot.slane %v333_v1, 5 }
 0x23d   : > { %v2858_v41 = vpop.permute.xlu0 %2857  ;;  %2829 = vrot.lane.b32.xlu1 %v11584_v5, %s7196_s23  ;;  %v1553_v43 = vrot.slane %v1551_v18, 4  ;;  %v6914_v18 = vld [vmem:[%s7421_s30 + $0x38] sm:$0xff]  }
 0x23e   : > { %v9292_v62 = vsel %vm2176_vm8, %v3018_v46, %v2858_v41  ;;  %v2730_v60 = vpop.permute.xlu1 %2729  ;;  %6722 = vmatprep.subr.bf16.mxu1 %v6914_v18 }
 0x23f   : > { %2827 = vrot.lane.b32.xlu0 %v11586_v11, %s7196_s23  ;;  %6604 = vmatprep.mubr.msk.bf16.mxu1 %vm2257_vm9, %v9292_v62  ;;  %v2940_v59 = vsel %vm2014_vm6, %v11445_v51, %v2730_v60  ;;  %v9338_v60 = vld [vmem:[%s7413_s20 + $0x1a8] sm:$0xf] }
 0x240   : > { %6581 = vmatmul.mubr.msk.bf16.gmra.mrb[60].mxu0 %vm2257_vm9, %v9300_v13  ;;  %6605 = vmatmul.mubr.msk.bf16.gmra.mrb[16].mxu1 %vm2257_vm9, %v9285_v29  ;;  %v1567_v13 = vor.u32 %v1566_v17, %v1562_v49  ;;  %v1606_v17 = vrot.slane %v9276_v36, 5 }
 0x241   : > { %6656 = vmatprep.mubr.msk.bf16.mxu0 %vm2257_vm9, %v8581_v24  ;;  %v2728_v22 = vpop.permute.xlu0 %2727  ;;  %2899 = vrot.lane.b32.xlu1 %v5929_v61, %s7197_s21  ;;  %v1557_v24 = vor.u32 %v1556_v37, %v1553_v43 }
 0x242   : > { %v2794_v48 = vpop.permute.xlu1 %2793  ;;  %v1568_v37 = vrot.slane %v1567_v13, 4  ;;  %6723 = vmatpush3.bf16.msra.mxu1 %v6914_v18  ;;  %v1584_v13 = vshll.u32 %v9338_v60, 16 }
 0x243   : > { %2897 = vrot.lane.b32.xlu0 %v5928_v0, %s7197_s21  ;;  %v2937_v0 = vsel %vm2014_vm6, %v11439_v54, %v2728_v22  ;;  %v3024_v31 = vsel %vm2111_vm7, %v2940_v59, %v2794_v48  ;;  %v1558_v54 = vrot.slane %v1557_v24, 4  ;;  %v1572_v48 = vrot.slane %v1570_v63, 5 }
 0x244   : > { %v1588_v24 = vshrl.u32 %v9338_v60, 16  ;;  %v5971_v63 = vcombine.low %v9268_v32, %v9276_v36  ;;  %v1586_v36 = vrot.slane %v1584_v13, 5 }
 0x245   : > { %v2792_v46 = vpop.permute.xlu0 %2791  ;;  %2769 = vrot.lane.b32.xlu1 %v5930_v55, %s7195_s18  ;;  %v1563_v59 = vsel %vm7437_vm2, %v1558_v54, %v1562_v49 }
 0x246   : > { %v2864_v41 = vpop.permute.xlu1 %2863  ;;  %v3022_v23 = vsel %vm2111_vm7, %v2937_v0, %v2792_v46  ;;  %v1578_v46 = vshll.u32 %v9327_v50, 16 }
 0x247   : > { %2767 = vrot.lane.b32.xlu0 %v5929_v61, %s7195_s18  ;;  %v9331_v43 = vsel %vm2176_vm8, %v3024_v31, %v2864_v41  ;;  %v11588_v61 = vld [vmem:[#allocation104_spill] sm:$0xff]  ;;  %v1573_v31 = vsel %vm7437_vm2, %v1568_v37, %v1572_v48  ;;  %v11592_v48 = vld [vmem:[#allocation26_spill] sm:$0xff] }
 0x248   : > { %6657 = vmatmul.mubr.msk.bf16.vlgmr.msra.gmra.mrb[64].mxu0 %vm2257_vm9, %v8608_v30  ;;  %11587 = vst [vmem:[#allocation63_spill] sm:$0xff] %v9331_v43  ;;  %v5973_v54 = vcombine.low %v1563_v59, %v1573_v31  ;;  %v387_v37 = vld [vmem:[%s7413_s20 + $0x1ac] sm:$0x1]  ;;  %s7102_s20 = scalar_lea.vmem %s11140_s25, 4096 }
 0x249   : > { %6660 = vmatprep.mubr.msk.bf16.mxu0 %vm2257_vm9, %v8640_v15  ;;  %v2862_v51 = vpop.permute.xlu0 %2861  ;;  %2833 = vrot.lane.b32.xlu1 %v11588_v61, %s7196_s23  ;;  %v1575_v15 = vshrl.u32 %v9327_v50, 16  ;;  %p7103_p1 = scmp.ne.s32.totalorder %s11140_s25, %s7102_s20  ;;  %p7110_p6 = scmp.lt.s32.totalorder %s7108_s10, %s7102_s20 }
 0x24a   : > { %v9341_v30 = vsel %vm2176_vm8, %v3022_v23, %v2862_v51  ;;  %v2734_v22 = vpop.permute.xlu1 %2733  ;;  %v5795_v23 = vrot.slane %v9268_v32, 9  ;;  %v1608_v51 = vrot.slane %v1606_v17, 4 }
 0x24b   : > { %11589 = vst [vmem:[#allocation90_spill] sm:$0xff] %v9341_v30  ;;  %2831 = vrot.lane.b32.xlu0 %v11590_v38, %s7196_s23  ;;  %6608 = vmatprep.mubr.msk.bf16.mxu1 %vm2257_vm9, %v9341_v30  ;;  %v1577_v57 = vrot.slane %v1575_v15, 4  ;;  %v1590_v30 = vrot.slane %v1588_v24, 4  ;;  %p7104_p8 = pnand %p7103_p1, %p11935_p5  ;;  %p7111_p10 = por %p7110_p6, %p7109_p3 }
 0x24c   : > { %6609 = vmatmul.mubr.msk.bf16.gmra.mrb[20].mxu1 %vm2257_vm9, %v9331_v43  ;;  %v1580_v43 = vrot.slane %v1578_v46, 5  ;;  %v1607_v1 = vsel %vm8300_vm5, %v5795_v23, %v1606_v17  ;;  %v11596_v23 = vld [vmem:[#allocation49_spill] sm:$0xff] }
 0x24d   : > { %v2732_v41 = vpop.permute.xlu0 %2731  ;;  %2903 = vrot.lane.b32.xlu1 %v8630_v19, %s7197_s21  ;;  %v1591_v13 = vor.u32 %v1590_v30, %v1586_v36  ;;  %v11595_v30 = vld [vmem:[#allocation61_spill] sm:$0xff]  ;;  %p7105_p9 = pneg %p7104_p8 }
 0x24e   : > { %v2798_v0 = vpop.permute.xlu1 %2797  ;;  %v1581_v15 = vor.u32 %v1580_v43, %v1577_v57  ;;  %v11594_v43 = vld [vmem:[#allocation96_spill] sm:$0xff] }
 0x24f   : > { %2901 = vrot.lane.b32.xlu0 %v5930_v55, %s7197_s21  ;;  %v1610_v55 = vsel %vm8300_vm5, %v1608_v51, %v1609_v33  ;;  %p7112_p12 = pnand %p7111_p10, %p7105_p9 }
 0x250   : > { %6661 = vmatmul.mubr.msk.bf16.gmra.mrb[68].mxu0 %vm2257_vm9, %v8644_v16  ;;  %v2946_v16 = vsel %vm2014_vm6, %v11498_v27, %v2734_v22  ;;  %v6013_v27 = vcombine.low %v1607_v1, %v1610_v55 }
 0x251   : > { %6664 = vmatprep.mubr.msk.bf16.mxu0 %vm2257_vm9, %v8678_v47  ;;  %v2796_v49 = vpop.permute.xlu0 %2795  ;;  %3509 = vrot.lane.b32.xlu1 %v5971_v63, %s7196_s23  ;;  %v11593_v47 = vld [vmem:[#allocation29_spill] sm:$0xff]  ;;  %v3028_v24 = vsel %vm2111_vm7, %v2946_v16, %v2798_v0  ;;  %v1594_v63 = vshll.u32 %v387_v37, 16  ;;  %v1592_v0 = vrot.slane %v1591_v13, 4  ;;  %v11598_v13 = vld [vmem:[#allocation31_spill] sm:$0xff] }
 0x252   : > { %v2868_v32 = vpop.permute.xlu1 %2867  ;;  %v2943_v46 = vsel %vm2014_vm6, %v11593_v47, %v2732_v41  ;;  %v1582_v41 = vrot.slane %v1581_v15, 4  ;;  %v11597_v47 = vld [vmem:[#allocation30_spill] sm:$0xff] }
 0x253   : > { %3499 = vrot.lane.b32.xlu0 %v11592_v48, %s7195_s18  ;;  %v3026_v59 = vsel %vm2111_vm7, %v2943_v46, %v2796_v49  ;;  %v9383_v17 = vsel %vm2176_vm8, %v3028_v24, %v2868_v32  ;;  %v1596_v31 = vrot.slane %v1594_v63, 5  ;;  %v5972_v49 = vcombine.low %v9327_v50, %v9338_v60 }
 0x254   : > { %v1587_v1 = vsel %vm7437_vm2, %v1582_v41, %v1586_v36  ;;  %v11599_v36 = vld [vmem:[#allocation47_spill] sm:$0xff] }
 0x255   : > { %v2866_v33 = vpop.permute.xlu0 %2865  ;;  %3519 = vrot.lane.b32.xlu1 %v5973_v54, %s7197_s21  ;;  %v1597_v55 = vsel %vm7437_vm2, %v1592_v0, %v1596_v31  ;;  %v5796_v0 = vrot.slane %v9327_v50, 9 }
 0x256   : > { %v9387_v22 = vsel %vm2176_vm8, %v3026_v59, %v2866_v33  ;;  %v2738_v57 = vpop.permute.xlu1 %2737  ;;  %v5974_v24 = vcombine.low %v1587_v1, %v1597_v55  ;;  %v11600_v33 = vld [vmem:[#allocation51_spill] sm:$0xff]  ;;  %v11602_v55 = vld [vmem:[#allocation33_spill] sm:$0xff] }
 0x257   : > { %6612 = vmatprep.mubr.msk.bf16.mxu1 %vm2257_vm9, %v9387_v22  ;;  %3847 = vrot.lane.b32.xlu0 %v11594_v43, %s7195_s18  ;;  %v2952_v46 = vsel %vm2014_vm6, %v11597_v47, %v2738_v57 }
 0x258   : > { %6613 = vmatmul.mubr.msk.bf16.gmra.mrb[24].mxu1 %vm2257_vm9, %v9383_v17  ;;  %6665 = vmatmul.mubr.msk.bf16.gmra.mrb[72].mxu0 %vm2257_vm9, %v11595_v30  ;;  %v1613_v30 = vrot.slane %v9338_v60, 5 }
 0x259   : > { %6668 = vmatprep.mubr.msk.bf16.mxu0 %vm2257_vm9, %v11596_v23  ;;  %v2736_v51 = vpop.permute.xlu0 %2735  ;;  %3861 = vrot.lane.b32.xlu1 %v6013_v27, %s7197_s21  ;;  %v1616_v23 = vrot.slane %v387_v37, 5 }
 0x25a   : > { %v2802_v32 = vpop.permute.xlu1 %2801  ;;  %v1615_v31 = vrot.slane %v1613_v30, 4 }
 0x25b   : > { %3851 = vrot.lane.b32.xlu0 %v5973_v54, %s7196_s23  ;;  %v2949_v54 = vsel %vm2014_vm6, %v11598_v13, %v2736_v51  ;;  %v3032_v63 = vsel %vm2111_vm7, %v2952_v46, %v2802_v32  ;;  %v1614_v51 = vsel %vm8300_vm5, %v5796_v0, %v1613_v30  ;;  %v11601_v32 = vld [vmem:[#allocation50_spill] sm:$0xff]  ;;  %v11605_v30 = vld [vmem:[#allocation52_spill] sm:$0xff]  ;;  %v11606_v0 = vld [vmem:[#allocation73_spill] sm:$0xff] }
 0x25d   : > { %v2800_v16 = vpop.permute.xlu0 %2799  ;;  %3511 = vrot.lane.b32.xlu1 %v5972_v49, %s7196_s23  ;;  %v1617_v49 = vsel %vm8300_vm5, %v1615_v31, %v1616_v23 }
 0x25e   : > { %v2872_v15 = vpop.permute.xlu1 %2871  ;;  %v3030_v18 = vsel %vm2111_vm7, %v2949_v54, %v2800_v16  ;;  %v6014_v60 = vcombine.low %v1614_v51, %v1617_v49 }
 0x25f   : > { %3501 = vrot.lane.b32.xlu0 %v11588_v61, %s7195_s18  ;;  %v9419_v59 = vsel %vm2176_vm8, %v3032_v63, %v2872_v15 }
 0x260   : > { %6669 = vmatmul.mubr.msk.bf16.gmra.mrb[76].mxu0 %vm2257_vm9, %v11599_v36 }
 0x261   : > { %6672 = vmatprep.mubr.msk.bf16.mxu0 %vm2257_vm9, %v11600_v33  ;;  %v2870_v27 = vpop.permute.xlu0 %2869  ;;  %3849 = vrot.lane.b32.xlu1 %v8630_v19, %s7195_s18  ;;  %v11604_v33 = vld [vmem:[#allocation35_spill] sm:$0xff] }
 0x262   : > { %v9426_v57 = vsel %vm2176_vm8, %v3030_v18, %v2870_v27  ;;  %v2742_v43 = vpop.permute.xlu1 %2741 }
 0x263   : > { %6616 = vmatprep.mubr.msk.bf16.mxu1 %vm2257_vm9, %v9426_v57  ;;  %3521 = vrot.lane.b32.xlu0 %v5974_v24, %s7197_s21  ;;  %v2958_v37 = vsel %vm2014_vm6, %v11519_v12, %v2742_v43  ;;  %v11603_v12 = vld [vmem:[#allocation53_spill] sm:$0xff] }
 0x264   : > { %6617 = vmatmul.mubr.msk.bf16.gmra.mrb[28].mxu1 %vm2257_vm9, %v9419_v59 }
 0x265   : > { %v2740_v41 = vpop.permute.xlu0 %2739  ;;  %3863 = vrot.lane.b32.xlu1 %v6014_v60, %s7197_s21 }
 0x266   : > { %v2806_v19 = vpop.permute.xlu1 %2805  ;;  %v2955_v16 = vsel %vm2014_vm6, %v11602_v55, %v2740_v41 }
 0x267   : > { %3853 = vrot.lane.b32.xlu0 %v5974_v24, %s7196_s23  ;;  %v3036_v56 = vsel %vm2111_vm7, %v2958_v37, %v2806_v19 }
 0x268   : > { %6673 = vmatmul.mubr.msk.bf16.gmra.mrb[80].mxu0 %vm2257_vm9, %v11601_v32 }
 0x269   : > { %6676 = vmatprep.mubr.msk.bf16.mxu0 %vm2257_vm9, %v8814_v40  ;;  %v2804_v1 = vpop.permute.xlu0 %2803 }
 0x26a   : > { %v2876_v50 = vpop.permute.xlu1 %2875  ;;  %v3034_v15 = vsel %vm2111_vm7, %v2955_v16, %v2804_v1  ;;  %v11607_v1 = vld [vmem:[#allocation37_spill] sm:$0xff] }
 0x26b   : > { %v9452_v47 = vsel %vm2176_vm8, %v3036_v56, %v2876_v50 }
 0x26d   : > { %v2874_v46 = vpop.permute.xlu0 %2873 }
 0x26e   : > { %v3098_v40 = vsel %vm2176_vm8, %v3034_v15, %v2874_v46  ;;  %v2746_v24 = vpop.permute.xlu1 %2745 }
 0x26f   : > { %6620 = vmatprep.mubr.msk.bf16.mxu1 %vm2257_vm9, %v3098_v40  ;;  %v2964_v18 = vsel %vm2014_vm6, %v11526_v9, %v2746_v24 }
 0x270   : > { %6621 = vmatmul.mubr.msk.bf16.gmra.mrb[32].mxu1 %vm2257_vm9, %v9452_v47  ;;  %6677 = vmatmul.mubr.msk.bf16.gmra.mrb[84].mxu0 %vm2257_vm9, %v8819_v8 }
 0x271   : > { %6680 = vmatprep.mubr.msk.bf16.mxu0 %vm2257_vm9, %v11603_v12  ;;  %v2744_v13 = vpop.permute.xlu0 %2743 }
 0x272   : > { %v2810_v54 = vpop.permute.xlu1 %2809  ;;  %v2961_v27 = vsel %vm2014_vm6, %v11604_v33, %v2744_v13 }
 0x273   : > { %v3040_v43 = vsel %vm2111_vm7, %v2964_v18, %v2810_v54 }
 0x275   : > { %v2808_v63 = vpop.permute.xlu0 %2807 }
 0x276   : > { %v2880_v36 = vpop.permute.xlu1 %2879  ;;  %v3038_v8 = vsel %vm2111_vm7, %v2961_v27, %v2808_v63 }
 0x277   : > { %v9471_v41 = vsel %vm2176_vm8, %v3040_v43, %v2880_v36 }
 0x278   : > { %6681 = vmatmul.mubr.msk.bf16.gmra.mrb[88].mxu0 %vm2257_vm9, %v11605_v30 }
 0x279   : > { %6684 = vmatprep.mubr.msk.bf16.mxu0 %vm2257_vm9, %v11606_v0  ;;  %v2878_v31 = vpop.permute.xlu0 %2877 }
 0x27a   : > { %v9476_v23 = vsel %vm2176_vm8, %v3038_v8, %v2878_v31  ;;  %v2750_v9 = vpop.permute.xlu1 %2749 }
 0x27b   : > { %6624 = vmatprep.mubr.msk.bf16.mxu1 %vm2257_vm9, %v9476_v23  ;;  %v2970_v60 = vsel %vm2014_vm6, %v11539_v20, %v2750_v9 }
 0x27c   : > { %6625 = vmatmul.mubr.msk.bf16.gmra.mrb[36].mxu1 %vm2257_vm9, %v9471_v41 }
 0x27d   : > { %v2748_v19 = vpop.permute.xlu0 %2747 }
 0x27e   : > { %v2814_v51 = vpop.permute.xlu1 %2813  ;;  %v2967_v50 = vsel %vm2014_vm6, %v11607_v1, %v2748_v19 }
 0x27f   : > { %v3044_v37 = vsel %vm2111_vm7, %v2970_v60, %v2814_v51 }
 0x281   : > { %v2812_v49 = vpop.permute.xlu0 %2811 }
 0x282   : > { %v2884_v32 = vpop.permute.xlu1 %2883  ;;  %v3042_v55 = vsel %vm2111_vm7, %v2967_v50, %v2812_v49 }
 0x283   : > { %v9489_v16 = vsel %vm2176_vm8, %v3044_v37, %v2884_v32 }
 0x285   : > { %v2882_v56 = vpop.permute.xlu0 %2881 }
 0x286   : > { %v9492_v15 = vsel %vm2176_vm8, %v3042_v55, %v2882_v56  ;;  %v2754_v46 = vpop.permute.xlu1 %2753 }
 0x287   : > { %6628 = vmatprep.mubr.msk.bf16.mxu1 %vm2257_vm9, %v9492_v15  ;;  %v2976_v13 = vsel %vm2014_vm6, %v11546_v7, %v2754_v46 }
 0x288   : > { %6629 = vmatmul.mubr.msk.bf16.gmra.mrb[40].mxu1 %vm2257_vm9, %v9489_v16 }
 0x289   : > { %v2752_v20 = vpop.permute.xlu0 %2751 }
 0x28a   : > { %v2818_v40 = vpop.permute.xlu1 %2817  ;;  %v2973_v54 = vsel %vm2014_vm6, %v11533_v53, %v2752_v20 }
 0x28b   : > { %v3048_v63 = vsel %vm2111_vm7, %v2976_v13, %v2818_v40 }
 0x28d   : > { %v2816_v24 = vpop.permute.xlu0 %2815 }
 0x28e   : > { %v2888_v12 = vpop.permute.xlu1 %2887  ;;  %v3046_v36 = vsel %vm2111_vm7, %v2973_v54, %v2816_v24 }
 0x28f   : > { %v9505_v18 = vsel %vm2176_vm8, %v3048_v63, %v2888_v12 }
 0x291   : > { %v2886_v33 = vpop.permute.xlu0 %2885 }
 0x292   : > { %v9508_v27 = vsel %vm2176_vm8, %v3046_v36, %v2886_v33  ;;  %v2758_v43 = vpop.permute.xlu1 %2757 }
 0x293   : > { %6632 = vmatprep.mubr.msk.bf16.mxu1 %vm2257_vm9, %v9508_v27  ;;  %v2982_v8 = vsel %vm2014_vm6, %v11559_v52, %v2758_v43 }
 0x294   : > { %6633 = vmatmul.mubr.msk.bf16.gmra.mrb[44].mxu1 %vm2257_vm9, %v9505_v18 }
 0x295   : > { %v2756_v7 = vpop.permute.xlu0 %2755 }
 0x296   : > { %v2822_v53 = vpop.permute.xlu1 %2821  ;;  %v2979_v9 = vsel %vm2014_vm6, %v11545_v6, %v2756_v7 }
 0x297   : > { %v3052_v19 = vsel %vm2111_vm7, %v2982_v8, %v2822_v53 }
 0x299   : > { %v2820_v30 = vpop.permute.xlu0 %2819 }
 0x29a   : > { %v3050_v49 = vsel %vm2111_vm7, %v2979_v9, %v2820_v30 }
 0x29b   : > { %v9516_v0 = vpop.f32.mrb[0].mxu0  ;;  %v2892_v31 = vpop.permute.xlu1 %2891 }
 0x29c   : > { %11608 = vst [vmem:[#allocation60_spill] sm:$0xff] %v9516_v0  ;;  %v9521_v51 = vpop.f32.mrb[1].mxu0  ;;  %v9525_v32 = vsel %vm2176_vm8, %v3052_v19, %v2892_v31 }
 0x29d   : > { %11609 = vst [vmem:[#allocation88_spill] sm:$0xff] %v9521_v51  ;;  %v9527_v60 = vpop.f32.mrb[2].mxu0  ;;  %v2890_v1 = vpop.permute.xlu0 %2889 }
 0x29e   : > { %11610 = vst [vmem:[#allocation65_spill] sm:$0xff] %v9527_v60  ;;  %v9530_v52 = vsel %vm2176_vm8, %v3050_v49, %v2890_v1  ;;  %v9532_v50 = vpop.f32.mrb[3].mxu0 }
 0x29f   : > { %11611 = vst [vmem:[#allocation16_spill] sm:$0xff] %v9532_v50  ;;  %6636 = vmatprep.mubr.msk.bf16.mxu1 %vm2257_vm9, %v9530_v52  ;;  %v2762_v6 = vpop.permute.xlu1 %2761 }
 0x2a0   : > { %6637 = vmatmul.mubr.msk.bf16.gmra.mrb[48].mxu1 %vm2257_vm9, %v9525_v32  ;;  %v2988_v12 = vsel %vm2014_vm6, %v11572_v39, %v2762_v6 }
 0x2a1   : > { %v2760_v37 = vpop.permute.xlu0 %2759 }
 0x2a2   : > { %v2985_v54 = vsel %vm2014_vm6, %v11556_v58, %v2760_v37 }
 0x2a3   : > { %v9538_v55 = vpop.f32.mrb[4].mxu0  ;;  %v2826_v56 = vpop.permute.xlu1 %2825 }
 0x2a4   : > { %11612 = vst [vmem:[#allocation64_spill] sm:$0xff] %v9538_v55  ;;  %v9540_v46 = vpop.f32.mrb[5].mxu0  ;;  %v3056_v63 = vsel %vm2111_vm7, %v2988_v12, %v2826_v56 }
 0x2a5   : > { %11613 = vst [vmem:[#allocation32_spill] sm:$0xff] %v9540_v46  ;;  %v9542_v20 = vpop.f32.mrb[6].mxu0  ;;  %v2824_v40 = vpop.permute.xlu0 %2823 }
 0x2a6   : > { %11614 = vst [vmem:[#allocation91_spill] sm:$0xff] %v9542_v20  ;;  %v9544_v24 = vpop.f32.mrb[7].mxu0  ;;  %v3054_v36 = vsel %vm2111_vm7, %v2985_v54, %v2824_v40 }
 0x2a7   : > { %11615 = vst [vmem:[#allocation67_spill] sm:$0xff] %v9544_v24  ;;  %v2896_v13 = vpop.permute.xlu1 %2895 }
 0x2a8   : > { %v9553_v33 = vsel %vm2176_vm8, %v3056_v63, %v2896_v13 }
 0x2a9   : > { %v2894_v43 = vpop.permute.xlu0 %2893 }
 0x2aa   : > { %v9556_v7 = vsel %vm2176_vm8, %v3054_v36, %v2894_v43 }
 0x2ab   : > { %v9558_v53 = vpop.f32.mrb[8].mxu0  ;;  %6640 = vmatprep.mubr.msk.bf16.mxu1 %vm2257_vm9, %v9556_v7  ;;  %v2766_v39 = vpop.permute.xlu1 %2765 }
 0x2ac   : > { %11616 = vst [vmem:[#allocation18_spill] sm:$0xff] %v9558_v53  ;;  %v9562_v30 = vpop.f32.mrb[9].mxu0  ;;  %6641 = vmatmul.mubr.msk.bf16.gmra.mrb[52].mxu1 %vm2257_vm9, %v9553_v33  ;;  %v2994_v49 = vsel %vm2014_vm6, %v11586_v11, %v2766_v39 }
 0x2ad   : > { %11617 = vst [vmem:[#allocation34_spill] sm:$0xff] %v9562_v30  ;;  %v9566_v58 = vpop.f32.mrb[10].mxu0  ;;  %v2764_v8 = vpop.permute.xlu0 %2763 }
 0x2ae   : > { %11618 = vst [vmem:[#allocation19_spill] sm:$0xff] %v9566_v58  ;;  %v9568_v31 = vpop.f32.mrb[11].mxu0  ;;  %v2991_v37 = vsel %vm2014_vm6, %v11571_v44, %v2764_v8  ;;  %v11671_v58 = vld [vmem:[#allocation58_spill] sm:$0xff] }
 0x2af   : > { %11619 = vst [vmem:[#allocation69_spill] sm:$0xff] %v9568_v31  ;;  %v2830_v9 = vpop.permute.xlu1 %2829 }
 0x2b0   : > { %v3060_v56 = vsel %vm2111_vm7, %v2994_v49, %v2830_v9 }
 0x2b1   : > { %v2828_v19 = vpop.permute.xlu0 %2827 }
 0x2b2   : > { %v3058_v12 = vsel %vm2111_vm7, %v2991_v37, %v2828_v19 }
 0x2b3   : > { %v9572_v1 = vpop.f32.mrb[12].mxu0  ;;  %v2900_v6 = vpop.permute.xlu1 %2899 }
 0x2b4   : > { %11620 = vst [vmem:[#allocation20_spill] sm:$0xff] %v9572_v1  ;;  %v9577_v40 = vpop.f32.mrb[13].mxu0  ;;  %v9581_v13 = vsel %vm2176_vm8, %v3060_v56, %v2900_v6 }
 0x2b5   : > { %11621 = vst [vmem:[#allocation68_spill] sm:$0xff] %v9577_v40  ;;  %v9583_v54 = vpop.f32.mrb[14].mxu0  ;;  %v2898_v63 = vpop.permute.xlu0 %2897 }
 0x2b6   : > { %11622 = vst [vmem:[#allocation39_spill] sm:$0xff] %v9583_v54  ;;  %v9586_v11 = vsel %vm2176_vm8, %v3058_v12, %v2898_v63  ;;  %v9588_v36 = vpop.f32.mrb[15].mxu0 }
 0x2b7   : > { %11623 = vst [vmem:[#allocation92_spill] sm:$0xff] %v9588_v36  ;;  %6644 = vmatprep.mubr.msk.bf16.mxu1 %vm2257_vm9, %v9586_v11  ;;  %v2770_v44 = vpop.permute.xlu1 %2769 }
 0x2b8   : > { %6645 = vmatmul.mubr.msk.bf16.gmra.mrb[56].mxu1 %vm2257_vm9, %v9581_v13  ;;  %v3000_v37 = vsel %vm2014_vm6, %v11590_v38, %v2770_v44 }
 0x2b9   : > { %v2768_v43 = vpop.permute.xlu0 %2767 }
 0x2ba   : > { %v2997_v12 = vsel %vm2014_vm6, %v11584_v5, %v2768_v43 }
 0x2bb   : > { %v9594_v39 = vpop.f32.mrb[16].mxu0  ;;  %v2834_v8 = vpop.permute.xlu1 %2833 }
 0x2bc   : > { %11624 = vst [vmem:[#allocation71_spill] sm:$0xff] %v9594_v39  ;;  %v9596_v9 = vpop.f32.mrb[17].mxu0  ;;  %v3064_v63 = vsel %vm2111_vm7, %v3000_v37, %v2834_v8 }
 0x2bd   : > { %11625 = vst [vmem:[#allocation17_spill] sm:$0xff] %v9596_v9  ;;  %v9598_v19 = vpop.f32.mrb[18].mxu0  ;;  %v2832_v49 = vpop.permute.xlu0 %2831 }
 0x2be   : > { %11626 = vst [vmem:[#allocation24_spill] sm:$0xff] %v9598_v19  ;;  %v9600_v6 = vpop.f32.mrb[19].mxu0  ;;  %v3062_v54 = vsel %vm2111_vm7, %v2997_v12, %v2832_v49  ;;  %v11633_v12 = vld [vmem:[#allocation57_spill] sm:$0xff] }
 0x2bf   : > { %11627 = vst [vmem:[#allocation70_spill] sm:$0xff] %v9600_v6  ;;  %v2904_v56 = vpop.permute.xlu1 %2903 }
 0x2c0   : > { %v9609_v39 = vsel %vm2176_vm8, %v3064_v63, %v2904_v56 }
 0x2c1   : > { %v2902_v9 = vpop.permute.xlu0 %2901 }
 0x2c2   : > { %v9612_v19 = vsel %vm2176_vm8, %v3062_v54, %v2902_v9  ;;  %v11632_v54 = vld [vmem:[#allocation66_spill] sm:$0xff] }
 0x2c3   : > { %v9614_v1 = vpop.f32.mrb[20].mxu0  ;;  %6648 = vmatprep.mubr.msk.bf16.mxu1 %vm2257_vm9, %v9612_v19  ;;  %v3510_v38 = vpop.permute.xlu1 %3509 }
 0x2c4   : > { %11628 = vst [vmem:[#allocation36_spill] sm:$0xff] %v9614_v1  ;;  %v9618_v44 = vpop.f32.mrb[21].mxu0  ;;  %6649 = vmatmul.mubr.msk.bf16.gmra.mrb[60].mxu1 %vm2257_vm9, %v9609_v39 }
 0x2c5   : > { %11629 = vst [vmem:[#allocation27_spill] sm:$0xff] %v9618_v44  ;;  %v9622_v5 = vpop.f32.mrb[22].mxu0  ;;  %6724 = vmatprep.mubr.msk.bf16.mxu1 %vm2257_vm9, %v9036_v3  ;;  %v3500_v43 = vpop.permute.xlu0 %3499 }
 0x2c6   : > { %11630 = vst [vmem:[#allocation74_spill] sm:$0xff] %v9622_v5  ;;  %v9626_v8 = vpop.f32.mrb[23].mxu0  ;;  %v3525_v9 = vsel %vm2014_vm6, %v11632_v54, %v3500_v43  ;;  %v11638_v43 = vld [vmem:[#allocation80_spill] sm:$0xff] }
 0x2c7   : > { %11631 = vst [vmem:[#allocation94_spill] sm:$0xff] %v9626_v8  ;;  %v3520_v49 = vpop.permute.xlu1 %3519  ;;  %v3530_v37 = vsel %vm2111_vm7, %v3525_v9, %v3510_v38 }
 0x2c8   : > { %v3534_v56 = vsel %vm2176_vm8, %v3530_v37, %v3520_v49  ;;  %v11643_v49 = vld [vmem:[#allocation56_spill] sm:$0xff] }
 0x2c9   : > { %6685 = vmatmul.mubr.msk.bf16.gmra.mrb[92].mxu0 %vm2257_vm9, %v3534_v56 }
 0x2ca   : > { %6688 = vmatprep.mubr.msk.bf16.mxu0 %vm2257_vm9, %v11633_v12 }
 0x2cb   : > { %v9635_v63 = vpop.f32.mrb[24].mxu0 }
 0x2cc   : > { %11634 = vst [vmem:[#allocation72_spill] sm:$0xff] %v9635_v63  ;;  %v9637_v5 = vpop.f32.mrb[25].mxu0  ;;  %6725 = vmatmul.mubr.msk.bf16.vlgmr.msra.gmra.mrb[64].mxu1 %vm2257_vm9, %v9048_v21 }
 0x2cd   : > { %11635 = vst [vmem:[#allocation41_spill] sm:$0xff] %v9637_v5  ;;  %v9641_v3 = vpop.f32.mrb[26].mxu0  ;;  %6728 = vmatprep.mubr.msk.bf16.mxu1 %vm2257_vm9, %v9086_v10 }
 0x2ce   : > { %11636 = vst [vmem:[#allocation38_spill] sm:$0xff] %v9641_v3  ;;  %v9645_v38 = vpop.f32.mrb[27].mxu0  ;;  %v11658_v3 = vld [vmem:[#allocation28_spill] sm:$0xff] }
 0x2cf   : > { %11637 = vst [vmem:[#allocation93_spill] sm:$0xff] %v9645_v38 }
 0x2d1   : > { %6689 = vmatmul.mubr.msk.bf16.gmra.mrb[96].mxu0 %vm2257_vm9, %v11638_v43 }
 0x2d2   : > { %6692 = vmatprep.mubr.msk.bf16.mxu0 %vm2257_vm9, %v8990_v26 }
 0x2d3   : > { %v9651_v54 = vpop.f32.mrb[28].mxu0 }
 0x2d4   : > { %11639 = vst [vmem:[#allocation76_spill] sm:$0xff] %v9651_v54  ;;  %v9653_v9 = vpop.f32.mrb[29].mxu0  ;;  %6729 = vmatmul.mubr.msk.bf16.gmra.mrb[68].mxu1 %vm2257_vm9, %v9139_v45 }
 0x2d5   : > { %11640 = vst [vmem:[#allocation97_spill] sm:$0xff] %v9653_v9  ;;  %v9657_v21 = vpop.f32.mrb[30].mxu0  ;;  %6732 = vmatprep.mubr.msk.bf16.mxu1 %vm2257_vm9, %v9133_v34 }
 0x2d6   : > { %11641 = vst [vmem:[#allocation75_spill] sm:$0xff] %v9657_v21  ;;  %v9661_v10 = vpop.f32.mrb[31].mxu0 }
 0x2d7   : > { %11642 = vst [vmem:[#allocation95_spill] sm:$0xff] %v9661_v10 }
 0x2d9   : > { %6693 = vmatmul.mubr.msk.bf16.gmra.mrb[100].mxu0 %vm2257_vm9, %v11643_v49  ;;  %v11654_v49 = vld [vmem:[#allocation90_spill] sm:$0xff] }
 0x2da   : > { %6696 = vmatprep.mubr.msk.bf16.mxu0 %vm2257_vm9, %v9042_v28 }
 0x2db   : > { %v9667_v26 = vpop.f32.mrb[32].mxu0 }
 0x2dc   : > { %11644 = vst [vmem:[#allocation79_spill] sm:$0xff] %v9667_v26  ;;  %v9669_v37 = vpop.f32.mrb[33].mxu0  ;;  %6733 = vmatmul.mubr.msk.bf16.gmra.mrb[72].mxu1 %vm2257_vm9, %v9217_v42 }
 0x2dd   : > { %11645 = vst [vmem:[#allocation99_spill] sm:$0xff] %v9669_v37  ;;  %v9673_v45 = vpop.f32.mrb[34].mxu0  ;;  %6736 = vmatprep.mubr.msk.bf16.mxu1 %vm2257_vm9, %v9209_v4 }
 0x2de   : > { %11646 = vst [vmem:[#allocation77_spill] sm:$0xff] %v9673_v45  ;;  %v9677_v34 = vpop.f32.mrb[35].mxu0 }
 0x2df   : > { %11647 = vst [vmem:[#allocation21_spill] sm:$0xff] %v9677_v34 }
 0x2e1   : > { %6697 = vmatmul.mubr.msk.bf16.gmra.mrb[104].mxu0 %vm2257_vm9, %v9052_v2 }
 0x2e2   : > { %6700 = vmatprep.mubr.msk.bf16.mxu0 %vm2257_vm9, %v9094_v14 }
 0x2e3   : > { %v9683_v28 = vpop.f32.mrb[36].mxu0 }
 0x2e4   : > { %11648 = vst [vmem:[#allocation43_spill] sm:$0xff] %v9683_v28  ;;  %v9685_v56 = vpop.f32.mrb[37].mxu0  ;;  %6737 = vmatmul.mubr.msk.bf16.gmra.mrb[76].mxu1 %vm2257_vm9, %v9292_v62 }
 0x2e5   : > { %11649 = vst [vmem:[#allocation55_spill] sm:$0xff] %v9685_v56  ;;  %v9689_v42 = vpop.f32.mrb[38].mxu0  ;;  %6740 = vmatprep.mubr.msk.bf16.mxu1 %vm2257_vm9, %v9285_v29 }
 0x2e6   : > { %11650 = vst [vmem:[#allocation105_spill] sm:$0xff] %v9689_v42  ;;  %v9693_v4 = vpop.f32.mrb[39].mxu0 }
 0x2e7   : > { %11651 = vst [vmem:[#allocation40_spill] sm:$0xff] %v9693_v4 }
 0x2e9   : > { %6701 = vmatmul.mubr.msk.bf16.gmra.mrb[108].mxu0 %vm2257_vm9, %v9102_v25  ;;  %v11656_v25 = vld [vmem:[#allocation63_spill] sm:$0xff] }
 0x2ea   : > { %v6590_v2 = vpop.f32.mrb[0].mxu1  ;;  %6704 = vmatprep.mubr.msk.bf16.mxu0 %vm2257_vm9, %v9149_v35  ;;  %v3848_v35 = vpop.permute.xlu0 %3847 }
 0x2eb   : > { %v9699_v14 = vpop.f32.mrb[40].mxu0  ;;  %v3244_v12 = vpop.f32.mrb[1].mxu1  ;;  %v3867_v44 = vsel %vm2014_vm6, %v11592_v48, %v3848_v35  ;;  %v11670_v48 = vld [vmem:[#allocation87_spill] sm:$0xff] }
 0x2ec   : > { %11652 = vst [vmem:[#allocation98_spill] sm:$0xff] %v9699_v14  ;;  %v9701_v43 = vpop.f32.mrb[41].mxu0  ;;  %v6591_v62 = vpop.f32.mrb[2].mxu1  ;;  %4253 = vrot.lane.b32.xlu0 %v3244_v12, %s7198_s5  ;;  %6741 = vmatmul.mubr.msk.bf16.gmra.mrb[80].mxu1 %vm2257_vm9, %v11654_v49  ;;  %v11659_v49 = vld [vmem:[#allocation78_spill] sm:$0xff] }
 0x2ed   : > { %11653 = vst [vmem:[#allocation83_spill] sm:$0xff] %v9701_v43  ;;  %v9706_v29 = vpop.f32.mrb[42].mxu0  ;;  %v3247_v10 = vpop.f32.mrb[3].mxu1  ;;  %6744 = vmatprep.mubr.msk.bf16.mxu1 %vm2257_vm9, %v11656_v25 }
 0x2ee   : > { %11655 = vst [vmem:[#allocation101_spill] sm:$0xff] %v9706_v29  ;;  %v9710_v9 = vpop.f32.mrb[43].mxu0  ;;  %4255 = vrot.lane.b32.xlu1 %v3247_v10, %s7198_s5 }
 0x2ef   : > { %11657 = vst [vmem:[#allocation81_spill] sm:$0xff] %v9710_v9 }
 0x2f0   : > { %4257 = vrot.lane.b32.xlu0 %v6590_v2, %s7198_s5 }
 0x2f1   : > { %6705 = vmatmul.mubr.msk.bf16.gmra.mrb[112].mxu0 %vm2257_vm9, %v11658_v3 }
 0x2f2   : > { %4259 = vrot.lane.b32.xlu1 %v6591_v62, %s7198_s5  ;;  %v6594_v12 = vpop.f32.mrb[4].mxu1  ;;  %6708 = vmatprep.mubr.msk.bf16.mxu0 %vm2257_vm9, %v11659_v49  ;;  %v3852_v62 = vpop.permute.xlu0 %3851  ;;  %v11664_v49 = vld [vmem:[#allocation59_spill] sm:$0xff] }
 0x2f3   : > { %v9719_v63 = vpop.f32.mrb[44].mxu0  ;;  %v3260_v38 = vpop.f32.mrb[5].mxu1  ;;  %v3872_v36 = vsel %vm2111_vm7, %v3867_v44, %v3852_v62 }
 0x2f4   : > { %11660 = vst [vmem:[#allocation54_spill] sm:$0xff] %v9719_v63  ;;  %v9721_v25 = vpop.f32.mrb[45].mxu0  ;;  %v6595_v5 = vpop.f32.mrb[6].mxu1  ;;  %4261 = vrot.lane.b32.xlu0 %v3260_v38, %s7198_s5  ;;  %6745 = vmatmul.mubr.msk.bf16.gmra.mrb[84].mxu1 %vm2257_vm9, %v9387_v22  ;;  %v11665_v38 = vld [vmem:[#allocation85_spill] sm:$0xff] }
 0x2f5   : > { %11661 = vst [vmem:[#allocation107_spill] sm:$0xff] %v9721_v25  ;;  %v9726_v10 = vpop.f32.mrb[46].mxu0  ;;  %v3263_v3 = vpop.f32.mrb[7].mxu1  ;;  %6748 = vmatprep.mubr.msk.bf16.mxu1 %vm2257_vm9, %v9383_v17 }
 0x2f6   : > { %11662 = vst [vmem:[#allocation22_spill] sm:$0xff] %v9726_v10  ;;  %v9730_v2 = vpop.f32.mrb[47].mxu0  ;;  %4263 = vrot.lane.b32.xlu1 %v3263_v3, %s7198_s5  ;;  %v3862_v22 = vpop.permute.xlu1 %3861 }
 0x2f7   : > { %11663 = vst [vmem:[#allocation23_spill] sm:$0xff] %v9730_v2  ;;  %v3502_v1 = vpop.permute.xlu0 %3501 }
 0x2f8   : > { %4265 = vrot.lane.b32.xlu0 %v6594_v12, %s7198_s5  ;;  %v3528_v35 = vsel %vm2014_vm6, %v11670_v48, %v3502_v1 }
 0x2f9   : > { %6709 = vmatmul.mubr.msk.bf16.gmra.mrb[116].mxu0 %vm2257_vm9, %v11664_v49 }
 0x2fa   : > { %4267 = vrot.lane.b32.xlu1 %v6595_v5, %s7198_s5  ;;  %6712 = vmatprep.mubr.msk.bf16.mxu0 %vm2257_vm9, %v11665_v38  ;;  %v3512_v40 = vpop.permute.xlu1 %3511 }
 0x2fb   : > { %v9739_v8 = vpop.f32.mrb[48].mxu0  ;;  %v6598_v17 = vpop.f32.mrb[8].mxu1  ;;  %v3532_v44 = vsel %vm2111_vm7, %v3528_v35, %v3512_v40 }
 0x2fc   : > { %11666 = vst [vmem:[#allocation45_spill] sm:$0xff] %v9739_v8  ;;  %v9743_v3 = vpop.f32.mrb[49].mxu0  ;;  %v3276_v6 = vpop.f32.mrb[9].mxu1  ;;  %6749 = vmatmul.mubr.msk.bf16.gmra.mrb[88].mxu1 %vm2257_vm9, %v9426_v57  ;;  %v3876_v57 = vsel %vm2176_vm8, %v3872_v36, %v3862_v22 }
 0x2fd   : > { %11667 = vst [vmem:[#allocation42_spill] sm:$0xff] %v9743_v3  ;;  %v9747_v12 = vpop.f32.mrb[50].mxu0  ;;  %v6599_v5 = vpop.f32.mrb[10].mxu1  ;;  %4269 = vrot.lane.b32.xlu0 %v3276_v6, %s7198_s5  ;;  %6752 = vmatprep.mubr.msk.bf16.mxu1 %vm2257_vm9, %v9419_v59  ;;  %v11672_v6 = vld [vmem:[#allocation82_spill] sm:$0xff] }
 0x2fe   : > { %11668 = vst [vmem:[#allocation100_spill] sm:$0xff] %v9747_v12  ;;  %v9752_v49 = vpop.f32.mrb[51].mxu0  ;;  %v3279_v38 = vpop.f32.mrb[11].mxu1 }
 0x2ff   : > { %11669 = vst [vmem:[#allocation86_spill] sm:$0xff] %v9752_v49  ;;  %4271 = vrot.lane.b32.xlu1 %v3279_v38, %s7198_s5  ;;  %v3522_v62 = vpop.permute.xlu0 %3521  ;;  %v3850_v60 = vpop.permute.xlu1 %3849 }
 0x300   : > { %v3536_v36 = vsel %vm2176_vm8, %v3532_v44, %v3522_v62 }
 0x301   : > { %4273 = vrot.lane.b32.xlu0 %v6598_v17, %s7198_s5  ;;  %6713 = vmatmul.mubr.msk.bf16.gmra.mrb[120].mxu0 %vm2257_vm9, %v11671_v58 }
 0x302   : > { %6716 = vmatprep.mubr.msk.bf16.mxu0 %vm2257_vm9, %v11672_v6 }
 0x303   : > { %v9764_v59 = vpop.f32.mrb[52].mxu0  ;;  %4275 = vrot.lane.b32.xlu1 %v6599_v5, %s7198_s5 }
 0x304   : > { %11673 = vst [vmem:[#allocation103_spill] sm:$0xff] %v9764_v59  ;;  %v9768_v38 = vpop.f32.mrb[53].mxu0  ;;  %6753 = vmatmul.mubr.msk.bf16.gmra.mrb[92].mxu1 %vm2257_vm9, %v3876_v57 }
 0x305   : > { %11674 = vst [vmem:[#allocation84_spill] sm:$0xff] %v9768_v38  ;;  %v9771_v1 = vpop.f32.mrb[54].mxu0  ;;  %6756 = vmatprep.mubr.msk.bf16.mxu1 %vm2257_vm9, %v9452_v47 }
 0x306   : > { %11675 = vst [vmem:[#allocation106_spill] sm:$0xff] %v9771_v1  ;;  %v9775_v58 = vpop.f32.mrb[55].mxu0 }
 0x307   : > { %11676 = vst [vmem:[#allocation102_spill] sm:$0xff] %v9775_v58  ;;  %v6602_v22 = vpop.f32.mrb[12].mxu1 }
 0x308   : > { %v3292_v17 = vpop.f32.mrb[13].mxu1 }
 0x309   : > { %4277 = vrot.lane.b32.xlu0 %v3292_v17, %s7198_s5  ;;  %v6603_v5 = vpop.f32.mrb[14].mxu1  ;;  %6717 = vmatmul.mubr.msk.bf16.gmra.mrb[124].mxu0 %vm2257_vm9, %v3536_v36 }
 0x30a   : > { %v3295_v40 = vpop.f32.mrb[15].mxu1 }
 0x30b   : > { %v9780_v48 = vpop.f32.mrb[56].mxu0  ;;  %4279 = vrot.lane.b32.xlu1 %v3295_v40, %s7198_s5 }
 0x30c   : > { %11677 = vst [vmem:[#allocation89_spill] sm:$0xff] %v9780_v48  ;;  %v9783_v35 = vpop.f32.mrb[57].mxu0  ;;  %6757 = vmatmul.mubr.msk.bf16.gmra.mrb[96].mxu1 %vm2257_vm9, %v9476_v23 }
 0x30d   : > { %11678 = vst [vmem:[#allocation62_spill] sm:$0xff] %v9783_v35  ;;  %v9787_v47 = vpop.f32.mrb[58].mxu0  ;;  %4281 = vrot.lane.b32.xlu0 %v6602_v22, %s7198_s5  ;;  %6760 = vmatprep.mubr.msk.bf16.mxu1 %vm2257_vm9, %v9471_v41 }
 0x30e   : > { %11679 = vst [vmem:[#allocation25_spill] sm:$0xff] %v9787_v47  ;;  %v9792_v57 = vpop.f32.mrb[59].mxu0 }
 0x30f   : > { %11680 = vst [vmem:[#allocation48_spill] sm:$0xff] %v9792_v57  ;;  %4283 = vrot.lane.b32.xlu1 %v6603_v5, %s7198_s5 }
 0x313   : > { %v9795_v6 = vpop.f32.mrb[60].mxu0  ;;  %v6606_v44 = vpop.f32.mrb[16].mxu1 }
 0x314   : > { %11681 = vst [vmem:[#allocation44_spill] sm:$0xff] %v9795_v6  ;;  %v9797_v62 = vpop.f32.mrb[61].mxu0  ;;  %v3308_v36 = vpop.f32.mrb[17].mxu1  ;;  %6761 = vmatmul.mubr.msk.bf16.gmra.mrb[100].mxu1 %vm2257_vm9, %v9492_v15 }
 0x315   : > { %11682 = vst [vmem:[#allocation104_spill] sm:$0xff] %v9797_v62  ;;  %v9801_v23 = vpop.f32.mrb[62].mxu0  ;;  %4285 = vrot.lane.b32.xlu0 %v3308_v36, %s7198_s5  ;;  %v6607_v22 = vpop.f32.mrb[18].mxu1  ;;  %6764 = vmatprep.mubr.msk.bf16.mxu1 %vm2257_vm9, %v9489_v16 }
 0x316   : > { %11683 = vst [vmem:[#allocation46_spill] sm:$0xff] %v9801_v23  ;;  %v9806_v41 = vpop.f32.mrb[63].mxu0  ;;  %v3311_v17 = vpop.f32.mrb[19].mxu1 }
 0x317   : > { %11684 = vst [vmem:[#allocation15_spill] sm:$0xff] %v9806_v41  ;;  %4287 = vrot.lane.b32.xlu1 %v3311_v17, %s7198_s5 }
 0x319   : > { %4289 = vrot.lane.b32.xlu0 %v6606_v44, %s7198_s5 }
 0x31b   : > { %v9810_v5 = vpop.f32.mrb[64].mxu0  ;;  %4291 = vrot.lane.b32.xlu1 %v6607_v22, %s7198_s5 }
 0x31c   : > { %v9813_v15 = vpop.f32.mrb[65].mxu0  ;;  %6765 = vmatmul.mubr.msk.bf16.gmra.mrb[104].mxu1 %vm2257_vm9, %v9508_v27 }
 0x31d   : > { %v9817_v40 = vpop.f32.mrb[66].mxu0  ;;  %6768 = vmatprep.mubr.msk.bf16.mxu1 %vm2257_vm9, %v9505_v18 }
 0x31e   : > { %v9821_v16 = vpop.f32.mrb[67].mxu0 }
 0x31f   : > { %v6610_v36 = vpop.f32.mrb[20].mxu1 }
 0x320   : > { %v3324_v17 = vpop.f32.mrb[21].mxu1 }
 0x321   : > { %4293 = vrot.lane.b32.xlu0 %v3324_v17, %s7198_s5  ;;  %v6611_v44 = vpop.f32.mrb[22].mxu1 }
 0x322   : > { %v3327_v53 = vpop.f32.mrb[23].mxu1 }
 0x323   : > { %v9824_v31 = vpop.f32.mrb[68].mxu0  ;;  %4295 = vrot.lane.b32.xlu1 %v3327_v53, %s7198_s5 }
 0x324   : > { %v9827_v22 = vpop.f32.mrb[69].mxu0  ;;  %6769 = vmatmul.mubr.msk.bf16.gmra.mrb[108].mxu1 %vm2257_vm9, %v9530_v52 }
 0x325   : > { %v9831_v27 = vpop.f32.mrb[70].mxu0  ;;  %4297 = vrot.lane.b32.xlu0 %v6610_v36, %s7198_s5  ;;  %6772 = vmatprep.mubr.msk.bf16.mxu1 %vm2257_vm9, %v9525_v32 }
 0x326   : > { %v9836_v18 = vpop.f32.mrb[71].mxu0 }
 0x327   : > { %4299 = vrot.lane.b32.xlu1 %v6611_v44, %s7198_s5 }
 0x32b   : > { %v6614_v17 = vpop.f32.mrb[24].mxu1  ;;  %v9839_v30 = vpop.f32.mrb[72].mxu0 }
 0x32c   : > { %v3340_v53 = vpop.f32.mrb[25].mxu1  ;;  %v9841_v20 = vpop.f32.mrb[73].mxu0  ;;  %6773 = vmatmul.mubr.msk.bf16.gmra.mrb[112].mxu1 %vm2257_vm9, %v9556_v7 }
 0x32d   : > { %v9845_v52 = vpop.f32.mrb[74].mxu0  ;;  %4301 = vrot.lane.b32.xlu0 %v3340_v53, %s7198_s5  ;;  %v6615_v36 = vpop.f32.mrb[26].mxu1  ;;  %6776 = vmatprep.mubr.msk.bf16.mxu1 %vm2257_vm9, %v9553_v33 }
 0x32e   : > { %v3343_v32 = vpop.f32.mrb[27].mxu1  ;;  %v9850_v55 = vpop.f32.mrb[75].mxu0 }
 0x32f   : > { %4303 = vrot.lane.b32.xlu1 %v3343_v32, %s7198_s5 }
 0x331   : > { %4305 = vrot.lane.b32.xlu0 %v6614_v17, %s7198_s5 }
 0x333   : > { %v9854_v44 = vpop.f32.mrb[76].mxu0  ;;  %4307 = vrot.lane.b32.xlu1 %v6615_v36, %s7198_s5 }
 0x334   : > { %v9857_v7 = vpop.f32.mrb[77].mxu0  ;;  %6777 = vmatmul.mubr.msk.bf16.gmra.mrb[116].mxu1 %vm2257_vm9, %v9586_v11  ;;  %v3870_v11 = vsel %vm2014_vm6, %v11588_v61, %v3850_v60  ;;  %v3864_v61 = vpop.permute.xlu1 %3863 }
 0x335   : > { %v9861_v53 = vpop.f32.mrb[78].mxu0  ;;  %6780 = vmatprep.mubr.msk.bf16.mxu1 %vm2257_vm9, %v9581_v13 }
 0x336   : > { %v9865_v33 = vpop.f32.mrb[79].mxu0 }
 0x337   : > { %v6618_v24 = vpop.f32.mrb[28].mxu1 }
 0x338   : > { %v3356_v32 = vpop.f32.mrb[29].mxu1 }
 0x339   : > { %4309 = vrot.lane.b32.xlu0 %v3356_v32, %s7198_s5  ;;  %v6619_v17 = vpop.f32.mrb[30].mxu1  ;;  %v3854_v32 = vpop.permute.xlu0 %3853 }
 0x33a   : > { %v3359_v46 = vpop.f32.mrb[31].mxu1 }
 0x33b   : > { %v9868_v36 = vpop.f32.mrb[80].mxu0  ;;  %4311 = vrot.lane.b32.xlu1 %v3359_v46, %s7198_s5  ;;  %v3874_v46 = vsel %vm2111_vm7, %v3870_v11, %v3854_v32 }
 0x33c   : > { %v9873_v0 = vpop.f32.mrb[81].mxu0  ;;  %6781 = vmatmul.mubr.msk.bf16.gmra.mrb[120].mxu1 %vm2257_vm9, %v9612_v19  ;;  %v3878_v60 = vsel %vm2176_vm8, %v3874_v46, %v3864_v61 }
 0x33d   : > { %v9877_v13 = vpop.f32.mrb[82].mxu0  ;;  %4313 = vrot.lane.b32.xlu0 %v6618_v24, %s7198_s5  ;;  %6784 = vmatprep.mubr.msk.bf16.mxu1 %vm2257_vm9, %v9609_v39 }
 0x33e   : > { %v9882_v50 = vpop.f32.mrb[83].mxu0 }
 0x33f   : > { %4315 = vrot.lane.b32.xlu1 %v6619_v17, %s7198_s5 }
 0x343   : > { %v6622_v51 = vpop.f32.mrb[32].mxu1  ;;  %v9887_v23 = vpop.f32.mrb[84].mxu0 }
 0x344   : > { %v3372_v19 = vpop.f32.mrb[33].mxu1  ;;  %v9889_v6 = vpop.f32.mrb[85].mxu0  ;;  %6785 = vmatmul.mubr.msk.bf16.gmra.mrb[124].mxu1 %vm2257_vm9, %v3878_v60 }
 0x345   : > { %v9892_v24 = vpop.f32.mrb[86].mxu0  ;;  %4317 = vrot.lane.b32.xlu0 %v3372_v19, %s7198_s5  ;;  %v6623_v39 = vpop.f32.mrb[34].mxu1 }
 0x346   : > { %v3375_v41 = vpop.f32.mrb[35].mxu1  ;;  %v9895_v11 = vpop.f32.mrb[87].mxu0 }
 0x347   : > { %4319 = vrot.lane.b32.xlu1 %v3375_v41, %s7198_s5 }
 0x349   : > { %4321 = vrot.lane.b32.xlu0 %v6622_v51, %s7198_s5 }
 0x34b   : > { %v9899_v17 = vpop.f32.mrb[88].mxu0  ;;  %4323 = vrot.lane.b32.xlu1 %v6623_v39, %s7198_s5 }
 0x34c   : > { %v9902_v32 = vpop.f32.mrb[89].mxu0 }
 0x34d   : > { %v9904_v46 = vpop.f32.mrb[90].mxu0 }
 0x34e   : > { %v9906_v61 = vpop.f32.mrb[91].mxu0 }
 0x34f   : > { %v6626_v60 = vpop.f32.mrb[36].mxu1 }
 0x350   : > { %v3388_v19 = vpop.f32.mrb[37].mxu1 }
 0x351   : > { %4325 = vrot.lane.b32.xlu0 %v3388_v19, %s7198_s5  ;;  %v6627_v62 = vpop.f32.mrb[38].mxu1 }
 0x352   : > { %v3391_v47 = vpop.f32.mrb[39].mxu1 }
 0x353   : > { %4327 = vrot.lane.b32.xlu1 %v3391_v47, %s7198_s5 }
 0x355   : > { %4329 = vrot.lane.b32.xlu0 %v6626_v60, %s7198_s5 }
 0x357   : > { %4331 = vrot.lane.b32.xlu1 %v6627_v62, %s7198_s5 }
 0x35b   : > { %v6630_v51 = vpop.f32.mrb[40].mxu1 }
 0x35c   : > { %v3404_v41 = vpop.f32.mrb[41].mxu1 }
 0x35d   : > { %4333 = vrot.lane.b32.xlu0 %v3404_v41, %s7198_s5  ;;  %v6631_v39 = vpop.f32.mrb[42].mxu1 }
 0x35e   : > { %v3407_v48 = vpop.f32.mrb[43].mxu1  ;;  %v9919_v62 = vpop.permute.xlu0 %4253 }
 0x35f   : > { %4335 = vrot.lane.b32.xlu1 %v3407_v48, %s7198_s5  ;;  %11685 = vst [vmem:[#allocation26_spill] sm:$0xff] %v9919_v62 }
 0x360   : > { %v9922_v41 = vpop.permute.xlu1 %4255 }
 0x361   : > { %4337 = vrot.lane.b32.xlu0 %v6630_v51, %s7198_s5  ;;  %11686 = vst [vmem:[#allocation29_spill] sm:$0xff] %v9922_v41 }
 0x362   : > { %v9924_v35 = vpop.permute.xlu0 %4257 }
 0x363   : > { %4339 = vrot.lane.b32.xlu1 %v6631_v39, %s7198_s5  ;;  %11687 = vst [vmem:[#allocation96_spill] sm:$0xff] %v9924_v35 }
 0x367   : > { %v6634_v19 = vpop.f32.mrb[44].mxu1 }
 0x368   : > { %v3420_v57 = vpop.f32.mrb[45].mxu1 }
 0x369   : > { %4341 = vrot.lane.b32.xlu0 %v3420_v57, %s7198_s5  ;;  %v6635_v47 = vpop.f32.mrb[46].mxu1  ;;  %v9927_v57 = vpop.permute.xlu1 %4259 }
 0x36a   : > { %v3423_v60 = vpop.f32.mrb[47].mxu1  ;;  %11688 = vst [vmem:[#allocation61_spill] sm:$0xff] %v9927_v57 }
 0x36b   : > { %4343 = vrot.lane.b32.xlu1 %v3423_v60, %s7198_s5 }
 0x36d   : > { %4345 = vrot.lane.b32.xlu0 %v6634_v19, %s7198_s5  ;;  %v9931_v19 = vpop.permute.xlu0 %4261 }
 0x36e   : > { %11689 = vst [vmem:[#allocation49_spill] sm:$0xff] %v9931_v19 }
 0x36f   : > { %4347 = vrot.lane.b32.xlu1 %v6635_v47, %s7198_s5  ;;  %v9934_v47 = vpop.permute.xlu1 %4263 }
 0x370   : > { %11690 = vst [vmem:[#allocation30_spill] sm:$0xff] %v9934_v47 }
 0x371   : > { %v9936_v62 = vpop.permute.xlu0 %4265 }
 0x372   : > { %11691 = vst [vmem:[#allocation31_spill] sm:$0xff] %v9936_v62 }
 0x373   : > { %v6638_v48 = vpop.f32.mrb[48].mxu1  ;;  %v9939_v35 = vpop.permute.xlu1 %4267 }
 0x374   : > { %v3436_v51 = vpop.f32.mrb[49].mxu1  ;;  %11692 = vst [vmem:[#allocation47_spill] sm:$0xff] %v9939_v35 }
 0x375   : > { %4349 = vrot.lane.b32.xlu0 %v3436_v51, %s7198_s5  ;;  %v6639_v39 = vpop.f32.mrb[50].mxu1 }
 0x376   : > { %v3439_v1 = vpop.f32.mrb[51].mxu1 }
 0x377   : > { %4351 = vrot.lane.b32.xlu1 %v3439_v1, %s7198_s5  ;;  %v9943_v1 = vpop.permute.xlu0 %4269 }
 0x378   : > { %11693 = vst [vmem:[#allocation51_spill] sm:$0xff] %v9943_v1 }
 0x379   : > { %4353 = vrot.lane.b32.xlu0 %v6638_v48, %s7198_s5  ;;  %v9946_v48 = vpop.permute.xlu1 %4271 }
 0x37a   : > { %11694 = vst [vmem:[#allocation50_spill] sm:$0xff] %v9946_v48 }
 0x37b   : > { %4355 = vrot.lane.b32.xlu1 %v6639_v39, %s7198_s5  ;;  %v9948_v19 = vpop.permute.xlu0 %4273 }
 0x37c   : > { %11695 = vst [vmem:[#allocation33_spill] sm:$0xff] %v9948_v19 }
 0x37d   : > { %v9951_v62 = vpop.permute.xlu1 %4275 }
 0x37e   : > { %11696 = vst [vmem:[#allocation53_spill] sm:$0xff] %v9951_v62 }
 0x37f   : > { %v6642_v60 = vpop.f32.mrb[52].mxu1 }
 0x380   : > { %v3452_v41 = vpop.f32.mrb[53].mxu1 }
 0x381   : > { %4357 = vrot.lane.b32.xlu0 %v3452_v41, %s7198_s5  ;;  %v6643_v51 = vpop.f32.mrb[54].mxu1 }
 0x382   : > { %v3455_v57 = vpop.f32.mrb[55].mxu1 }
 0x383   : > { %4359 = vrot.lane.b32.xlu1 %v3455_v57, %s7198_s5  ;;  %v9954_v57 = vpop.permute.xlu0 %4277 }
 0x384   : > { %11697 = vst [vmem:[#allocation35_spill] sm:$0xff] %v9954_v57 }
 0x385   : > { %4361 = vrot.lane.b32.xlu0 %v6642_v60, %s7198_s5  ;;  %v9957_v60 = vpop.permute.xlu1 %4279 }
 0x386   : > { %11698 = vst [vmem:[#allocation52_spill] sm:$0xff] %v9957_v60 }
 0x387   : > { %4363 = vrot.lane.b32.xlu1 %v6643_v51, %s7198_s5  ;;  %v9960_v51 = vpop.permute.xlu0 %4281 }
 0x388   : > { %11699 = vst [vmem:[#allocation73_spill] sm:$0xff] %v9960_v51 }
 0x389   : > { %v9962_v19 = vpop.permute.xlu1 %4283 }
 0x38a   : > { %11700 = vst [vmem:[#allocation37_spill] sm:$0xff] %v9962_v19 }
 0x38b   : > { %v6646_v39 = vpop.f32.mrb[56].mxu1  ;;  %v9965_v59 = vpop.permute.xlu0 %4285 }
 0x38c   : > { %v3468_v47 = vpop.f32.mrb[57].mxu1  ;;  %11701 = vst [vmem:[#allocation66_spill] sm:$0xff] %v9965_v59 }
 0x38d   : > { %4365 = vrot.lane.b32.xlu0 %v3468_v47, %s7198_s5  ;;  %v6647_v41 = vpop.f32.mrb[58].mxu1 }
 0x38e   : > { %v3471_v35 = vpop.f32.mrb[59].mxu1 }
 0x38f   : > { %4367 = vrot.lane.b32.xlu1 %v3471_v35, %s7198_s5  ;;  %v9968_v35 = vpop.permute.xlu1 %4287  ;;  %v9984_v59 = vpop.permute.xlu0 %4289 }
 0x390   : > { %11702 = vst [vmem:[#allocation57_spill] sm:$0xff] %v9968_v35  ;;  %11703 = vst [vmem:[#allocation80_spill] sm:$0xff] %v9984_v59 }
 0x391   : > { %4369 = vrot.lane.b32.xlu0 %v6646_v39, %s7198_s5 }
 0x393   : > { %4371 = vrot.lane.b32.xlu1 %v6647_v41, %s7198_s5  ;;  %v9998_v57 = vpop.permute.xlu0 %4293 }
 0x394   : > { %11705 = vst [vmem:[#allocation90_spill] sm:$0xff] %v9998_v57 }
 0x397   : > { %v6650_v48 = vpop.f32.mrb[60].mxu1  ;;  %v10022_v12 = vpop.permute.xlu0 %4297 }
 0x398   : > { %v3484_v47 = vpop.f32.mrb[61].mxu1  ;;  %11707 = vst [vmem:[#allocation28_spill] sm:$0xff] %v10022_v12 }
 0x399   : > { %4373 = vrot.lane.b32.xlu0 %v3484_v47, %s7198_s5  ;;  %v6651_v62 = vpop.f32.mrb[62].mxu1 }
 0x39a   : > { %v3487_v1 = vpop.f32.mrb[63].mxu1 }
 0x39b   : > { %4375 = vrot.lane.b32.xlu1 %v3487_v1, %s7198_s5 }
 0x39c   : > { %v9970_v39 = vpop.f32.mrb[92].mxu0 }
 0x39d   : > { %4377 = vrot.lane.b32.xlu0 %v6650_v48, %s7198_s5  ;;  %v9973_v41 = vpop.f32.mrb[93].mxu0  ;;  %v9990_v48 = vpop.permute.xlu1 %4291 }
 0x39e   : > { %v9975_v51 = vpop.f32.mrb[94].mxu0  ;;  %11704 = vst [vmem:[#allocation56_spill] sm:$0xff] %v9990_v48 }
 0x39f   : > { %4379 = vrot.lane.b32.xlu1 %v6651_v62, %s7198_s5  ;;  %v9978_v19 = vpop.f32.mrb[64].mxu1  ;;  %v9982_v60 = vpop.f32.mrb[95].mxu0 }
 0x3a0   : > { %v9980_v47 = vpop.f32.mrb[65].mxu1 }
 0x3a1   : > { %4509 = vrot.lane.b32.xlu0 %v9813_v15, %s7199_s29  ;;  %v9988_v1 = vpop.f32.mrb[66].mxu1  ;;  %v10004_v58 = vpop.permute.xlu1 %4295 }
 0x3a2   : > { %v9992_v35 = vpop.f32.mrb[67].mxu1  ;;  %11706 = vst [vmem:[#allocation63_spill] sm:$0xff] %v10004_v58 }
 0x3a3   : > { %4511 = vrot.lane.b32.xlu1 %v9821_v16, %s7199_s29 }
 0x3a4   : > { %v9996_v62 = vpop.f32.mrb[96].mxu0 }
 0x3a5   : > { %4513 = vrot.lane.b32.xlu0 %v9810_v5, %s7199_s29  ;;  %v10002_v59 = vpop.f32.mrb[97].mxu0 }
 0x3a6   : > { %v10006_v15 = vpop.f32.mrb[98].mxu0 }
 0x3a7   : > { %4515 = vrot.lane.b32.xlu1 %v9817_v40, %s7199_s29  ;;  %v10010_v48 = vpop.f32.mrb[68].mxu1  ;;  %v10012_v38 = vpop.f32.mrb[99].mxu0 }
 0x3a8   : > { %v10014_v16 = vpop.f32.mrb[69].mxu1  ;;  %v10028_v40 = vpop.permute.xlu1 %4299 }
 0x3a9   : > { %4517 = vrot.lane.b32.xlu0 %v9827_v22, %s7199_s29  ;;  %v10018_v57 = vpop.f32.mrb[70].mxu1  ;;  %11708 = vst [vmem:[#allocation78_spill] sm:$0xff] %v10028_v40  ;;  %v10036_v22 = vpop.permute.xlu0 %4301 }
 0x3aa   : > { %v10020_v5 = vpop.f32.mrb[71].mxu1  ;;  %11709 = vst [vmem:[#allocation59_spill] sm:$0xff] %v10036_v22 }
 0x3ab   : > { %4519 = vrot.lane.b32.xlu1 %v9836_v18, %s7199_s29 }
 0x3ac   : > { %v10026_v58 = vpop.f32.mrb[100].mxu0  ;;  %v10046_v10 = vpop.permute.xlu1 %4303 }
 0x3ad   : > { %4521 = vrot.lane.b32.xlu0 %v9824_v31, %s7199_s29  ;;  %v10032_v8 = vpop.f32.mrb[101].mxu0  ;;  %11710 = vst [vmem:[#allocation85_spill] sm:$0xff] %v10046_v10  ;;  %v10062_v63 = vpop.permute.xlu0 %4305 }
 0x3ae   : > { %v10034_v49 = vpop.f32.mrb[102].mxu0  ;;  %11711 = vst [vmem:[#allocation87_spill] sm:$0xff] %v10062_v63 }
 0x3af   : > { %4523 = vrot.lane.b32.xlu1 %v9831_v27, %s7199_s29  ;;  %v10040_v12 = vpop.f32.mrb[72].mxu1  ;;  %v10044_v18 = vpop.f32.mrb[103].mxu0 }
 0x3b0   : > { %v10042_v3 = vpop.f32.mrb[73].mxu1  ;;  %v10066_v2 = vpop.permute.xlu1 %4307 }
 0x3b1   : > { %4525 = vrot.lane.b32.xlu0 %v9841_v20, %s7199_s29  ;;  %v10050_v31 = vpop.f32.mrb[74].mxu1  ;;  %11712 = vst [vmem:[#allocation58_spill] sm:$0xff] %v10066_v2  ;;  %v10080_v29 = vpop.permute.xlu0 %4309 }
 0x3b2   : > { %v10052_v40 = vpop.f32.mrb[75].mxu1  ;;  %11713 = vst [vmem:[#allocation82_spill] sm:$0xff] %v10080_v29 }
 0x3b3   : > { %4527 = vrot.lane.b32.xlu1 %v9850_v55, %s7199_s29 }
 0x3b4   : > { %v10056_v22 = vpop.f32.mrb[104].mxu0  ;;  %v10084_v14 = vpop.permute.xlu1 %4311 }
 0x3b5   : > { %4529 = vrot.lane.b32.xlu0 %v9839_v30, %s7199_s29  ;;  %v10060_v27 = vpop.f32.mrb[105].mxu0  ;;  %11714 = vst [vmem:[#allocation108_spill] sm:$0xff] %v10084_v14  ;;  %v10102_v14 = vpop.permute.xlu0 %4313 }
 0x3b6   : > { %v10064_v10 = vpop.f32.mrb[106].mxu0 }
 0x3b7   : > { %4531 = vrot.lane.b32.xlu1 %v9845_v52, %s7199_s29  ;;  %v10070_v20 = vpop.f32.mrb[76].mxu1  ;;  %v10074_v55 = vpop.f32.mrb[107].mxu0 }
 0x3b8   : > { %v10072_v25 = vpop.f32.mrb[77].mxu1 }
 0x3b9   : > { %4533 = vrot.lane.b32.xlu0 %v9857_v7, %s7199_s29  ;;  %v10078_v30 = vpop.f32.mrb[78].mxu1 }
 0x3ba   : > { %v10082_v63 = vpop.f32.mrb[79].mxu1 }
 0x3bb   : > { %4535 = vrot.lane.b32.xlu1 %v9865_v33, %s7199_s29  ;;  %v10106_v33 = vpop.permute.xlu1 %4315 }
 0x3bc   : > { %v10088_v52 = vpop.f32.mrb[108].mxu0  ;;  %11715 = vst [vmem:[#allocation109_spill] sm:$0xff] %v10106_v33 }
 0x3bd   : > { %4537 = vrot.lane.b32.xlu0 %v9854_v44, %s7199_s29  ;;  %v10092_v2 = vpop.f32.mrb[109].mxu0 }
 0x3be   : > { %v10094_v9 = vpop.f32.mrb[110].mxu0 }
 0x3bf   : > { %4539 = vrot.lane.b32.xlu1 %v9861_v53, %s7199_s29  ;;  %v10098_v7 = vpop.f32.mrb[80].mxu1  ;;  %v10100_v29 = vpop.f32.mrb[111].mxu0 }
 0x3c0   : > { %v10104_v43 = vpop.f32.mrb[81].mxu1  ;;  %v10116_v53 = vpop.permute.xlu0 %4317 }
 0x3c1   : > { %4541 = vrot.lane.b32.xlu0 %v9873_v0, %s7199_s29  ;;  %v10110_v44 = vpop.f32.mrb[82].mxu1  ;;  %11716 = vst [vmem:[#allocation110_spill] sm:$0xff] %v10116_v53  ;;  %v10120_v4 = vpop.permute.xlu1 %4319 }
 0x3c2   : > { %v10112_v42 = vpop.f32.mrb[83].mxu1  ;;  %11717 = vst [vmem:[#allocation111_spill] sm:$0xff] %v10120_v4 }
 0x3c3   : > { %4543 = vrot.lane.b32.xlu1 %v9882_v50, %s7199_s29 }
 0x3c4   : > { %v10118_v28 = vpop.f32.mrb[112].mxu0  ;;  %v10140_v4 = vpop.permute.xlu0 %4321 }
 0x3c5   : > { %4545 = vrot.lane.b32.xlu0 %v9868_v36, %s7199_s29  ;;  %v10124_v56 = vpop.f32.mrb[113].mxu0  ;;  %11719 = vst [vmem:[#allocation113_spill] sm:$0xff] %v10140_v4  ;;  %v10144_v37 = vpop.permute.xlu1 %4323 }
 0x3c6   : > { %v10126_v45 = vpop.f32.mrb[114].mxu0  ;;  %11720 = vst [vmem:[#allocation114_spill] sm:$0xff] %v10144_v37 }
 0x3c7   : > { %4547 = vrot.lane.b32.xlu1 %v9877_v13, %s7199_s29  ;;  %v10130_v0 = vpop.f32.mrb[84].mxu1  ;;  %v10134_v50 = vpop.f32.mrb[115].mxu0 }
 0x3c8   : > { %v10132_v26 = vpop.f32.mrb[85].mxu1  ;;  %v10154_v21 = vpop.permute.xlu0 %4325 }
 0x3c9   : > { %4549 = vrot.lane.b32.xlu0 %v9889_v6, %s7199_s29  ;;  %v10138_v34 = vpop.f32.mrb[86].mxu1  ;;  %11721 = vst [vmem:[#allocation115_spill] sm:$0xff] %v10154_v21  ;;  %v10158_v33 = vpop.permute.xlu1 %4327 }
 0x3ca   : > { %11718 = vst [vmem:[#allocation112_spill] sm:$0xff] %v10138_v34  ;;  %v10142_v36 = vpop.f32.mrb[87].mxu1  ;;  %11722 = vst [vmem:[#allocation116_spill] sm:$0xff] %v10158_v33 }
 0x3cb   : > { %4551 = vrot.lane.b32.xlu1 %v9895_v11, %s7199_s29 }
 0x3cc   : > { %v10148_v13 = vpop.f32.mrb[116].mxu0  ;;  %v10178_v21 = vpop.permute.xlu0 %4329 }
 0x3cd   : > { %4553 = vrot.lane.b32.xlu0 %v9887_v23, %s7199_s29  ;;  %v10152_v53 = vpop.f32.mrb[117].mxu0  ;;  %11727 = vst [vmem:[#allocation121_spill] sm:$0xff] %v10178_v21 }
 0x3ce   : > { %v10156_v6 = vpop.f32.mrb[118].mxu0 }
 0x3cf   : > { %4555 = vrot.lane.b32.xlu1 %v9892_v24, %s7199_s29  ;;  %v10162_v37 = vpop.f32.mrb[88].mxu1  ;;  %v10166_v11 = vpop.f32.mrb[119].mxu0 }
 0x3d0   : > { %11723 = vst [vmem:[#allocation117_spill] sm:$0xff] %v10162_v37  ;;  %v10164_v4 = vpop.f32.mrb[89].mxu1  ;;  %v10184_v37 = vpop.permute.xlu1 %4331 }
 0x3d1   : > { %11724 = vst [vmem:[#allocation118_spill] sm:$0xff] %v10164_v4  ;;  %v10168_v34 = vpop.f32.mrb[90].mxu1  ;;  %4557 = vrot.lane.b32.xlu0 %v9902_v32, %s7199_s29  ;;  %11728 = vst [vmem:[#allocation122_spill] sm:$0xff] %v10184_v37  ;;  %v10196_v4 = vpop.permute.xlu0 %4333 }
 0x3d2   : > { %11725 = vst [vmem:[#allocation119_spill] sm:$0xff] %v10168_v34  ;;  %v10172_v23 = vpop.f32.mrb[91].mxu1  ;;  %11731 = vst [vmem:[#allocation125_spill] sm:$0xff] %v10196_v4 }
 0x3d3   : > { %11726 = vst [vmem:[#allocation120_spill] sm:$0xff] %v10172_v23  ;;  %4559 = vrot.lane.b32.xlu1 %v9906_v61, %s7199_s29 }
 0x3d4   : > { %v10176_v33 = vpop.f32.mrb[120].mxu0  ;;  %v10204_v37 = vpop.permute.xlu1 %4335 }
 0x3d5   : > { %4561 = vrot.lane.b32.xlu0 %v9899_v17, %s7199_s29  ;;  %v10182_v24 = vpop.f32.mrb[121].mxu0  ;;  %11734 = vst [vmem:[#allocation128_spill] sm:$0xff] %v10204_v37 }
 0x3d6   : > { %v10186_v34 = vpop.f32.mrb[122].mxu0 }
 0x3d7   : > { %4563 = vrot.lane.b32.xlu1 %v9904_v46, %s7199_s29  ;;  %v10190_v32 = vpop.f32.mrb[123].mxu0  ;;  %v10192_v23 = vpop.f32.mrb[92].mxu1 }
 0x3d8   : > { %11729 = vst [vmem:[#allocation123_spill] sm:$0xff] %v10192_v23  ;;  %v10194_v61 = vpop.f32.mrb[93].mxu1 }
 0x3d9   : > { %11730 = vst [vmem:[#allocation124_spill] sm:$0xff] %v10194_v61  ;;  %4565 = vrot.lane.b32.xlu0 %v9973_v41, %s7199_s29  ;;  %v10200_v17 = vpop.f32.mrb[94].mxu1  ;;  %v10216_v61 = vpop.permute.xlu0 %4337 }
 0x3da   : > { %11732 = vst [vmem:[#allocation126_spill] sm:$0xff] %v10200_v17  ;;  %v10202_v21 = vpop.f32.mrb[95].mxu1  ;;  %11735 = vst [vmem:[#allocation129_spill] sm:$0xff] %v10216_v61 }
 0x3db   : > { %11733 = vst [vmem:[#allocation127_spill] sm:$0xff] %v10202_v21  ;;  %4567 = vrot.lane.b32.xlu1 %v9982_v60, %s7199_s29  ;;  %v10226_v60 = vpop.permute.xlu1 %4339 }
 0x3dc   : > { %v10208_v46 = vpop.f32.mrb[124].mxu0  ;;  %11736 = vst [vmem:[#allocation130_spill] sm:$0xff] %v10226_v60 }
 0x3dd   : > { %4569 = vrot.lane.b32.xlu0 %v9970_v39, %s7199_s29  ;;  %v10212_v23 = vpop.f32.mrb[125].mxu0  ;;  %v10234_v54 = vpop.permute.xlu0 %4341 }
 0x3de   : > { %v10214_v4 = vpop.f32.mrb[126].mxu0 }
 0x3df   : > { %4571 = vrot.lane.b32.xlu1 %v9975_v51, %s7199_s29  ;;  %v10220_v41 = vpop.f32.mrb[96].mxu1  ;;  %v10224_v17 = vpop.f32.mrb[127].mxu0 }
 0x3e0   : > { %v10222_v37 = vpop.f32.mrb[97].mxu1  ;;  %v10238_v51 = vpop.permute.xlu1 %4343 }
 0x3e1   : > { %v10228_v21 = vpop.f32.mrb[98].mxu1  ;;  %4573 = vrot.lane.b32.xlu0 %v10002_v59, %s7199_s29  ;;  %11738 = vst [vmem:[#allocation132_spill] sm:$0xff] %v10238_v51  ;;  %v10248_v59 = vpop.permute.xlu0 %4345 }
 0x3e2   : > { %11737 = vst [vmem:[#allocation131_spill] sm:$0xff] %v10228_v21  ;;  %v10232_v39 = vpop.f32.mrb[99].mxu1  ;;  %11739 = vst [vmem:[#allocation133_spill] sm:$0xff] %v10248_v59 }
 0x3e3   : > { %4575 = vrot.lane.b32.xlu1 %v10012_v38, %s7199_s29 }
 0x3e4   : > { %v10256_v51 = vpop.permute.xlu1 %4347 }
 0x3e5   : > { %4577 = vrot.lane.b32.xlu0 %v9996_v62, %s7199_s29 }
 0x3e7   : > { %4579 = vrot.lane.b32.xlu1 %v10006_v15, %s7199_s29  ;;  %v10244_v60 = vpop.f32.mrb[100].mxu1  ;;  %v10260_v62 = vpop.permute.xlu0 %4349 }
 0x3e8   : > { %v10246_v21 = vpop.f32.mrb[101].mxu1  ;;  %11741 = vst [vmem:[#allocation135_spill] sm:$0xff] %v10260_v62 }
 0x3e9   : > { %v10250_v61 = vpop.f32.mrb[102].mxu1  ;;  %4581 = vrot.lane.b32.xlu0 %v10032_v8, %s7199_s29  ;;  %v10264_v15 = vpop.permute.xlu1 %4351 }
 0x3ea   : > { %11740 = vst [vmem:[#allocation134_spill] sm:$0xff] %v10250_v61  ;;  %v10254_v38 = vpop.f32.mrb[103].mxu1 }
 0x3eb   : > { %4583 = vrot.lane.b32.xlu1 %v10044_v18, %s7199_s29  ;;  %v10278_v62 = vpop.permute.xlu0 %4353 }
 0x3ec   : > { %11744 = vst [vmem:[#allocation138_spill] sm:$0xff] %v10278_v62 }
 0x3ed   : > { %4585 = vrot.lane.b32.xlu0 %v10026_v58, %s7199_s29  ;;  %v10282_v58 = vpop.permute.xlu1 %4355 }
 0x3ef   : > { %4587 = vrot.lane.b32.xlu1 %v10034_v49, %s7199_s29  ;;  %v10268_v61 = vpop.f32.mrb[104].mxu1 }
 0x3f0   : > { %11742 = vst [vmem:[#allocation136_spill] sm:$0xff] %v10268_v61  ;;  %v10270_v8 = vpop.f32.mrb[105].mxu1 }
 0x3f1   : > { %v10272_v59 = vpop.f32.mrb[106].mxu1  ;;  %4589 = vrot.lane.b32.xlu0 %v10060_v27, %s7199_s29 }
 0x3f2   : > { %11743 = vst [vmem:[#allocation137_spill] sm:$0xff] %v10272_v59  ;;  %v10276_v18 = vpop.f32.mrb[107].mxu1 }
 0x3f3   : > { %4591 = vrot.lane.b32.xlu1 %v10074_v55, %s7199_s29  ;;  %v10286_v49 = vpop.permute.xlu0 %4357 }
 0x3f5   : > { %4593 = vrot.lane.b32.xlu0 %v10056_v22, %s7199_s29  ;;  %v10294_v61 = vpop.permute.xlu1 %4359 }
 0x3f6   : > { %11746 = vst [vmem:[#allocation140_spill] sm:$0xff] %v10294_v61 }
 0x3f7   : > { %4595 = vrot.lane.b32.xlu1 %v10064_v10, %s7199_s29  ;;  %v10290_v59 = vpop.f32.mrb[108].mxu1  ;;  %v10304_v22 = vpop.permute.xlu0 %4361 }
 0x3f8   : > { %11745 = vst [vmem:[#allocation139_spill] sm:$0xff] %v10290_v59  ;;  %v10292_v27 = vpop.f32.mrb[109].mxu1  ;;  %11748 = vst [vmem:[#allocation142_spill] sm:$0xff] %v10304_v22 }
 0x3f9   : > { %v10296_v62 = vpop.f32.mrb[110].mxu1  ;;  %4597 = vrot.lane.b32.xlu0 %v10092_v2, %s7199_s29  ;;  %v10308_v10 = vpop.permute.xlu1 %4363 }
 0x3fa   : > { %11747 = vst [vmem:[#allocation141_spill] sm:$0xff] %v10296_v62  ;;  %v10300_v55 = vpop.f32.mrb[111].mxu1 }
 0x3fb   : > { %4599 = vrot.lane.b32.xlu1 %v10100_v29, %s7199_s29 }
 0x3fd   : > { %4601 = vrot.lane.b32.xlu0 %v10088_v52, %s7199_s29 }
 0x3ff   : > { %4603 = vrot.lane.b32.xlu1 %v10094_v9, %s7199_s29  ;;  %v10312_v59 = vpop.f32.mrb[112].mxu1  ;;  %v10316_v2 = vpop.permute.xlu0 %4365 }
 0x400   : > { %11749 = vst [vmem:[#allocation143_spill] sm:$0xff] %v10312_v59  ;;  %v10314_v62 = vpop.f32.mrb[113].mxu1 }
 0x401   : > { %v10318_v61 = vpop.f32.mrb[114].mxu1  ;;  %4605 = vrot.lane.b32.xlu0 %v10124_v56, %s7199_s29  ;;  %v10324_v22 = vpop.permute.xlu1 %4367 }
 0x402   : > { %11750 = vst [vmem:[#allocation144_spill] sm:$0xff] %v10318_v61  ;;  %v10322_v29 = vpop.f32.mrb[115].mxu1 }
 0x403   : > { %4607 = vrot.lane.b32.xlu1 %v10134_v50, %s7199_s29  ;;  %v10330_v9 = vpop.permute.xlu0 %4369 }
 0x404   : > { %11751 = vst [vmem:[#allocation145_spill] sm:$0xff] %v10330_v9 }
 0x405   : > { %4609 = vrot.lane.b32.xlu0 %v10118_v28, %s7199_s29  ;;  %v10338_v56 = vpop.permute.xlu1 %4371 }
 0x407   : > { %4611 = vrot.lane.b32.xlu1 %v10126_v45, %s7199_s29  ;;  %v10334_v52 = vpop.f32.mrb[116].mxu1 }
 0x408   : > { %11752 = vst [vmem:[#allocation146_spill] sm:$0xff] %v10334_v52  ;;  %v10336_v61 = vpop.f32.mrb[117].mxu1 }
 0x409   : > { %v10340_v59 = vpop.f32.mrb[118].mxu1  ;;  %4613 = vrot.lane.b32.xlu0 %v10152_v53, %s7199_s29 }
 0x40a   : > { %11753 = vst [vmem:[#allocation147_spill] sm:$0xff] %v10340_v59  ;;  %v10344_v50 = vpop.f32.mrb[119].mxu1 }
 0x40b   : > { %11754 = vst [vmem:[#allocation148_spill] sm:$0xff] %v10344_v50  ;;  %4615 = vrot.lane.b32.xlu1 %v10166_v11, %s7199_s29  ;;  %v10348_v28 = vpop.permute.xlu0 %4373 }
 0x40d   : > { %v10350_v9 = vpop.permute.xlu1 %4375  ;;  %4617 = vrot.lane.b32.xlu0 %v10148_v13, %s7199_s29 }
 0x40f   : > { %4619 = vrot.lane.b32.xlu1 %v10156_v6, %s7199_s29  ;;  %v10356_v45 = vpop.f32.mrb[120].mxu1  ;;  %v10358_v59 = vpop.permute.xlu0 %4377 }
 0x410   : > { %11755 = vst [vmem:[#allocation149_spill] sm:$0xff] %v10356_v45  ;;  %v10360_v53 = vpop.f32.mrb[121].mxu1 }
 0x411   : > { %v10362_v52 = vpop.permute.xlu1 %4379  ;;  %v10364_v50 = vpop.f32.mrb[122].mxu1  ;;  %4621 = vrot.lane.b32.xlu0 %v10182_v24, %s7199_s29 }
 0x412   : > { %11756 = vst [vmem:[#allocation150_spill] sm:$0xff] %v10364_v50  ;;  %v10368_v11 = vpop.f32.mrb[123].mxu1 }
 0x413   : > { %11757 = vst [vmem:[#allocation151_spill] sm:$0xff] %v10368_v11  ;;  %4623 = vrot.lane.b32.xlu1 %v10190_v32, %s7199_s29  ;;  %v10372_v13 = vpop.permute.xlu0 %4509 }
 0x415   : > { %v10374_v6 = vpop.permute.xlu1 %4511  ;;  %4625 = vrot.lane.b32.xlu0 %v10176_v33, %s7199_s29 }
 0x416   : > { %11758 = vst [vmem:[#allocation152_spill] sm:$0xff] %v10374_v6 }
 0x417   : > { %4627 = vrot.lane.b32.xlu1 %v10186_v34, %s7199_s29  ;;  %v10380_v45 = vpop.permute.xlu0 %4513  ;;  %v10382_v50 = vpop.f32.mrb[124].mxu1 }
 0x418   : > { %11759 = vst [vmem:[#allocation153_spill] sm:$0xff] %v10382_v50  ;;  %v10384_v24 = vpop.f32.mrb[125].mxu1 }
 0x419   : > { %v10386_v11 = vpop.permute.xlu1 %4515  ;;  %4629 = vrot.lane.b32.xlu0 %v10212_v23, %s7199_s29  ;;  %v10390_v32 = vpop.f32.mrb[126].mxu1 }
 0x41a   : > { %11760 = vst [vmem:[#allocation154_spill] sm:$0xff] %v10390_v32  ;;  %v10392_v6 = vpop.f32.mrb[127].mxu1 }
 0x41b   : > { %4631 = vrot.lane.b32.xlu1 %v10224_v17, %s7199_s29  ;;  %v10396_v33 = vpop.permute.xlu0 %4517 }
 0x41d   : > { %v10398_v34 = vpop.permute.xlu1 %4519  ;;  %4633 = vrot.lane.b32.xlu0 %v10208_v46, %s7199_s29 }
 0x41f   : > { %4635 = vrot.lane.b32.xlu1 %v10214_v4, %s7199_s29  ;;  %v10404_v50 = vpop.permute.xlu0 %4521 }
 0x421   : > { %v10406_v23 = vpop.permute.xlu1 %4523  ;;  %4765 = vrot.lane.b32.xlu0 %v9980_v47, %s7200_s8 }
 0x423   : > { %4767 = vrot.lane.b32.xlu1 %v9992_v35, %s7200_s8  ;;  %v10412_v17 = vpop.permute.xlu0 %4525 }
 0x425   : > { %v10414_v32 = vpop.permute.xlu1 %4527  ;;  %4769 = vrot.lane.b32.xlu0 %v9978_v19, %s7200_s8 }
 0x427   : > { %4771 = vrot.lane.b32.xlu1 %v9988_v1, %s7200_s8  ;;  %v10420_v4 = vpop.permute.xlu0 %4529 }
 0x429   : > { %v10422_v46 = vpop.permute.xlu1 %4531  ;;  %4773 = vrot.lane.b32.xlu0 %v10014_v16, %s7200_s8 }
 0x42b   : > { %4775 = vrot.lane.b32.xlu1 %v10020_v5, %s7200_s8  ;;  %v10428_v35 = vpop.permute.xlu0 %4533 }
 0x42d   : > { %v10430_v47 = vpop.permute.xlu1 %4535  ;;  %4777 = vrot.lane.b32.xlu0 %v10010_v48, %s7200_s8 }
 0x42f   : > { %4779 = vrot.lane.b32.xlu1 %v10018_v57, %s7200_s8  ;;  %v10436_v19 = vpop.permute.xlu0 %4537 }
 0x431   : > { %v10438_v1 = vpop.permute.xlu1 %4539  ;;  %4781 = vrot.lane.b32.xlu0 %v10042_v3, %s7200_s8 }
 0x433   : > { %4783 = vrot.lane.b32.xlu1 %v10052_v40, %s7200_s8  ;;  %v10444_v16 = vpop.permute.xlu0 %4541 }
 0x435   : > { %v10446_v5 = vpop.permute.xlu1 %4543  ;;  %4785 = vrot.lane.b32.xlu0 %v10040_v12, %s7200_s8 }
 0x437   : > { %4787 = vrot.lane.b32.xlu1 %v10050_v31, %s7200_s8  ;;  %v10452_v57 = vpop.permute.xlu0 %4545 }
 0x439   : > { %v10454_v48 = vpop.permute.xlu1 %4547  ;;  %4789 = vrot.lane.b32.xlu0 %v10072_v25, %s7200_s8 }
 0x43b   : > { %4791 = vrot.lane.b32.xlu1 %v10082_v63, %s7200_s8  ;;  %v10460_v3 = vpop.permute.xlu0 %4549 }
 0x43d   : > { %v10462_v40 = vpop.permute.xlu1 %4551  ;;  %4793 = vrot.lane.b32.xlu0 %v10070_v20, %s7200_s8 }
 0x43f   : > { %4795 = vrot.lane.b32.xlu1 %v10078_v30, %s7200_s8  ;;  %v10468_v12 = vpop.permute.xlu0 %4553 }
 0x440   : > { %11761 = vst [vmem:[#allocation155_spill] sm:$0xff] %v10468_v12 }
 0x441   : > { %v10470_v31 = vpop.permute.xlu1 %4555  ;;  %4797 = vrot.lane.b32.xlu0 %v10104_v43, %s7200_s8 }
 0x442   : > { %11762 = vst [vmem:[#allocation156_spill] sm:$0xff] %v10470_v31 }
 0x443   : > { %4799 = vrot.lane.b32.xlu1 %v10112_v42, %s7200_s8  ;;  %v10476_v63 = vpop.permute.xlu0 %4557 }
 0x444   : > { %11763 = vst [vmem:[#allocation157_spill] sm:$0xff] %v10476_v63  ;;  %v11774_v63 = vld [vmem:[#allocation118_spill] sm:$0xff] }
 0x445   : > { %v10478_v25 = vpop.permute.xlu1 %4559  ;;  %4801 = vrot.lane.b32.xlu0 %v10098_v7, %s7200_s8  ;;  %v11769_v7 = vld [vmem:[#allocation76_spill] sm:$0xff] }
 0x446   : > { %11764 = vst [vmem:[#allocation158_spill] sm:$0xff] %v10478_v25  ;;  %v11773_v25 = vld [vmem:[#allocation75_spill] sm:$0xff] }
 0x447   : > { %4803 = vrot.lane.b32.xlu1 %v10110_v44, %s7200_s8  ;;  %v10484_v20 = vpop.permute.xlu0 %4561  ;;  %v4987_v44 = vsel %vm2257_vm9, %v11769_v7, %v10102_v14  ;;  %v11776_v14 = vld [vmem:[#allocation110_spill] sm:$0xff]  ;;  %v11777_v7 = vld [vmem:[#allocation99_spill] sm:$0xff] }
 0x448   : > { %11765 = vst [vmem:[#allocation159_spill] sm:$0xff] %v10484_v20  ;;  %v4989_v31 = vsel %vm2257_vm9, %v11777_v7, %v11776_v14  ;;  %v11785_v14 = vld [vmem:[#allocation79_spill] sm:$0xff] }
 0x449   : > { %v10486_v30 = vpop.permute.xlu1 %4563  ;;  %4805 = vrot.lane.b32.xlu0 %v10132_v26, %s7200_s8 }
 0x44a   : > { %11766 = vst [vmem:[#allocation160_spill] sm:$0xff] %v10486_v30  ;;  %v11770_v30 = vld [vmem:[#allocation112_spill] sm:$0xff] }
 0x44b   : > { %4807 = vrot.lane.b32.xlu1 %v10142_v36, %s7200_s8  ;;  %v10492_v42 = vpop.permute.xlu0 %4565  ;;  %v11772_v36 = vld [vmem:[#allocation109_spill] sm:$0xff] }
 0x44c   : > { %11767 = vst [vmem:[#allocation161_spill] sm:$0xff] %v10492_v42  ;;  %v4988_v42 = vsel %vm2257_vm9, %v11773_v25, %v11772_v36  ;;  %v11781_v25 = vld [vmem:[#allocation21_spill] sm:$0xff] }
 0x44d   : > { %v10494_v43 = vpop.permute.xlu1 %4567  ;;  %4809 = vrot.lane.b32.xlu0 %v10130_v0, %s7200_s8 }
 0x44e   : > { %11768 = vst [vmem:[#allocation162_spill] sm:$0xff] %v10494_v43 }
 0x44f   : > { %4811 = vrot.lane.b32.xlu1 %v11770_v30, %s7200_s8  ;;  %v4570_v20 = vpop.permute.xlu0 %4569  ;;  %v11778_v30 = vld [vmem:[#allocation120_spill] sm:$0xff] }
 0x450   : > { %v10504_v26 = vsel %vm5021_vm10, %v4987_v44, %v4570_v20 }
 0x451   : > { %11771 = vst [vmem:[#allocation76_spill] sm:$0xff] %v10504_v26  ;;  %v4572_v43 = vpop.permute.xlu1 %4571  ;;  %4813 = vrot.lane.b32.xlu0 %v11774_v63, %s7200_s8  ;;  %v11780_v26 = vld [vmem:[#allocation111_spill] sm:$0xff]  ;;  %v11782_v63 = vld [vmem:[#allocation117_spill] sm:$0xff] }
 0x452   : > { %v10512_v0 = vsel %vm5021_vm10, %v4988_v42, %v4572_v43  ;;  %v4990_v36 = vsel %vm2257_vm9, %v11781_v25, %v11780_v26  ;;  %v11784_v43 = vld [vmem:[#allocation113_spill] sm:$0xff] }
 0x453   : > { %11775 = vst [vmem:[#allocation112_spill] sm:$0xff] %v10512_v0  ;;  %4815 = vrot.lane.b32.xlu1 %v11778_v30, %s7200_s8  ;;  %v4574_v20 = vpop.permute.xlu0 %4573  ;;  %v4991_v7 = vsel %vm2257_vm9, %v11785_v14, %v11784_v43  ;;  %v11786_v30 = vld [vmem:[#allocation119_spill] sm:$0xff]  ;;  %v11789_v26 = vld [vmem:[#allocation77_spill] sm:$0xff] }
 0x454   : > { %v10520_v44 = vsel %vm5021_vm10, %v4989_v31, %v4574_v20  ;;  %v11793_v43 = vld [vmem:[#allocation55_spill] sm:$0xff] }
 0x455   : > { %11779 = vst [vmem:[#allocation109_spill] sm:$0xff] %v10520_v44  ;;  %v4576_v12 = vpop.permute.xlu1 %4575  ;;  %4817 = vrot.lane.b32.xlu0 %v11782_v63, %s7200_s8  ;;  %v11788_v44 = vld [vmem:[#allocation114_spill] sm:$0xff]  ;;  %v11790_v63 = vld [vmem:[#allocation124_spill] sm:$0xff] }
 0x456   : > { %v10528_v42 = vsel %vm5021_vm10, %v4990_v36, %v4576_v12  ;;  %v4992_v25 = vsel %vm2257_vm9, %v11789_v26, %v11788_v44  ;;  %v11792_v36 = vld [vmem:[#allocation115_spill] sm:$0xff]  ;;  %v11797_v44 = vld [vmem:[#allocation40_spill] sm:$0xff] }
 0x457   : > { %11783 = vst [vmem:[#allocation75_spill] sm:$0xff] %v10528_v42  ;;  %4819 = vrot.lane.b32.xlu1 %v11786_v30, %s7200_s8  ;;  %v4578_v31 = vpop.permute.xlu0 %4577  ;;  %v4993_v14 = vsel %vm2257_vm9, %v11793_v43, %v11792_v36  ;;  %v11794_v30 = vld [vmem:[#allocation127_spill] sm:$0xff] }
 0x458   : > { %v10536_v20 = vsel %vm5021_vm10, %v4991_v7, %v4578_v31  ;;  %v11800_v36 = vld [vmem:[#allocation43_spill] sm:$0xff] }
 0x459   : > { %11787 = vst [vmem:[#allocation118_spill] sm:$0xff] %v10536_v20  ;;  %v4580_v0 = vpop.permute.xlu1 %4579  ;;  %4821 = vrot.lane.b32.xlu0 %v11790_v63, %s7200_s8  ;;  %v11796_v20 = vld [vmem:[#allocation116_spill] sm:$0xff]  ;;  %v11798_v63 = vld [vmem:[#allocation123_spill] sm:$0xff] }
 0x45a   : > { %v10544_v12 = vsel %vm5021_vm10, %v4992_v25, %v4580_v0  ;;  %v4994_v26 = vsel %vm2257_vm9, %v11797_v44, %v11796_v20  ;;  %v11799_v25 = vld [vmem:[#allocation121_spill] sm:$0xff] }
 0x45b   : > { %11791 = vst [vmem:[#allocation110_spill] sm:$0xff] %v10544_v12  ;;  %4823 = vrot.lane.b32.xlu1 %v11794_v30, %s7200_s8  ;;  %v4582_v7 = vpop.permute.xlu0 %4581  ;;  %v4995_v43 = vsel %vm2257_vm9, %v11800_v36, %v11799_v25  ;;  %v11801_v30 = vld [vmem:[#allocation126_spill] sm:$0xff]  ;;  %v11803_v20 = vld [vmem:[#allocation105_spill] sm:$0xff] }
 0x45c   : > { %v10552_v31 = vsel %vm5021_vm10, %v4993_v14, %v4582_v7 }
 0x45d   : > { %11795 = vst [vmem:[#allocation99_spill] sm:$0xff] %v10552_v31  ;;  %v4584_v42 = vpop.permute.xlu1 %4583  ;;  %4825 = vrot.lane.b32.xlu0 %v11798_v63, %s7200_s8  ;;  %v11802_v31 = vld [vmem:[#allocation122_spill] sm:$0xff]  ;;  %v11805_v63 = vld [vmem:[#allocation83_spill] sm:$0xff] }
 0x45e   : > { %v10560_v0 = vsel %vm5021_vm10, %v4994_v26, %v4584_v42  ;;  %v4996_v44 = vsel %vm2257_vm9, %v11803_v20, %v11802_v31  ;;  %v11804_v26 = vld [vmem:[#allocation125_spill] sm:$0xff] }
 0x45f   : > { %4827 = vrot.lane.b32.xlu1 %v11801_v30, %s7200_s8  ;;  %v4586_v14 = vpop.permute.xlu0 %4585  ;;  %v4997_v25 = vsel %vm2257_vm9, %v11805_v63, %v11804_v26  ;;  %v11807_v30 = vld [vmem:[#allocation128_spill] sm:$0xff]  ;;  %v11808_v31 = vld [vmem:[#allocation81_spill] sm:$0xff] }
 0x460   : > { %v10568_v7 = vsel %vm5021_vm10, %v4995_v43, %v4586_v14  ;;  %v4998_v14 = vsel %vm2257_vm9, %v11808_v31, %v11807_v30  ;;  %v11813_v30 = vld [vmem:[#allocation101_spill] sm:$0xff] }
 0x461   : > { %v4588_v12 = vpop.permute.xlu1 %4587  ;;  %4829 = vrot.lane.b32.xlu0 %v10222_v37, %s7200_s8 }
 0x462   : > { %v10576_v42 = vsel %vm5021_vm10, %v4996_v44, %v4588_v12  ;;  %v11809_v12 = vld [vmem:[#allocation129_spill] sm:$0xff]  ;;  %v11810_v44 = vld [vmem:[#allocation98_spill] sm:$0xff] }
 0x463   : > { %4831 = vrot.lane.b32.xlu1 %v10232_v39, %s7200_s8  ;;  %v4590_v36 = vpop.permute.xlu0 %4589  ;;  %v4999_v26 = vsel %vm2257_vm9, %v11810_v44, %v11809_v12  ;;  %v11811_v39 = vld [vmem:[#allocation131_spill] sm:$0xff] }
 0x464   : > { %v10584_v43 = vsel %vm5021_vm10, %v4997_v25, %v4590_v36  ;;  %v11812_v36 = vld [vmem:[#allocation130_spill] sm:$0xff] }
 0x465   : > { %11806 = vst [vmem:[#allocation120_spill] sm:$0xff] %v10584_v43  ;;  %v4592_v20 = vpop.permute.xlu1 %4591  ;;  %4833 = vrot.lane.b32.xlu0 %v10220_v41, %s7200_s8  ;;  %v5000_v31 = vsel %vm2257_vm9, %v11813_v30, %v11812_v36 }
 0x466   : > { %v10592_v37 = vsel %vm5021_vm10, %v4998_v14, %v4592_v20  ;;  %v11814_v14 = vld [vmem:[#allocation107_spill] sm:$0xff] }
 0x467   : > { %4835 = vrot.lane.b32.xlu1 %v11811_v39, %s7200_s8  ;;  %v4594_v63 = vpop.permute.xlu0 %4593  ;;  %v5001_v20 = vsel %vm2257_vm9, %v11814_v14, %v10234_v54  ;;  %v11816_v39 = vld [vmem:[#allocation23_spill] sm:$0xff]  ;;  %v11818_v54 = vld [vmem:[#allocation54_spill] sm:$0xff] }
 0x468   : > { %v10600_v25 = vsel %vm5021_vm10, %v4999_v26, %v4594_v63  ;;  %v11815_v26 = vld [vmem:[#allocation132_spill] sm:$0xff] }
 0x469   : > { %v4596_v43 = vpop.permute.xlu1 %4595  ;;  %4837 = vrot.lane.b32.xlu0 %v10246_v21, %s7200_s8  ;;  %v5002_v63 = vsel %vm2257_vm9, %v11816_v39, %v11815_v26  ;;  %v11821_v39 = vld [vmem:[#allocation135_spill] sm:$0xff] }
 0x46a   : > { %v10608_v41 = vsel %vm5021_vm10, %v5000_v31, %v4596_v43  ;;  %v11817_v43 = vld [vmem:[#allocation133_spill] sm:$0xff] }
 0x46b   : > { %4839 = vrot.lane.b32.xlu1 %v10254_v38, %s7200_s8  ;;  %v4598_v12 = vpop.permute.xlu0 %4597  ;;  %v5003_v30 = vsel %vm2257_vm9, %v11818_v54, %v11817_v43  ;;  %v11819_v38 = vld [vmem:[#allocation134_spill] sm:$0xff] }
 0x46c   : > { %v10616_v44 = vsel %vm5021_vm10, %v5001_v20, %v4598_v12  ;;  %v11820_v20 = vld [vmem:[#allocation22_spill] sm:$0xff] }
 0x46d   : > { %v4600_v36 = vpop.permute.xlu1 %4599  ;;  %4841 = vrot.lane.b32.xlu0 %v10244_v60, %s7200_s8  ;;  %v5004_v12 = vsel %vm2257_vm9, %v11820_v20, %v10256_v51  ;;  %v11823_v51 = vld [vmem:[#allocation86_spill] sm:$0xff] }
 0x46e   : > { %v10624_v21 = vsel %vm5021_vm10, %v5002_v63, %v4600_v36  ;;  %v11822_v63 = vld [vmem:[#allocation42_spill] sm:$0xff] }
 0x46f   : > { %4843 = vrot.lane.b32.xlu1 %v11819_v38, %s7200_s8  ;;  %v4602_v31 = vpop.permute.xlu0 %4601  ;;  %v5005_v36 = vsel %vm2257_vm9, %v11822_v63, %v11821_v39  ;;  %v11825_v20 = vld [vmem:[#allocation138_spill] sm:$0xff] }
 0x470   : > { %v10632_v14 = vsel %vm5021_vm10, %v5003_v30, %v4602_v31  ;;  %v5006_v30 = vsel %vm2257_vm9, %v11823_v51, %v10264_v15  ;;  %v11828_v15 = vld [vmem:[#allocation100_spill] sm:$0xff] }
 0x471   : > { %v4604_v26 = vpop.permute.xlu1 %4603  ;;  %4845 = vrot.lane.b32.xlu0 %v10270_v8, %s7200_s8  ;;  %v11824_v8 = vld [vmem:[#allocation136_spill] sm:$0xff] }
 0x472   : > { %v10640_v60 = vsel %vm5021_vm10, %v5004_v12, %v4604_v26  ;;  %v11826_v12 = vld [vmem:[#allocation45_spill] sm:$0xff] }
 0x473   : > { %4847 = vrot.lane.b32.xlu1 %v10276_v18, %s7200_s8  ;;  %v4606_v43 = vpop.permute.xlu0 %4605  ;;  %v5007_v26 = vsel %vm2257_vm9, %v11826_v12, %v11825_v20  ;;  %v11827_v18 = vld [vmem:[#allocation137_spill] sm:$0xff]  ;;  %v11830_v12 = vld [vmem:[#allocation140_spill] sm:$0xff] }
 0x474   : > { %v10648_v54 = vsel %vm5021_vm10, %v5005_v36, %v4606_v43  ;;  %v5008_v36 = vsel %vm2257_vm9, %v11828_v15, %v10282_v58  ;;  %v11831_v58 = vld [vmem:[#allocation102_spill] sm:$0xff] }
 0x475   : > { %v4608_v38 = vpop.permute.xlu1 %4607  ;;  %4849 = vrot.lane.b32.xlu0 %v11824_v8, %s7200_s8  ;;  %v11833_v15 = vld [vmem:[#allocation142_spill] sm:$0xff] }
 0x476   : > { %v10656_v31 = vsel %vm5021_vm10, %v5006_v30, %v4608_v38  ;;  %v11829_v30 = vld [vmem:[#allocation84_spill] sm:$0xff] }
 0x477   : > { %4851 = vrot.lane.b32.xlu1 %v11827_v18, %s7200_s8  ;;  %v4610_v39 = vpop.permute.xlu0 %4609  ;;  %v5009_v38 = vsel %vm2257_vm9, %v11829_v30, %v10286_v49  ;;  %v11834_v49 = vld [vmem:[#allocation103_spill] sm:$0xff] }
 0x478   : > { %v10664_v63 = vsel %vm5021_vm10, %v5007_v26, %v4610_v39  ;;  %v5010_v26 = vsel %vm2257_vm9, %v11831_v58, %v11830_v12 }
 0x479   : > { %v4612_v43 = vpop.permute.xlu1 %4611  ;;  %4853 = vrot.lane.b32.xlu0 %v10292_v27, %s7200_s8  ;;  %v11832_v27 = vld [vmem:[#allocation139_spill] sm:$0xff] }
 0x47a   : > { %v10672_v51 = vsel %vm5021_vm10, %v5008_v36, %v4612_v43  ;;  %v5011_v36 = vsel %vm2257_vm9, %v11834_v49, %v11833_v15 }
 0x47b   : > { %4855 = vrot.lane.b32.xlu1 %v10300_v55, %s7200_s8  ;;  %v4614_v8 = vpop.permute.xlu0 %4613  ;;  %v11835_v55 = vld [vmem:[#allocation141_spill] sm:$0xff] }
 0x47c   : > { %v10680_v20 = vsel %vm5021_vm10, %v5009_v38, %v4614_v8  ;;  %v11836_v38 = vld [vmem:[#allocation106_spill] sm:$0xff] }
 0x47d   : > { %v4616_v18 = vpop.permute.xlu1 %4615  ;;  %4857 = vrot.lane.b32.xlu0 %v11832_v27, %s7200_s8  ;;  %v5012_v8 = vsel %vm2257_vm9, %v11836_v38, %v10308_v10  ;;  %v11838_v10 = vld [vmem:[#allocation48_spill] sm:$0xff] }
 0x47e   : > { %v10688_v39 = vsel %vm5021_vm10, %v5010_v26, %v4616_v18  ;;  %v11837_v26 = vld [vmem:[#allocation62_spill] sm:$0xff]  ;;  %v5014_v49 = vsel %vm2257_vm9, %v11838_v10, %v10324_v22  ;;  %v11843_v22 = vld [vmem:[#allocation25_spill] sm:$0xff]  ;;  %v11844_v10 = vld [vmem:[#allocation104_spill] sm:$0xff] }
 0x47f   : > { %4859 = vrot.lane.b32.xlu1 %v11835_v55, %s7200_s8  ;;  %v4618_v43 = vpop.permute.xlu0 %4617  ;;  %v5013_v18 = vsel %vm2257_vm9, %v11837_v26, %v10316_v2  ;;  %v11841_v2 = vld [vmem:[#allocation89_spill] sm:$0xff]  ;;  %v5016_v26 = vsel %vm2257_vm9, %v11843_v22, %v10338_v56  ;;  %v11846_v56 = vld [vmem:[#allocation15_spill] sm:$0xff] }
 0x480   : > { %v10696_v30 = vsel %vm5021_vm10, %v5011_v36, %v4618_v43  ;;  %v11840_v43 = vld [vmem:[#allocation145_spill] sm:$0xff]  ;;  %v11849_v22 = vld [vmem:[#allocation147_spill] sm:$0xff] }
 0x481   : > { %v4620_v12 = vpop.permute.xlu1 %4619  ;;  %4861 = vrot.lane.b32.xlu0 %v10314_v62, %s7200_s8  ;;  %v11839_v62 = vld [vmem:[#allocation143_spill] sm:$0xff]  ;;  %v5015_v38 = vsel %vm2257_vm9, %v11841_v2, %v11840_v43  ;;  %v5018_v2 = vsel %vm2257_vm9, %v11846_v56, %v10350_v9  ;;  %v11850_v9 = vld [vmem:[#allocation46_spill] sm:$0xff] }
 0x482   : > { %v10704_v58 = vsel %vm5021_vm10, %v5012_v8, %v4620_v12 }
 0x483   : > { %4863 = vrot.lane.b32.xlu1 %v10322_v29, %s7200_s8  ;;  %v4622_v27 = vpop.permute.xlu0 %4621  ;;  %v11842_v29 = vld [vmem:[#allocation144_spill] sm:$0xff] }
 0x484   : > { %v10712_v15 = vsel %vm5021_vm10, %v5013_v18, %v4622_v27 }
 0x485   : > { %v4624_v36 = vpop.permute.xlu1 %4623  ;;  %4865 = vrot.lane.b32.xlu0 %v11839_v62, %s7200_s8 }
 0x486   : > { %v10720_v55 = vsel %vm5021_vm10, %v5014_v49, %v4624_v36  ;;  %v5017_v49 = vsel %vm2257_vm9, %v11844_v10, %v10348_v28  ;;  %v11845_v36 = vld [vmem:[#allocation148_spill] sm:$0xff]  ;;  %v5020_v10 = vsel %vm2257_vm9, %v11850_v9, %v10362_v52  ;;  %v11854_v52 = vld [vmem:[#allocation151_spill] sm:$0xff] }
 0x487   : > { %4867 = vrot.lane.b32.xlu1 %v11842_v29, %s7200_s8  ;;  %v4626_v8 = vpop.permute.xlu0 %4625  ;;  %v11848_v28 = vld [vmem:[#allocation44_spill] sm:$0xff] }
 0x488   : > { %v10728_v12 = vsel %vm5021_vm10, %v5015_v38, %v4626_v8  ;;  %v11847_v38 = vld [vmem:[#allocation146_spill] sm:$0xff]  ;;  %v5019_v8 = vsel %vm2257_vm9, %v11848_v28, %v10358_v59  ;;  %v11856_v28 = vld [vmem:[#allocation16_spill] sm:$0xff] }
 0x489   : > { %v4628_v18 = vpop.permute.xlu1 %4627  ;;  %4869 = vrot.lane.b32.xlu0 %v10336_v61, %s7200_s8 }
 0x48a   : > { %v10736_v27 = vsel %vm5021_vm10, %v5016_v26, %v4628_v18 }
 0x48b   : > { %4871 = vrot.lane.b32.xlu1 %v11845_v36, %s7200_s8  ;;  %v4630_v62 = vpop.permute.xlu0 %4629  ;;  %v11851_v36 = vld [vmem:[#allocation26_spill] sm:$0xff] }
 0x48c   : > { %v10744_v43 = vsel %vm5021_vm10, %v5017_v49, %v4630_v62  ;;  %v11852_v62 = vld [vmem:[#allocation88_spill] sm:$0xff] }
 0x48d   : > { %v4632_v61 = vpop.permute.xlu1 %4631  ;;  %4873 = vrot.lane.b32.xlu0 %v11847_v38, %s7200_s8  ;;  %v4957_v59 = vsel %vm2257_vm9, %v11852_v62, %v11851_v36  ;;  %v11858_v36 = vld [vmem:[#allocation149_spill] sm:$0xff]  ;;  %v11860_v62 = vld [vmem:[#allocation60_spill] sm:$0xff] }
 0x48e   : > { %v10752_v29 = vsel %vm5021_vm10, %v5018_v2, %v4632_v61  ;;  %v10774_v2 = vld [vmem:[%s242_s11] ss:$0 sm:$0xff]  ;;  %v5022_v61 = vsel %vm5021_vm10, %v4957_v59, %v10372_v13  ;;  %v11859_v13 = vld [vmem:[#allocation96_spill] sm:$0xff] }
 0x48f   : > { %4875 = vrot.lane.b32.xlu1 %v11849_v22, %s7200_s8  ;;  %v4634_v26 = vpop.permute.xlu0 %4633  ;;  %v4959_v59 = vsel %vm2257_vm9, %v11860_v62, %v11859_v13 }
 0x490   : > { %v10760_v18 = vsel %vm5021_vm10, %v5019_v8, %v4634_v26  ;;  %v11857_v26 = vld [vmem:[#allocation152_spill] sm:$0xff] }
 0x491   : > { %v4636_v49 = vpop.permute.xlu1 %4635  ;;  %4877 = vrot.lane.b32.xlu0 %v10360_v53, %s7200_s8  ;;  %v11855_v53 = vld [vmem:[#allocation29_spill] sm:$0xff] }
 0x492   : > { %v10771_v56 = vsel %vm5021_vm10, %v5020_v10, %v4636_v49  ;;  %v4958_v8 = vsel %vm2257_vm9, %v11856_v28, %v11855_v53  ;;  %v5024_v53 = vsel %vm5021_vm10, %v4959_v59, %v10380_v45  ;;  %v11864_v59 = vld [vmem:[#allocation49_spill] sm:$0xff] }
 0x493   : > { %11853 = vst [vmem:[#allocation111_spill] sm:$0xff] %v10771_v56  ;;  %4879 = vrot.lane.b32.xlu1 %v11854_v52, %s7200_s8  ;;  %v4766_v38 = vpop.permute.xlu0 %4765  ;;  %v5023_v9 = vsel %vm5021_vm10, %v4958_v8, %v11857_v26  ;;  %v11862_v8 = vld [vmem:[#allocation61_spill] sm:$0xff] }
 0x494   : > { %v5087_v22 = vsel %vm5086_vm11, %v5022_v61, %v4766_v38  ;;  %v11861_v38 = vld [vmem:[#allocation150_spill] sm:$0xff] }
 0x495   : > { %v5158_v10 = vadd.f32 %v10774_v2, %v5087_v22  ;;  %v4768_v49 = vpop.permute.xlu1 %4767  ;;  %4881 = vrot.lane.b32.xlu0 %v11858_v36, %s7200_s8  ;;  %v11863_v22 = vld [vmem:[#allocation65_spill] sm:$0xff] }
 0x496   : > { %v5088_v52 = vsel %vm5086_vm11, %v5023_v9, %v4768_v49  ;;  %v4960_v26 = vsel %vm2257_vm9, %v11863_v22, %v11862_v8  ;;  %v11867_v8 = vld [vmem:[#allocation67_spill] sm:$0xff] }
 0x497   : > { %v5159_v61 = vadd.f32 %v10774_v2, %v5088_v52  ;;  %4883 = vrot.lane.b32.xlu1 %v11861_v38, %s7200_s8  ;;  %v4770_v28 = vpop.permute.xlu0 %4769  ;;  %v5025_v13 = vsel %vm5021_vm10, %v4960_v26, %v10386_v11  ;;  %v5222_v9 = vmax.f32 %v5158_v10, 0.0  ;;  %v11865_v52 = vld [vmem:[#allocation32_spill] sm:$0xff] }
 0x498   : > { %v5089_v36 = vsel %vm5086_vm11, %v5024_v53, %v4770_v28  ;;  %v4961_v38 = vsel %vm2257_vm9, %v11865_v52, %v11864_v59 }
 0x499   : > { %v5223_v49 = vmax.f32 %v5159_v61, 0.0  ;;  %v5160_v45 = vadd.f32 %v10774_v2, %v5089_v36  ;;  %v4772_v62 = vpop.permute.xlu1 %4771  ;;  %4885 = vrot.lane.b32.xlu0 %v10384_v24, %s7200_s8  ;;  %v5026_v53 = vsel %vm5021_vm10, %v4961_v38, %v10396_v33  ;;  %v11866_v61 = vld [vmem:[#allocation30_spill] sm:$0xff] }
 0x49a   : > { %v5090_v56 = vsel %vm5086_vm11, %v5025_v13, %v4772_v62  ;;  %v4962_v24 = vsel %vm2257_vm9, %v11867_v8, %v11866_v61  ;;  %v11868_v13 = vld [vmem:[#allocation153_spill] sm:$0xff] }
 0x49b   : > { %v6192_v28 = vpack.c.bf16 %v5223_v49, %v5222_v9  ;;  %v5161_v11 = vadd.f32 %v10774_v2, %v5090_v56  ;;  %4887 = vrot.lane.b32.xlu1 %v10392_v6, %s7200_s8  ;;  %v4774_v10 = vpop.permute.xlu0 %4773  ;;  %v5027_v26 = vsel %vm5021_vm10, %v4962_v24, %v10398_v34  ;;  %v5224_v33 = vmax.f32 %v5160_v45, 0.0  ;;  %v11869_v9 = vld [vmem:[#allocation31_spill] sm:$0xff]  ;;  %v11870_v49 = vld [vmem:[#allocation64_spill] sm:$0xff]  ;;  %v11871_v45 = vld [vmem:[#allocation154_spill] sm:$0xff] }
 0x49c   : > { %v5091_v22 = vsel %vm5086_vm11, %v5026_v53, %v4774_v10  ;;  %v4963_v62 = vsel %vm2257_vm9, %v11870_v49, %v11869_v9 }
 0x49d   : > { %6193 = vst [vmem:[%s10823_s4] sm:$0xff] %v6192_v28   ;;  %v5225_v56 = vmax.f32 %v5161_v11, 0.0  ;;  %v5162_v36 = vadd.f32 %v10774_v2, %v5091_v22  ;;  %v4776_v6 = vpop.permute.xlu1 %4775  ;;  %4889 = vrot.lane.b32.xlu0 %v11868_v13, %s7200_s8  ;;  %v5028_v34 = vsel %vm5021_vm10, %v4963_v62, %v10404_v50  ;;  %v11872_v28 = vld [vmem:[#allocation47_spill] sm:$0xff] }
 0x49e   : > { %v5092_v59 = vsel %vm5086_vm11, %v5027_v26, %v4776_v6  ;;  %v11873_v11 = vld [vmem:[#allocation91_spill] sm:$0xff] }
 0x49f   : > { %v6197_v52 = vpack.c.bf16 %v5225_v56, %v5224_v33  ;;  %v5163_v38 = vadd.f32 %v10774_v2, %v5092_v59  ;;  %4891 = vrot.lane.b32.xlu1 %v11871_v45, %s7200_s8  ;;  %v4778_v53 = vpop.permute.xlu0 %4777  ;;  %v4964_v10 = vsel %vm2257_vm9, %v11873_v11, %v11872_v28  ;;  %v5226_v24 = vmax.f32 %v5162_v36, 0.0  ;;  %v11874_v33 = vld [vmem:[#allocation51_spill] sm:$0xff]  ;;  %v11875_v56 = vld [vmem:[#allocation34_spill] sm:$0xff]  ;;  %v11878_v11 = vld [vmem:[#allocation33_spill] sm:$0xff] }
 0x4a0   : > { %v5093_v61 = vsel %vm5086_vm11, %v5028_v34, %v4778_v53  ;;  %v5029_v8 = vsel %vm5021_vm10, %v4964_v10, %v10406_v23  ;;  %v4965_v6 = vsel %vm2257_vm9, %v11875_v56, %v11874_v33  ;;  %v11876_v23 = vld [vmem:[#allocation50_spill] sm:$0xff]  ;;  %v11877_v34 = vld [vmem:[#allocation69_spill] sm:$0xff]  ;;  %v11881_v56 = vld [vmem:[#allocation19_spill] sm:$0xff] }
 0x4a1   : > { %6349 = vst [vmem:[%s10823_s4 + $0x8] sm:$0xff] %v6197_v52   ;;  %v5227_v50 = vmax.f32 %v5163_v38, 0.0  ;;  %v5164_v22 = vadd.f32 %v10774_v2, %v5093_v61  ;;  %v4780_v26 = vpop.permute.xlu1 %4779  ;;  %v5030_v9 = vsel %vm5021_vm10, %v4965_v6, %v10412_v17  ;;  %v4966_v36 = vsel %vm2257_vm9, %v11877_v34, %v11876_v23  ;;  %v11879_v10 = vld [vmem:[#allocation18_spill] sm:$0xff]  ;;  %v11883_v23 = vld [vmem:[#allocation68_spill] sm:$0xff] }
 0x4a2   : > { %v5094_v13 = vsel %vm5086_vm11, %v5029_v8, %v4780_v26  ;;  %v5031_v38 = vsel %vm5021_vm10, %v4966_v36, %v10414_v32  ;;  %v4967_v61 = vsel %vm2257_vm9, %v11879_v10, %v11878_v11  ;;  %v11880_v32 = vld [vmem:[#allocation53_spill] sm:$0xff] }
 0x4a3   : > { %v6202_v49 = vpack.c.bf16 %v5227_v50, %v5226_v24  ;;  %v5165_v62 = vadd.f32 %v10774_v2, %v5094_v13  ;;  %v4782_v59 = vpop.permute.xlu0 %4781  ;;  %v5228_v45 = vmax.f32 %v5164_v22, 0.0  ;;  %v5032_v24 = vsel %vm5021_vm10, %v4967_v61, %v10420_v4 }
 0x4a4   : > { %v5095_v52 = vsel %vm5086_vm11, %v5030_v9, %v4782_v59  ;;  %v4968_v22 = vsel %vm2257_vm9, %v11881_v56, %v11880_v32  ;;  %v11882_v59 = vld [vmem:[#allocation35_spill] sm:$0xff] }
 0x4a5   : > { %6350 = vst [vmem:[%s10823_s4 + $0x10] sm:$0xff] %v6202_v49   ;;  %v5229_v53 = vmax.f32 %v5165_v62, 0.0  ;;  %v5166_v28 = vadd.f32 %v10774_v2, %v5095_v52  ;;  %v4784_v17 = vpop.permute.xlu1 %4783  ;;  %v5033_v13 = vsel %vm5021_vm10, %v4968_v22, %v10422_v46  ;;  %v4969_v34 = vsel %vm2257_vm9, %v11883_v23, %v11882_v59  ;;  %v11884_v46 = vld [vmem:[#allocation52_spill] sm:$0xff] }
 0x4a6   : > { %v5096_v8 = vsel %vm5086_vm11, %v5031_v38, %v4784_v17  ;;  %v5034_v52 = vsel %vm5021_vm10, %v4969_v34, %v10428_v35  ;;  %v11885_v17 = vld [vmem:[#allocation92_spill] sm:$0xff] }
 0x4a7   : > { %v6207_v50 = vpack.c.bf16 %v5229_v53, %v5228_v45  ;;  %v5167_v26 = vadd.f32 %v10774_v2, %v5096_v8  ;;  %v4786_v33 = vpop.permute.xlu0 %4785  ;;  %v5230_v9 = vmax.f32 %v5166_v28, 0.0  ;;  %v4970_v28 = vsel %vm2257_vm9, %v11885_v17, %v11884_v46 }
 0x4a8   : > { %v5097_v6 = vsel %vm5086_vm11, %v5032_v24, %v4786_v33  ;;  %v5035_v10 = vsel %vm5021_vm10, %v4970_v28, %v10430_v47  ;;  %v11888_v47 = vld [vmem:[#allocation37_spill] sm:$0xff] }
 0x4a9   : > { %6351 = vst [vmem:[%s10823_s4 + $0x18] sm:$0xff] %v6207_v50   ;;  %v5231_v49 = vmax.f32 %v5167_v26, 0.0  ;;  %v5168_v62 = vadd.f32 %v10774_v2, %v5097_v6  ;;  %v4788_v4 = vpop.permute.xlu1 %4787  ;;  %v11886_v50 = vld [vmem:[#allocation73_spill] sm:$0xff]  ;;  %v11887_v26 = vld [vmem:[#allocation20_spill] sm:$0xff] }
 0x4aa   : > { %v5098_v36 = vsel %vm5086_vm11, %v5033_v13, %v4788_v4  ;;  %v4971_v33 = vsel %vm2257_vm9, %v11887_v26, %v11886_v50  ;;  %v11894_v26 = vld [vmem:[#allocation80_spill] sm:$0xff] }
 0x4ab   : > { %v6212_v38 = vpack.c.bf16 %v5231_v49, %v5230_v9  ;;  %v5169_v45 = vadd.f32 %v10774_v2, %v5098_v36  ;;  %v4790_v53 = vpop.permute.xlu0 %4789  ;;  %v5232_v61 = vmax.f32 %v5168_v62, 0.0  ;;  %v5036_v56 = vsel %vm5021_vm10, %v4971_v33, %v10436_v19  ;;  %v11889_v9 = vld [vmem:[#allocation39_spill] sm:$0xff]  ;;  %v11890_v36 = vld [vmem:[#allocation66_spill] sm:$0xff] }
 0x4ac   : > { %v5099_v11 = vsel %vm5086_vm11, %v5034_v52, %v4790_v53  ;;  %v4972_v49 = vsel %vm2257_vm9, %v11889_v9, %v11888_v47  ;;  %v11891_v52 = vld [vmem:[#allocation17_spill] sm:$0xff]  ;;  %v11895_v33 = vld [vmem:[#allocation71_spill] sm:$0xff]  ;;  %v11897_v9 = vld [vmem:[#allocation24_spill] sm:$0xff] }
 0x4ad   : > { %6352 = vst [vmem:[%s10823_s4 + $0x20] sm:$0xff] %v6212_v38   ;;  %v5233_v8 = vmax.f32 %v5169_v45, 0.0  ;;  %v5170_v24 = vadd.f32 %v10774_v2, %v5099_v11  ;;  %v4792_v35 = vpop.permute.xlu1 %4791  ;;  %v5037_v4 = vsel %vm5021_vm10, %v4972_v49, %v10438_v1  ;;  %v4973_v38 = vsel %vm2257_vm9, %v11891_v52, %v11890_v36  ;;  %v11892_v1 = vld [vmem:[#allocation57_spill] sm:$0xff]  ;;  %v11893_v11 = vld [vmem:[#allocation70_spill] sm:$0xff]  ;;  %v11899_v36 = vld [vmem:[#allocation27_spill] sm:$0xff] }
 0x4ae   : > { %v5100_v32 = vsel %vm5086_vm11, %v5035_v10, %v4792_v35  ;;  %v5038_v53 = vsel %vm5021_vm10, %v4973_v38, %v10444_v16  ;;  %v4974_v10 = vsel %vm2257_vm9, %v11893_v11, %v11892_v1 }
 0x4af   : > { %v6217_v22 = vpack.c.bf16 %v5233_v8, %v5232_v61  ;;  %v5171_v6 = vadd.f32 %v10774_v2, %v5100_v32  ;;  %v4794_v13 = vpop.permute.xlu0 %4793  ;;  %v5234_v59 = vmax.f32 %v5170_v24, 0.0  ;;  %v5039_v8 = vsel %vm5021_vm10, %v4974_v10, %v10446_v5  ;;  %v11896_v5 = vld [vmem:[#allocation56_spill] sm:$0xff] }
 0x4b0   : > { %v5101_v62 = vsel %vm5086_vm11, %v5036_v56, %v4794_v13  ;;  %v4975_v32 = vsel %vm2257_vm9, %v11895_v33, %v11894_v26  ;;  %v4976_v49 = vsel %vm2257_vm9, %v11897_v9, %v11896_v5  ;;  %v11904_v33 = vld [vmem:[#allocation155_spill] sm:$0xff]  ;;  %v11907_v9 = vld [vmem:[#allocation156_spill] sm:$0xff] }
 0x4b1   : > { %6353 = vst [vmem:[%s10823_s4 + $0x28] sm:$0xff] %v6217_v22   ;;  %v5235_v23 = vmax.f32 %v5171_v6, 0.0  ;;  %v5172_v34 = vadd.f32 %v10774_v2, %v5101_v62  ;;  %v4796_v19 = vpop.permute.xlu1 %4795  ;;  %v5040_v22 = vsel %vm5021_vm10, %v4975_v32, %v10452_v57 }
 0x4b2   : > { %v5102_v45 = vsel %vm5086_vm11, %v5037_v4, %v4796_v19  ;;  %v5041_v4 = vsel %vm5021_vm10, %v4976_v49, %v10454_v48  ;;  %v11898_v19 = vld [vmem:[#allocation90_spill] sm:$0xff]  ;;  %v11900_v48 = vld [vmem:[#allocation63_spill] sm:$0xff] }
 0x4b3   : > { %v6222_v46 = vpack.c.bf16 %v5235_v23, %v5234_v59  ;;  %v5173_v17 = vadd.f32 %v10774_v2, %v5102_v45  ;;  %v4798_v28 = vpop.permute.xlu0 %4797  ;;  %v5236_v24 = vmax.f32 %v5172_v34, 0.0  ;;  %v4977_v52 = vsel %vm2257_vm9, %v11899_v36, %v11898_v19 }
 0x4b4   : > { %v5103_v61 = vsel %vm5086_vm11, %v5038_v53, %v4798_v28  ;;  %v5042_v45 = vsel %vm5021_vm10, %v4977_v52, %v10460_v3  ;;  %v11901_v28 = vld [vmem:[#allocation94_spill] sm:$0xff]  ;;  %v11910_v52 = vld [vmem:[#allocation157_spill] sm:$0xff] }
 0x4b5   : > { %6354 = vst [vmem:[%s10823_s4 + $0x30] sm:$0xff] %v6222_v46   ;;  %v5237_v35 = vmax.f32 %v5173_v17, 0.0  ;;  %v5174_v50 = vadd.f32 %v10774_v2, %v5103_v61  ;;  %v4800_v16 = vpop.permute.xlu1 %4799  ;;  %v4978_v1 = vsel %vm2257_vm9, %v11901_v28, %v11900_v48  ;;  %v11912_v48 = vld [vmem:[#allocation93_spill] sm:$0xff] }
 0x4b6   : > { %v5104_v56 = vsel %vm5086_vm11, %v5039_v8, %v4800_v16  ;;  %v5043_v10 = vsel %vm5021_vm10, %v4978_v1, %v10462_v40  ;;  %v11905_v40 = vld [vmem:[#allocation78_spill] sm:$0xff] }
 0x4b7   : > { %v6227_v6 = vpack.c.bf16 %v5237_v35, %v5236_v24  ;;  %v5175_v13 = vadd.f32 %v10774_v2, %v5104_v56  ;;  %v4802_v47 = vpop.permute.xlu0 %4801  ;;  %v5238_v59 = vmax.f32 %v5174_v50, 0.0  ;;  %v11902_v35 = vld [vmem:[#allocation28_spill] sm:$0xff] }
 0x4b8   : > { %v5105_v62 = vsel %vm5086_vm11, %v5040_v22, %v4802_v47  ;;  %v11903_v50 = vld [vmem:[#allocation36_spill] sm:$0xff] }
 0x4b9   : > { %6355 = vst [vmem:[%s10823_s4 + $0x38] sm:$0xff] %v6227_v6   ;;  %v5239_v23 = vmax.f32 %v5175_v13, 0.0  ;;  %v5176_v34 = vadd.f32 %v10774_v2, %v5105_v62  ;;  %v4804_v57 = vpop.permute.xlu1 %4803  ;;  %v4979_v16 = vsel %vm2257_vm9, %v11903_v50, %v11902_v35  ;;  %v11906_v13 = vld [vmem:[#allocation74_spill] sm:$0xff]  ;;  %v11914_v35 = vld [vmem:[#allocation87_spill] sm:$0xff]  ;;  %v11915_v50 = vld [vmem:[#allocation72_spill] sm:$0xff] }
 0x4ba   : > { %v5106_v38 = vsel %vm5086_vm11, %v5041_v4, %v4804_v57  ;;  %v5044_v32 = vsel %vm5021_vm10, %v4979_v16, %v11904_v33  ;;  %v4980_v47 = vsel %vm2257_vm9, %v11906_v13, %v11905_v40  ;;  %v11909_v57 = vld [vmem:[#allocation41_spill] sm:$0xff]  ;;  %v4983_v16 = vsel %vm2257_vm9, %v11915_v50, %v11914_v35  ;;  %v11916_v33 = vld [vmem:[#allocation159_spill] sm:$0xff]  ;;  %v11917_v40 = vld [vmem:[#allocation58_spill] sm:$0xff] }
 0x4bb   : > { %v6232_v53 = vpack.c.bf16 %v5239_v23, %v5238_v59  ;;  %v5177_v46 = vadd.f32 %v10774_v2, %v5106_v38  ;;  %v4806_v17 = vpop.permute.xlu0 %4805  ;;  %v5240_v61 = vmax.f32 %v5176_v34, 0.0  ;;  %v5045_v49 = vsel %vm5021_vm10, %v4980_v47, %v11907_v9  ;;  %v11908_v34 = vld [vmem:[#allocation59_spill] sm:$0xff]  ;;  %v11918_v13 = vld [vmem:[#allocation38_spill] sm:$0xff]  ;;  %v11919_v9 = vld [vmem:[#allocation160_spill] sm:$0xff] }
 0x4bc   : > { %v5107_v11 = vsel %vm5086_vm11, %v5042_v45, %v4806_v17  ;;  %v4981_v19 = vsel %vm2257_vm9, %v11909_v57, %v11908_v34  ;;  %v11911_v17 = vld [vmem:[#allocation85_spill] sm:$0xff]  ;;  %v4984_v47 = vsel %vm2257_vm9, %v11918_v13, %v11917_v40  ;;  %v11920_v34 = vld [vmem:[#allocation82_spill] sm:$0xff]  ;;  %v11927_v13 = vld [vmem:[#allocation112_spill] sm:$0xff] }
 0x4bd   : > { %6356 = vst [vmem:[%s10823_s4 + $0x40] sm:$0xff] %v6232_v53   ;;  %v5241_v8 = vmax.f32 %v5177_v46, 0.0  ;;  %v5178_v24 = vadd.f32 %v10774_v2, %v5107_v11  ;;  %v4808_v3 = vpop.permute.xlu1 %4807  ;;  %v5046_v38 = vsel %vm5021_vm10, %v4981_v19, %v11910_v52  ;;  %v4982_v28 = vsel %vm2257_vm9, %v11912_v48, %v11911_v17  ;;  %v11913_v11 = vld [vmem:[#allocation158_spill] sm:$0xff]  ;;  %v11921_v57 = vld [vmem:[#allocation97_spill] sm:$0xff]  ;;  %v11923_v17 = vld [vmem:[#allocation108_spill] sm:$0xff] }
 0x4be   : > { %v5108_v26 = vsel %vm5086_vm11, %v5043_v10, %v4808_v3  ;;  %v5047_v10 = vsel %vm5021_vm10, %v4982_v28, %v11913_v11  ;;  %v4985_v19 = vsel %vm2257_vm9, %v11921_v57, %v11920_v34  ;;  %v11922_v52 = vld [vmem:[#allocation161_spill] sm:$0xff]  ;;  %v11924_v48 = vld [vmem:[#allocation95_spill] sm:$0xff]  ;;  %v11925_v11 = vld [vmem:[#allocation162_spill] sm:$0xff] }
 0x4bf   : > { %v6237_v56 = vpack.c.bf16 %v5241_v8, %v5240_v61  ;;  %v5179_v22 = vadd.f32 %v10774_v2, %v5108_v26  ;;  %v4810_v6 = vpop.permute.xlu0 %4809  ;;  %v5242_v62 = vmax.f32 %v5178_v24, 0.0  ;;  %v4986_v28 = vsel %vm2257_vm9, %v11924_v48, %v11923_v17 }
 0x4c0   : > { %v5109_v5 = vsel %vm5086_vm11, %v5044_v32, %v4810_v6  ;;  %v5048_v32 = vsel %vm5021_vm10, %v4983_v16, %v11916_v33  ;;  %v11926_v33 = vld [vmem:[#allocation76_spill] sm:$0xff] }
 0x4c1   : > { %6357 = vst [vmem:[%s10823_s4 + $0x48] sm:$0xff] %v6237_v56   ;;  %v5243_v4 = vmax.f32 %v5179_v22, 0.0  ;;  %v5180_v59 = vadd.f32 %v10774_v2, %v5109_v5  ;;  %v4812_v23 = vpop.permute.xlu1 %4811 }
 0x4c2   : > { %v5110_v36 = vsel %vm5086_vm11, %v5045_v49, %v4812_v23  ;;  %v5049_v49 = vsel %vm5021_vm10, %v4984_v47, %v11919_v9 }
 0x4c3   : > { %v6242_v45 = vpack.c.bf16 %v5243_v4, %v5242_v62  ;;  %v5181_v53 = vadd.f32 %v10774_v2, %v5110_v36  ;;  %v4814_v46 = vpop.permute.xlu0 %4813  ;;  %v5244_v61 = vmax.f32 %v5180_v59, 0.0 }
 0x4c4   : > { %v5111_v1 = vsel %vm5086_vm11, %v5046_v38, %v4814_v46  ;;  %v5050_v38 = vsel %vm5021_vm10, %v4985_v19, %v11922_v52  ;;  %v11929_v19 = vld [vmem:[#allocation75_spill] sm:$0xff] }
 0x4c5   : > { %6358 = vst [vmem:[%s10823_s4 + $0x50] sm:$0xff] %v6242_v45   ;;  %v5245_v8 = vmax.f32 %v5181_v53, 0.0  ;;  %v5182_v24 = vadd.f32 %v10774_v2, %v5111_v1  ;;  %v4816_v3 = vpop.permute.xlu1 %4815 }
 0x4c6   : > { %v5112_v26 = vsel %vm5086_vm11, %v5047_v10, %v4816_v3  ;;  %v5051_v10 = vsel %vm5021_vm10, %v4986_v28, %v11925_v11  ;;  %v11931_v11 = vld [vmem:[#allocation110_spill] sm:$0xff] }
 0x4c7   : > { %v6247_v56 = vpack.c.bf16 %v5245_v8, %v5244_v61  ;;  %v5183_v22 = vadd.f32 %v10774_v2, %v5112_v26  ;;  %v4818_v6 = vpop.permute.xlu0 %4817  ;;  %v5246_v62 = vmax.f32 %v5182_v24, 0.0 }
 0x4c8   : > { %v5113_v5 = vsel %vm5086_vm11, %v5048_v32, %v4818_v6 }
 0x4c9   : > { %6359 = vst [vmem:[%s10823_s4 + $0x58] sm:$0xff] %v6247_v56   ;;  %v5247_v4 = vmax.f32 %v5183_v22, 0.0  ;;  %v5184_v59 = vadd.f32 %v10774_v2, %v5113_v5  ;;  %v4820_v23 = vpop.permute.xlu1 %4819 }
 0x4ca   : > { %v5114_v36 = vsel %vm5086_vm11, %v5049_v49, %v4820_v23 }
 0x4cb   : > { %v6252_v45 = vpack.c.bf16 %v5247_v4, %v5246_v62  ;;  %v5185_v53 = vadd.f32 %v10774_v2, %v5114_v36  ;;  %v4822_v46 = vpop.permute.xlu0 %4821  ;;  %v5248_v61 = vmax.f32 %v5184_v59, 0.0  ;;  %v11928_v62 = vld [vmem:[#allocation109_spill] sm:$0xff] }
 0x4cc   : > { %v5115_v1 = vsel %vm5086_vm11, %v5050_v38, %v4822_v46 }
 0x4cd   : > { %6360 = vst [vmem:[%s10823_s4 + $0x60] sm:$0xff] %v6252_v45   ;;  %v5249_v8 = vmax.f32 %v5185_v53, 0.0  ;;  %v5186_v24 = vadd.f32 %v10774_v2, %v5115_v1  ;;  %v4824_v3 = vpop.permute.xlu1 %4823  ;;  %v11930_v53 = vld [vmem:[#allocation118_spill] sm:$0xff] }
 0x4ce   : > { %v5116_v35 = vsel %vm5086_vm11, %v5051_v10, %v4824_v3  ;;  %v11932_v3 = vld [vmem:[#allocation99_spill] sm:$0xff] }
 0x4cf   : > { %v6257_v50 = vpack.c.bf16 %v5249_v8, %v5248_v61  ;;  %v5187_v16 = vadd.f32 %v10774_v2, %v5116_v35  ;;  %v4826_v26 = vpop.permute.xlu0 %4825  ;;  %v5250_v56 = vmax.f32 %v5186_v24, 0.0 }
 0x4d0   : > { %v5117_v32 = vsel %vm5086_vm11, %v11926_v33, %v4826_v26 }
 0x4d1   : > { %6361 = vst [vmem:[%s10823_s4 + $0x68] sm:$0xff] %v6257_v50   ;;  %v5251_v22 = vmax.f32 %v5187_v16, 0.0  ;;  %v5188_v6 = vadd.f32 %v10774_v2, %v5117_v32  ;;  %v4828_v40 = vpop.permute.xlu1 %4827 }
 0x4d2   : > { %v5118_v47 = vsel %vm5086_vm11, %v11927_v13, %v4828_v40 }
 0x4d3   : > { %v6262_v5 = vpack.c.bf16 %v5251_v22, %v5250_v56  ;;  %v5189_v9 = vadd.f32 %v10774_v2, %v5118_v47  ;;  %v4830_v49 = vpop.permute.xlu0 %4829  ;;  %v5252_v59 = vmax.f32 %v5188_v6, 0.0 }
 0x4d4   : > { %v5119_v4 = vsel %vm5086_vm11, %v11928_v62, %v4830_v49 }
 0x4d5   : > { %6362 = vst [vmem:[%s10823_s4 + $0x70] sm:$0xff] %v6262_v5   ;;  %v5253_v23 = vmax.f32 %v5189_v9, 0.0  ;;  %v5190_v34 = vadd.f32 %v10774_v2, %v5119_v4  ;;  %v4832_v57 = vpop.permute.xlu1 %4831 }
 0x4d6   : > { %v5120_v36 = vsel %vm5086_vm11, %v11929_v19, %v4832_v57 }
 0x4d7   : > { %v6267_v52 = vpack.c.bf16 %v5253_v23, %v5252_v59  ;;  %v5191_v38 = vadd.f32 %v10774_v2, %v5120_v36  ;;  %v4834_v45 = vpop.permute.xlu0 %4833  ;;  %v5254_v17 = vmax.f32 %v5190_v34, 0.0  ;;  %v11933_v59 = vld [vmem:[#allocation120_spill] sm:$0xff] }
 0x4d8   : > { %v5121_v46 = vsel %vm5086_vm11, %v11930_v53, %v4834_v45 }
 0x4d9   : > { %6363 = vst [vmem:[%s10823_s4 + $0x78] sm:$0xff] %v6267_v52   ;;  %v5255_v48 = vmax.f32 %v5191_v38, 0.0  ;;  %v5192_v28 = vadd.f32 %v10774_v2, %v5121_v46  ;;  %v4836_v1 = vpop.permute.xlu1 %4835 }
 0x4da   : > { %v5122_v10 = vsel %vm5086_vm11, %v11931_v11, %v4836_v1 }
 0x4db   : > { %v6272_v61 = vpack.c.bf16 %v5255_v48, %v5254_v17  ;;  %v5193_v8 = vadd.f32 %v10774_v2, %v5122_v10  ;;  %v4838_v24 = vpop.permute.xlu0 %4837  ;;  %v5256_v50 = vmax.f32 %v5192_v28, 0.0 }
 0x4dc   : > { %v5123_v35 = vsel %vm5086_vm11, %v11932_v3, %v4838_v24 }
 0x4dd   : > { %6364 = vst [vmem:[%s10823_s4 + $0x80] sm:$0xff] %v6272_v61   ;;  %v5257_v16 = vmax.f32 %v5193_v8, 0.0  ;;  %v5194_v26 = vadd.f32 %v10774_v2, %v5123_v35  ;;  %v4840_v33 = vpop.permute.xlu1 %4839 }
 0x4de   : > { %v5124_v32 = vsel %vm5086_vm11, %v10560_v0, %v4840_v33 }
 0x4df   : > { %v6277_v56 = vpack.c.bf16 %v5257_v16, %v5256_v50  ;;  %v5195_v22 = vadd.f32 %v10774_v2, %v5124_v32  ;;  %v4842_v6 = vpop.permute.xlu0 %4841  ;;  %v5258_v13 = vmax.f32 %v5194_v26, 0.0 }
 0x4e0   : > { %v5125_v40 = vsel %vm5086_vm11, %v10568_v7, %v4842_v6 }
 0x4e1   : > { %6365 = vst [vmem:[%s10823_s4 + $0x88] sm:$0xff] %v6277_v56   ;;  %v5259_v47 = vmax.f32 %v5195_v22, 0.0  ;;  %v5196_v5 = vadd.f32 %v10774_v2, %v5125_v40  ;;  %v4844_v9 = vpop.permute.xlu1 %4843 }
 0x4e2   : > { %v5126_v49 = vsel %vm5086_vm11, %v10576_v42, %v4844_v9 }
 0x4e3   : > { %v6282_v62 = vpack.c.bf16 %v5259_v47, %v5258_v13  ;;  %v5197_v0 = vadd.f32 %v10774_v2, %v5126_v49  ;;  %v4846_v4 = vpop.permute.xlu0 %4845  ;;  %v5260_v34 = vmax.f32 %v5196_v5, 0.0 }
 0x4e4   : > { %v5127_v23 = vsel %vm5086_vm11, %v11933_v59, %v4846_v4 }
 0x4e5   : > { %6366 = vst [vmem:[%s10823_s4 + $0x90] sm:$0xff] %v6282_v62   ;;  %v5261_v7 = vmax.f32 %v5197_v0, 0.0  ;;  %v5198_v57 = vadd.f32 %v10774_v2, %v5127_v23  ;;  %v4848_v19 = vpop.permute.xlu1 %4847 }
 0x4e6   : > { %v5128_v36 = vsel %vm5086_vm11, %v10592_v37, %v4848_v19 }
 0x4e7   : > { %v6287_v52 = vpack.c.bf16 %v5261_v7, %v5260_v34  ;;  %v5199_v42 = vadd.f32 %v10774_v2, %v5128_v36  ;;  %v4850_v38 = vpop.permute.xlu0 %4849  ;;  %v5262_v53 = vmax.f32 %v5198_v57, 0.0 }
 0x4e8   : > { %v5129_v45 = vsel %vm5086_vm11, %v10600_v25, %v4850_v38 }
 0x4e9   : > { %6367 = vst [vmem:[%s10823_s4 + $0x98] sm:$0xff] %v6287_v52   ;;  %v5263_v46 = vmax.f32 %v5199_v42, 0.0  ;;  %v5200_v17 = vadd.f32 %v10774_v2, %v5129_v45  ;;  %v4852_v48 = vpop.permute.xlu1 %4851 }
 0x4ea   : > { %v5130_v28 = vsel %vm5086_vm11, %v10608_v41, %v4852_v48 }
 0x4eb   : > { %v6292_v1 = vpack.c.bf16 %v5263_v46, %v5262_v53  ;;  %v5201_v37 = vadd.f32 %v10774_v2, %v5130_v28  ;;  %v4854_v11 = vpop.permute.xlu0 %4853  ;;  %v5264_v61 = vmax.f32 %v5200_v17, 0.0 }
 0x4ec   : > { %v5131_v10 = vsel %vm5086_vm11, %v10616_v44, %v4854_v11 }
 0x4ed   : > { %6368 = vst [vmem:[%s10823_s4 + $0xa0] sm:$0xff] %v6292_v1   ;;  %v5265_v25 = vmax.f32 %v5201_v37, 0.0  ;;  %v5202_v8 = vadd.f32 %v10774_v2, %v5131_v10  ;;  %v4856_v24 = vpop.permute.xlu1 %4855 }
 0x4ee   : > { %v5132_v3 = vsel %vm5086_vm11, %v10624_v21, %v4856_v24 }
 0x4ef   : > { %v6297_v35 = vpack.c.bf16 %v5265_v25, %v5264_v61  ;;  %v5203_v41 = vadd.f32 %v10774_v2, %v5132_v3  ;;  %v4858_v50 = vpop.permute.xlu0 %4857  ;;  %v5266_v26 = vmax.f32 %v5202_v8, 0.0 }
 0x4f0   : > { %v5133_v16 = vsel %vm5086_vm11, %v10632_v14, %v4858_v50 }
 0x4f1   : > { %6369 = vst [vmem:[%s10823_s4 + $0xa8] sm:$0xff] %v6297_v35   ;;  %v5267_v44 = vmax.f32 %v5203_v41, 0.0  ;;  %v5204_v33 = vadd.f32 %v10774_v2, %v5133_v16  ;;  %v4860_v32 = vpop.permute.xlu1 %4859 }
 0x4f2   : > { %v5134_v56 = vsel %vm5086_vm11, %v10640_v60, %v4860_v32 }
 0x4f3   : > { %v6302_v22 = vpack.c.bf16 %v5267_v44, %v5266_v26  ;;  %v5205_v21 = vadd.f32 %v10774_v2, %v5134_v56  ;;  %v4862_v6 = vpop.permute.xlu0 %4861  ;;  %v5268_v13 = vmax.f32 %v5204_v33, 0.0 }
 0x4f4   : > { %v5135_v40 = vsel %vm5086_vm11, %v10648_v54, %v4862_v6 }
 0x4f5   : > { %6370 = vst [vmem:[%s10823_s4 + $0xb0] sm:$0xff] %v6302_v22   ;;  %v5269_v14 = vmax.f32 %v5205_v21, 0.0  ;;  %v5206_v47 = vadd.f32 %v10774_v2, %v5135_v40  ;;  %v4864_v5 = vpop.permute.xlu1 %4863 }
 0x4f6   : > { %v5136_v9 = vsel %vm5086_vm11, %v10656_v31, %v4864_v5 }
 0x4f7   : > { %v6307_v49 = vpack.c.bf16 %v5269_v14, %v5268_v13  ;;  %v5207_v60 = vadd.f32 %v10774_v2, %v5136_v9  ;;  %v4866_v62 = vpop.permute.xlu0 %4865  ;;  %v5270_v4 = vmax.f32 %v5206_v47, 0.0 }
 0x4f8   : > { %v5137_v0 = vsel %vm5086_vm11, %v10664_v63, %v4866_v62 }
 0x4f9   : > { %6371 = vst [vmem:[%s10823_s4 + $0xb8] sm:$0xff] %v6307_v49   ;;  %v5271_v54 = vmax.f32 %v5207_v60, 0.0  ;;  %v5208_v59 = vadd.f32 %v10774_v2, %v5137_v0  ;;  %v4868_v23 = vpop.permute.xlu1 %4867  ;;  %v11934_v60 = vld [vmem:[#allocation111_spill] sm:$0xff] }
 0x4fa   : > { %v5138_v34 = vsel %vm5086_vm11, %v10672_v51, %v4868_v23 }
 0x4fb   : > { %v6312_v7 = vpack.c.bf16 %v5271_v54, %v5270_v4  ;;  %v5209_v31 = vadd.f32 %v10774_v2, %v5138_v34  ;;  %v4870_v57 = vpop.permute.xlu0 %4869  ;;  %v5272_v36 = vmax.f32 %v5208_v59, 0.0 }
 0x4fc   : > { %v5139_v19 = vsel %vm5086_vm11, %v10680_v20, %v4870_v57 }
 0x4fd   : > { %6372 = vst [vmem:[%s10823_s4 + $0xc0] sm:$0xff] %v6312_v7   ;;  %v5273_v63 = vmax.f32 %v5209_v31, 0.0  ;;  %v5210_v52 = vadd.f32 %v10774_v2, %v5139_v19  ;;  %v4872_v42 = vpop.permute.xlu1 %4871 }
 0x4fe   : > { %v5140_v38 = vsel %vm5086_vm11, %v10688_v39, %v4872_v42 }
 0x4ff   : > { %v6317_v45 = vpack.c.bf16 %v5273_v63, %v5272_v36  ;;  %v5211_v51 = vadd.f32 %v10774_v2, %v5140_v38  ;;  %v4874_v53 = vpop.permute.xlu0 %4873  ;;  %v5274_v17 = vmax.f32 %v5210_v52, 0.0 }
 0x500   : > { %v5141_v46 = vsel %vm5086_vm11, %v10696_v30, %v4874_v53 }
 0x501   : > { %6373 = vst [vmem:[%s10823_s4 + $0xc8] sm:$0xff] %v6317_v45   ;;  %v5275_v20 = vmax.f32 %v5211_v51, 0.0  ;;  %v5212_v48 = vadd.f32 %v10774_v2, %v5141_v46  ;;  %v4876_v28 = vpop.permute.xlu1 %4875 }
 0x502   : > { %v5142_v1 = vsel %vm5086_vm11, %v10704_v58, %v4876_v28 }
 0x503   : > { %v6322_v37 = vpack.c.bf16 %v5275_v20, %v5274_v17  ;;  %v5213_v39 = vadd.f32 %v10774_v2, %v5142_v1  ;;  %v4878_v11 = vpop.permute.xlu0 %4877  ;;  %v5276_v61 = vmax.f32 %v5212_v48, 0.0 }
 0x504   : > { %v5143_v10 = vsel %vm5086_vm11, %v10712_v15, %v4878_v11 }
 0x505   : > { %6374 = vst [vmem:[%s10823_s4 + $0xd0] sm:$0xff] %v6322_v37   ;;  %v5277_v30 = vmax.f32 %v5213_v39, 0.0  ;;  %v5214_v25 = vadd.f32 %v10774_v2, %v5143_v10  ;;  %v4880_v8 = vpop.permute.xlu1 %4879 }
 0x506   : > { %v5144_v24 = vsel %vm5086_vm11, %v10720_v55, %v4880_v8 }
 0x507   : > { %v6327_v3 = vpack.c.bf16 %v5277_v30, %v5276_v61  ;;  %v5215_v58 = vadd.f32 %v10774_v2, %v5144_v24  ;;  %v4882_v35 = vpop.permute.xlu0 %4881  ;;  %v5278_v50 = vmax.f32 %v5214_v25, 0.0 }
 0x508   : > { %v5145_v41 = vsel %vm5086_vm11, %v10728_v12, %v4882_v35 }
 0x509   : > { %6375 = vst [vmem:[%s10823_s4 + $0xd8] sm:$0xff] %v6327_v3   ;;  %v5279_v15 = vmax.f32 %v5215_v58, 0.0  ;;  %v5216_v16 = vadd.f32 %v10774_v2, %v5145_v41  ;;  %v4884_v26 = vpop.permute.xlu1 %4883 }
 0x50a   : > { %v5146_v44 = vsel %vm5086_vm11, %v10736_v27, %v4884_v26 }
 0x50b   : > { %v6332_v33 = vpack.c.bf16 %v5279_v15, %v5278_v50  ;;  %v5217_v55 = vadd.f32 %v10774_v2, %v5146_v44  ;;  %v4886_v32 = vpop.permute.xlu0 %4885  ;;  %v5280_v22 = vmax.f32 %v5216_v16, 0.0 }
 0x50c   : > { %v5147_v56 = vsel %vm5086_vm11, %v10744_v43, %v4886_v32 }
 0x50d   : > { %6376 = vst [vmem:[%s10823_s4 + $0xe0] sm:$0xff] %v6332_v33   ;;  %v5281_v12 = vmax.f32 %v5217_v55, 0.0  ;;  %v5218_v21 = vadd.f32 %v10774_v2, %v5147_v56  ;;  %v4888_v6 = vpop.permute.xlu1 %4887 }
 0x50e   : > { %v5148_v40 = vsel %vm5086_vm11, %v10752_v29, %v4888_v6 }
 0x50f   : > { %v6337_v27 = vpack.c.bf16 %v5281_v12, %v5280_v22  ;;  %v5219_v13 = vadd.f32 %v10774_v2, %v5148_v40  ;;  %v4890_v14 = vpop.permute.xlu0 %4889  ;;  %v5282_v43 = vmax.f32 %v5218_v21, 0.0 }
 0x510   : > { %v5149_v47 = vsel %vm5086_vm11, %v10760_v18, %v4890_v14 }
 0x511   : > { %6377 = vst [vmem:[%s10823_s4 + $0xe8] sm:$0xff] %v6337_v27   ;;  %v5283_v5 = vmax.f32 %v5219_v13, 0.0  ;;  %v5220_v9 = vadd.f32 %v10774_v2, %v5149_v47  ;;  %v4892_v49 = vpop.permute.xlu1 %4891 }
 0x512   : > { %v5150_v62 = vsel %vm5086_vm11, %v11934_v60, %v4892_v49 }
 0x513   : > { %v6342_v29 = vpack.c.bf16 %v5283_v5, %v5282_v43  ;;  %v5221_v0 = vadd.f32 %v10774_v2, %v5150_v62  ;;  %v5284_v4 = vmax.f32 %v5220_v9, 0.0 }
 0x515   : > { %6378 = vst [vmem:[%s10823_s4 + $0xf0] sm:$0xff] %v6342_v29   ;;  %v5285_v18 = vmax.f32 %v5221_v0, 0.0 }
 0x517   : > { %v6347_v54 = vpack.c.bf16 %v5285_v18, %v5284_v4 }
 0x519   : > { %6379 = vst [vmem:[%s10823_s4 + $0xf8] sm:$0xff] %v6347_v54  }
 0x51a   : > { %7115 = shalt.err (!%p7112_p12)
}
 0x51b   : > { %s7116_s22 = scalar_lea.hbm %s11138_s1, 4096  ;;  %s7120_s23 = scalar_lea.hbm %s11194_s3, 32768 }
 0x51c   : > { %p7117_p11 = scmp.ne.s32.totalorder %s11138_s1, %s7116_s22  ;;  %p7121_p4 = scmp.lt.u32.totalorder %s11138_s1, %s11194_s3 }
 0x51d   : > { %p7122_p0 = scmp.lt.u32.totalorder %s7120_s23, %s7116_s22  ;;  %p7124_p1 = scmp.lt.u32.totalorder %s7116_s22, %s11138_s1 }
 0x51e   : > { %p7118_p7 = pnand %p7117_p11, %p11935_p5 }
 0x51f   : > { %p7123_p13 = por %p7122_p0, %p7121_p4 }
 0x520   : > { %p7119_p2 = pneg %p7118_p7 }
 0x521   : > { %p7125_p8 = por %p7124_p1, %p7123_p13 }
 0x523   : > { %p7126_p9 = pnand %p7125_p8, %p7119_p2 }
 0x525   : > { %7129 = shalt.err (!%p7126_p9)
}
 0x526   : > { %s7202_s8 = smov 4  }
 0x527   : > { %6797 = dma.vmem_to_hbm [thread:$0]  (%p11935_p5), %s11140_s25, 4096, %s11138_s1, %s5607_s7, %s7199_s29, %s7199_s29, %s7202_s8  }
 0x528 PF: > { %p6814_p3 = scmp.ge.s32.totalorder %s7188_s17, 2  ;;  %s5638_s11 = sand.u32 1, %s7168_s12  }
 0x529   : > { %p11936_p6 = scmp.ne.s32.totalorder %s11337_s26, 0  ;;  %s5639_s27 = scalar_lea.sflag [#allocation4], %s5638_s11 }
 0x52b   : > { %p6810_p10 = pnand %p6814_p3, %p11936_p6 }
 0x52d   : > { %7163 = dma.done.wait (!%p6810_p10), %s5639_s27, 4096  }
 0x52e   : > { %7165 = vsyncadd (!%p6810_p10), %s5639_s27, 4294963200  ;;  %s22_s17 = sadd.s32 1, %s7188_s17   ;;  %s11937_s24 = sld [smem:[#allocation14_spill]] }
 0x52f   : > { %p19_p12 = scmp.ge.s32.totalorder %s22_s17, 10   ;;  %s11938_s15 = sld [smem:[#allocation12_spill]] }
 0x530   : > { %s11939_s16 = sld [smem:[#allocation13_spill]]  ;;  %s11940_s12 = smov %s7172_s13 }
 0x531   : > { %s11941_s13 = smov %s7176_s14  ;;  %21 = sbr.rel (!%p19_p12) target bundleno = 10 (0xa), region = 105 }
 0x534   : > { %s11942_s14 = smov %s11937_s24 }
 0x538   :  { %5644 = vsyncpa [#allocation3], 1 }
 0x539   :  { %5646 = vsyncpa [#allocation3 + $0x1], 1 }
 0x53a   :  { %5647 = vsyncpa [#allocation6], 1 }
 0x53b   :  { %5649 = vsyncpa [#allocation6 + $0x1], 1 }
 0x53c   :  { %5650 = vsyncpa [#allocation4], 1 }
 0x53d   :  { %5652 = vsyncpa [#allocation4 + $0x1], 1 }

</bundles_post_ra>
